<compile_context>
chip_gen: v7x
topology: tpu7x:2x2x1
jax: 0.10.0
libtpu: 0.0.40
codegen_flags: <defaults>
</compile_context>

<pallas_src>
import functools

import jax
import jax.numpy as jnp
from jax.experimental import pallas as pl
from jax.experimental.pallas import tpu as pltpu

# keep the pure-JAX reference numerically comparable to the f32 Pallas matmuls
jax.config.update("jax_default_matmul_precision", "highest")


# ----------------------------------------------------------------------------
# In-kernel math helpers (traced inside the fused Pallas kernel; all data VMEM)
# ----------------------------------------------------------------------------
def _softmax_last(x):
    x = x - jnp.max(x, axis=-1, keepdims=True)
    e = jnp.exp(x)
    return e / jnp.sum(e, axis=-1, keepdims=True)          # exact divide


def _attn_ctx(q, k, v, num_heads):
    """Multi-head attention context.  q/k/v: (S, Dq) f32 -> (S, Dq) f32."""
    s_len, d_q = q.shape
    dh = d_q // num_heads
    scale = dh ** -0.5
    ctx = []
    for h in range(num_heads):                              # static unroll
        sl = slice(h * dh, (h + 1) * dh)
        sc = jax.lax.dot_general(q[:, sl], k[:, sl], (((1,), (1,)), ((), ())),
                                 preferred_element_type=jnp.float32) * scale
        p = _softmax_last(sc)
        ctx.append(jnp.dot(p, v[:, sl], preferred_element_type=jnp.float32))
    # one lane concat, then ONE full-width output projection in the caller
    return jnp.concatenate(ctx, axis=-1)


def _enhance_pair(xv, xa, w_vin, b_vin, w_ain, b_ain, wo_v, bo_v, wo_a, bo_a,
                  num_heads, d_v, d_a):
    """Bidirectional cross-modal MHA block with residual.

    Projections of both directions are merged per modality:
      xv @ [v.Wq | a.Wkv] -> q for the v-direction, k/v for the a-direction
      xa @ [a.Wq | v.Wkv] -> q for the a-direction, k/v for the v-direction
    """
    pv = jnp.dot(xv, w_vin, preferred_element_type=jnp.float32) + b_vin  # (S, Dv+2Da)
    pa = jnp.dot(xa, w_ain, preferred_element_type=jnp.float32) + b_ain  # (S, Da+2Dv)
    q_v = pv[:, :d_v]
    k_a = pv[:, d_v:d_v + d_a]
    v_a = pv[:, d_v + d_a:]
    q_a = pa[:, :d_a]
    k_v = pa[:, d_a:d_a + d_v]
    v_v = pa[:, d_a + d_v:]
    ctx_v = _attn_ctx(q_v, k_v, v_v, num_heads)
    ctx_a = _attn_ctx(q_a, k_a, v_a, num_heads)
    ov = xv + jnp.dot(ctx_v, wo_v, preferred_element_type=jnp.float32) + bo_v
    oa = xa + jnp.dot(ctx_a, wo_a, preferred_element_type=jnp.float32) + bo_a
    return ov, oa


def _res_ffn(s, w1, b1, w2, b2):
    """Residual 2-layer ReLU FFN on the packed (S, Dv+Da) slab."""
    h = jnp.maximum(jnp.dot(s, w1, preferred_element_type=jnp.float32) + b1, 0.0)
    return jnp.dot(h, w2, preferred_element_type=jnp.float32) + b2 + s


# ----------------------------------------------------------------------------
# Fully fused forward kernel (one kernel = whole network, per batch block)
# ----------------------------------------------------------------------------
def _make_fused_kernel(*, dec, late, early, glb_res, num_heads, d_v, d_a,
                       bt, n_ffn):
    def kernel(*refs):
        out_ref = refs[-1]
        it = iter(refs[:-1])
        x_ref = next(it)
        if dec:
            dec_w, dec_b = next(it), next(it)
        w_vin, b_vin, w_ain, b_ain = next(it), next(it), next(it), next(it)
        w_ov, b_ov, w_oa, b_oa = next(it), next(it), next(it), next(it)
        if n_ffn:
            f_w1, f_b1, f_w2, f_b2 = next(it), next(it), next(it), next(it)

        def enh(xq_v, xq_a, i):
            return _enhance_pair(xq_v, xq_a,
                                 w_vin[i], b_vin[i], w_ain[i], b_ain[i],
                                 w_ov[i], b_ov[i], w_oa[i], b_oa[i],
                                 num_heads, d_v, d_a)

        def ffn(s, i):
            return _res_ffn(s, f_w1[i], f_b1[i], f_w2[i], f_b2[i])

        for bi in range(bt):                        # static batch-block unroll
            x = x_ref[bi].astype(jnp.float32)       # (S, Dv+Da) packed slab
            xv, xa = x[:, :d_v], x[:, d_v:]
            ai = 0
            fi = 0
            if dec:
                xd = jnp.dot(x, dec_w[...],
                             preferred_element_type=jnp.float32) + dec_b[...]
                o_v, o_a = enh(xd[:, :d_v], xd[:, d_v:], ai); ai += 1   # dec attn
                o_v, o_a = enh(o_v, o_a, ai); ai += 1                   # late attn
            else:
                o_v, o_a = enh(xv, xa, ai); ai += 1   # late attn (or early if only)
            if (dec or late) and early:
                e_v, e_a = enh(xv, xa, ai); ai += 1   # early attn on raw inputs
                o = ffn(jnp.concatenate([o_v + e_v, o_a + e_a], axis=-1), fi)
                fi += 1                                # late FFN pair
            else:
                o = jnp.concatenate([o_v, o_a], axis=-1)
            if glb_res:
                o = ffn(o + x, fi); fi += 1            # global-residual FFN pair
            out_ref[bi] = o.astype(out_ref.dtype)

    return kernel


# ----------------------------------------------------------------------------
# Host-side weight packing helpers
# ----------------------------------------------------------------------------
def _block_diag(a, b):
    top = jnp.concatenate([a, jnp.zeros((a.shape[0], b.shape[1]), a.dtype)], axis=1)
    bot = jnp.concatenate([jnp.zeros((b.shape[0], a.shape[1]), b.dtype), b], axis=1)
    return jnp.concatenate([top, bot], axis=0)


def _pack_attn_block(pv, pa):
    """Merge the two attention directions' input projections of one block."""
    w_vin = jnp.concatenate([pv["wq"], pa["wkv"]], axis=1)   # (Dv, Dv+2Da)
    b_vin = jnp.concatenate([pv["bq"], pa["bkv"]], axis=1)
    w_ain = jnp.concatenate([pa["wq"], pv["wkv"]], axis=1)   # (Da, Da+2Dv)
    b_ain = jnp.concatenate([pa["bq"], pv["bkv"]], axis=1)
    return w_vin, b_vin, w_ain, b_ain, pv["wo"], pv["bo"], pa["wo"], pa["bo"]


def _pack_ffn_block(p):
    """Block-diagonal (vision|audio) packing of one LateFFN pair."""
    w1 = _block_diag(p["v_w1"], p["a_w1"])
    b1 = jnp.concatenate([p["v_b1"], p["a_b1"]], axis=1)
    w2 = _block_diag(p["v_w2"], p["a_w2"])
    b2 = jnp.concatenate([p["v_b2"], p["a_b2"]], axis=1)
    return w1, b1, w2, b2


def _batch_block(batch):
    """Largest per-step batch block that still leaves >=2 grid steps (v7x TCs)."""
    for cand in (8, 4, 2):
        if batch % cand == 0 and batch // cand >= 2:
            return cand
    return 1


# ----------------------------------------------------------------------------
# EnhanceNet_v2 forward: a single pallas_call
# ----------------------------------------------------------------------------
def enhance_net_v2_forward(vision, audio, params, cfg):
    dec = cfg["use_decomposition"]
    late = cfg["use_late_enhance"]
    early = cfg["use_early_enhance"]
    glb = cfg["global_residual"]
    num_heads = cfg["num_heads"]

    if dec and not late:
        raise ValueError("use_decomposition=True requires use_late_enhance=True "
                         "(output is undefined in the reference module otherwise)")
    if not (dec or late or early):
        raise ValueError("at least one enhance path must be enabled")

    B, S, Dv = vision.shape
    Da = audio.shape[-1]
    D = Dv + Da

    # attention blocks stacked in execution order
    attn_blocks = []
    if dec:
        attn_blocks.append(params["dec"]["attn"])
        attn_blocks.append(params["late"])
    elif late:
        attn_blocks.append(params["late"])
    else:
        attn_blocks.append(params["early"])
    if (dec or late) and early:
        attn_blocks.append(params["early"])

    packed = [_pack_attn_block(blk["v"], blk["a"]) for blk in attn_blocks]
    w_vin = jnp.stack([p[0] for p in packed])
    b_vin = jnp.stack([p[1] for p in packed])
    w_ain = jnp.stack([p[2] for p in packed])
    b_ain = jnp.stack([p[3] for p in packed])
    w_ov = jnp.stack([p[4] for p in packed])
    b_ov = jnp.stack([p[5] for p in packed])
    w_oa = jnp.stack([p[6] for p in packed])
    b_oa = jnp.stack([p[7] for p in packed])

    # FFN pairs stacked in execution order
    ffn_blocks = []
    if (dec or late) and early:
        ffn_blocks.append(params["late_ffn"])
    if glb:
        ffn_blocks.append(params["glb_ffn"])
    n_ffn = len(ffn_blocks)
    if n_ffn:
        pf = [_pack_ffn_block(p) for p in ffn_blocks]
        f_w1 = jnp.stack([p[0] for p in pf])
        f_b1 = jnp.stack([p[1] for p in pf])
        f_w2 = jnp.stack([p[2] for p in pf])
        f_b2 = jnp.stack([p[3] for p in pf])

    # lane-dense packed activation slab (split back after the kernel)
    x_cat = jnp.concatenate([vision, audio], axis=-1)   # (B, S, Dv+Da)

    bt = _batch_block(B)
    grid = (B // bt,)

    def w_spec(arr):
        zeros = (0,) * arr.ndim
        return pl.BlockSpec(arr.shape, lambda b: zeros)

    act_spec = pl.BlockSpec((bt, S, D), lambda b: (b, 0, 0))

    args = [x_cat]
    in_specs = [act_spec]

    def add_weight(arr):
        args.append(arr)
        in_specs.append(w_spec(arr))

    if dec:
        dec_w = _block_diag(params["dec"]["dec_wv"], params["dec"]["dec_wa"])
        dec_b = jnp.concatenate(
            [params["dec"]["dec_bv"], params["dec"]["dec_ba"]], axis=1)
        add_weight(dec_w)
        add_weight(dec_b)
    for arr in (w_vin, b_vin, w_ain, b_ain, w_ov, b_ov, w_oa, b_oa):
        add_weight(arr)
    if n_ffn:
        for arr in (f_w1, f_b1, f_w2, f_b2):
            add_weight(arr)

    kernel = _make_fused_kernel(dec=dec, late=late, early=early, glb_res=glb,
                                num_heads=num_heads, d_v=Dv, d_a=Da,
                                bt=bt, n_ffn=n_ffn)

    out = pl.pallas_call(
        kernel,
        grid=grid,
        out_shape=jax.ShapeDtypeStruct((B, S, D), vision.dtype),
        in_specs=in_specs,
        out_specs=act_spec,
        compiler_params=pltpu.CompilerParams(dimension_semantics=("parallel",)),
    )(*args)
    return out[..., :Dv], out[..., Dv:]


# ----------------------------------------------------------------------------
# Deterministic parameter initialization (packed QKV layout)
# ----------------------------------------------------------------------------
def _init_mha(key, d_q, d_kv, scale=0.05):
    ks = jax.random.split(key, 6)
    n = lambda k, s: jax.random.normal(k, s, jnp.float32) * scale
    return dict(
        wq=n(ks[0], (d_q, d_q)), bq=n(ks[1], (1, d_q)),
        wkv=n(ks[2], (d_kv, 2 * d_q)), bkv=n(ks[3], (1, 2 * d_q)),
        wo=n(ks[4], (d_q, d_q)), bo=n(ks[5], (1, d_q)),
    )


def _init_blockdiag(key, split_rate, scale=0.05):
    d = sum(split_rate)
    w = jnp.zeros((d, d), jnp.float32)
    ks = jax.random.split(key, len(split_rate))
    off = 0
    for k, r in zip(ks, split_rate):
        blk = jnp.eye(r, dtype=jnp.float32) + jax.random.normal(k, (r, r), jnp.float32) * scale
        w = w.at[off:off + r, off:off + r].set(blk)
        off += r
    return w


def _init_ffn_pair(key, dv, da, hidden, scale=0.05):
    ks = jax.random.split(key, 8)
    n = lambda k, s: jax.random.normal(k, s, jnp.float32) * scale
    return dict(
        v_w1=n(ks[0], (dv, hidden)), v_b1=n(ks[1], (1, hidden)),
        v_w2=n(ks[2], (hidden, dv)), v_b2=n(ks[3], (1, dv)),
        a_w1=n(ks[4], (da, hidden)), a_b1=n(ks[5], (1, hidden)),
        a_w2=n(ks[6], (hidden, da)), a_b2=n(ks[7], (1, da)),
    )


def init_params(key, split_rate, hidden):
    dv, da = sum(split_rate["vision"]), sum(split_rate["audio"])
    ks = jax.random.split(key, 12)
    return {
        "dec": {
            "dec_wv": _init_blockdiag(ks[0], split_rate["vision"]),
            "dec_bv": jax.random.normal(ks[1], (1, dv), jnp.float32) * 0.05,
            "dec_wa": _init_blockdiag(ks[2], split_rate["audio"]),
            "dec_ba": jax.random.normal(ks[3], (1, da), jnp.float32) * 0.05,
            "attn": {"v": _init_mha(ks[4], dv, da), "a": _init_mha(ks[5], da, dv)},
        },
        "late": {"v": _init_mha(ks[6], dv, da), "a": _init_mha(ks[7], da, dv)},
        "early": {"v": _init_mha(ks[8], dv, da), "a": _init_mha(ks[9], da, dv)},
        "late_ffn": _init_ffn_pair(ks[10], dv, da, hidden),
        "glb_ffn": _init_ffn_pair(ks[11], dv, da, hidden),
    }


# ----------------------------------------------------------------------------
# Pure-JAX reference (for correctness check only)
# ----------------------------------------------------------------------------
def _ref_cross_attn(xq, xkv, p, num_heads):
    B, S, d_q = xq.shape
    q = xq @ p["wq"] + p["bq"]
    kv = xkv @ p["wkv"] + p["bkv"]
    k, v = kv[..., :d_q], kv[..., d_q:]
    dh = d_q // num_heads
    qh = q.reshape(B, S, num_heads, dh).transpose(0, 2, 1, 3)
    kh = k.reshape(B, S, num_heads, dh).transpose(0, 2, 1, 3)
    vh = v.reshape(B, S, num_heads, dh).transpose(0, 2, 1, 3)
    s = jnp.einsum("bhqd,bhkd->bhqk", qh, kh) / (dh ** 0.5)
    att = jax.nn.softmax(s, axis=-1)
    ctx = jnp.einsum("bhqk,bhkd->bhqd", att, vh)
    ctx = ctx.transpose(0, 2, 1, 3).reshape(B, S, d_q)
    return xq + ctx @ p["wo"] + p["bo"]


def _ref_res_ffn(s, w1, b1, w2, b2):
    return jnp.maximum(s @ w1 + b1, 0.0) @ w2 + b2 + s


def reference_forward(vision, audio, params, cfg):
    H = cfg["num_heads"]
    dec, late = cfg["use_decomposition"], cfg["use_late_enhance"]
    early, glb = cfg["use_early_enhance"], cfg["global_residual"]
    res_v, res_a = vision, audio

    def ffn_pair(xv, xa, p):
        return (_ref_res_ffn(xv, p["v_w1"], p["v_b1"], p["v_w2"], p["v_b2"]),
                _ref_res_ffn(xa, p["a_w1"], p["a_b1"], p["a_w2"], p["a_b2"]))

    if dec:
        dp = params["dec"]
        v_d = vision @ dp["dec_wv"] + dp["dec_bv"]
        a_d = audio @ dp["dec_wa"] + dp["dec_ba"]
        O_dv = _ref_cross_attn(v_d, a_d, dp["attn"]["v"], H)
        O_da = _ref_cross_attn(a_d, v_d, dp["attn"]["a"], H)
        o_v = _ref_cross_attn(O_dv, O_da, params["late"]["v"], H)
        o_a = _ref_cross_attn(O_da, O_dv, params["late"]["a"], H)
    elif late:
        o_v = _ref_cross_attn(vision, audio, params["late"]["v"], H)
        o_a = _ref_cross_attn(audio, vision, params["late"]["a"], H)
    else:
        o_v = _ref_cross_attn(vision, audio, params["early"]["v"], H)
        o_a = _ref_cross_attn(audio, vision, params["early"]["a"], H)
    if (dec or late) and early:
        e_v = _ref_cross_attn(vision, audio, params["early"]["v"], H)
        e_a = _ref_cross_attn(audio, vision, params["early"]["a"], H)
        o_v, o_a = ffn_pair(o_v + e_v, o_a + e_a, params["late_ffn"])
    if glb:
        o_v, o_a = ffn_pair(o_v + res_v, o_a + res_a, params["glb_ffn"])
    return o_v, o_a


# ----------------------------------------------------------------------------
# Main
# ----------------------------------------------------------------------------
if __name__ == "__main__":
    B, S = 2, 8
    split_rate = {"vision": [16, 16], "audio": [8, 24]}   # Dv = Da = 32
    Dv, Da = sum(split_rate["vision"]), sum(split_rate["audio"])
    cfg = dict(
        use_decomposition=True,
        use_early_enhance=True,
        use_late_enhance=True,
        global_residual=True,
        num_heads=4,
    )

    key = jax.random.PRNGKey(0)
    k_v, k_a, k_p = jax.random.split(key, 3)
    vision = jax.random.normal(k_v, (B, S, Dv), jnp.float32)
    audio = jax.random.normal(k_a, (B, S, Da), jnp.float32)
    params = init_params(k_p, split_rate, hidden=64)

    fwd = jax.jit(functools.partial(enhance_net_v2_forward, params=params, cfg=cfg))
    O_v, O_a = fwd(vision, audio)
    jax.block_until_ready((O_v, O_a))

    assert O_v.shape == (B, S, Dv) and O_a.shape == (B, S, Da)
    assert jnp.all(jnp.isfinite(O_v)) and jnp.all(jnp.isfinite(O_a))

    # correctness vs. pure-JAX reference (exact softmax divide in kernel)
    R_v, R_a = reference_forward(vision, audio, params, cfg)
    err_v = float(jnp.max(jnp.abs(O_v - R_v)))
    err_a = float(jnp.max(jnp.abs(O_a - R_a)))
    assert err_v < 1e-2, err_v
    assert err_a < 1e-2, err_a

    print("KERNEL_OK")
</pallas_src>

<mosaic_0001>
module attributes {stable_mosaic.version = 11 : i64} {
  func.func @kernel(%arg0: i32, %arg1: memref<1x8x64xf32, #tpu.memory_space<vmem>>, %arg2: memref<64x64xf32, #tpu.memory_space<vmem>>, %arg3: memref<1x64xf32, #tpu.memory_space<vmem>>, %arg4: memref<3x32x96xf32, #tpu.memory_space<vmem>>, %arg5: memref<3x1x96xf32, #tpu.memory_space<vmem>>, %arg6: memref<3x32x96xf32, #tpu.memory_space<vmem>>, %arg7: memref<3x1x96xf32, #tpu.memory_space<vmem>>, %arg8: memref<3x32x32xf32, #tpu.memory_space<vmem>>, %arg9: memref<3x1x32xf32, #tpu.memory_space<vmem>>, %arg10: memref<3x32x32xf32, #tpu.memory_space<vmem>>, %arg11: memref<3x1x32xf32, #tpu.memory_space<vmem>>, %arg12: memref<2x64x128xf32, #tpu.memory_space<vmem>>, %arg13: memref<2x1x128xf32, #tpu.memory_space<vmem>>, %arg14: memref<2x128x64xf32, #tpu.memory_space<vmem>>, %arg15: memref<2x1x64xf32, #tpu.memory_space<vmem>>, %arg16: memref<1x8x64xf32, #tpu.memory_space<vmem>>) attributes {dimension_semantics = [#tpu.dimension_semantics<parallel>], iteration_bounds = array<i64: 2>, scalar_prefetch = 0 : i64, scratch_operands = 0 : i64, tpu.core_type = #tpu.core_type<tc>, window_params = [{transform_indices = @transform_0, window_bounds = array<i64: 1, 8, 64>}, {pipeline_mode = #tpu.pipeline_mode<synchronous>, transform_indices = @transform_1, window_bounds = array<i64: 64, 64>}, {pipeline_mode = #tpu.pipeline_mode<synchronous>, transform_indices = @transform_2, window_bounds = array<i64: 1, 64>}, {pipeline_mode = #tpu.pipeline_mode<synchronous>, transform_indices = @transform_3, window_bounds = array<i64: 3, 32, 96>}, {pipeline_mode = #tpu.pipeline_mode<synchronous>, transform_indices = @transform_4, window_bounds = array<i64: 3, 1, 96>}, {pipeline_mode = #tpu.pipeline_mode<synchronous>, transform_indices = @transform_5, window_bounds = array<i64: 3, 32, 96>}, {pipeline_mode = #tpu.pipeline_mode<synchronous>, transform_indices = @transform_6, window_bounds = array<i64: 3, 1, 96>}, {pipeline_mode = #tpu.pipeline_mode<synchronous>, transform_indices = @transform_7, window_bounds = array<i64: 3, 32, 32>}, {pipeline_mode = #tpu.pipeline_mode<synchronous>, transform_indices = @transform_8, window_bounds = array<i64: 3, 1, 32>}, {pipeline_mode = #tpu.pipeline_mode<synchronous>, transform_indices = @transform_9, window_bounds = array<i64: 3, 32, 32>}, {pipeline_mode = #tpu.pipeline_mode<synchronous>, transform_indices = @transform_10, window_bounds = array<i64: 3, 1, 32>}, {pipeline_mode = #tpu.pipeline_mode<synchronous>, transform_indices = @transform_11, window_bounds = array<i64: 2, 64, 128>}, {pipeline_mode = #tpu.pipeline_mode<synchronous>, transform_indices = @transform_12, window_bounds = array<i64: 2, 1, 128>}, {pipeline_mode = #tpu.pipeline_mode<synchronous>, transform_indices = @transform_13, window_bounds = array<i64: 2, 128, 64>}, {pipeline_mode = #tpu.pipeline_mode<synchronous>, transform_indices = @transform_14, window_bounds = array<i64: 2, 1, 64>}, {transform_indices = @transform_15, window_bounds = array<i64: 1, 8, 64>}]} {
    %c0 = arith.constant 0 : index
    %c0_0 = arith.constant 0 : index
    %c0_1 = arith.constant 0 : index
    %0 = vector.load %arg1[%c0, %c0_0, %c0_1] : memref<1x8x64xf32, #tpu.memory_space<vmem>>, vector<1x8x64xf32>
    %1 = vector.shape_cast %0 : vector<1x8x64xf32> to vector<8x64xf32>
    %2 = vector.extract_strided_slice %1 {offsets = [0, 0], sizes = [8, 32], strides = [1, 1]} : vector<8x64xf32> to vector<8x32xf32>
    %3 = vector.extract_strided_slice %1 {offsets = [0, 32], sizes = [8, 32], strides = [1, 1]} : vector<8x64xf32> to vector<8x32xf32>
    %c0_2 = arith.constant 0 : index
    %c0_3 = arith.constant 0 : index
    %4 = vector.load %arg2[%c0_2, %c0_3] : memref<64x64xf32, #tpu.memory_space<vmem>>, vector<64x64xf32>
    %cst = arith.constant dense<0.000000e+00> : vector<8x64xf32>
    %5 = tpu.matmul %1, %4, %cst {dimension_numbers = #tpu.dot_dimension_numbers<[1], [0], [0], [1], [0, 0, 1, 1], [], []>, precision = #tpu.contract_precision<fp32>} : vector<8x64xf32>, vector<64x64xf32>, vector<8x64xf32> -> vector<8x64xf32>
    %c0_4 = arith.constant 0 : index
    %c0_5 = arith.constant 0 : index
    %6 = vector.load %arg3[%c0_4, %c0_5] : memref<1x64xf32, #tpu.memory_space<vmem>>, vector<1x64xf32>
    %7 = vector.broadcast %6 : vector<1x64xf32> to vector<8x64xf32>
    %8 = arith.addf %5, %7 : vector<8x64xf32>
    %9 = vector.extract_strided_slice %8 {offsets = [0, 0], sizes = [8, 32], strides = [1, 1]} : vector<8x64xf32> to vector<8x32xf32>
    %10 = vector.extract_strided_slice %8 {offsets = [0, 32], sizes = [8, 32], strides = [1, 1]} : vector<8x64xf32> to vector<8x32xf32>
    %c0_6 = arith.constant 0 : index
    %c0_7 = arith.constant 0 : index
    %c0_8 = arith.constant 0 : index
    %11 = vector.load %arg4[%c0_6, %c0_7, %c0_8] : memref<3x32x96xf32, #tpu.memory_space<vmem>>, vector<1x32x96xf32>
    %12 = vector.shape_cast %11 : vector<1x32x96xf32> to vector<32x96xf32>
    %c0_9 = arith.constant 0 : index
    %c0_10 = arith.constant 0 : index
    %c0_11 = arith.constant 0 : index
    %13 = vector.load %arg5[%c0_9, %c0_10, %c0_11] : memref<3x1x96xf32, #tpu.memory_space<vmem>>, vector<1x1x96xf32>
    %14 = vector.shape_cast %13 : vector<1x1x96xf32> to vector<1x96xf32>
    %c0_12 = arith.constant 0 : index
    %c0_13 = arith.constant 0 : index
    %c0_14 = arith.constant 0 : index
    %15 = vector.load %arg6[%c0_12, %c0_13, %c0_14] : memref<3x32x96xf32, #tpu.memory_space<vmem>>, vector<1x32x96xf32>
    %16 = vector.shape_cast %15 : vector<1x32x96xf32> to vector<32x96xf32>
    %c0_15 = arith.constant 0 : index
    %c0_16 = arith.constant 0 : index
    %c0_17 = arith.constant 0 : index
    %17 = vector.load %arg7[%c0_15, %c0_16, %c0_17] : memref<3x1x96xf32, #tpu.memory_space<vmem>>, vector<1x1x96xf32>
    %18 = vector.shape_cast %17 : vector<1x1x96xf32> to vector<1x96xf32>
    %c0_18 = arith.constant 0 : index
    %c0_19 = arith.constant 0 : index
    %c0_20 = arith.constant 0 : index
    %19 = vector.load %arg8[%c0_18, %c0_19, %c0_20] : memref<3x32x32xf32, #tpu.memory_space<vmem>>, vector<1x32x32xf32>
    %20 = vector.shape_cast %19 : vector<1x32x32xf32> to vector<32x32xf32>
    %c0_21 = arith.constant 0 : index
    %c0_22 = arith.constant 0 : index
    %c0_23 = arith.constant 0 : index
    %21 = vector.load %arg9[%c0_21, %c0_22, %c0_23] : memref<3x1x32xf32, #tpu.memory_space<vmem>>, vector<1x1x32xf32>
    %22 = vector.shape_cast %21 : vector<1x1x32xf32> to vector<1x32xf32>
    %c0_24 = arith.constant 0 : index
    %c0_25 = arith.constant 0 : index
    %c0_26 = arith.constant 0 : index
    %23 = vector.load %arg10[%c0_24, %c0_25, %c0_26] : memref<3x32x32xf32, #tpu.memory_space<vmem>>, vector<1x32x32xf32>
    %24 = vector.shape_cast %23 : vector<1x32x32xf32> to vector<32x32xf32>
    %c0_27 = arith.constant 0 : index
    %c0_28 = arith.constant 0 : index
    %c0_29 = arith.constant 0 : index
    %25 = vector.load %arg11[%c0_27, %c0_28, %c0_29] : memref<3x1x32xf32, #tpu.memory_space<vmem>>, vector<1x1x32xf32>
    %26 = vector.shape_cast %25 : vector<1x1x32xf32> to vector<1x32xf32>
    %cst_30 = arith.constant dense<0.000000e+00> : vector<8x96xf32>
    %27 = tpu.matmul %9, %12, %cst_30 {dimension_numbers = #tpu.dot_dimension_numbers<[1], [0], [0], [1], [0, 0, 1, 1], [], []>, precision = #tpu.contract_precision<fp32>} : vector<8x32xf32>, vector<32x96xf32>, vector<8x96xf32> -> vector<8x96xf32>
    %28 = vector.broadcast %14 : vector<1x96xf32> to vector<8x96xf32>
    %29 = arith.addf %27, %28 : vector<8x96xf32>
    %cst_31 = arith.constant dense<0.000000e+00> : vector<8x96xf32>
    %30 = tpu.matmul %10, %16, %cst_31 {dimension_numbers = #tpu.dot_dimension_numbers<[1], [0], [0], [1], [0, 0, 1, 1], [], []>, precision = #tpu.contract_precision<fp32>} : vector<8x32xf32>, vector<32x96xf32>, vector<8x96xf32> -> vector<8x96xf32>
    %31 = vector.broadcast %18 : vector<1x96xf32> to vector<8x96xf32>
    %32 = arith.addf %30, %31 : vector<8x96xf32>
    %33 = vector.extract_strided_slice %29 {offsets = [0, 0], sizes = [8, 32], strides = [1, 1]} : vector<8x96xf32> to vector<8x32xf32>
    %34 = vector.extract_strided_slice %29 {offsets = [0, 32], sizes = [8, 32], strides = [1, 1]} : vector<8x96xf32> to vector<8x32xf32>
    %35 = vector.extract_strided_slice %29 {offsets = [0, 64], sizes = [8, 32], strides = [1, 1]} : vector<8x96xf32> to vector<8x32xf32>
    %36 = vector.extract_strided_slice %32 {offsets = [0, 0], sizes = [8, 32], strides = [1, 1]} : vector<8x96xf32> to vector<8x32xf32>
    %37 = vector.extract_strided_slice %32 {offsets = [0, 32], sizes = [8, 32], strides = [1, 1]} : vector<8x96xf32> to vector<8x32xf32>
    %38 = vector.extract_strided_slice %32 {offsets = [0, 64], sizes = [8, 32], strides = [1, 1]} : vector<8x96xf32> to vector<8x32xf32>
    %39 = vector.extract_strided_slice %33 {offsets = [0, 0], sizes = [8, 8], strides = [1, 1]} : vector<8x32xf32> to vector<8x8xf32>
    %40 = vector.extract_strided_slice %37 {offsets = [0, 0], sizes = [8, 8], strides = [1, 1]} : vector<8x32xf32> to vector<8x8xf32>
    %cst_32 = arith.constant dense<0.000000e+00> : vector<8x8xf32>
    %41 = tpu.matmul %39, %40, %cst_32 {dimension_numbers = #tpu.dot_dimension_numbers<[1], [1], [0], [0], [0, 0, 1, 0], [], []>, precision = #tpu.contract_precision<fp32>} : vector<8x8xf32>, vector<8x8xf32>, vector<8x8xf32> -> vector<8x8xf32>
    %cst_33 = arith.constant 0.353553385 : f32
    %42 = vector.broadcast %cst_33 : f32 to vector<8x8xf32>
    %43 = arith.mulf %41, %42 : vector<8x8xf32>
    %cst_34 = arith.constant dense<0xFF800000> : vector<8xf32>
    %44 = vector.multi_reduction <maximumf>, %43, %cst_34 [1] : vector<8x8xf32> to vector<8xf32>
    %45 = vector.shape_cast %44 : vector<8xf32> to vector<8x1xf32>
    %46 = vector.broadcast %45 : vector<8x1xf32> to vector<8x8xf32>
    %47 = arith.subf %43, %46 : vector<8x8xf32>
    %48 = math.exp %47 : vector<8x8xf32>
    %cst_35 = arith.constant dense<0.000000e+00> : vector<8xf32>
    %49 = vector.multi_reduction <add>, %48, %cst_35 [1] : vector<8x8xf32> to vector<8xf32>
    %50 = vector.shape_cast %49 : vector<8xf32> to vector<8x1xf32>
    %51 = vector.broadcast %50 : vector<8x1xf32> to vector<8x8xf32>
    %52 = arith.divf %48, %51 : vector<8x8xf32>
    %53 = vector.extract_strided_slice %38 {offsets = [0, 0], sizes = [8, 8], strides = [1, 1]} : vector<8x32xf32> to vector<8x8xf32>
    %cst_36 = arith.constant dense<0.000000e+00> : vector<8x8xf32>
    %54 = tpu.matmul %52, %53, %cst_36 {dimension_numbers = #tpu.dot_dimension_numbers<[1], [0], [0], [1], [0, 0, 1, 1], [], []>, precision = #tpu.contract_precision<fp32>} : vector<8x8xf32>, vector<8x8xf32>, vector<8x8xf32> -> vector<8x8xf32>
    %55 = vector.extract_strided_slice %33 {offsets = [0, 8], sizes = [8, 8], strides = [1, 1]} : vector<8x32xf32> to vector<8x8xf32>
    %56 = vector.extract_strided_slice %37 {offsets = [0, 8], sizes = [8, 8], strides = [1, 1]} : vector<8x32xf32> to vector<8x8xf32>
    %cst_37 = arith.constant dense<0.000000e+00> : vector<8x8xf32>
    %57 = tpu.matmul %55, %56, %cst_37 {dimension_numbers = #tpu.dot_dimension_numbers<[1], [1], [0], [0], [0, 0, 1, 0], [], []>, precision = #tpu.contract_precision<fp32>} : vector<8x8xf32>, vector<8x8xf32>, vector<8x8xf32> -> vector<8x8xf32>
    %cst_38 = arith.constant 0.353553385 : f32
    %58 = vector.broadcast %cst_38 : f32 to vector<8x8xf32>
    %59 = arith.mulf %57, %58 : vector<8x8xf32>
    %cst_39 = arith.constant dense<0xFF800000> : vector<8xf32>
    %60 = vector.multi_reduction <maximumf>, %59, %cst_39 [1] : vector<8x8xf32> to vector<8xf32>
    %61 = vector.shape_cast %60 : vector<8xf32> to vector<8x1xf32>
    %62 = vector.broadcast %61 : vector<8x1xf32> to vector<8x8xf32>
    %63 = arith.subf %59, %62 : vector<8x8xf32>
    %64 = math.exp %63 : vector<8x8xf32>
    %cst_40 = arith.constant dense<0.000000e+00> : vector<8xf32>
    %65 = vector.multi_reduction <add>, %64, %cst_40 [1] : vector<8x8xf32> to vector<8xf32>
    %66 = vector.shape_cast %65 : vector<8xf32> to vector<8x1xf32>
    %67 = vector.broadcast %66 : vector<8x1xf32> to vector<8x8xf32>
    %68 = arith.divf %64, %67 : vector<8x8xf32>
    %69 = vector.extract_strided_slice %38 {offsets = [0, 8], sizes = [8, 8], strides = [1, 1]} : vector<8x32xf32> to vector<8x8xf32>
    %cst_41 = arith.constant dense<0.000000e+00> : vector<8x8xf32>
    %70 = tpu.matmul %68, %69, %cst_41 {dimension_numbers = #tpu.dot_dimension_numbers<[1], [0], [0], [1], [0, 0, 1, 1], [], []>, precision = #tpu.contract_precision<fp32>} : vector<8x8xf32>, vector<8x8xf32>, vector<8x8xf32> -> vector<8x8xf32>
    %71 = vector.extract_strided_slice %33 {offsets = [0, 16], sizes = [8, 8], strides = [1, 1]} : vector<8x32xf32> to vector<8x8xf32>
    %72 = vector.extract_strided_slice %37 {offsets = [0, 16], sizes = [8, 8], strides = [1, 1]} : vector<8x32xf32> to vector<8x8xf32>
    %cst_42 = arith.constant dense<0.000000e+00> : vector<8x8xf32>
    %73 = tpu.matmul %71, %72, %cst_42 {dimension_numbers = #tpu.dot_dimension_numbers<[1], [1], [0], [0], [0, 0, 1, 0], [], []>, precision = #tpu.contract_precision<fp32>} : vector<8x8xf32>, vector<8x8xf32>, vector<8x8xf32> -> vector<8x8xf32>
    %cst_43 = arith.constant 0.353553385 : f32
    %74 = vector.broadcast %cst_43 : f32 to vector<8x8xf32>
    %75 = arith.mulf %73, %74 : vector<8x8xf32>
    %cst_44 = arith.constant dense<0xFF800000> : vector<8xf32>
    %76 = vector.multi_reduction <maximumf>, %75, %cst_44 [1] : vector<8x8xf32> to vector<8xf32>
    %77 = vector.shape_cast %76 : vector<8xf32> to vector<8x1xf32>
    %78 = vector.broadcast %77 : vector<8x1xf32> to vector<8x8xf32>
    %79 = arith.subf %75, %78 : vector<8x8xf32>
    %80 = math.exp %79 : vector<8x8xf32>
    %cst_45 = arith.constant dense<0.000000e+00> : vector<8xf32>
    %81 = vector.multi_reduction <add>, %80, %cst_45 [1] : vector<8x8xf32> to vector<8xf32>
    %82 = vector.shape_cast %81 : vector<8xf32> to vector<8x1xf32>
    %83 = vector.broadcast %82 : vector<8x1xf32> to vector<8x8xf32>
    %84 = arith.divf %80, %83 : vector<8x8xf32>
    %85 = vector.extract_strided_slice %38 {offsets = [0, 16], sizes = [8, 8], strides = [1, 1]} : vector<8x32xf32> to vector<8x8xf32>
    %cst_46 = arith.constant dense<0.000000e+00> : vector<8x8xf32>
    %86 = tpu.matmul %84, %85, %cst_46 {dimension_numbers = #tpu.dot_dimension_numbers<[1], [0], [0], [1], [0, 0, 1, 1], [], []>, precision = #tpu.contract_precision<fp32>} : vector<8x8xf32>, vector<8x8xf32>, vector<8x8xf32> -> vector<8x8xf32>
    %87 = vector.extract_strided_slice %33 {offsets = [0, 24], sizes = [8, 8], strides = [1, 1]} : vector<8x32xf32> to vector<8x8xf32>
    %88 = vector.extract_strided_slice %37 {offsets = [0, 24], sizes = [8, 8], strides = [1, 1]} : vector<8x32xf32> to vector<8x8xf32>
    %cst_47 = arith.constant dense<0.000000e+00> : vector<8x8xf32>
    %89 = tpu.matmul %87, %88, %cst_47 {dimension_numbers = #tpu.dot_dimension_numbers<[1], [1], [0], [0], [0, 0, 1, 0], [], []>, precision = #tpu.contract_precision<fp32>} : vector<8x8xf32>, vector<8x8xf32>, vector<8x8xf32> -> vector<8x8xf32>
    %cst_48 = arith.constant 0.353553385 : f32
    %90 = vector.broadcast %cst_48 : f32 to vector<8x8xf32>
    %91 = arith.mulf %89, %90 : vector<8x8xf32>
    %cst_49 = arith.constant dense<0xFF800000> : vector<8xf32>
    %92 = vector.multi_reduction <maximumf>, %91, %cst_49 [1] : vector<8x8xf32> to vector<8xf32>
    %93 = vector.shape_cast %92 : vector<8xf32> to vector<8x1xf32>
    %94 = vector.broadcast %93 : vector<8x1xf32> to vector<8x8xf32>
    %95 = arith.subf %91, %94 : vector<8x8xf32>
    %96 = math.exp %95 : vector<8x8xf32>
    %cst_50 = arith.constant dense<0.000000e+00> : vector<8xf32>
    %97 = vector.multi_reduction <add>, %96, %cst_50 [1] : vector<8x8xf32> to vector<8xf32>
    %98 = vector.shape_cast %97 : vector<8xf32> to vector<8x1xf32>
    %99 = vector.broadcast %98 : vector<8x1xf32> to vector<8x8xf32>
    %100 = arith.divf %96, %99 : vector<8x8xf32>
    %101 = vector.extract_strided_slice %38 {offsets = [0, 24], sizes = [8, 8], strides = [1, 1]} : vector<8x32xf32> to vector<8x8xf32>
    %cst_51 = arith.constant dense<0.000000e+00> : vector<8x8xf32>
    %102 = tpu.matmul %100, %101, %cst_51 {dimension_numbers = #tpu.dot_dimension_numbers<[1], [0], [0], [1], [0, 0, 1, 1], [], []>, precision = #tpu.contract_precision<fp32>} : vector<8x8xf32>, vector<8x8xf32>, vector<8x8xf32> -> vector<8x8xf32>
    %103 = tpu.concatenate %54, %70, %86, %102 in 1 : vector<8x8xf32>, vector<8x8xf32>, vector<8x8xf32>, vector<8x8xf32> -> vector<8x32xf32>
    %104 = vector.extract_strided_slice %36 {offsets = [0, 0], sizes = [8, 8], strides = [1, 1]} : vector<8x32xf32> to vector<8x8xf32>
    %105 = vector.extract_strided_slice %34 {offsets = [0, 0], sizes = [8, 8], strides = [1, 1]} : vector<8x32xf32> to vector<8x8xf32>
    %cst_52 = arith.constant dense<0.000000e+00> : vector<8x8xf32>
    %106 = tpu.matmul %104, %105, %cst_52 {dimension_numbers = #tpu.dot_dimension_numbers<[1], [1], [0], [0], [0, 0, 1, 0], [], []>, precision = #tpu.contract_precision<fp32>} : vector<8x8xf32>, vector<8x8xf32>, vector<8x8xf32> -> vector<8x8xf32>
    %cst_53 = arith.constant 0.353553385 : f32
    %107 = vector.broadcast %cst_53 : f32 to vector<8x8xf32>
    %108 = arith.mulf %106, %107 : vector<8x8xf32>
    %cst_54 = arith.constant dense<0xFF800000> : vector<8xf32>
    %109 = vector.multi_reduction <maximumf>, %108, %cst_54 [1] : vector<8x8xf32> to vector<8xf32>
    %110 = vector.shape_cast %109 : vector<8xf32> to vector<8x1xf32>
    %111 = vector.broadcast %110 : vector<8x1xf32> to vector<8x8xf32>
    %112 = arith.subf %108, %111 : vector<8x8xf32>
    %113 = math.exp %112 : vector<8x8xf32>
    %cst_55 = arith.constant dense<0.000000e+00> : vector<8xf32>
    %114 = vector.multi_reduction <add>, %113, %cst_55 [1] : vector<8x8xf32> to vector<8xf32>
    %115 = vector.shape_cast %114 : vector<8xf32> to vector<8x1xf32>
    %116 = vector.broadcast %115 : vector<8x1xf32> to vector<8x8xf32>
    %117 = arith.divf %113, %116 : vector<8x8xf32>
    %118 = vector.extract_strided_slice %35 {offsets = [0, 0], sizes = [8, 8], strides = [1, 1]} : vector<8x32xf32> to vector<8x8xf32>
    %cst_56 = arith.constant dense<0.000000e+00> : vector<8x8xf32>
    %119 = tpu.matmul %117, %118, %cst_56 {dimension_numbers = #tpu.dot_dimension_numbers<[1], [0], [0], [1], [0, 0, 1, 1], [], []>, precision = #tpu.contract_precision<fp32>} : vector<8x8xf32>, vector<8x8xf32>, vector<8x8xf32> -> vector<8x8xf32>
    %120 = vector.extract_strided_slice %36 {offsets = [0, 8], sizes = [8, 8], strides = [1, 1]} : vector<8x32xf32> to vector<8x8xf32>
    %121 = vector.extract_strided_slice %34 {offsets = [0, 8], sizes = [8, 8], strides = [1, 1]} : vector<8x32xf32> to vector<8x8xf32>
    %cst_57 = arith.constant dense<0.000000e+00> : vector<8x8xf32>
    %122 = tpu.matmul %120, %121, %cst_57 {dimension_numbers = #tpu.dot_dimension_numbers<[1], [1], [0], [0], [0, 0, 1, 0], [], []>, precision = #tpu.contract_precision<fp32>} : vector<8x8xf32>, vector<8x8xf32>, vector<8x8xf32> -> vector<8x8xf32>
    %cst_58 = arith.constant 0.353553385 : f32
    %123 = vector.broadcast %cst_58 : f32 to vector<8x8xf32>
    %124 = arith.mulf %122, %123 : vector<8x8xf32>
    %cst_59 = arith.constant dense<0xFF800000> : vector<8xf32>
    %125 = vector.multi_reduction <maximumf>, %124, %cst_59 [1] : vector<8x8xf32> to vector<8xf32>
    %126 = vector.shape_cast %125 : vector<8xf32> to vector<8x1xf32>
    %127 = vector.broadcast %126 : vector<8x1xf32> to vector<8x8xf32>
    %128 = arith.subf %124, %127 : vector<8x8xf32>
    %129 = math.exp %128 : vector<8x8xf32>
    %cst_60 = arith.constant dense<0.000000e+00> : vector<8xf32>
    %130 = vector.multi_reduction <add>, %129, %cst_60 [1] : vector<8x8xf32> to vector<8xf32>
    %131 = vector.shape_cast %130 : vector<8xf32> to vector<8x1xf32>
    %132 = vector.broadcast %131 : vector<8x1xf32> to vector<8x8xf32>
    %133 = arith.divf %129, %132 : vector<8x8xf32>
    %134 = vector.extract_strided_slice %35 {offsets = [0, 8], sizes = [8, 8], strides = [1, 1]} : vector<8x32xf32> to vector<8x8xf32>
    %cst_61 = arith.constant dense<0.000000e+00> : vector<8x8xf32>
    %135 = tpu.matmul %133, %134, %cst_61 {dimension_numbers = #tpu.dot_dimension_numbers<[1], [0], [0], [1], [0, 0, 1, 1], [], []>, precision = #tpu.contract_precision<fp32>} : vector<8x8xf32>, vector<8x8xf32>, vector<8x8xf32> -> vector<8x8xf32>
    %136 = vector.extract_strided_slice %36 {offsets = [0, 16], sizes = [8, 8], strides = [1, 1]} : vector<8x32xf32> to vector<8x8xf32>
    %137 = vector.extract_strided_slice %34 {offsets = [0, 16], sizes = [8, 8], strides = [1, 1]} : vector<8x32xf32> to vector<8x8xf32>
    %cst_62 = arith.constant dense<0.000000e+00> : vector<8x8xf32>
    %138 = tpu.matmul %136, %137, %cst_62 {dimension_numbers = #tpu.dot_dimension_numbers<[1], [1], [0], [0], [0, 0, 1, 0], [], []>, precision = #tpu.contract_precision<fp32>} : vector<8x8xf32>, vector<8x8xf32>, vector<8x8xf32> -> vector<8x8xf32>
    %cst_63 = arith.constant 0.353553385 : f32
    %139 = vector.broadcast %cst_63 : f32 to vector<8x8xf32>
    %140 = arith.mulf %138, %139 : vector<8x8xf32>
    %cst_64 = arith.constant dense<0xFF800000> : vector<8xf32>
    %141 = vector.multi_reduction <maximumf>, %140, %cst_64 [1] : vector<8x8xf32> to vector<8xf32>
    %142 = vector.shape_cast %141 : vector<8xf32> to vector<8x1xf32>
    %143 = vector.broadcast %142 : vector<8x1xf32> to vector<8x8xf32>
    %144 = arith.subf %140, %143 : vector<8x8xf32>
    %145 = math.exp %144 : vector<8x8xf32>
    %cst_65 = arith.constant dense<0.000000e+00> : vector<8xf32>
    %146 = vector.multi_reduction <add>, %145, %cst_65 [1] : vector<8x8xf32> to vector<8xf32>
    %147 = vector.shape_cast %146 : vector<8xf32> to vector<8x1xf32>
    %148 = vector.broadcast %147 : vector<8x1xf32> to vector<8x8xf32>
    %149 = arith.divf %145, %148 : vector<8x8xf32>
    %150 = vector.extract_strided_slice %35 {offsets = [0, 16], sizes = [8, 8], strides = [1, 1]} : vector<8x32xf32> to vector<8x8xf32>
    %cst_66 = arith.constant dense<0.000000e+00> : vector<8x8xf32>
    %151 = tpu.matmul %149, %150, %cst_66 {dimension_numbers = #tpu.dot_dimension_numbers<[1], [0], [0], [1], [0, 0, 1, 1], [], []>, precision = #tpu.contract_precision<fp32>} : vector<8x8xf32>, vector<8x8xf32>, vector<8x8xf32> -> vector<8x8xf32>
    %152 = vector.extract_strided_slice %36 {offsets = [0, 24], sizes = [8, 8], strides = [1, 1]} : vector<8x32xf32> to vector<8x8xf32>
    %153 = vector.extract_strided_slice %34 {offsets = [0, 24], sizes = [8, 8], strides = [1, 1]} : vector<8x32xf32> to vector<8x8xf32>
    %cst_67 = arith.constant dense<0.000000e+00> : vector<8x8xf32>
    %154 = tpu.matmul %152, %153, %cst_67 {dimension_numbers = #tpu.dot_dimension_numbers<[1], [1], [0], [0], [0, 0, 1, 0], [], []>, precision = #tpu.contract_precision<fp32>} : vector<8x8xf32>, vector<8x8xf32>, vector<8x8xf32> -> vector<8x8xf32>
    %cst_68 = arith.constant 0.353553385 : f32
    %155 = vector.broadcast %cst_68 : f32 to vector<8x8xf32>
    %156 = arith.mulf %154, %155 : vector<8x8xf32>
    %cst_69 = arith.constant dense<0xFF800000> : vector<8xf32>
    %157 = vector.multi_reduction <maximumf>, %156, %cst_69 [1] : vector<8x8xf32> to vector<8xf32>
    %158 = vector.shape_cast %157 : vector<8xf32> to vector<8x1xf32>
    %159 = vector.broadcast %158 : vector<8x1xf32> to vector<8x8xf32>
    %160 = arith.subf %156, %159 : vector<8x8xf32>
    %161 = math.exp %160 : vector<8x8xf32>
    %cst_70 = arith.constant dense<0.000000e+00> : vector<8xf32>
    %162 = vector.multi_reduction <add>, %161, %cst_70 [1] : vector<8x8xf32> to vector<8xf32>
    %163 = vector.shape_cast %162 : vector<8xf32> to vector<8x1xf32>
    %164 = vector.broadcast %163 : vector<8x1xf32> to vector<8x8xf32>
    %165 = arith.divf %161, %164 : vector<8x8xf32>
    %166 = vector.extract_strided_slice %35 {offsets = [0, 24], sizes = [8, 8], strides = [1, 1]} : vector<8x32xf32> to vector<8x8xf32>
    %cst_71 = arith.constant dense<0.000000e+00> : vector<8x8xf32>
    %167 = tpu.matmul %165, %166, %cst_71 {dimension_numbers = #tpu.dot_dimension_numbers<[1], [0], [0], [1], [0, 0, 1, 1], [], []>, precision = #tpu.contract_precision<fp32>} : vector<8x8xf32>, vector<8x8xf32>, vector<8x8xf32> -> vector<8x8xf32>
    %168 = tpu.concatenate %119, %135, %151, %167 in 1 : vector<8x8xf32>, vector<8x8xf32>, vector<8x8xf32>, vector<8x8xf32> -> vector<8x32xf32>
    %cst_72 = arith.constant dense<0.000000e+00> : vector<8x32xf32>
    %169 = tpu.matmul %103, %20, %cst_72 {dimension_numbers = #tpu.dot_dimension_numbers<[1], [0], [0], [1], [0, 0, 1, 1], [], []>, precision = #tpu.contract_precision<fp32>} : vector<8x32xf32>, vector<32x32xf32>, vector<8x32xf32> -> vector<8x32xf32>
    %170 = arith.addf %9, %169 : vector<8x32xf32>
    %171 = vector.broadcast %22 : vector<1x32xf32> to vector<8x32xf32>
    %172 = arith.addf %170, %171 : vector<8x32xf32>
    %cst_73 = arith.constant dense<0.000000e+00> : vector<8x32xf32>
    %173 = tpu.matmul %168, %24, %cst_73 {dimension_numbers = #tpu.dot_dimension_numbers<[1], [0], [0], [1], [0, 0, 1, 1], [], []>, precision = #tpu.contract_precision<fp32>} : vector<8x32xf32>, vector<32x32xf32>, vector<8x32xf32> -> vector<8x32xf32>
    %174 = arith.addf %10, %173 : vector<8x32xf32>
    %175 = vector.broadcast %26 : vector<1x32xf32> to vector<8x32xf32>
    %176 = arith.addf %174, %175 : vector<8x32xf32>
    %c1 = arith.constant 1 : index
    %c0_74 = arith.constant 0 : index
    %c0_75 = arith.constant 0 : index
    %177 = vector.load %arg4[%c1, %c0_74, %c0_75] : memref<3x32x96xf32, #tpu.memory_space<vmem>>, vector<1x32x96xf32>
    %178 = vector.shape_cast %177 : vector<1x32x96xf32> to vector<32x96xf32>
    %c1_76 = arith.constant 1 : index
    %c0_77 = arith.constant 0 : index
    %c0_78 = arith.constant 0 : index
    %179 = vector.load %arg5[%c1_76, %c0_77, %c0_78] : memref<3x1x96xf32, #tpu.memory_space<vmem>>, vector<1x1x96xf32>
    %180 = vector.shape_cast %179 : vector<1x1x96xf32> to vector<1x96xf32>
    %c1_79 = arith.constant 1 : index
    %c0_80 = arith.constant 0 : index
    %c0_81 = arith.constant 0 : index
    %181 = vector.load %arg6[%c1_79, %c0_80, %c0_81] : memref<3x32x96xf32, #tpu.memory_space<vmem>>, vector<1x32x96xf32>
    %182 = vector.shape_cast %181 : vector<1x32x96xf32> to vector<32x96xf32>
    %c1_82 = arith.constant 1 : index
    %c0_83 = arith.constant 0 : index
    %c0_84 = arith.constant 0 : index
    %183 = vector.load %arg7[%c1_82, %c0_83, %c0_84] : memref<3x1x96xf32, #tpu.memory_space<vmem>>, vector<1x1x96xf32>
    %184 = vector.shape_cast %183 : vector<1x1x96xf32> to vector<1x96xf32>
    %c1_85 = arith.constant 1 : index
    %c0_86 = arith.constant 0 : index
    %c0_87 = arith.constant 0 : index
    %185 = vector.load %arg8[%c1_85, %c0_86, %c0_87] : memref<3x32x32xf32, #tpu.memory_space<vmem>>, vector<1x32x32xf32>
    %186 = vector.shape_cast %185 : vector<1x32x32xf32> to vector<32x32xf32>
    %c1_88 = arith.constant 1 : index
    %c0_89 = arith.constant 0 : index
    %c0_90 = arith.constant 0 : index
    %187 = vector.load %arg9[%c1_88, %c0_89, %c0_90] : memref<3x1x32xf32, #tpu.memory_space<vmem>>, vector<1x1x32xf32>
    %188 = vector.shape_cast %187 : vector<1x1x32xf32> to vector<1x32xf32>
    %c1_91 = arith.constant 1 : index
    %c0_92 = arith.constant 0 : index
    %c0_93 = arith.constant 0 : index
    %189 = vector.load %arg10[%c1_91, %c0_92, %c0_93] : memref<3x32x32xf32, #tpu.memory_space<vmem>>, vector<1x32x32xf32>
    %190 = vector.shape_cast %189 : vector<1x32x32xf32> to vector<32x32xf32>
    %c1_94 = arith.constant 1 : index
    %c0_95 = arith.constant 0 : index
    %c0_96 = arith.constant 0 : index
    %191 = vector.load %arg11[%c1_94, %c0_95, %c0_96] : memref<3x1x32xf32, #tpu.memory_space<vmem>>, vector<1x1x32xf32>
    %192 = vector.shape_cast %191 : vector<1x1x32xf32> to vector<1x32xf32>
    %cst_97 = arith.constant dense<0.000000e+00> : vector<8x96xf32>
    %193 = tpu.matmul %172, %178, %cst_97 {dimension_numbers = #tpu.dot_dimension_numbers<[1], [0], [0], [1], [0, 0, 1, 1], [], []>, precision = #tpu.contract_precision<fp32>} : vector<8x32xf32>, vector<32x96xf32>, vector<8x96xf32> -> vector<8x96xf32>
    %194 = vector.broadcast %180 : vector<1x96xf32> to vector<8x96xf32>
    %195 = arith.addf %193, %194 : vector<8x96xf32>
    %cst_98 = arith.constant dense<0.000000e+00> : vector<8x96xf32>
    %196 = tpu.matmul %176, %182, %cst_98 {dimension_numbers = #tpu.dot_dimension_numbers<[1], [0], [0], [1], [0, 0, 1, 1], [], []>, precision = #tpu.contract_precision<fp32>} : vector<8x32xf32>, vector<32x96xf32>, vector<8x96xf32> -> vector<8x96xf32>
    %197 = vector.broadcast %184 : vector<1x96xf32> to vector<8x96xf32>
    %198 = arith.addf %196, %197 : vector<8x96xf32>
    %199 = vector.extract_strided_slice %195 {offsets = [0, 0], sizes = [8, 32], strides = [1, 1]} : vector<8x96xf32> to vector<8x32xf32>
    %200 = vector.extract_strided_slice %195 {offsets = [0, 32], sizes = [8, 32], strides = [1, 1]} : vector<8x96xf32> to vector<8x32xf32>
    %201 = vector.extract_strided_slice %195 {offsets = [0, 64], sizes = [8, 32], strides = [1, 1]} : vector<8x96xf32> to vector<8x32xf32>
    %202 = vector.extract_strided_slice %198 {offsets = [0, 0], sizes = [8, 32], strides = [1, 1]} : vector<8x96xf32> to vector<8x32xf32>
    %203 = vector.extract_strided_slice %198 {offsets = [0, 32], sizes = [8, 32], strides = [1, 1]} : vector<8x96xf32> to vector<8x32xf32>
    %204 = vector.extract_strided_slice %198 {offsets = [0, 64], sizes = [8, 32], strides = [1, 1]} : vector<8x96xf32> to vector<8x32xf32>
    %205 = vector.extract_strided_slice %199 {offsets = [0, 0], sizes = [8, 8], strides = [1, 1]} : vector<8x32xf32> to vector<8x8xf32>
    %206 = vector.extract_strided_slice %203 {offsets = [0, 0], sizes = [8, 8], strides = [1, 1]} : vector<8x32xf32> to vector<8x8xf32>
    %cst_99 = arith.constant dense<0.000000e+00> : vector<8x8xf32>
    %207 = tpu.matmul %205, %206, %cst_99 {dimension_numbers = #tpu.dot_dimension_numbers<[1], [1], [0], [0], [0, 0, 1, 0], [], []>, precision = #tpu.contract_precision<fp32>} : vector<8x8xf32>, vector<8x8xf32>, vector<8x8xf32> -> vector<8x8xf32>
    %cst_100 = arith.constant 0.353553385 : f32
    %208 = vector.broadcast %cst_100 : f32 to vector<8x8xf32>
    %209 = arith.mulf %207, %208 : vector<8x8xf32>
    %cst_101 = arith.constant dense<0xFF800000> : vector<8xf32>
    %210 = vector.multi_reduction <maximumf>, %209, %cst_101 [1] : vector<8x8xf32> to vector<8xf32>
    %211 = vector.shape_cast %210 : vector<8xf32> to vector<8x1xf32>
    %212 = vector.broadcast %211 : vector<8x1xf32> to vector<8x8xf32>
    %213 = arith.subf %209, %212 : vector<8x8xf32>
    %214 = math.exp %213 : vector<8x8xf32>
    %cst_102 = arith.constant dense<0.000000e+00> : vector<8xf32>
    %215 = vector.multi_reduction <add>, %214, %cst_102 [1] : vector<8x8xf32> to vector<8xf32>
    %216 = vector.shape_cast %215 : vector<8xf32> to vector<8x1xf32>
    %217 = vector.broadcast %216 : vector<8x1xf32> to vector<8x8xf32>
    %218 = arith.divf %214, %217 : vector<8x8xf32>
    %219 = vector.extract_strided_slice %204 {offsets = [0, 0], sizes = [8, 8], strides = [1, 1]} : vector<8x32xf32> to vector<8x8xf32>
    %cst_103 = arith.constant dense<0.000000e+00> : vector<8x8xf32>
    %220 = tpu.matmul %218, %219, %cst_103 {dimension_numbers = #tpu.dot_dimension_numbers<[1], [0], [0], [1], [0, 0, 1, 1], [], []>, precision = #tpu.contract_precision<fp32>} : vector<8x8xf32>, vector<8x8xf32>, vector<8x8xf32> -> vector<8x8xf32>
    %221 = vector.extract_strided_slice %199 {offsets = [0, 8], sizes = [8, 8], strides = [1, 1]} : vector<8x32xf32> to vector<8x8xf32>
    %222 = vector.extract_strided_slice %203 {offsets = [0, 8], sizes = [8, 8], strides = [1, 1]} : vector<8x32xf32> to vector<8x8xf32>
    %cst_104 = arith.constant dense<0.000000e+00> : vector<8x8xf32>
    %223 = tpu.matmul %221, %222, %cst_104 {dimension_numbers = #tpu.dot_dimension_numbers<[1], [1], [0], [0], [0, 0, 1, 0], [], []>, precision = #tpu.contract_precision<fp32>} : vector<8x8xf32>, vector<8x8xf32>, vector<8x8xf32> -> vector<8x8xf32>
    %cst_105 = arith.constant 0.353553385 : f32
    %224 = vector.broadcast %cst_105 : f32 to vector<8x8xf32>
    %225 = arith.mulf %223, %224 : vector<8x8xf32>
    %cst_106 = arith.constant dense<0xFF800000> : vector<8xf32>
    %226 = vector.multi_reduction <maximumf>, %225, %cst_106 [1] : vector<8x8xf32> to vector<8xf32>
    %227 = vector.shape_cast %226 : vector<8xf32> to vector<8x1xf32>
    %228 = vector.broadcast %227 : vector<8x1xf32> to vector<8x8xf32>
    %229 = arith.subf %225, %228 : vector<8x8xf32>
    %230 = math.exp %229 : vector<8x8xf32>
    %cst_107 = arith.constant dense<0.000000e+00> : vector<8xf32>
    %231 = vector.multi_reduction <add>, %230, %cst_107 [1] : vector<8x8xf32> to vector<8xf32>
    %232 = vector.shape_cast %231 : vector<8xf32> to vector<8x1xf32>
    %233 = vector.broadcast %232 : vector<8x1xf32> to vector<8x8xf32>
    %234 = arith.divf %230, %233 : vector<8x8xf32>
    %235 = vector.extract_strided_slice %204 {offsets = [0, 8], sizes = [8, 8], strides = [1, 1]} : vector<8x32xf32> to vector<8x8xf32>
    %cst_108 = arith.constant dense<0.000000e+00> : vector<8x8xf32>
    %236 = tpu.matmul %234, %235, %cst_108 {dimension_numbers = #tpu.dot_dimension_numbers<[1], [0], [0], [1], [0, 0, 1, 1], [], []>, precision = #tpu.contract_precision<fp32>} : vector<8x8xf32>, vector<8x8xf32>, vector<8x8xf32> -> vector<8x8xf32>
    %237 = vector.extract_strided_slice %199 {offsets = [0, 16], sizes = [8, 8], strides = [1, 1]} : vector<8x32xf32> to vector<8x8xf32>
    %238 = vector.extract_strided_slice %203 {offsets = [0, 16], sizes = [8, 8], strides = [1, 1]} : vector<8x32xf32> to vector<8x8xf32>
    %cst_109 = arith.constant dense<0.000000e+00> : vector<8x8xf32>
    %239 = tpu.matmul %237, %238, %cst_109 {dimension_numbers = #tpu.dot_dimension_numbers<[1], [1], [0], [0], [0, 0, 1, 0], [], []>, precision = #tpu.contract_precision<fp32>} : vector<8x8xf32>, vector<8x8xf32>, vector<8x8xf32> -> vector<8x8xf32>
    %cst_110 = arith.constant 0.353553385 : f32
    %240 = vector.broadcast %cst_110 : f32 to vector<8x8xf32>
    %241 = arith.mulf %239, %240 : vector<8x8xf32>
    %cst_111 = arith.constant dense<0xFF800000> : vector<8xf32>
    %242 = vector.multi_reduction <maximumf>, %241, %cst_111 [1] : vector<8x8xf32> to vector<8xf32>
    %243 = vector.shape_cast %242 : vector<8xf32> to vector<8x1xf32>
    %244 = vector.broadcast %243 : vector<8x1xf32> to vector<8x8xf32>
    %245 = arith.subf %241, %244 : vector<8x8xf32>
    %246 = math.exp %245 : vector<8x8xf32>
    %cst_112 = arith.constant dense<0.000000e+00> : vector<8xf32>
    %247 = vector.multi_reduction <add>, %246, %cst_112 [1] : vector<8x8xf32> to vector<8xf32>
    %248 = vector.shape_cast %247 : vector<8xf32> to vector<8x1xf32>
    %249 = vector.broadcast %248 : vector<8x1xf32> to vector<8x8xf32>
    %250 = arith.divf %246, %249 : vector<8x8xf32>
    %251 = vector.extract_strided_slice %204 {offsets = [0, 16], sizes = [8, 8], strides = [1, 1]} : vector<8x32xf32> to vector<8x8xf32>
    %cst_113 = arith.constant dense<0.000000e+00> : vector<8x8xf32>
    %252 = tpu.matmul %250, %251, %cst_113 {dimension_numbers = #tpu.dot_dimension_numbers<[1], [0], [0], [1], [0, 0, 1, 1], [], []>, precision = #tpu.contract_precision<fp32>} : vector<8x8xf32>, vector<8x8xf32>, vector<8x8xf32> -> vector<8x8xf32>
    %253 = vector.extract_strided_slice %199 {offsets = [0, 24], sizes = [8, 8], strides = [1, 1]} : vector<8x32xf32> to vector<8x8xf32>
    %254 = vector.extract_strided_slice %203 {offsets = [0, 24], sizes = [8, 8], strides = [1, 1]} : vector<8x32xf32> to vector<8x8xf32>
    %cst_114 = arith.constant dense<0.000000e+00> : vector<8x8xf32>
    %255 = tpu.matmul %253, %254, %cst_114 {dimension_numbers = #tpu.dot_dimension_numbers<[1], [1], [0], [0], [0, 0, 1, 0], [], []>, precision = #tpu.contract_precision<fp32>} : vector<8x8xf32>, vector<8x8xf32>, vector<8x8xf32> -> vector<8x8xf32>
    %cst_115 = arith.constant 0.353553385 : f32
    %256 = vector.broadcast %cst_115 : f32 to vector<8x8xf32>
    %257 = arith.mulf %255, %256 : vector<8x8xf32>
    %cst_116 = arith.constant dense<0xFF800000> : vector<8xf32>
    %258 = vector.multi_reduction <maximumf>, %257, %cst_116 [1] : vector<8x8xf32> to vector<8xf32>
    %259 = vector.shape_cast %258 : vector<8xf32> to vector<8x1xf32>
    %260 = vector.broadcast %259 : vector<8x1xf32> to vector<8x8xf32>
    %261 = arith.subf %257, %260 : vector<8x8xf32>
    %262 = math.exp %261 : vector<8x8xf32>
    %cst_117 = arith.constant dense<0.000000e+00> : vector<8xf32>
    %263 = vector.multi_reduction <add>, %262, %cst_117 [1] : vector<8x8xf32> to vector<8xf32>
    %264 = vector.shape_cast %263 : vector<8xf32> to vector<8x1xf32>
    %265 = vector.broadcast %264 : vector<8x1xf32> to vector<8x8xf32>
    %266 = arith.divf %262, %265 : vector<8x8xf32>
    %267 = vector.extract_strided_slice %204 {offsets = [0, 24], sizes = [8, 8], strides = [1, 1]} : vector<8x32xf32> to vector<8x8xf32>
    %cst_118 = arith.constant dense<0.000000e+00> : vector<8x8xf32>
    %268 = tpu.matmul %266, %267, %cst_118 {dimension_numbers = #tpu.dot_dimension_numbers<[1], [0], [0], [1], [0, 0, 1, 1], [], []>, precision = #tpu.contract_precision<fp32>} : vector<8x8xf32>, vector<8x8xf32>, vector<8x8xf32> -> vector<8x8xf32>
    %269 = tpu.concatenate %220, %236, %252, %268 in 1 : vector<8x8xf32>, vector<8x8xf32>, vector<8x8xf32>, vector<8x8xf32> -> vector<8x32xf32>
    %270 = vector.extract_strided_slice %202 {offsets = [0, 0], sizes = [8, 8], strides = [1, 1]} : vector<8x32xf32> to vector<8x8xf32>
    %271 = vector.extract_strided_slice %200 {offsets = [0, 0], sizes = [8, 8], strides = [1, 1]} : vector<8x32xf32> to vector<8x8xf32>
    %cst_119 = arith.constant dense<0.000000e+00> : vector<8x8xf32>
    %272 = tpu.matmul %270, %271, %cst_119 {dimension_numbers = #tpu.dot_dimension_numbers<[1], [1], [0], [0], [0, 0, 1, 0], [], []>, precision = #tpu.contract_precision<fp32>} : vector<8x8xf32>, vector<8x8xf32>, vector<8x8xf32> -> vector<8x8xf32>
    %cst_120 = arith.constant 0.353553385 : f32
    %273 = vector.broadcast %cst_120 : f32 to vector<8x8xf32>
    %274 = arith.mulf %272, %273 : vector<8x8xf32>
    %cst_121 = arith.constant dense<0xFF800000> : vector<8xf32>
    %275 = vector.multi_reduction <maximumf>, %274, %cst_121 [1] : vector<8x8xf32> to vector<8xf32>
    %276 = vector.shape_cast %275 : vector<8xf32> to vector<8x1xf32>
    %277 = vector.broadcast %276 : vector<8x1xf32> to vector<8x8xf32>
    %278 = arith.subf %274, %277 : vector<8x8xf32>
    %279 = math.exp %278 : vector<8x8xf32>
    %cst_122 = arith.constant dense<0.000000e+00> : vector<8xf32>
    %280 = vector.multi_reduction <add>, %279, %cst_122 [1] : vector<8x8xf32> to vector<8xf32>
    %281 = vector.shape_cast %280 : vector<8xf32> to vector<8x1xf32>
    %282 = vector.broadcast %281 : vector<8x1xf32> to vector<8x8xf32>
    %283 = arith.divf %279, %282 : vector<8x8xf32>
    %284 = vector.extract_strided_slice %201 {offsets = [0, 0], sizes = [8, 8], strides = [1, 1]} : vector<8x32xf32> to vector<8x8xf32>
    %cst_123 = arith.constant dense<0.000000e+00> : vector<8x8xf32>
    %285 = tpu.matmul %283, %284, %cst_123 {dimension_numbers = #tpu.dot_dimension_numbers<[1], [0], [0], [1], [0, 0, 1, 1], [], []>, precision = #tpu.contract_precision<fp32>} : vector<8x8xf32>, vector<8x8xf32>, vector<8x8xf32> -> vector<8x8xf32>
    %286 = vector.extract_strided_slice %202 {offsets = [0, 8], sizes = [8, 8], strides = [1, 1]} : vector<8x32xf32> to vector<8x8xf32>
    %287 = vector.extract_strided_slice %200 {offsets = [0, 8], sizes = [8, 8], strides = [1, 1]} : vector<8x32xf32> to vector<8x8xf32>
    %cst_124 = arith.constant dense<0.000000e+00> : vector<8x8xf32>
    %288 = tpu.matmul %286, %287, %cst_124 {dimension_numbers = #tpu.dot_dimension_numbers<[1], [1], [0], [0], [0, 0, 1, 0], [], []>, precision = #tpu.contract_precision<fp32>} : vector<8x8xf32>, vector<8x8xf32>, vector<8x8xf32> -> vector<8x8xf32>
    %cst_125 = arith.constant 0.353553385 : f32
    %289 = vector.broadcast %cst_125 : f32 to vector<8x8xf32>
    %290 = arith.mulf %288, %289 : vector<8x8xf32>
    %cst_126 = arith.constant dense<0xFF800000> : vector<8xf32>
    %291 = vector.multi_reduction <maximumf>, %290, %cst_126 [1] : vector<8x8xf32> to vector<8xf32>
    %292 = vector.shape_cast %291 : vector<8xf32> to vector<8x1xf32>
    %293 = vector.broadcast %292 : vector<8x1xf32> to vector<8x8xf32>
    %294 = arith.subf %290, %293 : vector<8x8xf32>
    %295 = math.exp %294 : vector<8x8xf32>
    %cst_127 = arith.constant dense<0.000000e+00> : vector<8xf32>
    %296 = vector.multi_reduction <add>, %295, %cst_127 [1] : vector<8x8xf32> to vector<8xf32>
    %297 = vector.shape_cast %296 : vector<8xf32> to vector<8x1xf32>
    %298 = vector.broadcast %297 : vector<8x1xf32> to vector<8x8xf32>
    %299 = arith.divf %295, %298 : vector<8x8xf32>
    %300 = vector.extract_strided_slice %201 {offsets = [0, 8], sizes = [8, 8], strides = [1, 1]} : vector<8x32xf32> to vector<8x8xf32>
    %cst_128 = arith.constant dense<0.000000e+00> : vector<8x8xf32>
    %301 = tpu.matmul %299, %300, %cst_128 {dimension_numbers = #tpu.dot_dimension_numbers<[1], [0], [0], [1], [0, 0, 1, 1], [], []>, precision = #tpu.contract_precision<fp32>} : vector<8x8xf32>, vector<8x8xf32>, vector<8x8xf32> -> vector<8x8xf32>
    %302 = vector.extract_strided_slice %202 {offsets = [0, 16], sizes = [8, 8], strides = [1, 1]} : vector<8x32xf32> to vector<8x8xf32>
    %303 = vector.extract_strided_slice %200 {offsets = [0, 16], sizes = [8, 8], strides = [1, 1]} : vector<8x32xf32> to vector<8x8xf32>
    %cst_129 = arith.constant dense<0.000000e+00> : vector<8x8xf32>
    %304 = tpu.matmul %302, %303, %cst_129 {dimension_numbers = #tpu.dot_dimension_numbers<[1], [1], [0], [0], [0, 0, 1, 0], [], []>, precision = #tpu.contract_precision<fp32>} : vector<8x8xf32>, vector<8x8xf32>, vector<8x8xf32> -> vector<8x8xf32>
    %cst_130 = arith.constant 0.353553385 : f32
    %305 = vector.broadcast %cst_130 : f32 to vector<8x8xf32>
    %306 = arith.mulf %304, %305 : vector<8x8xf32>
    %cst_131 = arith.constant dense<0xFF800000> : vector<8xf32>
    %307 = vector.multi_reduction <maximumf>, %306, %cst_131 [1] : vector<8x8xf32> to vector<8xf32>
    %308 = vector.shape_cast %307 : vector<8xf32> to vector<8x1xf32>
    %309 = vector.broadcast %308 : vector<8x1xf32> to vector<8x8xf32>
    %310 = arith.subf %306, %309 : vector<8x8xf32>
    %311 = math.exp %310 : vector<8x8xf32>
    %cst_132 = arith.constant dense<0.000000e+00> : vector<8xf32>
    %312 = vector.multi_reduction <add>, %311, %cst_132 [1] : vector<8x8xf32> to vector<8xf32>
    %313 = vector.shape_cast %312 : vector<8xf32> to vector<8x1xf32>
    %314 = vector.broadcast %313 : vector<8x1xf32> to vector<8x8xf32>
    %315 = arith.divf %311, %314 : vector<8x8xf32>
    %316 = vector.extract_strided_slice %201 {offsets = [0, 16], sizes = [8, 8], strides = [1, 1]} : vector<8x32xf32> to vector<8x8xf32>
    %cst_133 = arith.constant dense<0.000000e+00> : vector<8x8xf32>
    %317 = tpu.matmul %315, %316, %cst_133 {dimension_numbers = #tpu.dot_dimension_numbers<[1], [0], [0], [1], [0, 0, 1, 1], [], []>, precision = #tpu.contract_precision<fp32>} : vector<8x8xf32>, vector<8x8xf32>, vector<8x8xf32> -> vector<8x8xf32>
    %318 = vector.extract_strided_slice %202 {offsets = [0, 24], sizes = [8, 8], strides = [1, 1]} : vector<8x32xf32> to vector<8x8xf32>
    %319 = vector.extract_strided_slice %200 {offsets = [0, 24], sizes = [8, 8], strides = [1, 1]} : vector<8x32xf32> to vector<8x8xf32>
    %cst_134 = arith.constant dense<0.000000e+00> : vector<8x8xf32>
    %320 = tpu.matmul %318, %319, %cst_134 {dimension_numbers = #tpu.dot_dimension_numbers<[1], [1], [0], [0], [0, 0, 1, 0], [], []>, precision = #tpu.contract_precision<fp32>} : vector<8x8xf32>, vector<8x8xf32>, vector<8x8xf32> -> vector<8x8xf32>
    %cst_135 = arith.constant 0.353553385 : f32
    %321 = vector.broadcast %cst_135 : f32 to vector<8x8xf32>
    %322 = arith.mulf %320, %321 : vector<8x8xf32>
    %cst_136 = arith.constant dense<0xFF800000> : vector<8xf32>
    %323 = vector.multi_reduction <maximumf>, %322, %cst_136 [1] : vector<8x8xf32> to vector<8xf32>
    %324 = vector.shape_cast %323 : vector<8xf32> to vector<8x1xf32>
    %325 = vector.broadcast %324 : vector<8x1xf32> to vector<8x8xf32>
    %326 = arith.subf %322, %325 : vector<8x8xf32>
    %327 = math.exp %326 : vector<8x8xf32>
    %cst_137 = arith.constant dense<0.000000e+00> : vector<8xf32>
    %328 = vector.multi_reduction <add>, %327, %cst_137 [1] : vector<8x8xf32> to vector<8xf32>
    %329 = vector.shape_cast %328 : vector<8xf32> to vector<8x1xf32>
    %330 = vector.broadcast %329 : vector<8x1xf32> to vector<8x8xf32>
    %331 = arith.divf %327, %330 : vector<8x8xf32>
    %332 = vector.extract_strided_slice %201 {offsets = [0, 24], sizes = [8, 8], strides = [1, 1]} : vector<8x32xf32> to vector<8x8xf32>
    %cst_138 = arith.constant dense<0.000000e+00> : vector<8x8xf32>
    %333 = tpu.matmul %331, %332, %cst_138 {dimension_numbers = #tpu.dot_dimension_numbers<[1], [0], [0], [1], [0, 0, 1, 1], [], []>, precision = #tpu.contract_precision<fp32>} : vector<8x8xf32>, vector<8x8xf32>, vector<8x8xf32> -> vector<8x8xf32>
    %334 = tpu.concatenate %285, %301, %317, %333 in 1 : vector<8x8xf32>, vector<8x8xf32>, vector<8x8xf32>, vector<8x8xf32> -> vector<8x32xf32>
    %cst_139 = arith.constant dense<0.000000e+00> : vector<8x32xf32>
    %335 = tpu.matmul %269, %186, %cst_139 {dimension_numbers = #tpu.dot_dimension_numbers<[1], [0], [0], [1], [0, 0, 1, 1], [], []>, precision = #tpu.contract_precision<fp32>} : vector<8x32xf32>, vector<32x32xf32>, vector<8x32xf32> -> vector<8x32xf32>
    %336 = arith.addf %172, %335 : vector<8x32xf32>
    %337 = vector.broadcast %188 : vector<1x32xf32> to vector<8x32xf32>
    %338 = arith.addf %336, %337 : vector<8x32xf32>
    %cst_140 = arith.constant dense<0.000000e+00> : vector<8x32xf32>
    %339 = tpu.matmul %334, %190, %cst_140 {dimension_numbers = #tpu.dot_dimension_numbers<[1], [0], [0], [1], [0, 0, 1, 1], [], []>, precision = #tpu.contract_precision<fp32>} : vector<8x32xf32>, vector<32x32xf32>, vector<8x32xf32> -> vector<8x32xf32>
    %340 = arith.addf %176, %339 : vector<8x32xf32>
    %341 = vector.broadcast %192 : vector<1x32xf32> to vector<8x32xf32>
    %342 = arith.addf %340, %341 : vector<8x32xf32>
    %c2 = arith.constant 2 : index
    %c0_141 = arith.constant 0 : index
    %c0_142 = arith.constant 0 : index
    %343 = vector.load %arg4[%c2, %c0_141, %c0_142] : memref<3x32x96xf32, #tpu.memory_space<vmem>>, vector<1x32x96xf32>
    %344 = vector.shape_cast %343 : vector<1x32x96xf32> to vector<32x96xf32>
    %c2_143 = arith.constant 2 : index
    %c0_144 = arith.constant 0 : index
    %c0_145 = arith.constant 0 : index
    %345 = vector.load %arg5[%c2_143, %c0_144, %c0_145] : memref<3x1x96xf32, #tpu.memory_space<vmem>>, vector<1x1x96xf32>
    %346 = vector.shape_cast %345 : vector<1x1x96xf32> to vector<1x96xf32>
    %c2_146 = arith.constant 2 : index
    %c0_147 = arith.constant 0 : index
    %c0_148 = arith.constant 0 : index
    %347 = vector.load %arg6[%c2_146, %c0_147, %c0_148] : memref<3x32x96xf32, #tpu.memory_space<vmem>>, vector<1x32x96xf32>
    %348 = vector.shape_cast %347 : vector<1x32x96xf32> to vector<32x96xf32>
    %c2_149 = arith.constant 2 : index
    %c0_150 = arith.constant 0 : index
    %c0_151 = arith.constant 0 : index
    %349 = vector.load %arg7[%c2_149, %c0_150, %c0_151] : memref<3x1x96xf32, #tpu.memory_space<vmem>>, vector<1x1x96xf32>
    %350 = vector.shape_cast %349 : vector<1x1x96xf32> to vector<1x96xf32>
    %c2_152 = arith.constant 2 : index
    %c0_153 = arith.constant 0 : index
    %c0_154 = arith.constant 0 : index
    %351 = vector.load %arg8[%c2_152, %c0_153, %c0_154] : memref<3x32x32xf32, #tpu.memory_space<vmem>>, vector<1x32x32xf32>
    %352 = vector.shape_cast %351 : vector<1x32x32xf32> to vector<32x32xf32>
    %c2_155 = arith.constant 2 : index
    %c0_156 = arith.constant 0 : index
    %c0_157 = arith.constant 0 : index
    %353 = vector.load %arg9[%c2_155, %c0_156, %c0_157] : memref<3x1x32xf32, #tpu.memory_space<vmem>>, vector<1x1x32xf32>
    %354 = vector.shape_cast %353 : vector<1x1x32xf32> to vector<1x32xf32>
    %c2_158 = arith.constant 2 : index
    %c0_159 = arith.constant 0 : index
    %c0_160 = arith.constant 0 : index
    %355 = vector.load %arg10[%c2_158, %c0_159, %c0_160] : memref<3x32x32xf32, #tpu.memory_space<vmem>>, vector<1x32x32xf32>
    %356 = vector.shape_cast %355 : vector<1x32x32xf32> to vector<32x32xf32>
    %c2_161 = arith.constant 2 : index
    %c0_162 = arith.constant 0 : index
    %c0_163 = arith.constant 0 : index
    %357 = vector.load %arg11[%c2_161, %c0_162, %c0_163] : memref<3x1x32xf32, #tpu.memory_space<vmem>>, vector<1x1x32xf32>
    %358 = vector.shape_cast %357 : vector<1x1x32xf32> to vector<1x32xf32>
    %cst_164 = arith.constant dense<0.000000e+00> : vector<8x96xf32>
    %359 = tpu.matmul %2, %344, %cst_164 {dimension_numbers = #tpu.dot_dimension_numbers<[1], [0], [0], [1], [0, 0, 1, 1], [], []>, precision = #tpu.contract_precision<fp32>} : vector<8x32xf32>, vector<32x96xf32>, vector<8x96xf32> -> vector<8x96xf32>
    %360 = vector.broadcast %346 : vector<1x96xf32> to vector<8x96xf32>
    %361 = arith.addf %359, %360 : vector<8x96xf32>
    %cst_165 = arith.constant dense<0.000000e+00> : vector<8x96xf32>
    %362 = tpu.matmul %3, %348, %cst_165 {dimension_numbers = #tpu.dot_dimension_numbers<[1], [0], [0], [1], [0, 0, 1, 1], [], []>, precision = #tpu.contract_precision<fp32>} : vector<8x32xf32>, vector<32x96xf32>, vector<8x96xf32> -> vector<8x96xf32>
    %363 = vector.broadcast %350 : vector<1x96xf32> to vector<8x96xf32>
    %364 = arith.addf %362, %363 : vector<8x96xf32>
    %365 = vector.extract_strided_slice %361 {offsets = [0, 0], sizes = [8, 32], strides = [1, 1]} : vector<8x96xf32> to vector<8x32xf32>
    %366 = vector.extract_strided_slice %361 {offsets = [0, 32], sizes = [8, 32], strides = [1, 1]} : vector<8x96xf32> to vector<8x32xf32>
    %367 = vector.extract_strided_slice %361 {offsets = [0, 64], sizes = [8, 32], strides = [1, 1]} : vector<8x96xf32> to vector<8x32xf32>
    %368 = vector.extract_strided_slice %364 {offsets = [0, 0], sizes = [8, 32], strides = [1, 1]} : vector<8x96xf32> to vector<8x32xf32>
    %369 = vector.extract_strided_slice %364 {offsets = [0, 32], sizes = [8, 32], strides = [1, 1]} : vector<8x96xf32> to vector<8x32xf32>
    %370 = vector.extract_strided_slice %364 {offsets = [0, 64], sizes = [8, 32], strides = [1, 1]} : vector<8x96xf32> to vector<8x32xf32>
    %371 = vector.extract_strided_slice %365 {offsets = [0, 0], sizes = [8, 8], strides = [1, 1]} : vector<8x32xf32> to vector<8x8xf32>
    %372 = vector.extract_strided_slice %369 {offsets = [0, 0], sizes = [8, 8], strides = [1, 1]} : vector<8x32xf32> to vector<8x8xf32>
    %cst_166 = arith.constant dense<0.000000e+00> : vector<8x8xf32>
    %373 = tpu.matmul %371, %372, %cst_166 {dimension_numbers = #tpu.dot_dimension_numbers<[1], [1], [0], [0], [0, 0, 1, 0], [], []>, precision = #tpu.contract_precision<fp32>} : vector<8x8xf32>, vector<8x8xf32>, vector<8x8xf32> -> vector<8x8xf32>
    %cst_167 = arith.constant 0.353553385 : f32
    %374 = vector.broadcast %cst_167 : f32 to vector<8x8xf32>
    %375 = arith.mulf %373, %374 : vector<8x8xf32>
    %cst_168 = arith.constant dense<0xFF800000> : vector<8xf32>
    %376 = vector.multi_reduction <maximumf>, %375, %cst_168 [1] : vector<8x8xf32> to vector<8xf32>
    %377 = vector.shape_cast %376 : vector<8xf32> to vector<8x1xf32>
    %378 = vector.broadcast %377 : vector<8x1xf32> to vector<8x8xf32>
    %379 = arith.subf %375, %378 : vector<8x8xf32>
    %380 = math.exp %379 : vector<8x8xf32>
    %cst_169 = arith.constant dense<0.000000e+00> : vector<8xf32>
    %381 = vector.multi_reduction <add>, %380, %cst_169 [1] : vector<8x8xf32> to vector<8xf32>
    %382 = vector.shape_cast %381 : vector<8xf32> to vector<8x1xf32>
    %383 = vector.broadcast %382 : vector<8x1xf32> to vector<8x8xf32>
    %384 = arith.divf %380, %383 : vector<8x8xf32>
    %385 = vector.extract_strided_slice %370 {offsets = [0, 0], sizes = [8, 8], strides = [1, 1]} : vector<8x32xf32> to vector<8x8xf32>
    %cst_170 = arith.constant dense<0.000000e+00> : vector<8x8xf32>
    %386 = tpu.matmul %384, %385, %cst_170 {dimension_numbers = #tpu.dot_dimension_numbers<[1], [0], [0], [1], [0, 0, 1, 1], [], []>, precision = #tpu.contract_precision<fp32>} : vector<8x8xf32>, vector<8x8xf32>, vector<8x8xf32> -> vector<8x8xf32>
    %387 = vector.extract_strided_slice %365 {offsets = [0, 8], sizes = [8, 8], strides = [1, 1]} : vector<8x32xf32> to vector<8x8xf32>
    %388 = vector.extract_strided_slice %369 {offsets = [0, 8], sizes = [8, 8], strides = [1, 1]} : vector<8x32xf32> to vector<8x8xf32>
    %cst_171 = arith.constant dense<0.000000e+00> : vector<8x8xf32>
    %389 = tpu.matmul %387, %388, %cst_171 {dimension_numbers = #tpu.dot_dimension_numbers<[1], [1], [0], [0], [0, 0, 1, 0], [], []>, precision = #tpu.contract_precision<fp32>} : vector<8x8xf32>, vector<8x8xf32>, vector<8x8xf32> -> vector<8x8xf32>
    %cst_172 = arith.constant 0.353553385 : f32
    %390 = vector.broadcast %cst_172 : f32 to vector<8x8xf32>
    %391 = arith.mulf %389, %390 : vector<8x8xf32>
    %cst_173 = arith.constant dense<0xFF800000> : vector<8xf32>
    %392 = vector.multi_reduction <maximumf>, %391, %cst_173 [1] : vector<8x8xf32> to vector<8xf32>
    %393 = vector.shape_cast %392 : vector<8xf32> to vector<8x1xf32>
    %394 = vector.broadcast %393 : vector<8x1xf32> to vector<8x8xf32>
    %395 = arith.subf %391, %394 : vector<8x8xf32>
    %396 = math.exp %395 : vector<8x8xf32>
    %cst_174 = arith.constant dense<0.000000e+00> : vector<8xf32>
    %397 = vector.multi_reduction <add>, %396, %cst_174 [1] : vector<8x8xf32> to vector<8xf32>
    %398 = vector.shape_cast %397 : vector<8xf32> to vector<8x1xf32>
    %399 = vector.broadcast %398 : vector<8x1xf32> to vector<8x8xf32>
    %400 = arith.divf %396, %399 : vector<8x8xf32>
    %401 = vector.extract_strided_slice %370 {offsets = [0, 8], sizes = [8, 8], strides = [1, 1]} : vector<8x32xf32> to vector<8x8xf32>
    %cst_175 = arith.constant dense<0.000000e+00> : vector<8x8xf32>
    %402 = tpu.matmul %400, %401, %cst_175 {dimension_numbers = #tpu.dot_dimension_numbers<[1], [0], [0], [1], [0, 0, 1, 1], [], []>, precision = #tpu.contract_precision<fp32>} : vector<8x8xf32>, vector<8x8xf32>, vector<8x8xf32> -> vector<8x8xf32>
    %403 = vector.extract_strided_slice %365 {offsets = [0, 16], sizes = [8, 8], strides = [1, 1]} : vector<8x32xf32> to vector<8x8xf32>
    %404 = vector.extract_strided_slice %369 {offsets = [0, 16], sizes = [8, 8], strides = [1, 1]} : vector<8x32xf32> to vector<8x8xf32>
    %cst_176 = arith.constant dense<0.000000e+00> : vector<8x8xf32>
    %405 = tpu.matmul %403, %404, %cst_176 {dimension_numbers = #tpu.dot_dimension_numbers<[1], [1], [0], [0], [0, 0, 1, 0], [], []>, precision = #tpu.contract_precision<fp32>} : vector<8x8xf32>, vector<8x8xf32>, vector<8x8xf32> -> vector<8x8xf32>
    %cst_177 = arith.constant 0.353553385 : f32
    %406 = vector.broadcast %cst_177 : f32 to vector<8x8xf32>
    %407 = arith.mulf %405, %406 : vector<8x8xf32>
    %cst_178 = arith.constant dense<0xFF800000> : vector<8xf32>
    %408 = vector.multi_reduction <maximumf>, %407, %cst_178 [1] : vector<8x8xf32> to vector<8xf32>
    %409 = vector.shape_cast %408 : vector<8xf32> to vector<8x1xf32>
    %410 = vector.broadcast %409 : vector<8x1xf32> to vector<8x8xf32>
    %411 = arith.subf %407, %410 : vector<8x8xf32>
    %412 = math.exp %411 : vector<8x8xf32>
    %cst_179 = arith.constant dense<0.000000e+00> : vector<8xf32>
    %413 = vector.multi_reduction <add>, %412, %cst_179 [1] : vector<8x8xf32> to vector<8xf32>
    %414 = vector.shape_cast %413 : vector<8xf32> to vector<8x1xf32>
    %415 = vector.broadcast %414 : vector<8x1xf32> to vector<8x8xf32>
    %416 = arith.divf %412, %415 : vector<8x8xf32>
    %417 = vector.extract_strided_slice %370 {offsets = [0, 16], sizes = [8, 8], strides = [1, 1]} : vector<8x32xf32> to vector<8x8xf32>
    %cst_180 = arith.constant dense<0.000000e+00> : vector<8x8xf32>
    %418 = tpu.matmul %416, %417, %cst_180 {dimension_numbers = #tpu.dot_dimension_numbers<[1], [0], [0], [1], [0, 0, 1, 1], [], []>, precision = #tpu.contract_precision<fp32>} : vector<8x8xf32>, vector<8x8xf32>, vector<8x8xf32> -> vector<8x8xf32>
    %419 = vector.extract_strided_slice %365 {offsets = [0, 24], sizes = [8, 8], strides = [1, 1]} : vector<8x32xf32> to vector<8x8xf32>
    %420 = vector.extract_strided_slice %369 {offsets = [0, 24], sizes = [8, 8], strides = [1, 1]} : vector<8x32xf32> to vector<8x8xf32>
    %cst_181 = arith.constant dense<0.000000e+00> : vector<8x8xf32>
    %421 = tpu.matmul %419, %420, %cst_181 {dimension_numbers = #tpu.dot_dimension_numbers<[1], [1], [0], [0], [0, 0, 1, 0], [], []>, precision = #tpu.contract_precision<fp32>} : vector<8x8xf32>, vector<8x8xf32>, vector<8x8xf32> -> vector<8x8xf32>
    %cst_182 = arith.constant 0.353553385 : f32
    %422 = vector.broadcast %cst_182 : f32 to vector<8x8xf32>
    %423 = arith.mulf %421, %422 : vector<8x8xf32>
    %cst_183 = arith.constant dense<0xFF800000> : vector<8xf32>
    %424 = vector.multi_reduction <maximumf>, %423, %cst_183 [1] : vector<8x8xf32> to vector<8xf32>
    %425 = vector.shape_cast %424 : vector<8xf32> to vector<8x1xf32>
    %426 = vector.broadcast %425 : vector<8x1xf32> to vector<8x8xf32>
    %427 = arith.subf %423, %426 : vector<8x8xf32>
    %428 = math.exp %427 : vector<8x8xf32>
    %cst_184 = arith.constant dense<0.000000e+00> : vector<8xf32>
    %429 = vector.multi_reduction <add>, %428, %cst_184 [1] : vector<8x8xf32> to vector<8xf32>
    %430 = vector.shape_cast %429 : vector<8xf32> to vector<8x1xf32>
    %431 = vector.broadcast %430 : vector<8x1xf32> to vector<8x8xf32>
    %432 = arith.divf %428, %431 : vector<8x8xf32>
    %433 = vector.extract_strided_slice %370 {offsets = [0, 24], sizes = [8, 8], strides = [1, 1]} : vector<8x32xf32> to vector<8x8xf32>
    %cst_185 = arith.constant dense<0.000000e+00> : vector<8x8xf32>
    %434 = tpu.matmul %432, %433, %cst_185 {dimension_numbers = #tpu.dot_dimension_numbers<[1], [0], [0], [1], [0, 0, 1, 1], [], []>, precision = #tpu.contract_precision<fp32>} : vector<8x8xf32>, vector<8x8xf32>, vector<8x8xf32> -> vector<8x8xf32>
    %435 = tpu.concatenate %386, %402, %418, %434 in 1 : vector<8x8xf32>, vector<8x8xf32>, vector<8x8xf32>, vector<8x8xf32> -> vector<8x32xf32>
    %436 = vector.extract_strided_slice %368 {offsets = [0, 0], sizes = [8, 8], strides = [1, 1]} : vector<8x32xf32> to vector<8x8xf32>
    %437 = vector.extract_strided_slice %366 {offsets = [0, 0], sizes = [8, 8], strides = [1, 1]} : vector<8x32xf32> to vector<8x8xf32>
    %cst_186 = arith.constant dense<0.000000e+00> : vector<8x8xf32>
    %438 = tpu.matmul %436, %437, %cst_186 {dimension_numbers = #tpu.dot_dimension_numbers<[1], [1], [0], [0], [0, 0, 1, 0], [], []>, precision = #tpu.contract_precision<fp32>} : vector<8x8xf32>, vector<8x8xf32>, vector<8x8xf32> -> vector<8x8xf32>
    %cst_187 = arith.constant 0.353553385 : f32
    %439 = vector.broadcast %cst_187 : f32 to vector<8x8xf32>
    %440 = arith.mulf %438, %439 : vector<8x8xf32>
    %cst_188 = arith.constant dense<0xFF800000> : vector<8xf32>
    %441 = vector.multi_reduction <maximumf>, %440, %cst_188 [1] : vector<8x8xf32> to vector<8xf32>
    %442 = vector.shape_cast %441 : vector<8xf32> to vector<8x1xf32>
    %443 = vector.broadcast %442 : vector<8x1xf32> to vector<8x8xf32>
    %444 = arith.subf %440, %443 : vector<8x8xf32>
    %445 = math.exp %444 : vector<8x8xf32>
    %cst_189 = arith.constant dense<0.000000e+00> : vector<8xf32>
    %446 = vector.multi_reduction <add>, %445, %cst_189 [1] : vector<8x8xf32> to vector<8xf32>
    %447 = vector.shape_cast %446 : vector<8xf32> to vector<8x1xf32>
    %448 = vector.broadcast %447 : vector<8x1xf32> to vector<8x8xf32>
    %449 = arith.divf %445, %448 : vector<8x8xf32>
    %450 = vector.extract_strided_slice %367 {offsets = [0, 0], sizes = [8, 8], strides = [1, 1]} : vector<8x32xf32> to vector<8x8xf32>
    %cst_190 = arith.constant dense<0.000000e+00> : vector<8x8xf32>
    %451 = tpu.matmul %449, %450, %cst_190 {dimension_numbers = #tpu.dot_dimension_numbers<[1], [0], [0], [1], [0, 0, 1, 1], [], []>, precision = #tpu.contract_precision<fp32>} : vector<8x8xf32>, vector<8x8xf32>, vector<8x8xf32> -> vector<8x8xf32>
    %452 = vector.extract_strided_slice %368 {offsets = [0, 8], sizes = [8, 8], strides = [1, 1]} : vector<8x32xf32> to vector<8x8xf32>
    %453 = vector.extract_strided_slice %366 {offsets = [0, 8], sizes = [8, 8], strides = [1, 1]} : vector<8x32xf32> to vector<8x8xf32>
    %cst_191 = arith.constant dense<0.000000e+00> : vector<8x8xf32>
    %454 = tpu.matmul %452, %453, %cst_191 {dimension_numbers = #tpu.dot_dimension_numbers<[1], [1], [0], [0], [0, 0, 1, 0], [], []>, precision = #tpu.contract_precision<fp32>} : vector<8x8xf32>, vector<8x8xf32>, vector<8x8xf32> -> vector<8x8xf32>
    %cst_192 = arith.constant 0.353553385 : f32
    %455 = vector.broadcast %cst_192 : f32 to vector<8x8xf32>
    %456 = arith.mulf %454, %455 : vector<8x8xf32>
    %cst_193 = arith.constant dense<0xFF800000> : vector<8xf32>
    %457 = vector.multi_reduction <maximumf>, %456, %cst_193 [1] : vector<8x8xf32> to vector<8xf32>
    %458 = vector.shape_cast %457 : vector<8xf32> to vector<8x1xf32>
    %459 = vector.broadcast %458 : vector<8x1xf32> to vector<8x8xf32>
    %460 = arith.subf %456, %459 : vector<8x8xf32>
    %461 = math.exp %460 : vector<8x8xf32>
    %cst_194 = arith.constant dense<0.000000e+00> : vector<8xf32>
    %462 = vector.multi_reduction <add>, %461, %cst_194 [1] : vector<8x8xf32> to vector<8xf32>
    %463 = vector.shape_cast %462 : vector<8xf32> to vector<8x1xf32>
    %464 = vector.broadcast %463 : vector<8x1xf32> to vector<8x8xf32>
    %465 = arith.divf %461, %464 : vector<8x8xf32>
    %466 = vector.extract_strided_slice %367 {offsets = [0, 8], sizes = [8, 8], strides = [1, 1]} : vector<8x32xf32> to vector<8x8xf32>
    %cst_195 = arith.constant dense<0.000000e+00> : vector<8x8xf32>
    %467 = tpu.matmul %465, %466, %cst_195 {dimension_numbers = #tpu.dot_dimension_numbers<[1], [0], [0], [1], [0, 0, 1, 1], [], []>, precision = #tpu.contract_precision<fp32>} : vector<8x8xf32>, vector<8x8xf32>, vector<8x8xf32> -> vector<8x8xf32>
    %468 = vector.extract_strided_slice %368 {offsets = [0, 16], sizes = [8, 8], strides = [1, 1]} : vector<8x32xf32> to vector<8x8xf32>
    %469 = vector.extract_strided_slice %366 {offsets = [0, 16], sizes = [8, 8], strides = [1, 1]} : vector<8x32xf32> to vector<8x8xf32>
    %cst_196 = arith.constant dense<0.000000e+00> : vector<8x8xf32>
    %470 = tpu.matmul %468, %469, %cst_196 {dimension_numbers = #tpu.dot_dimension_numbers<[1], [1], [0], [0], [0, 0, 1, 0], [], []>, precision = #tpu.contract_precision<fp32>} : vector<8x8xf32>, vector<8x8xf32>, vector<8x8xf32> -> vector<8x8xf32>
    %cst_197 = arith.constant 0.353553385 : f32
    %471 = vector.broadcast %cst_197 : f32 to vector<8x8xf32>
    %472 = arith.mulf %470, %471 : vector<8x8xf32>
    %cst_198 = arith.constant dense<0xFF800000> : vector<8xf32>
    %473 = vector.multi_reduction <maximumf>, %472, %cst_198 [1] : vector<8x8xf32> to vector<8xf32>
    %474 = vector.shape_cast %473 : vector<8xf32> to vector<8x1xf32>
    %475 = vector.broadcast %474 : vector<8x1xf32> to vector<8x8xf32>
    %476 = arith.subf %472, %475 : vector<8x8xf32>
    %477 = math.exp %476 : vector<8x8xf32>
    %cst_199 = arith.constant dense<0.000000e+00> : vector<8xf32>
    %478 = vector.multi_reduction <add>, %477, %cst_199 [1] : vector<8x8xf32> to vector<8xf32>
    %479 = vector.shape_cast %478 : vector<8xf32> to vector<8x1xf32>
    %480 = vector.broadcast %479 : vector<8x1xf32> to vector<8x8xf32>
    %481 = arith.divf %477, %480 : vector<8x8xf32>
    %482 = vector.extract_strided_slice %367 {offsets = [0, 16], sizes = [8, 8], strides = [1, 1]} : vector<8x32xf32> to vector<8x8xf32>
    %cst_200 = arith.constant dense<0.000000e+00> : vector<8x8xf32>
    %483 = tpu.matmul %481, %482, %cst_200 {dimension_numbers = #tpu.dot_dimension_numbers<[1], [0], [0], [1], [0, 0, 1, 1], [], []>, precision = #tpu.contract_precision<fp32>} : vector<8x8xf32>, vector<8x8xf32>, vector<8x8xf32> -> vector<8x8xf32>
    %484 = vector.extract_strided_slice %368 {offsets = [0, 24], sizes = [8, 8], strides = [1, 1]} : vector<8x32xf32> to vector<8x8xf32>
    %485 = vector.extract_strided_slice %366 {offsets = [0, 24], sizes = [8, 8], strides = [1, 1]} : vector<8x32xf32> to vector<8x8xf32>
    %cst_201 = arith.constant dense<0.000000e+00> : vector<8x8xf32>
    %486 = tpu.matmul %484, %485, %cst_201 {dimension_numbers = #tpu.dot_dimension_numbers<[1], [1], [0], [0], [0, 0, 1, 0], [], []>, precision = #tpu.contract_precision<fp32>} : vector<8x8xf32>, vector<8x8xf32>, vector<8x8xf32> -> vector<8x8xf32>
    %cst_202 = arith.constant 0.353553385 : f32
    %487 = vector.broadcast %cst_202 : f32 to vector<8x8xf32>
    %488 = arith.mulf %486, %487 : vector<8x8xf32>
    %cst_203 = arith.constant dense<0xFF800000> : vector<8xf32>
    %489 = vector.multi_reduction <maximumf>, %488, %cst_203 [1] : vector<8x8xf32> to vector<8xf32>
    %490 = vector.shape_cast %489 : vector<8xf32> to vector<8x1xf32>
    %491 = vector.broadcast %490 : vector<8x1xf32> to vector<8x8xf32>
    %492 = arith.subf %488, %491 : vector<8x8xf32>
    %493 = math.exp %492 : vector<8x8xf32>
    %cst_204 = arith.constant dense<0.000000e+00> : vector<8xf32>
    %494 = vector.multi_reduction <add>, %493, %cst_204 [1] : vector<8x8xf32> to vector<8xf32>
    %495 = vector.shape_cast %494 : vector<8xf32> to vector<8x1xf32>
    %496 = vector.broadcast %495 : vector<8x1xf32> to vector<8x8xf32>
    %497 = arith.divf %493, %496 : vector<8x8xf32>
    %498 = vector.extract_strided_slice %367 {offsets = [0, 24], sizes = [8, 8], strides = [1, 1]} : vector<8x32xf32> to vector<8x8xf32>
    %cst_205 = arith.constant dense<0.000000e+00> : vector<8x8xf32>
    %499 = tpu.matmul %497, %498, %cst_205 {dimension_numbers = #tpu.dot_dimension_numbers<[1], [0], [0], [1], [0, 0, 1, 1], [], []>, precision = #tpu.contract_precision<fp32>} : vector<8x8xf32>, vector<8x8xf32>, vector<8x8xf32> -> vector<8x8xf32>
    %500 = tpu.concatenate %451, %467, %483, %499 in 1 : vector<8x8xf32>, vector<8x8xf32>, vector<8x8xf32>, vector<8x8xf32> -> vector<8x32xf32>
    %cst_206 = arith.constant dense<0.000000e+00> : vector<8x32xf32>
    %501 = tpu.matmul %435, %352, %cst_206 {dimension_numbers = #tpu.dot_dimension_numbers<[1], [0], [0], [1], [0, 0, 1, 1], [], []>, precision = #tpu.contract_precision<fp32>} : vector<8x32xf32>, vector<32x32xf32>, vector<8x32xf32> -> vector<8x32xf32>
    %502 = arith.addf %2, %501 : vector<8x32xf32>
    %503 = vector.broadcast %354 : vector<1x32xf32> to vector<8x32xf32>
    %504 = arith.addf %502, %503 : vector<8x32xf32>
    %cst_207 = arith.constant dense<0.000000e+00> : vector<8x32xf32>
    %505 = tpu.matmul %500, %356, %cst_207 {dimension_numbers = #tpu.dot_dimension_numbers<[1], [0], [0], [1], [0, 0, 1, 1], [], []>, precision = #tpu.contract_precision<fp32>} : vector<8x32xf32>, vector<32x32xf32>, vector<8x32xf32> -> vector<8x32xf32>
    %506 = arith.addf %3, %505 : vector<8x32xf32>
    %507 = vector.broadcast %358 : vector<1x32xf32> to vector<8x32xf32>
    %508 = arith.addf %506, %507 : vector<8x32xf32>
    %509 = arith.addf %338, %504 : vector<8x32xf32>
    %510 = arith.addf %342, %508 : vector<8x32xf32>
    %511 = tpu.concatenate %509, %510 in 1 : vector<8x32xf32>, vector<8x32xf32> -> vector<8x64xf32>
    %c0_208 = arith.constant 0 : index
    %c0_209 = arith.constant 0 : index
    %c0_210 = arith.constant 0 : index
    %512 = vector.load %arg12[%c0_208, %c0_209, %c0_210] : memref<2x64x128xf32, #tpu.memory_space<vmem>>, vector<1x64x128xf32>
    %513 = vector.shape_cast %512 : vector<1x64x128xf32> to vector<64x128xf32>
    %c0_211 = arith.constant 0 : index
    %c0_212 = arith.constant 0 : index
    %c0_213 = arith.constant 0 : index
    %514 = vector.load %arg13[%c0_211, %c0_212, %c0_213] : memref<2x1x128xf32, #tpu.memory_space<vmem>>, vector<1x1x128xf32>
    %515 = vector.shape_cast %514 : vector<1x1x128xf32> to vector<1x128xf32>
    %c0_214 = arith.constant 0 : index
    %c0_215 = arith.constant 0 : index
    %c0_216 = arith.constant 0 : index
    %516 = vector.load %arg14[%c0_214, %c0_215, %c0_216] : memref<2x128x64xf32, #tpu.memory_space<vmem>>, vector<1x128x64xf32>
    %517 = vector.shape_cast %516 : vector<1x128x64xf32> to vector<128x64xf32>
    %c0_217 = arith.constant 0 : index
    %c0_218 = arith.constant 0 : index
    %c0_219 = arith.constant 0 : index
    %518 = vector.load %arg15[%c0_217, %c0_218, %c0_219] : memref<2x1x64xf32, #tpu.memory_space<vmem>>, vector<1x1x64xf32>
    %519 = vector.shape_cast %518 : vector<1x1x64xf32> to vector<1x64xf32>
    %cst_220 = arith.constant dense<0.000000e+00> : vector<8x128xf32>
    %520 = tpu.matmul %511, %513, %cst_220 {dimension_numbers = #tpu.dot_dimension_numbers<[1], [0], [0], [1], [0, 0, 1, 1], [], []>, precision = #tpu.contract_precision<fp32>} : vector<8x64xf32>, vector<64x128xf32>, vector<8x128xf32> -> vector<8x128xf32>
    %521 = vector.broadcast %515 : vector<1x128xf32> to vector<8x128xf32>
    %522 = arith.addf %520, %521 : vector<8x128xf32>
    %cst_221 = arith.constant 0.000000e+00 : f32
    %523 = vector.broadcast %cst_221 : f32 to vector<8x128xf32>
    %524 = arith.maximumf %522, %523 : vector<8x128xf32>
    %cst_222 = arith.constant dense<0.000000e+00> : vector<8x64xf32>
    %525 = tpu.matmul %524, %517, %cst_222 {dimension_numbers = #tpu.dot_dimension_numbers<[1], [0], [0], [1], [0, 0, 1, 1], [], []>, precision = #tpu.contract_precision<fp32>} : vector<8x128xf32>, vector<128x64xf32>, vector<8x64xf32> -> vector<8x64xf32>
    %526 = vector.broadcast %519 : vector<1x64xf32> to vector<8x64xf32>
    %527 = arith.addf %525, %526 : vector<8x64xf32>
    %528 = arith.addf %527, %511 : vector<8x64xf32>
    %529 = arith.addf %528, %1 : vector<8x64xf32>
    %c1_223 = arith.constant 1 : index
    %c0_224 = arith.constant 0 : index
    %c0_225 = arith.constant 0 : index
    %530 = vector.load %arg12[%c1_223, %c0_224, %c0_225] : memref<2x64x128xf32, #tpu.memory_space<vmem>>, vector<1x64x128xf32>
    %531 = vector.shape_cast %530 : vector<1x64x128xf32> to vector<64x128xf32>
    %c1_226 = arith.constant 1 : index
    %c0_227 = arith.constant 0 : index
    %c0_228 = arith.constant 0 : index
    %532 = vector.load %arg13[%c1_226, %c0_227, %c0_228] : memref<2x1x128xf32, #tpu.memory_space<vmem>>, vector<1x1x128xf32>
    %533 = vector.shape_cast %532 : vector<1x1x128xf32> to vector<1x128xf32>
    %c1_229 = arith.constant 1 : index
    %c0_230 = arith.constant 0 : index
    %c0_231 = arith.constant 0 : index
    %534 = vector.load %arg14[%c1_229, %c0_230, %c0_231] : memref<2x128x64xf32, #tpu.memory_space<vmem>>, vector<1x128x64xf32>
    %535 = vector.shape_cast %534 : vector<1x128x64xf32> to vector<128x64xf32>
    %c1_232 = arith.constant 1 : index
    %c0_233 = arith.constant 0 : index
    %c0_234 = arith.constant 0 : index
    %536 = vector.load %arg15[%c1_232, %c0_233, %c0_234] : memref<2x1x64xf32, #tpu.memory_space<vmem>>, vector<1x1x64xf32>
    %537 = vector.shape_cast %536 : vector<1x1x64xf32> to vector<1x64xf32>
    %cst_235 = arith.constant dense<0.000000e+00> : vector<8x128xf32>
    %538 = tpu.matmul %529, %531, %cst_235 {dimension_numbers = #tpu.dot_dimension_numbers<[1], [0], [0], [1], [0, 0, 1, 1], [], []>, precision = #tpu.contract_precision<fp32>} : vector<8x64xf32>, vector<64x128xf32>, vector<8x128xf32> -> vector<8x128xf32>
    %539 = vector.broadcast %533 : vector<1x128xf32> to vector<8x128xf32>
    %540 = arith.addf %538, %539 : vector<8x128xf32>
    %cst_236 = arith.constant 0.000000e+00 : f32
    %541 = vector.broadcast %cst_236 : f32 to vector<8x128xf32>
    %542 = arith.maximumf %540, %541 : vector<8x128xf32>
    %cst_237 = arith.constant dense<0.000000e+00> : vector<8x64xf32>
    %543 = tpu.matmul %542, %535, %cst_237 {dimension_numbers = #tpu.dot_dimension_numbers<[1], [0], [0], [1], [0, 0, 1, 1], [], []>, precision = #tpu.contract_precision<fp32>} : vector<8x128xf32>, vector<128x64xf32>, vector<8x64xf32> -> vector<8x64xf32>
    %544 = vector.broadcast %537 : vector<1x64xf32> to vector<8x64xf32>
    %545 = arith.addf %543, %544 : vector<8x64xf32>
    %546 = arith.addf %545, %529 : vector<8x64xf32>
    %c0_238 = arith.constant 0 : index
    %c0_239 = arith.constant 0 : index
    %c0_240 = arith.constant 0 : index
    %547 = vector.load %arg16[%c0_238, %c0_239, %c0_240] : memref<1x8x64xf32, #tpu.memory_space<vmem>>, vector<1x8x64xf32>
    %548 = vector.shape_cast %547 : vector<1x8x64xf32> to vector<8x64xf32>
    %549 = vector.shape_cast %546 : vector<8x64xf32> to vector<1x8x64xf32>
    tpu.vector_store %arg16[%c0_238, %c0_239, %c0_240], %549 {strides = array<i32>} : memref<1x8x64xf32, #tpu.memory_space<vmem>>, vector<1x8x64xf32>,
    return
  }
  func.func @transform_0(%arg0: i32) -> (i32, i32, i32) {
    %c0_i32 = arith.constant 0 : i32
    %c0_i32_0 = arith.constant 0 : i32
    %c0_i32_1 = arith.constant 0 : i32
    return %arg0, %c0_i32, %c0_i32_0 : i32, i32, i32
  }
  func.func @transform_1(%arg0: i32) -> (i32, i32) {
    %c0_i32 = arith.constant 0 : i32
    %c0_i32_0 = arith.constant 0 : i32
    %c0_i32_1 = arith.constant 0 : i32
    return %c0_i32, %c0_i32_0 : i32, i32
  }
  func.func @transform_2(%arg0: i32) -> (i32, i32) {
    %c0_i32 = arith.constant 0 : i32
    %c0_i32_0 = arith.constant 0 : i32
    %c0_i32_1 = arith.constant 0 : i32
    return %c0_i32, %c0_i32_0 : i32, i32
  }
  func.func @transform_3(%arg0: i32) -> (i32, i32, i32) {
    %c0_i32 = arith.constant 0 : i32
    %c0_i32_0 = arith.constant 0 : i32
    %c0_i32_1 = arith.constant 0 : i32
    %c0_i32_2 = arith.constant 0 : i32
    return %c0_i32, %c0_i32_0, %c0_i32_1 : i32, i32, i32
  }
  func.func @transform_4(%arg0: i32) -> (i32, i32, i32) {
    %c0_i32 = arith.constant 0 : i32
    %c0_i32_0 = arith.constant 0 : i32
    %c0_i32_1 = arith.constant 0 : i32
    %c0_i32_2 = arith.constant 0 : i32
    return %c0_i32, %c0_i32_0, %c0_i32_1 : i32, i32, i32
  }
  func.func @transform_5(%arg0: i32) -> (i32, i32, i32) {
    %c0_i32 = arith.constant 0 : i32
    %c0_i32_0 = arith.constant 0 : i32
    %c0_i32_1 = arith.constant 0 : i32
    %c0_i32_2 = arith.constant 0 : i32
    return %c0_i32, %c0_i32_0, %c0_i32_1 : i32, i32, i32
  }
  func.func @transform_6(%arg0: i32) -> (i32, i32, i32) {
    %c0_i32 = arith.constant 0 : i32
    %c0_i32_0 = arith.constant 0 : i32
    %c0_i32_1 = arith.constant 0 : i32
    %c0_i32_2 = arith.constant 0 : i32
    return %c0_i32, %c0_i32_0, %c0_i32_1 : i32, i32, i32
  }
  func.func @transform_7(%arg0: i32) -> (i32, i32, i32) {
    %c0_i32 = arith.constant 0 : i32
    %c0_i32_0 = arith.constant 0 : i32
    %c0_i32_1 = arith.constant 0 : i32
    %c0_i32_2 = arith.constant 0 : i32
    return %c0_i32, %c0_i32_0, %c0_i32_1 : i32, i32, i32
  }
  func.func @transform_8(%arg0: i32) -> (i32, i32, i32) {
    %c0_i32 = arith.constant 0 : i32
    %c0_i32_0 = arith.constant 0 : i32
    %c0_i32_1 = arith.constant 0 : i32
    %c0_i32_2 = arith.constant 0 : i32
    return %c0_i32, %c0_i32_0, %c0_i32_1 : i32, i32, i32
  }
  func.func @transform_9(%arg0: i32) -> (i32, i32, i32) {
    %c0_i32 = arith.constant 0 : i32
    %c0_i32_0 = arith.constant 0 : i32
    %c0_i32_1 = arith.constant 0 : i32
    %c0_i32_2 = arith.constant 0 : i32
    return %c0_i32, %c0_i32_0, %c0_i32_1 : i32, i32, i32
  }
  func.func @transform_10(%arg0: i32) -> (i32, i32, i32) {
    %c0_i32 = arith.constant 0 : i32
    %c0_i32_0 = arith.constant 0 : i32
    %c0_i32_1 = arith.constant 0 : i32
    %c0_i32_2 = arith.constant 0 : i32
    return %c0_i32, %c0_i32_0, %c0_i32_1 : i32, i32, i32
  }
  func.func @transform_11(%arg0: i32) -> (i32, i32, i32) {
    %c0_i32 = arith.constant 0 : i32
    %c0_i32_0 = arith.constant 0 : i32
    %c0_i32_1 = arith.constant 0 : i32
    %c0_i32_2 = arith.constant 0 : i32
    return %c0_i32, %c0_i32_0, %c0_i32_1 : i32, i32, i32
  }
  func.func @transform_12(%arg0: i32) -> (i32, i32, i32) {
    %c0_i32 = arith.constant 0 : i32
    %c0_i32_0 = arith.constant 0 : i32
    %c0_i32_1 = arith.constant 0 : i32
    %c0_i32_2 = arith.constant 0 : i32
    return %c0_i32, %c0_i32_0, %c0_i32_1 : i32, i32, i32
  }
  func.func @transform_13(%arg0: i32) -> (i32, i32, i32) {
    %c0_i32 = arith.constant 0 : i32
    %c0_i32_0 = arith.constant 0 : i32
    %c0_i32_1 = arith.constant 0 : i32
    %c0_i32_2 = arith.constant 0 : i32
    return %c0_i32, %c0_i32_0, %c0_i32_1 : i32, i32, i32
  }
  func.func @transform_14(%arg0: i32) -> (i32, i32, i32) {
    %c0_i32 = arith.constant 0 : i32
    %c0_i32_0 = arith.constant 0 : i32
    %c0_i32_1 = arith.constant 0 : i32
    %c0_i32_2 = arith.constant 0 : i32
    return %c0_i32, %c0_i32_0, %c0_i32_1 : i32, i32, i32
  }
  func.func @transform_15(%arg0: i32) -> (i32, i32, i32) {
    %c0_i32 = arith.constant 0 : i32
    %c0_i32_0 = arith.constant 0 : i32
    %c0_i32_1 = arith.constant 0 : i32
    return %arg0, %c0_i32, %c0_i32_0 : i32, i32, i32
  }
}

</mosaic_0001>

<bundles_post_ra>
// kernel: enhance_net_v2_forward.1
= control target key start
LH: loop header
LB: loop body
LE: loop exit
PB: predicated region body
PF: predicated region fallthrough
CT: control target
= control target key end

     0   :  { %s41840_s0 = inlined_call_operand.vmem [shape: f32[2,8,64], index: 0, kind: input, shape index: {}]   ;;  %s41841_s1 = inlined_call_operand.hbm [shape: f32[64,64], index: 1, kind: input, shape index: {}]   ;;  %s41842_s2 = inlined_call_operand.vmem [shape: f32[1,64], index: 2, kind: input, shape index: {}]   ;;  %s41843_s3 = inlined_call_operand.hbm [shape: f32[3,32,96], index: 3, kind: input, shape index: {}]   ;;  %s41844_s4 = inlined_call_operand.vmem [shape: f32[3,1,96], index: 4, kind: input, shape index: {}]   ;;  %s41845_s5 = inlined_call_operand.hbm [shape: f32[3,32,96], index: 5, kind: input, shape index: {}]   ;;  %s41846_s6 = inlined_call_operand.vmem [shape: f32[3,1,96], index: 6, kind: input, shape index: {}]   ;;  %s41847_s7 = inlined_call_operand.hbm [shape: f32[3,32,32], index: 7, kind: input, shape index: {}]   ;;  %s41848_s8 = inlined_call_operand.vmem [shape: f32[3,1,32], index: 8, kind: input, shape index: {}]   ;;  %s41849_s9 = inlined_call_operand.hbm [shape: f32[3,32,32], index: 9, kind: input, shape index: {}]   ;;  %s41850_s10 = inlined_call_operand.vmem [shape: f32[3,1,32], index: 10, kind: input, shape index: {}]   ;;  %s41851_s11 = inlined_call_operand.hbm [shape: f32[2,64,128], index: 11, kind: input, shape index: {}]   ;;  %s41852_s12 = inlined_call_operand.vmem [shape: f32[2,1,128], index: 12, kind: input, shape index: {}]   ;;  %s41853_s13 = inlined_call_operand.hbm [shape: f32[2,128,64], index: 13, kind: input, shape index: {}]   ;;  %s41854_s14 = inlined_call_operand.vmem [shape: f32[2,1,64], index: 14, kind: input, shape index: {}]   ;;  %s41855_s15 = inlined_call_operand.vmem [shape: f32[2,8,64], index: 15, kind: output, shape index: {}]  }
   0x1   :  { %41884 = sst [smem:[#allocation18_spill]] %s41850_s10 }
   0x2   :  { %41885 = sst [smem:[#allocation19_spill]] %s41852_s12 }
   0x3   :  { %41886 = sst [smem:[#allocation20_spill]] %s41854_s14 }
   0x4   :  { %41887 = sst [smem:[#allocation21_spill]] %s41855_s15 }
   0x5   :  { %20 = vsyncpa [#allocation3], 0 }
   0x6   :  { %21 = vsyncpa [#allocation5], 0 }
   0x7   :  { %22 = vsyncpa [#allocation8], 0 }
   0x8   :  { %23 = vsyncpa [#allocation11], 0  ;;  %s38320_s18 = smov 0  }
   0x9 LB: > { %41888 = sst [smem:[#allocation17_spill]] %s38211_s18  ;;  %s38326_s19 = sadd.s32 4294967295, %s38211_s18   ;;  %s38211_s18 = sphi %s38320_s18, %s29_s18  }
   0xa   : > { %p31881_p0 = scmp.ge.s32.totalorder %s38211_s18, 1  ;;  %p380_p1 = scmp.lt.s32.totalorder %s38211_s18, 3 }
   0xb   : > { %p41860_p2 = scmp.eq.s32.totalorder %s38326_s19, 0  ;;  %s38213_s21 = smov [#allocation4]  }
   0xc   : > { %p38331_p3 = pnand %p31881_p0, %p380_p1  ;;  %s408_s22 = sshll.u32 %s38213_s21, 4  ;;  %s38335_s22 = int_to_ptr.vmem [resolvable:$true] %s408_s22 }
   0xd   : > { %s38214_s23 = smov [#allocation7]   ;;  %s38215_s26 = smov [#allocation10]  }
   0xe   : > { %s41889_s20 = scalar_select %p38331_p3, 1, 0 }
   0xf   : > { %p37824_p4 = pneg %p38331_p3  ;;  %s440_s24 = sshll.u32 %s38214_s23, 4  ;;  %s38339_s24 = int_to_ptr.vmem [resolvable:$true] %s440_s24 }
  0x10   : > { %s472_s27 = sshll.u32 %s38215_s26, 4  ;;  %s38216_s28 = smov [#allocation2]   ;;  %s38347_s27 = int_to_ptr.vmem [resolvable:$true] %s472_s27 }
  0x11   : > { %p38343_p5 = pnand %p41860_p2, %p37824_p4  ;;  %s38349_s29 = sshll.u32 %s38216_s28, 4  ;;  %s393_s29 = int_to_ptr.vmem [resolvable:$true] %s38349_s29 }
  0x12   : > { %s37993_s17 = scalar_lea.hbm %s41843_s3, 1536 }
  0x13   : > { %p37994_p6 = scmp.ne.s32.totalorder %s41843_s3, %s37993_s17  ;;  %p38359_p7 = pneg %p38343_p5 }
  0x14   : > { %p38000_p10 = scmp.lt.u32.totalorder %s37993_s17, %s41843_s3 }
  0x15   : > { %p37996_p8 = pnand %p38359_p7, %p37994_p6 }
  0x17   : > { %p37997_p9 = pneg %p37996_p8 }
  0x19   : > { %p38002_p11 = pnand %p38000_p10, %p37997_p9 }
  0x1b   : > { %38005 = shalt.err (!%p38002_p11)
}
  0x1c   : > { %s38006_s30 = scalar_lea.vmem %s38335_s22, 1536  ;;  %p38014_p1 = scmp.lt.s32.totalorder %s38335_s22, %s38335_s22 }
  0x1d   : > { %p38007_p12 = scmp.ne.s32.totalorder %s38335_s22, %s38006_s30  ;;  %p38015_p4 = scmp.lt.s32.totalorder %s38006_s30, %s38006_s30 }
  0x1f   : > { %p38009_p13 = pnand %p38007_p12, %p38359_p7  ;;  %p38016_p6 = por %p38015_p4, %p38014_p1 }
  0x21   : > { %p38010_p0 = pneg %p38009_p13 }
  0x23   : > { %p38017_p8 = pnand %p38016_p6, %p38010_p0 }
  0x25   : > { %38020 = shalt.err (!%p38017_p8)
}
  0x26   : > { %s38217_s16 = smov 128   ;;  %s38218_s17 = smov 8  }
  0x27   : > { %37830 = dma.hbm_to_vmem [thread:$0]  (!%p38343_p5), %s41843_s3, 1536, %s38335_s22, [#allocation5], %s38217_s16, %s38217_s16, %s38218_s17  }
  0x28   : > { %s38021_s30 = scalar_lea.hbm %s41847_s7, 1536 }
  0x29   : > { %p38022_p9 = scmp.ne.s32.totalorder %s41847_s7, %s38021_s30  ;;  %p38028_p12 = scmp.lt.u32.totalorder %s38021_s30, %s41847_s7 }
  0x2b   : > { %p38024_p10 = pnand %p38022_p9, %p38359_p7 }
  0x2d   : > { %p38025_p11 = pneg %p38024_p10 }
  0x2f   : > { %p38030_p13 = pnand %p38028_p12, %p38025_p11 }
  0x31   : > { %38033 = shalt.err (!%p38030_p13)
}
  0x32   : > { %s38034_s22 = scalar_lea.vmem %s38339_s24, 1536  ;;  %p38042_p6 = scmp.lt.s32.totalorder %s38339_s24, %s38339_s24 }
  0x33   : > { %p38035_p0 = scmp.ne.s32.totalorder %s38339_s24, %s38034_s22  ;;  %p38043_p8 = scmp.lt.s32.totalorder %s38034_s22, %s38034_s22 }
  0x35   : > { %p38037_p1 = pnand %p38035_p0, %p38359_p7  ;;  %p38044_p9 = por %p38043_p8, %p38042_p6 }
  0x37   : > { %p38038_p4 = pneg %p38037_p1 }
  0x39   : > { %p38045_p10 = pnand %p38044_p9, %p38038_p4 }
  0x3b   : > { %38048 = shalt.err (!%p38045_p10)
}
  0x3c   : > { %37836 = dma.hbm_to_vmem [thread:$0]  (!%p38343_p5), %s41847_s7, 1536, %s38339_s24, [#allocation8], %s38217_s16, %s38217_s16, %s38218_s17  }
  0x3d   : > { %s38049_s21 = scalar_lea.hbm %s41851_s11, 2048 }
  0x3e   : > { %p38050_p11 = scmp.ne.s32.totalorder %s41851_s11, %s38049_s21  ;;  %p38056_p0 = scmp.lt.u32.totalorder %s38049_s21, %s41851_s11 }
  0x40   : > { %p38052_p12 = pnand %p38050_p11, %p38359_p7 }
  0x42   : > { %p38053_p13 = pneg %p38052_p12 }
  0x44   : > { %p38058_p1 = pnand %p38056_p0, %p38053_p13 }
  0x46   : > { %38061 = shalt.err (!%p38058_p1)
}
  0x47   : > { %s38062_s24 = scalar_lea.vmem %s38347_s27, 2048  ;;  %p38070_p9 = scmp.lt.s32.totalorder %s38347_s27, %s38347_s27 }
  0x48   : > { %p38063_p4 = scmp.ne.s32.totalorder %s38347_s27, %s38062_s24  ;;  %p38071_p10 = scmp.lt.s32.totalorder %s38062_s24, %s38062_s24 }
  0x4a   : > { %p38065_p6 = pnand %p38063_p4, %p38359_p7  ;;  %p38072_p11 = por %p38071_p10, %p38070_p9 }
  0x4c   : > { %p38066_p8 = pneg %p38065_p6 }
  0x4e   : > { %p38073_p12 = pnand %p38072_p11, %p38066_p8 }
  0x50   : > { %38076 = shalt.err (!%p38073_p12)
}
  0x51   : > { %37842 = dma.hbm_to_vmem [thread:$0]  (!%p38343_p5), %s41851_s11, 2048, %s38347_s27, [#allocation11], %s38217_s16, %s38217_s16, %s38218_s17  }
  0x52   : > { %s38077_s15 = scalar_lea.hbm %s41841_s1, 1024 }
  0x53   : > { %p38078_p13 = scmp.ne.s32.totalorder %s41841_s1, %s38077_s15  ;;  %p38084_p4 = scmp.lt.u32.totalorder %s38077_s15, %s41841_s1 }
  0x55   : > { %p38080_p0 = pnand %p38078_p13, %p38359_p7 }
  0x57   : > { %p38081_p1 = pneg %p38080_p0 }
  0x59   : > { %p38086_p6 = pnand %p38084_p4, %p38081_p1 }
  0x5b   : > { %38089 = shalt.err (!%p38086_p6)
}
  0x5c   : > { %s38090_s30 = scalar_lea.vmem %s393_s29, 1024  ;;  %p38098_p11 = scmp.lt.s32.totalorder %s393_s29, %s393_s29 }
  0x5d   : > { %p38091_p8 = scmp.ne.s32.totalorder %s393_s29, %s38090_s30  ;;  %p38099_p12 = scmp.lt.s32.totalorder %s38090_s30, %s38090_s30 }
  0x5f   : > { %p38093_p9 = pnand %p38091_p8, %p38359_p7  ;;  %p38100_p2 = por %p38099_p12, %p38098_p11 }
  0x61   : > { %p38094_p10 = pneg %p38093_p9 }
  0x63   : > { %p38101_p3 = pnand %p38100_p2, %p38094_p10 }
  0x65   : > { %38104 = shalt.err (!%p38101_p3)
}
  0x66   : > { %37827 = dma.hbm_to_vmem [thread:$0]  (!%p38343_p5), %s41841_s1, 1024, %s393_s29, [#allocation3], %s38217_s16, %s38217_s16, %s38218_s17  }
  0x67   : > { %s38219_s22 = smov [#allocation6]   ;;  %s38220_s12 = smov [#allocation9]  }
  0x68   : > { %s424_s10 = sshll.u32 %s38219_s22, 4  ;;  %s456_s14 = sshll.u32 %s38220_s12, 4  ;;  %s425_s10 = int_to_ptr.vmem [resolvable:$true] %s424_s10  ;;  %s457_s14 = int_to_ptr.vmem [resolvable:$true] %s456_s14 }
  0x69   : > { %s38105_s23 = scalar_lea.hbm %s41845_s5, 1536 }
  0x6a   : > { %p38106_p2 = scmp.ne.s32.totalorder %s41845_s5, %s38105_s23  ;;  %p38112_p0 = scmp.lt.u32.totalorder %s38105_s23, %s41845_s5 }
  0x6c   : > { %p38108_p3 = pnand %p38106_p2, %p38359_p7 }
  0x6e   : > { %p38109_p13 = pneg %p38108_p3 }
  0x70   : > { %p38114_p1 = pnand %p38112_p0, %p38109_p13 }
  0x72   : > { %38117 = shalt.err (!%p38114_p1)
}
  0x73   : > { %s38118_s29 = scalar_lea.vmem %s425_s10, 1536  ;;  %p38126_p9 = scmp.lt.s32.totalorder %s425_s10, %s425_s10 }
  0x74   : > { %p38119_p4 = scmp.ne.s32.totalorder %s425_s10, %s38118_s29  ;;  %p38127_p10 = scmp.lt.s32.totalorder %s38118_s29, %s38118_s29 }
  0x76   : > { %p38121_p6 = pnand %p38119_p4, %p38359_p7  ;;  %p38128_p11 = por %p38127_p10, %p38126_p9 }
  0x78   : > { %p38122_p8 = pneg %p38121_p6 }
  0x7a   : > { %p38129_p12 = pnand %p38128_p11, %p38122_p8 }
  0x7c   : > { %38132 = shalt.err (!%p38129_p12)
}
  0x7d   : > { %37833 = dma.hbm_to_vmem [thread:$0]  (!%p38343_p5), %s41845_s5, 1536, %s425_s10, [#allocation5], %s38217_s16, %s38217_s16, %s38218_s17  }
  0x7e   : > { %s38133_s21 = scalar_lea.hbm %s41849_s9, 1536 }
  0x7f   : > { %p38134_p2 = scmp.ne.s32.totalorder %s41849_s9, %s38133_s21  ;;  %p38140_p0 = scmp.lt.u32.totalorder %s38133_s21, %s41849_s9 }
  0x81   : > { %p38136_p3 = pnand %p38134_p2, %p38359_p7 }
  0x83   : > { %p38137_p13 = pneg %p38136_p3 }
  0x85   : > { %p38142_p1 = pnand %p38140_p0, %p38137_p13 }
  0x87   : > { %38145 = shalt.err (!%p38142_p1)
}
  0x88   : > { %s38146_s27 = scalar_lea.vmem %s457_s14, 1536  ;;  %p38154_p9 = scmp.lt.s32.totalorder %s457_s14, %s457_s14 }
  0x89   : > { %p38147_p4 = scmp.ne.s32.totalorder %s457_s14, %s38146_s27  ;;  %p38155_p10 = scmp.lt.s32.totalorder %s38146_s27, %s38146_s27 }
  0x8b   : > { %p38149_p6 = pnand %p38147_p4, %p38359_p7  ;;  %p38156_p11 = por %p38155_p10, %p38154_p9 }
  0x8d   : > { %p38150_p8 = pneg %p38149_p6 }
  0x8f   : > { %p38157_p12 = pnand %p38156_p11, %p38150_p8 }
  0x91   : > { %38160 = shalt.err (!%p38157_p12)
}
  0x92   : > { %37839 = dma.hbm_to_vmem [thread:$0]  (!%p38343_p5), %s41849_s9, 1536, %s457_s14, [#allocation8], %s38217_s16, %s38217_s16, %s38218_s17  }
  0x93   : > { %s38221_s24 = smov [#allocation12]   ;;  %s38161_s21 = scalar_lea.hbm %s41853_s13, 4096 }
  0x94   : > { %s488_s22 = sshll.u32 %s38221_s24, 4  ;;  %p38162_p2 = scmp.ne.s32.totalorder %s41853_s13, %s38161_s21  ;;  %s489_s22 = int_to_ptr.vmem [resolvable:$true] %s488_s22 }
  0x95   : > { %p38168_p0 = scmp.lt.u32.totalorder %s38161_s21, %s41853_s13 }
  0x96   : > { %p38164_p3 = pnand %p38162_p2, %p38359_p7 }
  0x98   : > { %p38165_p13 = pneg %p38164_p3 }
  0x9a   : > { %p38170_p1 = pnand %p38168_p0, %p38165_p13 }
  0x9c   : > { %38173 = shalt.err (!%p38170_p1)
}
  0x9d   : > { %s38174_s14 = scalar_lea.vmem %s489_s22, 4096  ;;  %p38182_p9 = scmp.lt.s32.totalorder %s489_s22, %s489_s22 }
  0x9e   : > { %p38175_p4 = scmp.ne.s32.totalorder %s489_s22, %s38174_s14  ;;  %p38183_p10 = scmp.lt.s32.totalorder %s38174_s14, %s38174_s14 }
  0xa0   : > { %p38177_p6 = pnand %p38175_p4, %p38359_p7  ;;  %p38184_p11 = por %p38183_p10, %p38182_p9 }
  0xa2   : > { %p38178_p8 = pneg %p38177_p6 }
  0xa4   : > { %p38185_p12 = pnand %p38184_p11, %p38178_p8 }
  0xa6   : > { %38188 = shalt.err (!%p38185_p12)
}
  0xa7   : > { %37845 = dma.hbm_to_vmem [thread:$0]  (!%p38343_p5), %s41853_s13, 4096, %s489_s22, [#allocation11], %s38217_s16, %s38217_s16, %s38218_s17  }
  0xa8   : > { %p41892_p2 = scmp.ne.s32.totalorder %s41889_s20, 0 }
  0xa9   : > { %p41893_p7 = scmp.eq.s32.totalorder (!%p41892_p2), %s38326_s19, 0 }
  0xaa   : > { %514 = sbr.rel (%p41892_p2) target bundleno = 8077 (0x1f8d), region = 80 }
  0xb1   : > { %38194 = dma.done.wait (%p41893_p7), [#allocation3], 1024   ;;  %p41894_p3 = pmov %p41893_p7 }
  0xb3   : > { %38196 = vsyncadd (%p41894_p3), [#allocation3], 4294966272  ;;  %p41895_p13 = pmov %p41894_p3 }
  0xb4   : > { %p41896_p0 = pmov %p41894_p3 }
  0xb5   : > { %38198 = dma.done.wait (%p41895_p13), [#allocation5], 3072  }
  0xb6   : > { %38200 = vsyncadd (%p41896_p0), [#allocation5], 4294964224  ;;  %p41897_p1 = pmov %p41896_p0 }
  0xb7   : > { %p41898_p5 = pmov %p41896_p0 }
  0xb8   : > { %38202 = dma.done.wait (%p41897_p1), [#allocation8], 3072  }
  0xb9   : > { %38204 = vsyncadd (%p41898_p5), [#allocation8], 4294964224  ;;  %p41899_p4 = pmov %p41896_p0 }
  0xba   : > { %p41900_p6 = pmov %p41896_p0 }
  0xbb   : > { %38206 = dma.done.wait (%p41899_p4), [#allocation11], 6144  }
  0xbc   : > { %38208 = vsyncadd (%p41900_p6), [#allocation11], 4294961152  ;;  %p584_p8 = scmp.lt.s32.totalorder %s38326_s19, 1  ;;  %v38222_v0 = vmov 0.0|0.0   ;;  %vm38223_vm0 = vmmov 0   ;;  %v38224_v1 = vmov 0.0  }
  0xbd   : > { %36225 = vmatprep.subr.bf16.mxu0 %v38222_v0  ;;  %33247 = vmatprep.mubr.msk.f32.mxu0 %vm38223_vm0, %v38224_v1  ;;  %v593_v2 = vld [vmem:[#allocation2] sm:$0xff]  ;;  %v594_v3 = vld [vmem:[#allocation2 + $0x8] sm:$0xff]  ;;  %v595_v4 = vld [vmem:[#allocation2 + $0x10] sm:$0xff]  ;;  %vm608_vm1 = vcmask 523264   ;;  %vm1175_vm2 = vcmask 261120   ;;  %s38225_s24 = smov 96  }
  0xbe   : > { %s41926_s19 = smov (!%p584_p8, %s38326_s19), 1  ;;  %36297 = vmatprep.subr.bf16.mxu1 %v38222_v0  ;;  %33353 = vmatprep.mubr.msk.f32.mxu1 %vm38223_vm0, %v38224_v1  ;;  %v613_v5 = vand.u32 4294901760, %v593_v2  ;;  %v616_v6 = vand.u32 4294901760, %v594_v3  ;;  %v596_v7 = vld [vmem:[#allocation2 + $0x18] sm:$0xff]  ;;  %v619_v8 = vand.u32 4294901760, %v595_v4  ;;  %v597_v9 = vld [vmem:[#allocation2 + $0x20] sm:$0xff] }
  0xbf   : > { %s41862_s18 = sshll.u32 %s41926_s19, 3  ;;  %v598_v10 = vld [vmem:[#allocation2 + $0x28] sm:$0xff]  ;;  %v622_v11 = vand.u32 4294901760, %v596_v7  ;;  %v625_v18 = vand.u32 4294901760, %v597_v9  ;;  %v599_v20 = vld [vmem:[#allocation2 + $0x30] sm:$0xff]  ;;  %v600_v21 = vld [vmem:[#allocation2 + $0x38] sm:$0xff] }
  0xc0   : > { %s38554_s16 = scalar_lea.vmem %s41840_s0, %s41862_s18  ;;  %v38557_v13 = vpack.c.bf16 %v616_v6, %v613_v5  ;;  %v38559_v14 = vsub.f32 %v593_v2, %v613_v5  ;;  %v38561_v15 = vsub.f32 %v594_v3, %v616_v6  ;;  %v38563_v16 = vsub.f32 %v595_v4, %v619_v8  ;;  %s38226_s15 = smov 120  }
  0xc1   : > { %v592_v12 = vld [vmem:[%s38554_s16] sm:$0xff]  ;;  %v38565_v17 = vsub.f32 %v596_v7, %v622_v11  ;;  %v628_v19 = vand.u32 4294901760, %v598_v10  ;;  %v38568_v22 = vpack.c.bf16 %v622_v11, %v619_v8  ;;  %v631_v27 = vand.u32 4294901760, %v599_v20  ;;  %s38227_s26 = smov 88   ;;  %s38228_s28 = smov 80  }
  0xc2   : > { %36227 = vmatpush3.bf16.msra.mxu0 %v38557_v13  ;;  %v610_v23 = vsel %vm608_vm1, %v592_v12, 0  ;;  %v698_v25 = vand.u32 4294901760, %v38559_v14  ;;  %v705_v26 = vand.u32 4294901760, %v38561_v15  ;;  %v634_v28 = vand.u32 4294901760, %v600_v21  ;;  %v1149_v11 = vld [vmem:[#allocation4] sm:$0xff]  ;;  %v1150_v12 = vld [vmem:[#allocation4 + $0x8] sm:$0xff] }
  0xc3   : > { %36228 = vmatprep.subr.bf16.mxu0 %v38222_v0  ;;  %v38572_v24 = vand.u32 4294901760, %v610_v23  ;;  %v38576_v29 = vpack.c.bf16 %v628_v19, %v625_v18  ;;  %v712_v31 = vand.u32 4294901760, %v38563_v16  ;;  %v719_v32 = vand.u32 4294901760, %v38565_v17  ;;  %s38229_s30 = smov 112   ;;  %s38230_s14 = smov 72  }
  0xc4   : > { %v38584_v33 = vsub.f32 %v597_v9, %v625_v18  ;;  %v38586_v34 = vsub.f32 %v598_v10, %v628_v19  ;;  %v699_v35 = vsub.f32 %v38559_v14, %v698_v25  ;;  %v706_v36 = vsub.f32 %v38561_v15, %v705_v26  ;;  %s38231_s27 = smov 104   ;;  %s38232_s10 = smov 64  }
  0xc5   : > { %v38579_v30 = vsub.f32 %v610_v23, %v38572_v24  ;;  %v38596_v38 = vpack.c.bf16 %v634_v28, %v631_v27  ;;  %v38598_v39 = vsub.f32 %v599_v20, %v631_v27  ;;  %v38600_v40 = vsub.f32 %v600_v21, %v634_v28  ;;  %s38233_s20 = smov 56   ;;  %s38234_s25 = smov 48  }
  0xc6   : > { %36230 = vmatpush3.bf16.msra.mxu0 %v38568_v22  ;;  %v713_v42 = vsub.f32 %v38563_v16, %v712_v31  ;;  %v720_v43 = vsub.f32 %v38565_v17, %v719_v32  ;;  %v700_v44 = vand.u32 4294901760, %v699_v35  ;;  %v707_v45 = vand.u32 4294901760, %v706_v36  ;;  %s41871_s17 = smov 40   ;;  %s41869_s29 = smov 8  }
  0xc7   : > { %36231 = vmatprep.subr.bf16.mxu0 %v38222_v0  ;;  %v687_v37 = vand.u32 4294901760, %v38579_v30  ;;  %v726_v46 = vand.u32 4294901760, %v38584_v33  ;;  %v733_v47 = vand.u32 4294901760, %v38586_v34  ;;  %v740_v51 = vand.u32 4294901760, %v38598_v39  ;;  %s41865_s22 = smov 16   ;;  %s41863_s12 = smov 24  }
  0xc8   : > { %v714_v49 = vand.u32 4294901760, %v713_v42  ;;  %v721_v50 = vand.u32 4294901760, %v720_v43  ;;  %v36238_v52 = vpack.c.bf16 %v707_v45, %v700_v44  ;;  %v747_v55 = vand.u32 4294901760, %v38600_v40  ;;  %v38721_v43 = vld [vmem:[#allocation6] sm:$0xff]  ;;  %v38723_v44 = vld [vmem:[#allocation6 + $0x8] sm:$0xff]  ;;  %s41901_s18 = sld [smem:[#allocation18_spill]] }
  0xc9   : > { %v688_v41 = vsub.f32 %v38579_v30, %v687_v37  ;;  %v727_v53 = vsub.f32 %v38584_v33, %v726_v46  ;;  %v734_v54 = vsub.f32 %v38586_v34, %v733_v47  ;;  %v741_v56 = vsub.f32 %v38598_v39, %v740_v51  ;;  %s41903_s21 = smov 16   ;;  %s41904_s23 = smov 24  }
  0xca   : > { %36233 = vmatpush3.bf16.msra.mxu0 %v38576_v29  ;;  %v36241_v57 = vpack.c.bf16 %v721_v50, %v714_v49  ;;  %v748_v60 = vsub.f32 %v38600_v40, %v747_v55  ;;  %v36250_v3 = vpack.c.bf16 %v38561_v15, %v38559_v14  ;;  %v36253_v4 = vpack.c.bf16 %v38565_v17, %v38563_v16  ;;  %v1151_v15 = vld [vmem:[#allocation4 + $0x10] sm:$0xff]  ;;  %v1152_v16 = vld [vmem:[#allocation4 + $0x18] sm:$0xff] }
  0xcb   : > { %36234 = vmatprep.subr.bf16.mxu0 %v38222_v0  ;;  %v689_v48 = vand.u32 4294901760, %v688_v41  ;;  %v728_v58 = vand.u32 4294901760, %v727_v53  ;;  %v735_v59 = vand.u32 4294901760, %v734_v54  ;;  %v742_v62 = vand.u32 4294901760, %v741_v56  ;;  %v38737_v49 = vld [vmem:[#allocation6 + $0x10] sm:$0xff]  ;;  %v38739_v50 = vld [vmem:[#allocation6 + $0x18] sm:$0xff] }
  0xcc   : > { %v749_v63 = vand.u32 4294901760, %v748_v60  ;;  %v36256_v5 = vpack.c.bf16 %v38586_v34, %v38584_v33  ;;  %v36259_v6 = vpack.c.bf16 %v38600_v40, %v38598_v39  ;;  %v36274_v7 = vpack.c.bf16 %v705_v26, %v698_v25 }
  0xcd   : > { %v36244_v61 = vpack.c.bf16 %v735_v59, %v728_v58  ;;  %v36277_v8 = vpack.c.bf16 %v719_v32, %v712_v31  ;;  %v36280_v9 = vpack.c.bf16 %v733_v47, %v726_v46  ;;  %v36283_v10 = vpack.c.bf16 %v747_v55, %v740_v51  ;;  %v31900_v59 = vld [vmem:[%s41842_s2] ss:$0 sm:$0xff] }
  0xce   : > { %36236 = vmatpush3.bf16.msra.mxu0 %v38596_v38  ;;  %v36247_v2 = vpack.c.bf16 %v749_v63, %v742_v62  ;;  %v1183_v14 = vand.u32 4294901760, %v1150_v12  ;;  %v1186_v20 = vand.u32 4294901760, %v1151_v15  ;;  %v1189_v21 = vand.u32 4294901760, %v1152_v16 }
  0xcf   : > { %36237 = vmatprep.subr.bf16.mxu0 %v38222_v0  ;;  %v1675_v45 = vand.u32 4294901760, %v38721_v43  ;;  %v1678_v46 = vand.u32 4294901760, %v38723_v44  ;;  %v1681_v51 = vand.u32 4294901760, %v38737_v49  ;;  %vm2162_vm3 = vcmask 64512  }
  0xd0   : > { %v38693_v19 = vsub.f32 %v1150_v12, %v1183_v14  ;;  %v38701_v25 = vpack.c.bf16 %v1189_v21, %v1186_v20  ;;  %v38703_v26 = vsub.f32 %v1152_v16, %v1189_v21  ;;  %vm5845_vm4 = vcmask 130048  }
  0xd1   : > { %33248 = vmatmul.mubr.f32.vlgmr.msra.gmra.mrb[0].mxu0 %v689_v48  ;;  %v38730_v47 = vsub.f32 %v38721_v43, %v1675_v45  ;;  %v38735_v48 = vsub.f32 %v38723_v44, %v1678_v46  ;;  %v38748_v55 = vsub.f32 %v38737_v49, %v1681_v51  ;;  %vm5847_vm5 = vcmask 195584  }
  0xd2   : > { %36239 = vmatpush3.bf16.msra.mxu0 %v36238_v52  ;;  %33266 = vmatprep.mubr.msk.f32.mxu0 %vm38223_vm0, %v38224_v1  ;;  %v1282_v32 = vand.u32 4294901760, %v38703_v26  ;;  %v1684_v52 = vand.u32 4294901760, %v38739_v50 }
  0xd3   : > { %36240 = vmatprep.subr.bf16.mxu0 %v38222_v0  ;;  %v1756_v53 = vand.u32 4294901760, %v38730_v47  ;;  %v1763_v54 = vand.u32 4294901760, %v38735_v48 }
  0xd4   : > { %v1283_v35 = vsub.f32 %v38703_v26, %v1282_v32  ;;  %v38753_v56 = vsub.f32 %v38739_v50, %v1684_v52 }
  0xd5   : > { %v1764_v58 = vsub.f32 %v38735_v48, %v1763_v54 }
  0xd6   : > { %36242 = vmatpush3.bf16.msra.mxu0 %v36241_v57  ;;  %v1757_v57 = vsub.f32 %v38730_v47, %v1756_v53  ;;  %v1777_v62 = vand.u32 4294901760, %v38753_v56 }
  0xd7   : > { %36243 = vmatprep.subr.bf16.mxu0 %v38222_v0  ;;  %v1765_v63 = vand.u32 4294901760, %v1764_v58 }
  0xd8   : > { %v1758_v60 = vand.u32 4294901760, %v1757_v57 }
  0xda   : > { %36245 = vmatpush3.bf16.msra.mxu0 %v36244_v61  ;;  %v1770_v61 = vand.u32 4294901760, %v38748_v55 }
  0xdb   : > { %36246 = vmatprep.subr.bf16.mxu0 %v38222_v0 }
  0xdc   : > { %v36361_v21 = vpack.c.bf16 %v1777_v62, %v1770_v61 }
  0xde   : > { %36248 = vmatpush3.bf16.msra.mxu0 %v36247_v2 }
  0xdf   : > { %36249 = vmatprep.subr.bf16.mxu0 %v38222_v0 }
  0xe1   : > { %33267 = vmatmul.mubr.f32.vlgmr.msra.gmra.mrb[0].mxu0 %v38572_v24 }
  0xe2   : > { %36251 = vmatpush3.bf16.msra.mxu0 %v36250_v3  ;;  %33285 = vmatprep.mubr.msk.f32.mxu0 %vm38223_vm0, %v38224_v1  ;;  %v1771_v3 = vsub.f32 %v38748_v55, %v1770_v61 }
  0xe3   : > { %36252 = vmatprep.subr.bf16.mxu0 %v38222_v0 }
  0xe6   : > { %36254 = vmatpush3.bf16.msra.mxu0 %v36253_v4  ;;  %v1778_v4 = vsub.f32 %v38753_v56, %v1777_v62 }
  0xe7   : > { %36255 = vmatprep.subr.bf16.mxu0 %v38222_v0 }
  0xea   : > { %36257 = vmatpush3.bf16.msra.mxu0 %v36256_v5 }
  0xeb   : > { %36258 = vmatprep.subr.bf16.mxu0 %v38222_v0 }
  0xee   : > { %36260 = vmatpush3.bf16.msra.mxu0 %v36259_v6 }
  0xef   : > { %36261 = vmatprep.subr.bf16.mxu0 %v38222_v0 }
  0xf1   : > { %33286 = vmatmul.mubr.f32.vlgmr.msra.gmra.mrb[0].mxu0 %v38579_v30 }
  0xf2   : > { %36263 = vmatpush3.bf16.msra.mxu0 %v38557_v13  ;;  %33304 = vmatprep.mubr.msk.f32.mxu0 %vm38223_vm0, %v38224_v1 }
  0xf3   : > { %36264 = vmatprep.subr.bf16.mxu0 %v38222_v0 }
  0xf6   : > { %36266 = vmatpush3.bf16.msra.mxu0 %v38568_v22 }
  0xf7   : > { %36267 = vmatprep.subr.bf16.mxu0 %v38222_v0 }
  0xfa   : > { %36269 = vmatpush3.bf16.msra.mxu0 %v38576_v29 }
  0xfb   : > { %36270 = vmatprep.subr.bf16.mxu0 %v38222_v0 }
  0xfe   : > { %36272 = vmatpush3.bf16.msra.mxu0 %v38596_v38 }
  0xff   : > { %36273 = vmatprep.subr.bf16.mxu0 %v38222_v0 }
 0x101   : > { %33305 = vmatmul.mubr.f32.vlgmr.msra.gmra.mrb[0].mxu0 %v687_v37  ;;  %v1284_v37 = vand.u32 4294901760, %v1283_v35 }
 0x102   : > { %36275 = vmatpush3.bf16.msra.mxu0 %v36274_v7  ;;  %33323 = vmatprep.mubr.msk.f32.mxu0 %vm38223_vm0, %v38224_v1  ;;  %v36340_v7 = vpack.c.bf16 %v1765_v63, %v1758_v60 }
 0x103   : > { %36276 = vmatprep.subr.bf16.mxu0 %v38222_v0 }
 0x106   : > { %36278 = vmatpush3.bf16.msra.mxu0 %v36277_v8  ;;  %v1772_v8 = vand.u32 4294901760, %v1771_v3 }
 0x107   : > { %36279 = vmatprep.subr.bf16.mxu0 %v38222_v0 }
 0x10a   : > { %36281 = vmatpush3.bf16.msra.mxu0 %v36280_v9  ;;  %v1779_v9 = vand.u32 4294901760, %v1778_v4 }
 0x10b   : > { %36282 = vmatprep.subr.bf16.mxu0 %v38222_v0 }
 0x10c   : > { %v36343_v12 = vpack.c.bf16 %v1779_v9, %v1772_v8 }
 0x10e   : > { %36284 = vmatpush3.bf16.msra.mxu0 %v36283_v10 }
 0x10f   : > { %36285 = vmatprep.subr.bf16.mxu0 %v38222_v0 }
 0x111   : > { %33324 = vmatmul.mubr.f32.vlgmr.msra.gmra.mrb[0].mxu0 %v38572_v24 }
 0x112   : > { %36287 = vmatpush3.bf16.msra.mxu0 %v38557_v13  ;;  %33342 = vmatprep.mubr.msk.f32.mxu0 %vm38223_vm0, %v38224_v1  ;;  %v1180_v13 = vand.u32 4294901760, %v1149_v11 }
 0x113   : > { %36288 = vmatprep.subr.bf16.mxu0 %v38222_v0 }
 0x114   : > { %v38689_v17 = vpack.c.bf16 %v1183_v14, %v1180_v13  ;;  %v38691_v18 = vsub.f32 %v1149_v11, %v1180_v13 }
 0x116   : > { %36290 = vmatpush3.bf16.msra.mxu0 %v38568_v22  ;;  %36299 = vmatpush3.bf16.msra.mxu1 %v38689_v17  ;;  %v38696_v22 = vsub.f32 %v1151_v15, %v1186_v20  ;;  %v1261_v23 = vand.u32 4294901760, %v38691_v18  ;;  %v36310_v39 = vpack.c.bf16 %v38693_v19, %v38691_v18  ;;  %v36346_v15 = vpack.c.bf16 %v38735_v48, %v38730_v47 }
 0x117   : > { %36291 = vmatprep.subr.bf16.mxu0 %v38222_v0  ;;  %36300 = vmatprep.subr.bf16.mxu1 %v38222_v0  ;;  %v36358_v20 = vpack.c.bf16 %v1763_v54, %v1756_v53 }
 0x118   : > { %v1262_v27 = vsub.f32 %v38691_v18, %v1261_v23  ;;  %v1275_v31 = vand.u32 4294901760, %v38696_v22  ;;  %v36313_v40 = vpack.c.bf16 %v38703_v26, %v38696_v22  ;;  %v36349_v18 = vpack.c.bf16 %v38753_v56, %v38748_v55 }
 0x11a   : > { %36293 = vmatpush3.bf16.msra.mxu0 %v38576_v29  ;;  %36302 = vmatpush3.bf16.msra.mxu1 %v38701_v25  ;;  %v1263_v29 = vand.u32 4294901760, %v1262_v27  ;;  %v1276_v34 = vsub.f32 %v38696_v22, %v1275_v31  ;;  %v38719_v42 = vpack.c.bf16 %v1282_v32, %v1275_v31  ;;  %v36334_v22 = vpack.c.bf16 %v1678_v46, %v1675_v45 }
 0x11b   : > { %36294 = vmatprep.subr.bf16.mxu0 %v38222_v0  ;;  %36303 = vmatprep.subr.bf16.mxu1 %v38222_v0 }
 0x11c   : > { %v1277_v36 = vand.u32 4294901760, %v1276_v34  ;;  %v31902_v34 = vld [vmem:[%s41846_s6] ss:$0 sm:$0xff] }
 0x11e   : > { %36296 = vmatpush3.bf16.msra.mxu0 %v38596_v38  ;;  %v36307_v38 = vpack.c.bf16 %v1284_v37, %v1277_v36 }
 0x11f   : > { %33477 = vmatprep.subr.mxu0 %v38224_v1 }
 0x121   : > { %33343 = vmatmul.mubr.f32.vlgmr.msra.gmra.mrb[0].mxu0 %v38572_v24  ;;  %v1268_v24 = vand.u32 4294901760, %v38693_v19 }
 0x122   : > { %33479 = vmatprep.mubr.msk.f32.mxu0 %vm38223_vm0, %v38224_v1 }
 0x123   : > { %v1269_v28 = vsub.f32 %v38693_v19, %v1268_v24  ;;  %v38717_v41 = vpack.c.bf16 %v1268_v24, %v1261_v23 }
 0x125   : > { %v1270_v30 = vand.u32 4294901760, %v1269_v28 }
 0x127   : > { %v36304_v33 = vpack.c.bf16 %v1270_v30, %v1263_v29  ;;  %v31901_v30 = vld [vmem:[%s41844_s4] ss:$0 sm:$0xff] }
 0x1f4   : > { %v1145_v2 = vpop.f32.mrb[0].mxu0 }
 0x1f5   : > { %v38764_v5 = vadd.f32 %v31900_v59, %v1145_v2  ;;  %v33344_v6 = vpop.f32.mrb[1].mxu0 }
 0x1f7   : > { %v1177_v10 = vsel %vm1175_vm2, %v38764_v5, 0  ;;  %1670 = vrot.lane.b32.xlu0 %v38764_v5, %s38225_s24 }
 0x1f8   : > { %v1248_v11 = vand.u32 4294901760, %v1177_v10 }
 0x1fa   : > { %v1249_v13 = vsub.f32 %v1177_v10, %v1248_v11 }
 0x1fc   : > { %v1250_v14 = vand.u32 4294901760, %v1249_v13 }
 0x1fe   : > { %v1251_v16 = vsub.f32 %v1249_v13, %v1250_v14 }
 0x200   : > { %v1252_v19 = vand.u32 4294901760, %v1251_v16 }
 0x202   : > { %33354 = vmatmul.mubr.f32.vlgmr.msra.gmra.mrb[0].mxu1 %v1252_v19 }
 0x203   : > { %36305 = vmatpush3.bf16.msra.mxu1 %v36304_v33  ;;  %33364 = vmatprep.mubr.msk.f32.mxu1 %vm38223_vm0, %v38224_v1 }
 0x204   : > { %36306 = vmatprep.subr.bf16.mxu1 %v38222_v0 }
 0x207   : > { %36308 = vmatpush3.bf16.msra.mxu1 %v36307_v38 }
 0x208   : > { %36309 = vmatprep.subr.bf16.mxu1 %v38222_v0 }
 0x20a   : > { %33365 = vmatmul.mubr.f32.vlgmr.msra.gmra.mrb[0].mxu1 %v1248_v11 }
 0x20b   : > { %36311 = vmatpush3.bf16.msra.mxu1 %v36310_v39  ;;  %33375 = vmatprep.mubr.msk.f32.mxu1 %vm38223_vm0, %v38224_v1 }
 0x20c   : > { %36312 = vmatprep.subr.bf16.mxu1 %v38222_v0 }
 0x20f   : > { %36314 = vmatpush3.bf16.msra.mxu1 %v36313_v40 }
 0x210   : > { %36315 = vmatprep.subr.bf16.mxu1 %v38222_v0 }
 0x212   : > { %33376 = vmatmul.mubr.f32.vlgmr.msra.gmra.mrb[0].mxu1 %v1249_v13 }
 0x213   : > { %36317 = vmatpush3.bf16.msra.mxu1 %v38689_v17  ;;  %33386 = vmatprep.mubr.msk.f32.mxu1 %vm38223_vm0, %v38224_v1 }
 0x214   : > { %36318 = vmatprep.subr.bf16.mxu1 %v38222_v0 }
 0x217   : > { %36320 = vmatpush3.bf16.msra.mxu1 %v38701_v25 }
 0x218   : > { %36321 = vmatprep.subr.bf16.mxu1 %v38222_v0 }
 0x21a   : > { %33387 = vmatmul.mubr.f32.vlgmr.msra.gmra.mrb[0].mxu1 %v1250_v14 }
 0x21b   : > { %36323 = vmatpush3.bf16.msra.mxu1 %v38717_v41  ;;  %33397 = vmatprep.mubr.msk.f32.mxu1 %vm38223_vm0, %v38224_v1 }
 0x21c   : > { %36324 = vmatprep.subr.bf16.mxu1 %v38222_v0 }
 0x21f   : > { %36326 = vmatpush3.bf16.msra.mxu1 %v38719_v42 }
 0x220   : > { %36327 = vmatprep.subr.bf16.mxu1 %v38222_v0 }
 0x222   : > { %33398 = vmatmul.mubr.f32.vlgmr.msra.gmra.mrb[0].mxu1 %v1248_v11 }
 0x223   : > { %36329 = vmatpush3.bf16.msra.mxu1 %v38689_v17  ;;  %33408 = vmatprep.mubr.msk.f32.mxu1 %vm38223_vm0, %v38224_v1  ;;  %v36337_v17 = vpack.c.bf16 %v1684_v52, %v1681_v51 }
 0x224   : > { %36330 = vmatprep.subr.bf16.mxu1 %v38222_v0 }
 0x227   : > { %36332 = vmatpush3.bf16.msra.mxu1 %v38701_v25 }
 0x228   : > { %36333 = vmatprep.subr.bf16.mxu1 %v38222_v0 }
 0x22a   : > { %33409 = vmatmul.mubr.f32.vlgmr.msra.gmra.mrb[0].mxu1 %v1248_v11 }
 0x22b   : > { %36335 = vmatpush3.bf16.msra.mxu1 %v36334_v22  ;;  %33419 = vmatprep.mubr.msk.f32.mxu1 %vm38223_vm0, %v38224_v1 }
 0x22c   : > { %36336 = vmatprep.subr.bf16.mxu1 %v38222_v0 }
 0x22f   : > { %36338 = vmatpush3.bf16.msra.mxu1 %v36337_v17 }
 0x230   : > { %36339 = vmatprep.subr.bf16.mxu1 %v38222_v0 }
 0x269   : > { %v1671_v23 = vpop.permute.xlu0 %1670 }
 0x26a   : > { %v1672_v24 = vsel %vm1175_vm2, %v1671_v23, 0 }
 0x26b   : > { %v1743_v25 = vand.u32 4294901760, %v1672_v24 }
 0x26d   : > { %v1744_v26 = vsub.f32 %v1672_v24, %v1743_v25 }
 0x26f   : > { %v1745_v27 = vand.u32 4294901760, %v1744_v26 }
 0x271   : > { %v1746_v28 = vsub.f32 %v1744_v26, %v1745_v27 }
 0x273   : > { %v1747_v29 = vand.u32 4294901760, %v1746_v28 }
 0x275   : > { %33420 = vmatmul.mubr.f32.vlgmr.msra.gmra.mrb[2].mxu1 %v1747_v29 }
 0x276   : > { %36341 = vmatpush3.bf16.msra.mxu1 %v36340_v7  ;;  %33430 = vmatprep.mubr.msk.f32.mxu1 %vm38223_vm0, %v38224_v1 }
 0x277   : > { %36342 = vmatprep.subr.bf16.mxu1 %v38222_v0 }
 0x27a   : > { %36344 = vmatpush3.bf16.msra.mxu1 %v36343_v12 }
 0x27b   : > { %36345 = vmatprep.subr.bf16.mxu1 %v38222_v0 }
 0x27d   : > { %33431 = vmatmul.mubr.f32.vlgmr.msra.gmra.mrb[2].mxu1 %v1743_v25 }
 0x27e   : > { %36347 = vmatpush3.bf16.msra.mxu1 %v36346_v15  ;;  %33441 = vmatprep.mubr.msk.f32.mxu1 %vm38223_vm0, %v38224_v1 }
 0x27f   : > { %36348 = vmatprep.subr.bf16.mxu1 %v38222_v0 }
 0x282   : > { %36350 = vmatpush3.bf16.msra.mxu1 %v36349_v18 }
 0x283   : > { %36351 = vmatprep.subr.bf16.mxu1 %v38222_v0 }
 0x285   : > { %33442 = vmatmul.mubr.f32.vlgmr.msra.gmra.mrb[2].mxu1 %v1744_v26 }
 0x286   : > { %36353 = vmatpush3.bf16.msra.mxu1 %v36334_v22  ;;  %33452 = vmatprep.mubr.msk.f32.mxu1 %vm38223_vm0, %v38224_v1 }
 0x287   : > { %36354 = vmatprep.subr.bf16.mxu1 %v38222_v0 }
 0x28a   : > { %36356 = vmatpush3.bf16.msra.mxu1 %v36337_v17 }
 0x28b   : > { %36357 = vmatprep.subr.bf16.mxu1 %v38222_v0 }
 0x28d   : > { %33453 = vmatmul.mubr.f32.vlgmr.msra.gmra.mrb[2].mxu1 %v1745_v27 }
 0x28e   : > { %36359 = vmatpush3.bf16.msra.mxu1 %v36358_v20  ;;  %33463 = vmatprep.mubr.msk.f32.mxu1 %vm38223_vm0, %v38224_v1 }
 0x28f   : > { %36360 = vmatprep.subr.bf16.mxu1 %v38222_v0 }
 0x292   : > { %36362 = vmatpush3.bf16.msra.mxu1 %v36361_v21 }
 0x293   : > { %36363 = vmatprep.subr.bf16.mxu1 %v38222_v0 }
 0x295   : > { %33464 = vmatmul.mubr.f32.vlgmr.msra.gmra.mrb[2].mxu1 %v1743_v25 }
 0x296   : > { %36365 = vmatpush3.bf16.msra.mxu1 %v36334_v22  ;;  %33474 = vmatprep.mubr.msk.f32.mxu1 %vm38223_vm0, %v38224_v1 }
 0x297   : > { %36366 = vmatprep.subr.bf16.mxu1 %v38222_v0 }
 0x29a   : > { %36368 = vmatpush3.bf16.msra.mxu1 %v36337_v17 }
 0x29b   : > { %33507 = vmatprep.subr.mxu1 %v38224_v1 }
 0x29d   : > { %33475 = vmatmul.mubr.f32.vlgmr.msra.gmra.mrb[2].mxu1 %v1743_v25 }
 0x29e   : > { %33509 = vmatprep.mubr.msk.f32.mxu1 %vm38223_vm0, %v38224_v1 }
 0x2fd   : > { %v1660_v31 = vpop.f32.mrb[0].mxu1 }
 0x2fe   : > { %v38838_v32 = vadd.f32 %v31901_v30, %v1660_v31  ;;  %v33410_v33 = vpop.f32.mrb[1].mxu1 }
 0x300   : > { %3078 = vrot.lane.b32.xlu1 %v38838_v32, %s38226_s15  ;;  %v2164_v38 = vsel %vm2162_vm3, %v38838_v32, 0 }
 0x301   : > { %v2234_v39 = vand.u32 4294901760, %v2164_v38 }
 0x303   : > { %v2235_v40 = vsub.f32 %v2164_v38, %v2234_v39 }
 0x305   : > { %v2236_v41 = vand.u32 4294901760, %v2235_v40 }
 0x307   : > { %v2237_v44 = vsub.f32 %v2235_v40, %v2236_v41 }
 0x309   : > { %v2238_v47 = vand.u32 4294901760, %v2237_v44 }
 0x370   : > { %v2155_v35 = vpop.f32.mrb[2].mxu1 }
 0x371   : > { %v38845_v36 = vadd.f32 %v31902_v34, %v2155_v35  ;;  %v33476_v37 = vpop.f32.mrb[3].mxu1 }
 0x372   : > { %v3079_v51 = vpop.permute.xlu1 %3078 }
 0x373   : > { %3080 = vrot.lane.b32.xlu1 %v38845_v36, %s38227_s26  ;;  %2160 = vrot.lane.b32.xlu0 %v38845_v36, %s38225_s24  ;;  %v3082_v53 = vsel %vm2162_vm3, %v3079_v51, 0  ;;  %v5851_v34 = vsel %vm2162_vm3, %v38845_v36, 0 }
 0x374   : > { %v3152_v55 = vand.u32 4294901760, %v3082_v53  ;;  %v5921_v37 = vand.u32 4294901760, %v5851_v34 }
 0x376   : > { %v3153_v57 = vsub.f32 %v3082_v53, %v3152_v55 }
 0x377   : > { %3998 = vrot.lane.b32.xlu1 %v38845_v36, %s38228_s28  ;;  %3996 = vrot.lane.b32.xlu0 %v38838_v32, %s38229_s30 }
 0x378   : > { %v3154_v59 = vand.u32 4294901760, %v3153_v57 }
 0x37a   : > { %v3155_v61 = vsub.f32 %v3153_v57, %v3154_v59 }
 0x37b   : > { %4916 = vrot.lane.b32.xlu1 %v38845_v36, %s38230_s14  ;;  %4914 = vrot.lane.b32.xlu0 %v38838_v32, %s38231_s27 }
 0x37c   : > { %v3156_v63 = vand.u32 4294901760, %v3155_v61 }
 0x37f   : > { %6765 = vrot.lane.b32.xlu1 %v38845_v36, %s38226_s15  ;;  %5849 = vrot.lane.b32.xlu0 %v38838_v32, %s38225_s24 }
 0x383   : > { %7683 = vrot.lane.b32.xlu1 %v38845_v36, %s38229_s30  ;;  %6767 = vrot.lane.b32.xlu0 %v38838_v32, %s38227_s26 }
 0x387   : > { %8601 = vrot.lane.b32.xlu1 %v38845_v36, %s38231_s27  ;;  %7685 = vrot.lane.b32.xlu0 %v38838_v32, %s38228_s28 }
 0x38b   : > { %8603 = vrot.lane.b32.xlu0 %v38838_v32, %s38230_s14 }
 0x3e5   : > { %v2161_v42 = vpop.permute.xlu0 %2160  ;;  %v3081_v52 = vpop.permute.xlu1 %3080 }
 0x3e6   : > { %v2166_v43 = vsel %vm2162_vm3, %v2161_v42, 0  ;;  %v3084_v54 = vsel %vm2162_vm3, %v3081_v52, 0 }
 0x3e7   : > { %v2169_v45 = vand.u32 4294901760, %v2166_v43  ;;  %v3087_v56 = vand.u32 4294901760, %v3084_v54 }
 0x3e9   : > { %v2246_v46 = vsub.f32 %v2166_v43, %v2169_v45  ;;  %33478 = vmatpush3.xpose.msra.mxu0 %v2169_v45  ;;  %v3164_v58 = vsub.f32 %v3084_v54, %v3087_v56  ;;  %v3997_v3 = vpop.permute.xlu0 %3996  ;;  %v3999_v4 = vpop.permute.xlu1 %3998 }
 0x3ea   : > { %33482 = vmatprep.subr.mxu0 %v38224_v1  ;;  %v4000_v6 = vsel %vm2162_vm3, %v3997_v3, 0  ;;  %v4002_v7 = vsel %vm2162_vm3, %v3999_v4, 0 }
 0x3eb   : > { %v2247_v48 = vand.u32 4294901760, %v2246_v46  ;;  %v3165_v60 = vand.u32 4294901760, %v3164_v58  ;;  %v4070_v8 = vand.u32 4294901760, %v4000_v6  ;;  %v4005_v9 = vand.u32 4294901760, %v4002_v7 }
 0x3ec   : > { %33480 = vmatmul.mubr.f32.vlgmr.msra.gmra.mrb[2].mxu0 %v2238_v47 }
 0x3ed   : > { %v2248_v49 = vsub.f32 %v2246_v46, %v2247_v48  ;;  %33484 = vmatprep.mubr.msk.f32.mxu0 %vm38223_vm0, %v38224_v1  ;;  %v3166_v62 = vsub.f32 %v3164_v58, %v3165_v60  ;;  %v4071_v10 = vsub.f32 %v4000_v6, %v4070_v8  ;;  %v4082_v11 = vsub.f32 %v4002_v7, %v4005_v9  ;;  %v4915_v19 = vpop.permute.xlu0 %4914  ;;  %v4917_v20 = vpop.permute.xlu1 %4916 }
 0x3ee   : > { %v4918_v21 = vsel %vm2162_vm3, %v4915_v19, 0  ;;  %v4920_v22 = vsel %vm2162_vm3, %v4917_v20, 0 }
 0x3ef   : > { %v2249_v50 = vand.u32 4294901760, %v2248_v49  ;;  %v3167_v2 = vand.u32 4294901760, %v3166_v62  ;;  %v4072_v12 = vand.u32 4294901760, %v4071_v10  ;;  %v4083_v13 = vand.u32 4294901760, %v4082_v11 }
 0x3f0   : > { %v4988_v17 = vand.u32 4294901760, %v4918_v21  ;;  %v4923_v23 = vand.u32 4294901760, %v4920_v22 }
 0x3f1   : > { %33483 = vmatpush3.xpose.msra.mxu0 %v2249_v50  ;;  %v4073_v14 = vsub.f32 %v4071_v10, %v4072_v12  ;;  %v4084_v15 = vsub.f32 %v4082_v11, %v4083_v13  ;;  %v5850_v33 = vpop.permute.xlu0 %5849  ;;  %v6766_v47 = vpop.permute.xlu1 %6765 }
 0x3f2   : > { %33487 = vmatprep.subr.mxu0 %v38224_v1  ;;  %v4989_v24 = vsub.f32 %v4918_v21, %v4988_v17  ;;  %v5000_v25 = vsub.f32 %v4920_v22, %v4923_v23  ;;  %v5853_v35 = vsel %vm2162_vm3, %v5850_v33, 0  ;;  %v6769_v49 = vsel %vm2162_vm3, %v6766_v47, 0 }
 0x3f3   : > { %v4074_v16 = vand.u32 4294901760, %v4073_v14  ;;  %v4085_v18 = vand.u32 4294901760, %v4084_v15  ;;  %v5856_v38 = vand.u32 4294901760, %v5853_v35  ;;  %v6839_v51 = vand.u32 4294901760, %v6769_v49 }
 0x3f4   : > { %33485 = vmatmul.mubr.f32.vlgmr.msra.gmra.mrb[2].mxu0 %v2234_v39  ;;  %v4990_v26 = vand.u32 4294901760, %v4989_v24  ;;  %v5001_v27 = vand.u32 4294901760, %v5000_v25 }
 0x3f5   : > { %33488 = vmatpush3.xpose.msra.mxu0 %v2246_v46  ;;  %33489 = vmatprep.mubr.msk.f32.mxu0 %vm38223_vm0, %v38224_v1  ;;  %v6840_v53 = vsub.f32 %v6769_v49, %v6839_v51  ;;  %v7684_v61 = vpop.permute.xlu1 %7683 }
 0x3f6   : > { %33492 = vmatprep.subr.mxu0 %v38224_v1  ;;  %v4991_v28 = vsub.f32 %v4989_v24, %v4990_v26  ;;  %v5002_v29 = vsub.f32 %v5000_v25, %v5001_v27 }
 0x3f8   : > { %v4992_v30 = vand.u32 4294901760, %v4991_v28  ;;  %v5003_v31 = vand.u32 4294901760, %v5002_v29 }
 0x3f9   : > { %v8602_v19 = vpop.permute.xlu1 %8601 }
 0x3fa   : > { %v8605_v21 = vsel %vm2162_vm3, %v8602_v19, 0 }
 0x3fc   : > { %33490 = vmatmul.mubr.f32.vlgmr.msra.gmra.mrb[2].mxu0 %v2235_v40  ;;  %v5933_v40 = vsub.f32 %v5853_v35, %v5856_v38 }
 0x3fd   : > { %33493 = vmatpush3.xpose.msra.mxu0 %v2169_v45  ;;  %33494 = vmatprep.mubr.msk.f32.mxu0 %vm38223_vm0, %v38224_v1 }
 0x3fe   : > { %33497 = vmatprep.subr.mxu0 %v38224_v1  ;;  %v5934_v42 = vand.u32 4294901760, %v5933_v40 }
 0x400   : > { %v5935_v44 = vsub.f32 %v5933_v40, %v5934_v42 }
 0x402   : > { %v5936_v46 = vand.u32 4294901760, %v5935_v44 }
 0x404   : > { %33495 = vmatmul.mubr.f32.vlgmr.msra.gmra.mrb[2].mxu0 %v2236_v41 }
 0x405   : > { %33498 = vmatpush3.xpose.msra.mxu0 %v2247_v48  ;;  %33499 = vmatprep.mubr.msk.f32.mxu0 %vm38223_vm0, %v38224_v1  ;;  %v6768_v48 = vpop.permute.xlu0 %6767 }
 0x406   : > { %33502 = vmatprep.subr.mxu0 %v38224_v1  ;;  %v6771_v50 = vsel %vm2162_vm3, %v6768_v48, 0 }
 0x407   : > { %v6774_v52 = vand.u32 4294901760, %v6771_v50 }
 0x409   : > { %v6851_v54 = vsub.f32 %v6771_v50, %v6774_v52  ;;  %v7686_v62 = vpop.permute.xlu0 %7685 }
 0x40c   : > { %33500 = vmatmul.mubr.f32.vlgmr.msra.gmra.mrb[2].mxu0 %v2234_v39 }
 0x40d   : > { %33503 = vmatpush3.xpose.msra.mxu0 %v2169_v45  ;;  %33504 = vmatprep.mubr.msk.f32.mxu0 %vm38223_vm0, %v38224_v1  ;;  %v8604_v20 = vpop.permute.xlu0 %8603 }
 0x40e   : > { %33537 = vmatprep.subr.mxu0 %v38224_v1  ;;  %v8607_v22 = vsel %vm2162_vm3, %v8604_v20, 0 }
 0x414   : > { %33505 = vmatmul.mubr.f32.vlgmr.msra.gmra.mrb[2].mxu0 %v2234_v39  ;;  %v5922_v39 = vsub.f32 %v5851_v34, %v5921_v37 }
 0x415   : > { %33538 = vmatpush3.xpose.msra.mxu0 %v3087_v56  ;;  %33539 = vmatprep.mubr.msk.f32.mxu0 %vm38223_vm0, %v38224_v1 }
 0x416   : > { %33542 = vmatprep.subr.mxu0 %v38224_v1  ;;  %v5923_v41 = vand.u32 4294901760, %v5922_v39 }
 0x418   : > { %33540 = vmatmul.mubr.f32.vlgmr.msra.gmra.mrb[4].mxu0 %v3156_v63  ;;  %v5924_v43 = vsub.f32 %v5922_v39, %v5923_v41  ;;  %v7687_v63 = vsel %vm2162_vm3, %v7684_v61, 0 }
 0x419   : > { %33543 = vmatpush3.xpose.msra.mxu0 %v3167_v2  ;;  %33544 = vmatprep.mubr.msk.f32.mxu0 %vm38223_vm0, %v38224_v1  ;;  %v7689_v2 = vsel %vm2162_vm3, %v7686_v62, 0  ;;  %v7757_v3 = vand.u32 4294901760, %v7687_v63 }
 0x41a   : > { %33547 = vmatprep.subr.mxu0 %v38224_v1  ;;  %v5925_v45 = vand.u32 4294901760, %v5924_v43  ;;  %v7692_v4 = vand.u32 4294901760, %v7689_v2 }
 0x41b   : > { %v7758_v6 = vsub.f32 %v7687_v63, %v7757_v3 }
 0x41c   : > { %v7769_v7 = vsub.f32 %v7689_v2, %v7692_v4 }
 0x420   : > { %33545 = vmatmul.mubr.f32.vlgmr.msra.gmra.mrb[4].mxu0 %v3152_v55 }
 0x421   : > { %33548 = vmatpush3.xpose.msra.mxu0 %v3164_v58  ;;  %33549 = vmatprep.mubr.msk.f32.mxu0 %vm38223_vm0, %v38224_v1 }
 0x422   : > { %33552 = vmatprep.subr.mxu0 %v38224_v1 }
 0x428   : > { %33550 = vmatmul.mubr.f32.vlgmr.msra.gmra.mrb[4].mxu0 %v3153_v57 }
 0x429   : > { %33553 = vmatpush3.xpose.msra.mxu0 %v3087_v56  ;;  %33554 = vmatprep.mubr.msk.f32.mxu0 %vm38223_vm0, %v38224_v1 }
 0x42a   : > { %33557 = vmatprep.subr.mxu0 %v38224_v1 }
 0x430   : > { %33555 = vmatmul.mubr.f32.vlgmr.msra.gmra.mrb[4].mxu0 %v3154_v59 }
 0x431   : > { %33558 = vmatpush3.xpose.msra.mxu0 %v3165_v60  ;;  %33559 = vmatprep.mubr.msk.f32.mxu0 %vm38223_vm0, %v38224_v1 }
 0x432   : > { %33562 = vmatprep.subr.mxu0 %v38224_v1 }
 0x438   : > { %33560 = vmatmul.mubr.f32.vlgmr.msra.gmra.mrb[4].mxu0 %v3152_v55 }
 0x439   : > { %33563 = vmatpush3.xpose.msra.mxu0 %v3087_v56  ;;  %33564 = vmatprep.mubr.msk.f32.mxu0 %vm38223_vm0, %v38224_v1  ;;  %v6852_v56 = vand.u32 4294901760, %v6851_v54 }
 0x43a   : > { %33597 = vmatprep.subr.mxu0 %v38224_v1 }
 0x43b   : > { %v6853_v58 = vsub.f32 %v6851_v54, %v6852_v56 }
 0x43d   : > { %v6854_v60 = vand.u32 4294901760, %v6853_v58 }
 0x440   : > { %33565 = vmatmul.mubr.f32.vlgmr.msra.gmra.mrb[4].mxu0 %v3152_v55  ;;  %v6841_v55 = vand.u32 4294901760, %v6840_v53 }
 0x441   : > { %33598 = vmatpush3.xpose.msra.mxu0 %v4005_v9  ;;  %33599 = vmatprep.mubr.msk.f32.mxu0 %vm38223_vm0, %v38224_v1 }
 0x442   : > { %33602 = vmatprep.subr.mxu0 %v38224_v1  ;;  %v6842_v57 = vsub.f32 %v6840_v53, %v6841_v55 }
 0x444   : > { %33600 = vmatmul.mubr.f32.vlgmr.msra.gmra.mrb[6].mxu0 %v4074_v16  ;;  %v6843_v59 = vand.u32 4294901760, %v6842_v57 }
 0x445   : > { %33603 = vmatpush3.xpose.msra.mxu0 %v4085_v18  ;;  %33604 = vmatprep.mubr.msk.f32.mxu0 %vm38223_vm0, %v38224_v1 }
 0x446   : > { %33607 = vmatprep.subr.mxu0 %v38224_v1 }
 0x44c   : > { %33605 = vmatmul.mubr.f32.vlgmr.msra.gmra.mrb[6].mxu0 %v4070_v8 }
 0x44d   : > { %33608 = vmatpush3.xpose.msra.mxu0 %v4082_v11  ;;  %33609 = vmatprep.mubr.msk.f32.mxu0 %vm38223_vm0, %v38224_v1  ;;  %v7759_v11 = vand.u32 4294901760, %v7758_v6 }
 0x44e   : > { %33612 = vmatprep.subr.mxu0 %v38224_v1 }
 0x44f   : > { %v7760_v14 = vsub.f32 %v7758_v6, %v7759_v11 }
 0x451   : > { %v7761_v16 = vand.u32 4294901760, %v7760_v14 }
 0x454   : > { %33610 = vmatmul.mubr.f32.vlgmr.msra.gmra.mrb[6].mxu0 %v4071_v10 }
 0x455   : > { %33613 = vmatpush3.xpose.msra.mxu0 %v4005_v9  ;;  %33614 = vmatprep.mubr.msk.f32.mxu0 %vm38223_vm0, %v38224_v1 }
 0x456   : > { %33617 = vmatprep.subr.mxu0 %v38224_v1 }
 0x45c   : > { %33615 = vmatmul.mubr.f32.vlgmr.msra.gmra.mrb[6].mxu0 %v4072_v12 }
 0x45d   : > { %33618 = vmatpush3.xpose.msra.mxu0 %v4083_v13  ;;  %33619 = vmatprep.mubr.msk.f32.mxu0 %vm38223_vm0, %v38224_v1  ;;  %v7770_v13 = vand.u32 4294901760, %v7769_v7 }
 0x45e   : > { %33622 = vmatprep.subr.mxu0 %v38224_v1 }
 0x45f   : > { %v7771_v15 = vsub.f32 %v7769_v7, %v7770_v13 }
 0x461   : > { %v7772_v18 = vand.u32 4294901760, %v7771_v15 }
 0x464   : > { %33620 = vmatmul.mubr.f32.vlgmr.msra.gmra.mrb[6].mxu0 %v4070_v8 }
 0x465   : > { %33623 = vmatpush3.xpose.msra.mxu0 %v4005_v9  ;;  %33624 = vmatprep.mubr.msk.f32.mxu0 %vm38223_vm0, %v38224_v1 }
 0x466   : > { %33657 = vmatprep.subr.mxu0 %v38224_v1 }
 0x46c   : > { %33625 = vmatmul.mubr.f32.vlgmr.msra.gmra.mrb[6].mxu0 %v4070_v8 }
 0x46d   : > { %33658 = vmatpush3.xpose.msra.mxu0 %v4923_v23  ;;  %33659 = vmatprep.mubr.msk.f32.mxu0 %vm38223_vm0, %v38224_v1 }
 0x46e   : > { %33662 = vmatprep.subr.mxu0 %v38224_v1 }
 0x470   : > { %33660 = vmatmul.mubr.f32.vlgmr.msra.gmra.mrb[8].mxu0 %v4992_v30 }
 0x471   : > { %33663 = vmatpush3.xpose.msra.mxu0 %v5003_v31  ;;  %33664 = vmatprep.mubr.msk.f32.mxu0 %vm38223_vm0, %v38224_v1 }
 0x472   : > { %33667 = vmatprep.subr.mxu0 %v38224_v1 }
 0x478   : > { %33665 = vmatmul.mubr.f32.vlgmr.msra.gmra.mrb[8].mxu0 %v4988_v17 }
 0x479   : > { %33668 = vmatpush3.xpose.msra.mxu0 %v5000_v25  ;;  %33669 = vmatprep.mubr.msk.f32.mxu0 %vm38223_vm0, %v38224_v1 }
 0x47a   : > { %33672 = vmatprep.subr.mxu0 %v38224_v1 }
 0x480   : > { %33670 = vmatmul.mubr.f32.vlgmr.msra.gmra.mrb[8].mxu0 %v4989_v24 }
 0x481   : > { %33673 = vmatpush3.xpose.msra.mxu0 %v4923_v23  ;;  %33674 = vmatprep.mubr.msk.f32.mxu0 %vm38223_vm0, %v38224_v1 }
 0x482   : > { %33677 = vmatprep.subr.mxu0 %v38224_v1 }
 0x488   : > { %33675 = vmatmul.mubr.f32.vlgmr.msra.gmra.mrb[8].mxu0 %v4990_v26 }
 0x489   : > { %33678 = vmatpush3.xpose.msra.mxu0 %v5001_v27  ;;  %33679 = vmatprep.mubr.msk.f32.mxu0 %vm38223_vm0, %v38224_v1 }
 0x48a   : > { %33682 = vmatprep.subr.mxu0 %v38224_v1 }
 0x490   : > { %33680 = vmatmul.mubr.f32.vlgmr.msra.gmra.mrb[8].mxu0 %v4988_v17 }
 0x491   : > { %33683 = vmatpush3.xpose.msra.mxu0 %v4923_v23  ;;  %33684 = vmatprep.mubr.msk.f32.mxu0 %vm38223_vm0, %v38224_v1  ;;  %v8610_v23 = vand.u32 4294901760, %v8607_v22 }
 0x492   : > { %33717 = vmatprep.subr.mxu0 %v38224_v1 }
 0x493   : > { %v8687_v25 = vsub.f32 %v8607_v22, %v8610_v23 }
 0x495   : > { %v8688_v31 = vand.u32 4294901760, %v8687_v25 }
 0x497   : > { %v8689_v34 = vsub.f32 %v8687_v25, %v8688_v31 }
 0x498   : > { %33685 = vmatmul.mubr.f32.vlgmr.msra.gmra.mrb[8].mxu0 %v4988_v17  ;;  %v8675_v17 = vand.u32 4294901760, %v8605_v21 }
 0x499   : > { %33718 = vmatpush3.xpose.msra.mxu0 %v5856_v38  ;;  %33719 = vmatprep.mubr.msk.f32.mxu0 %vm38223_vm0, %v38224_v1 }
 0x49a   : > { %33722 = vmatprep.subr.mxu0 %v38224_v1  ;;  %v8676_v24 = vsub.f32 %v8605_v21, %v8675_v17 }
 0x49c   : > { %33720 = vmatmul.mubr.f32.vlgmr.msra.gmra.mrb[10].mxu0 %v5925_v45  ;;  %v8677_v29 = vand.u32 4294901760, %v8676_v24 }
 0x49d   : > { %33723 = vmatpush3.xpose.msra.mxu0 %v5936_v46  ;;  %33724 = vmatprep.mubr.msk.f32.mxu0 %vm38223_vm0, %v38224_v1 }
 0x49e   : > { %33727 = vmatprep.subr.mxu0 %v38224_v1  ;;  %v8678_v33 = vsub.f32 %v8676_v24, %v8677_v29 }
 0x4a0   : > { %v8679_v35 = vand.u32 4294901760, %v8678_v33 }
 0x4a4   : > { %33725 = vmatmul.mubr.f32.vlgmr.msra.gmra.mrb[10].mxu0 %v5921_v37 }
 0x4a5   : > { %33728 = vmatpush3.xpose.msra.mxu0 %v5933_v40  ;;  %33729 = vmatprep.mubr.msk.f32.mxu0 %vm38223_vm0, %v38224_v1 }
 0x4a6   : > { %33732 = vmatprep.subr.mxu0 %v38224_v1 }
 0x4ac   : > { %33730 = vmatmul.mubr.f32.vlgmr.msra.gmra.mrb[10].mxu0 %v5922_v39 }
 0x4ad   : > { %33733 = vmatpush3.xpose.msra.mxu0 %v5856_v38  ;;  %33734 = vmatprep.mubr.msk.f32.mxu0 %vm38223_vm0, %v38224_v1 }
 0x4ae   : > { %33737 = vmatprep.subr.mxu0 %v38224_v1 }
 0x4b4   : > { %33735 = vmatmul.mubr.f32.vlgmr.msra.gmra.mrb[10].mxu0 %v5923_v41 }
 0x4b5   : > { %33738 = vmatpush3.xpose.msra.mxu0 %v5934_v42  ;;  %33739 = vmatprep.mubr.msk.f32.mxu0 %vm38223_vm0, %v38224_v1 }
 0x4b6   : > { %33742 = vmatprep.subr.mxu0 %v38224_v1 }
 0x4bc   : > { %33740 = vmatmul.mubr.f32.vlgmr.msra.gmra.mrb[10].mxu0 %v5921_v37 }
 0x4bd   : > { %33743 = vmatpush3.xpose.msra.mxu0 %v5856_v38  ;;  %33744 = vmatprep.mubr.msk.f32.mxu0 %vm38223_vm0, %v38224_v1 }
 0x4be   : > { %33777 = vmatprep.subr.mxu0 %v38224_v1 }
 0x4c4   : > { %33745 = vmatmul.mubr.f32.vlgmr.msra.gmra.mrb[10].mxu0 %v5921_v37  ;;  %v8690_v37 = vand.u32 4294901760, %v8689_v34 }
 0x4c5   : > { %33778 = vmatpush3.xpose.msra.mxu0 %v6774_v52  ;;  %33779 = vmatprep.mubr.msk.f32.mxu0 %vm38223_vm0, %v38224_v1 }
 0x4c6   : > { %33782 = vmatprep.subr.mxu0 %v38224_v1 }
 0x4c8   : > { %33780 = vmatmul.mubr.f32.vlgmr.msra.gmra.mrb[12].mxu0 %v6843_v59 }
 0x4c9   : > { %33783 = vmatpush3.xpose.msra.mxu0 %v6854_v60  ;;  %33784 = vmatprep.mubr.msk.f32.mxu0 %vm38223_vm0, %v38224_v1 }
 0x4ca   : > { %33787 = vmatprep.subr.mxu0 %v38224_v1 }
 0x4d0   : > { %33785 = vmatmul.mubr.f32.vlgmr.msra.gmra.mrb[12].mxu0 %v6839_v51 }
 0x4d1   : > { %33788 = vmatpush3.xpose.msra.mxu0 %v6851_v54  ;;  %33789 = vmatprep.mubr.msk.f32.mxu0 %vm38223_vm0, %v38224_v1 }
 0x4d2   : > { %33792 = vmatprep.subr.mxu0 %v38224_v1 }
 0x4d8   : > { %33790 = vmatmul.mubr.f32.vlgmr.msra.gmra.mrb[12].mxu0 %v6840_v53 }
 0x4d9   : > { %33793 = vmatpush3.xpose.msra.mxu0 %v6774_v52  ;;  %33794 = vmatprep.mubr.msk.f32.mxu0 %vm38223_vm0, %v38224_v1 }
 0x4da   : > { %33797 = vmatprep.subr.mxu0 %v38224_v1 }
 0x4e0   : > { %33795 = vmatmul.mubr.f32.vlgmr.msra.gmra.mrb[12].mxu0 %v6841_v55 }
 0x4e1   : > { %33798 = vmatpush3.xpose.msra.mxu0 %v6852_v56  ;;  %33799 = vmatprep.mubr.msk.f32.mxu0 %vm38223_vm0, %v38224_v1 }
 0x4e2   : > { %33802 = vmatprep.subr.mxu0 %v38224_v1 }
 0x4e7   : > { %v2610_v8 = vpop.f32.mrb[2].mxu0 }
 0x4e8   : > { %v38992_v9 = vmul.f32 0.35355338, %v2610_v8  ;;  %v33506_v10 = vpop.f32.mrb[3].mxu0  ;;  %33800 = vmatmul.mubr.f32.vlgmr.msra.gmra.mrb[12].mxu0 %v6839_v51 }
 0x4e9   : > { %33803 = vmatpush3.xpose.msra.mxu0 %v6774_v52  ;;  %33804 = vmatprep.mubr.msk.f32.mxu0 %vm38223_vm0, %v38224_v1 }
 0x4ea   : > { %v2615_v12 = vsel %vm2162_vm3, %v38992_v9, -inf  ;;  %33837 = vmatprep.subr.mxu0 %v38224_v1 }
 0x4eb   : > { %2616 = vmax.xlane.f32.xlu1 %v2615_v12 }
 0x4f0   : > { %33805 = vmatmul.mubr.f32.vlgmr.msra.gmra.mrb[12].mxu0 %v6839_v51 }
 0x4f1   : > { %33838 = vmatpush3.xpose.msra.mxu0 %v7692_v4  ;;  %33839 = vmatprep.mubr.msk.f32.mxu0 %vm38223_vm0, %v38224_v1 }
 0x4f2   : > { %33842 = vmatprep.subr.mxu0 %v38224_v1 }
 0x4f4   : > { %33840 = vmatmul.mubr.f32.vlgmr.msra.gmra.mrb[14].mxu0 %v7761_v16 }
 0x4f5   : > { %33843 = vmatpush3.xpose.msra.mxu0 %v7772_v18  ;;  %33844 = vmatprep.mubr.msk.f32.mxu0 %vm38223_vm0, %v38224_v1 }
 0x4f6   : > { %33847 = vmatprep.subr.mxu0 %v38224_v1 }
 0x4fc   : > { %33845 = vmatmul.mubr.f32.vlgmr.msra.gmra.mrb[14].mxu0 %v7757_v3 }
 0x4fd   : > { %33848 = vmatpush3.xpose.msra.mxu0 %v7769_v7  ;;  %33849 = vmatprep.mubr.msk.f32.mxu0 %vm38223_vm0, %v38224_v1 }
 0x4fe   : > { %33852 = vmatprep.subr.mxu0 %v38224_v1 }
 0x504   : > { %33850 = vmatmul.mubr.f32.vlgmr.msra.gmra.mrb[14].mxu0 %v7758_v6 }
 0x505   : > { %33853 = vmatpush3.xpose.msra.mxu0 %v7692_v4  ;;  %33854 = vmatprep.mubr.msk.f32.mxu0 %vm38223_vm0, %v38224_v1 }
 0x506   : > { %33857 = vmatprep.subr.mxu0 %v38224_v1 }
 0x50c   : > { %33855 = vmatmul.mubr.f32.vlgmr.msra.gmra.mrb[14].mxu0 %v7759_v11 }
 0x50d   : > { %33858 = vmatpush3.xpose.msra.mxu0 %v7770_v13  ;;  %33859 = vmatprep.mubr.msk.f32.mxu0 %vm38223_vm0, %v38224_v1 }
 0x50e   : > { %33862 = vmatprep.subr.mxu0 %v38224_v1 }
 0x513   : > { %v3528_v26 = vpop.f32.mrb[4].mxu0 }
 0x514   : > { %v39016_v27 = vmul.f32 0.35355338, %v3528_v26  ;;  %v33566_v28 = vpop.f32.mrb[5].mxu0  ;;  %33860 = vmatmul.mubr.f32.vlgmr.msra.gmra.mrb[14].mxu0 %v7757_v3 }
 0x515   : > { %33863 = vmatpush3.xpose.msra.mxu0 %v7692_v4  ;;  %33864 = vmatprep.mubr.msk.f32.mxu0 %vm38223_vm0, %v38224_v1 }
 0x516   : > { %v3533_v30 = vsel %vm2162_vm3, %v39016_v27, -inf  ;;  %33897 = vmatprep.subr.mxu0 %v38224_v1 }
 0x517   : > { %3534 = vmax.xlane.f32.xlu0 %v3533_v30 }
 0x51c   : > { %33865 = vmatmul.mubr.f32.vlgmr.msra.gmra.mrb[14].mxu0 %v7757_v3 }
 0x51d   : > { %33898 = vmatpush3.xpose.msra.mxu0 %v8610_v23  ;;  %33899 = vmatprep.mubr.msk.f32.mxu0 %vm38223_vm0, %v38224_v1 }
 0x51e   : > { %33902 = vmatprep.subr.mxu0 %v38224_v1 }
 0x520   : > { %33900 = vmatmul.mubr.f32.vlgmr.msra.gmra.mrb[16].mxu0 %v8679_v35 }
 0x521   : > { %33903 = vmatpush3.xpose.msra.mxu0 %v8690_v37  ;;  %33904 = vmatprep.mubr.msk.f32.mxu0 %vm38223_vm0, %v38224_v1 }
 0x522   : > { %33907 = vmatprep.subr.mxu0 %v38224_v1 }
 0x528   : > { %33905 = vmatmul.mubr.f32.vlgmr.msra.gmra.mrb[16].mxu0 %v8675_v17 }
 0x529   : > { %33908 = vmatpush3.xpose.msra.mxu0 %v8687_v25  ;;  %33909 = vmatprep.mubr.msk.f32.mxu0 %vm38223_vm0, %v38224_v1 }
 0x52a   : > { %33912 = vmatprep.subr.mxu0 %v38224_v1 }
 0x530   : > { %33910 = vmatmul.mubr.f32.vlgmr.msra.gmra.mrb[16].mxu0 %v8676_v24 }
 0x531   : > { %33913 = vmatpush3.xpose.msra.mxu0 %v8610_v23  ;;  %33914 = vmatprep.mubr.msk.f32.mxu0 %vm38223_vm0, %v38224_v1 }
 0x532   : > { %33917 = vmatprep.subr.mxu0 %v38224_v1 }
 0x538   : > { %33915 = vmatmul.mubr.f32.vlgmr.msra.gmra.mrb[16].mxu0 %v8677_v29 }
 0x539   : > { %33918 = vmatpush3.xpose.msra.mxu0 %v8688_v31  ;;  %33919 = vmatprep.mubr.msk.f32.mxu0 %vm38223_vm0, %v38224_v1 }
 0x53a   : > { %33922 = vmatprep.subr.mxu0 %v38224_v1 }
 0x53f   : > { %v4446_v38 = vpop.f32.mrb[6].mxu0 }
 0x540   : > { %v4450_v39 = vmul.f32 0.35355338, %v4446_v38  ;;  %v33626_v40 = vpop.f32.mrb[7].mxu0  ;;  %33920 = vmatmul.mubr.f32.vlgmr.msra.gmra.mrb[16].mxu0 %v8675_v17 }
 0x541   : > { %33923 = vmatpush3.xpose.msra.mxu0 %v8610_v23  ;;  %33924 = vmatprep.mubr.msk.f32.mxu0 %vm38223_vm0, %v38224_v1 }
 0x542   : > { %v4451_v41 = vsel %vm2162_vm3, %v4450_v39, -inf  ;;  %36369 = vmatprep.subr.bf16.mxu0 %v38222_v0 }
 0x543   : > { %4452 = vmax.xlane.f32.xlu1 %v4451_v41 }
 0x548   : > { %33925 = vmatmul.mubr.f32.vlgmr.msra.gmra.mrb[16].mxu0 %v8675_v17 }
 0x549   : > { %33965 = vmatprep.mubr.msk.f32.mxu0 %vm38223_vm0, %v38224_v1 }
 0x56b   : > { %v5364_v42 = vpop.f32.mrb[8].mxu0 }
 0x56c   : > { %v5368_v43 = vmul.f32 0.35355338, %v5364_v42  ;;  %v33686_v44 = vpop.f32.mrb[9].mxu0 }
 0x56e   : > { %v5369_v45 = vsel %vm2162_vm3, %v5368_v43, -inf }
 0x56f   : > { %5370 = vmax.xlane.f32.xlu1 %v5369_v45 }
 0x578   : > { %v2617_v46 = vpop.xlane.xlu1 %2616 }
 0x579   : > { %v2618_v47 = vsub.f32 %v38992_v9, %v2617_v46 }
 0x57b   : > { %v2619_v48 = vmul.f32 1.442695, %v2618_v47 }
 0x57d   : > { %37895 = vpow2.f32 %v2619_v48 }
 0x587   : > { %v37896_v49 = vpop.eup %37895 }
 0x588   : > { %v2621_v50 = vsel %vm2162_vm3, %v37896_v49, 0.0 }
 0x589   : > { %2622 = vadd.xlane.f32.xlu0 %v2621_v50 }
 0x597   : > { %v6297_v51 = vpop.f32.mrb[10].mxu0 }
 0x598   : > { %v33746_v52 = vpop.f32.mrb[11].mxu0  ;;  %v39060_v3 = vmul.f32 0.35355338, %v6297_v51 }
 0x59a   : > { %v6302_v6 = vsel %vm2162_vm3, %v39060_v3, -inf }
 0x59f   : > { %2626 = vrot.lane.b32.xlu0 %v38845_v36, %s38232_s10 }
 0x5a4   : > { %v3535_v53 = vpop.xlane.xlu0 %3534 }
 0x5a5   : > { %v3536_v54 = vsub.f32 %v39016_v27, %v3535_v53 }
 0x5a7   : > { %v3537_v55 = vmul.f32 1.442695, %v3536_v54 }
 0x5a9   : > { %37897 = vpow2.f32 %v3537_v55 }
 0x5b3   : > { %v39050_v56 = vpop.eup %37897 }
 0x5b4   : > { %v3539_v57 = vsel %vm2162_vm3, %v39050_v56, 0.0 }
 0x5b5   : > { %3540 = vadd.xlane.f32.xlu1 %v3539_v57 }
 0x5c3   : > { %v7215_v58 = vpop.f32.mrb[12].mxu0 }
 0x5c4   : > { %v33806_v59 = vpop.f32.mrb[13].mxu0  ;;  %v39062_v4 = vmul.f32 0.35355338, %v7215_v58 }
 0x5c6   : > { %3544 = vrot.lane.b32.xlu1 %v38845_v36, %s38233_s20  ;;  %v7220_v7 = vsel %vm2162_vm3, %v39062_v4, -inf }
 0x5d0   : > { %v4453_v60 = vpop.xlane.xlu1 %4452 }
 0x5d1   : > { %v4454_v61 = vsub.f32 %v4450_v39, %v4453_v60 }
 0x5d3   : > { %v4455_v62 = vmul.f32 1.442695, %v4454_v61 }
 0x5d5   : > { %37899 = vpow2.f32 %v4455_v62 }
 0x5df   : > { %v39056_v63 = vpop.eup %37899 }
 0x5e0   : > { %v4457_v2 = vsel %vm2162_vm3, %v39056_v63, 0.0 }
 0x5e1   : > { %4458 = vadd.xlane.f32.xlu0 %v4457_v2 }
 0x5ea   : > { %6303 = vmax.xlane.f32.xlu1 %v6302_v6 }
 0x5ee   : > { %7221 = vmax.xlane.f32.xlu1 %v7220_v7 }
 0x5ef   : > { %v8133_v8 = vpop.f32.mrb[14].mxu0 }
 0x5f0   : > { %v33866_v9 = vpop.f32.mrb[15].mxu0 }
 0x5f7   : > { %4462 = vrot.lane.b32.xlu0 %v38845_v36, %s38234_s25 }
 0x5fc   : > { %v5371_v10 = vpop.xlane.xlu1 %5370 }
 0x5fd   : > { %v5372_v11 = vsub.f32 %v5368_v43, %v5371_v10 }
 0x5ff   : > { %v5373_v12 = vmul.f32 1.442695, %v5372_v11 }
 0x601   : > { %37901 = vpow2.f32 %v5373_v12 }
 0x60b   : > { %v39070_v13 = vpop.eup %37901 }
 0x60c   : > { %v5375_v14 = vsel %vm2162_vm3, %v39070_v13, 0.0 }
 0x60d   : > { %5376 = vadd.xlane.f32.xlu1 %v5375_v14 }
 0x616   : > { %v2623_v15 = vpop.xlane.xlu0 %2622 }
 0x617   : > { %37903 = vrcp.f32 %v2623_v15 }
 0x61a   : > { %v2627_v16 = vpop.permute.xlu0 %2626 }
 0x61b   : > { %v2633_v18 = vand.u32 4294901760, %v2627_v16  ;;  %v39074_v19 = vpop.f32.mrb[16].mxu0 }
 0x61c   : > { %v33926_v20 = vpop.f32.mrb[17].mxu0  ;;  %v39140_v14 = vmul.f32 0.35355338, %v39074_v19 }
 0x61d   : > { %33508 = vmatpush3.msra.mxu1 %v2633_v18  ;;  %v2710_v17 = vsub.f32 %v2627_v16, %v2633_v18 }
 0x61e   : > { %5380 = vrot.lane.b32.xlu1 %v38845_v36, %s41871_s17  ;;  %33512 = vmatprep.subr.mxu1 %v38224_v1  ;;  %v39086_v36 = vmul.f32 0.35355338, %v8133_v8  ;;  %v9056_v16 = vsel %vm2162_vm3, %v39140_v14, -inf }
 0x61f   : > { %v2711_v25 = vand.u32 4294901760, %v2710_v17 }
 0x620   : > { %v8138_v33 = vsel %vm2162_vm3, %v39086_v36, -inf }
 0x621   : > { %v37904_v21 = vpop.eup %37903  ;;  %v2712_v28 = vsub.f32 %v2710_v17, %v2711_v25 }
 0x622   : > { %v2625_v22 = vmul.f32 %v37904_v21, %v37896_v49 }
 0x623   : > { %v2713_v31 = vand.u32 4294901760, %v2712_v28 }
 0x624   : > { %v2630_v23 = vsel %vm2162_vm3, %v2625_v22, 0 }
 0x625   : > { %v2698_v24 = vand.u32 4294901760, %v2630_v23 }
 0x627   : > { %v2699_v26 = vsub.f32 %v2630_v23, %v2698_v24 }
 0x629   : > { %v2700_v27 = vand.u32 4294901760, %v2699_v26 }
 0x62b   : > { %v2701_v29 = vsub.f32 %v2699_v26, %v2700_v27 }
 0x62d   : > { %v2702_v30 = vand.u32 4294901760, %v2701_v29 }
 0x62f   : > { %33510 = vmatmul.mubr.f32.vlgmr.msra.gmra.mrb[4].mxu1 %v2702_v30 }
 0x630   : > { %33513 = vmatpush3.msra.mxu1 %v2713_v31  ;;  %33514 = vmatprep.mubr.msk.f32.mxu1 %vm38223_vm0, %v38224_v1 }
 0x631   : > { %33517 = vmatprep.subr.mxu1 %v38224_v1 }
 0x637   : > { %33515 = vmatmul.mubr.f32.vlgmr.msra.gmra.mrb[4].mxu1 %v2698_v24 }
 0x638   : > { %33518 = vmatpush3.msra.mxu1 %v2710_v17  ;;  %33519 = vmatprep.mubr.msk.f32.mxu1 %vm38223_vm0, %v38224_v1 }
 0x639   : > { %33522 = vmatprep.subr.mxu1 %v38224_v1 }
 0x63f   : > { %33520 = vmatmul.mubr.f32.vlgmr.msra.gmra.mrb[4].mxu1 %v2699_v26 }
 0x640   : > { %33523 = vmatpush3.msra.mxu1 %v2633_v18  ;;  %33524 = vmatprep.mubr.msk.f32.mxu1 %vm38223_vm0, %v38224_v1 }
 0x641   : > { %33527 = vmatprep.subr.mxu1 %v38224_v1 }
 0x642   : > { %v3541_v34 = vpop.xlane.xlu1 %3540  ;;  %8139 = vmax.xlane.f32.xlu1 %v8138_v33 }
 0x643   : > { %37905 = vrcp.f32 %v3541_v34 }
 0x646   : > { %v3545_v35 = vpop.permute.xlu1 %3544 }
 0x647   : > { %33525 = vmatmul.mubr.f32.vlgmr.msra.gmra.mrb[4].mxu1 %v2700_v27  ;;  %v3551_v37 = vand.u32 4294901760, %v3545_v35 }
 0x648   : > { %33528 = vmatpush3.msra.mxu1 %v2711_v25  ;;  %33529 = vmatprep.mubr.msk.f32.mxu1 %vm38223_vm0, %v38224_v1 }
 0x649   : > { %33532 = vmatprep.subr.mxu1 %v38224_v1  ;;  %v3628_v40 = vsub.f32 %v3545_v35, %v3551_v37 }
 0x64b   : > { %v3629_v43 = vand.u32 4294901760, %v3628_v40 }
 0x64d   : > { %v37906_v38 = vpop.eup %37905  ;;  %v3630_v46 = vsub.f32 %v3628_v40, %v3629_v43 }
 0x64e   : > { %v3543_v39 = vmul.f32 %v37906_v38, %v39050_v56 }
 0x64f   : > { %33530 = vmatmul.mubr.f32.vlgmr.msra.gmra.mrb[4].mxu1 %v2698_v24  ;;  %v3631_v49 = vand.u32 4294901760, %v3630_v46 }
 0x650   : > { %33533 = vmatpush3.msra.mxu1 %v2633_v18  ;;  %33534 = vmatprep.mubr.msk.f32.mxu1 %vm38223_vm0, %v38224_v1  ;;  %v3548_v41 = vsel %vm2162_vm3, %v3543_v39, 0 }
 0x651   : > { %33567 = vmatprep.subr.mxu1 %v38224_v1  ;;  %v3616_v42 = vand.u32 4294901760, %v3548_v41 }
 0x653   : > { %v3617_v44 = vsub.f32 %v3548_v41, %v3616_v42 }
 0x655   : > { %v3618_v45 = vand.u32 4294901760, %v3617_v44 }
 0x657   : > { %33535 = vmatmul.mubr.f32.vlgmr.msra.gmra.mrb[4].mxu1 %v2698_v24  ;;  %v3619_v47 = vsub.f32 %v3617_v44, %v3618_v45 }
 0x658   : > { %33568 = vmatpush3.msra.mxu1 %v3551_v37  ;;  %33569 = vmatprep.mubr.msk.f32.mxu1 %vm38223_vm0, %v38224_v1 }
 0x659   : > { %33572 = vmatprep.subr.mxu1 %v38224_v1  ;;  %v3620_v48 = vand.u32 4294901760, %v3619_v47 }
 0x65b   : > { %33570 = vmatmul.mubr.f32.vlgmr.msra.gmra.mrb[6].mxu1 %v3620_v48 }
 0x65c   : > { %33573 = vmatpush3.msra.mxu1 %v3631_v49  ;;  %33574 = vmatprep.mubr.msk.f32.mxu1 %vm38223_vm0, %v38224_v1 }
 0x65d   : > { %33577 = vmatprep.subr.mxu1 %v38224_v1 }
 0x663   : > { %33575 = vmatmul.mubr.f32.vlgmr.msra.gmra.mrb[6].mxu1 %v3616_v42 }
 0x664   : > { %33578 = vmatpush3.msra.mxu1 %v3628_v40  ;;  %33579 = vmatprep.mubr.msk.f32.mxu1 %vm38223_vm0, %v38224_v1 }
 0x665   : > { %33582 = vmatprep.subr.mxu1 %v38224_v1 }
 0x66b   : > { %33580 = vmatmul.mubr.f32.vlgmr.msra.gmra.mrb[6].mxu1 %v3617_v44 }
 0x66c   : > { %33583 = vmatpush3.msra.mxu1 %v3551_v37  ;;  %33584 = vmatprep.mubr.msk.f32.mxu1 %vm38223_vm0, %v38224_v1 }
 0x66d   : > { %33587 = vmatprep.subr.mxu1 %v38224_v1 }
 0x66e   : > { %v4459_v50 = vpop.xlane.xlu0 %4458 }
 0x66f   : > { %37907 = vrcp.f32 %v4459_v50 }
 0x672   : > { %v4463_v51 = vpop.permute.xlu0 %4462 }
 0x673   : > { %33585 = vmatmul.mubr.f32.vlgmr.msra.gmra.mrb[6].mxu1 %v3618_v45  ;;  %v39116_v52 = vand.u32 4294901760, %v4463_v51 }
 0x674   : > { %33588 = vmatpush3.msra.mxu1 %v3629_v43  ;;  %33589 = vmatprep.mubr.msk.f32.mxu1 %vm38223_vm0, %v38224_v1 }
 0x675   : > { %33592 = vmatprep.subr.mxu1 %v38224_v1  ;;  %v4546_v57 = vsub.f32 %v4463_v51, %v39116_v52 }
 0x677   : > { %v6304_v53 = vpop.xlane.xlu1 %6303  ;;  %v4547_v2 = vand.u32 4294901760, %v4546_v57 }
 0x678   : > { %v6305_v54 = vsub.f32 %v39060_v3, %v6304_v53 }
 0x679   : > { %v37908_v55 = vpop.eup %37907  ;;  %v4548_v7 = vsub.f32 %v4546_v57, %v4547_v2 }
 0x67a   : > { %v4461_v56 = vmul.f32 %v37908_v55, %v39056_v63  ;;  %v6306_v58 = vmul.f32 1.442695, %v6305_v54 }
 0x67b   : > { %33590 = vmatmul.mubr.f32.vlgmr.msra.gmra.mrb[6].mxu1 %v3616_v42  ;;  %v7222_v59 = vpop.xlane.xlu1 %7221  ;;  %v4549_v10 = vand.u32 4294901760, %v4548_v7 }
 0x67c   : > { %37909 = vpow2.f32 %v6306_v58  ;;  %33593 = vmatpush3.msra.mxu1 %v3551_v37  ;;  %v7223_v60 = vsub.f32 %v39062_v4, %v7222_v59  ;;  %33594 = vmatprep.mubr.msk.f32.mxu1 %vm38223_vm0, %v38224_v1  ;;  %v4466_v61 = vsel %vm2162_vm3, %v4461_v56, 0 }
 0x67d   : > { %33627 = vmatprep.subr.mxu1 %v38224_v1  ;;  %v4534_v62 = vand.u32 4294901760, %v4466_v61 }
 0x67e   : > { %v7224_v3 = vmul.f32 1.442695, %v7223_v60 }
 0x67f   : > { %v4535_v63 = vsub.f32 %v4466_v61, %v4534_v62 }
 0x680   : > { %37911 = vpow2.f32 %v7224_v3 }
 0x681   : > { %v4536_v6 = vand.u32 4294901760, %v4535_v63 }
 0x683   : > { %33595 = vmatmul.mubr.f32.vlgmr.msra.gmra.mrb[6].mxu1 %v3616_v42  ;;  %v4537_v8 = vsub.f32 %v4535_v63, %v4536_v6 }
 0x684   : > { %33628 = vmatpush3.msra.mxu1 %v39116_v52  ;;  %33629 = vmatprep.mubr.msk.f32.mxu1 %vm38223_vm0, %v38224_v1 }
 0x685   : > { %33632 = vmatprep.subr.mxu1 %v38224_v1  ;;  %v4538_v4 = vand.u32 4294901760, %v4537_v8 }
 0x686   : > { %v39130_v9 = vpop.eup %37909 }
 0x687   : > { %33630 = vmatmul.mubr.f32.vlgmr.msra.gmra.mrb[8].mxu1 %v4538_v4  ;;  %v6308_v11 = vsel %vm2162_vm3, %v39130_v9, 0.0 }
 0x688   : > { %33633 = vmatpush3.msra.mxu1 %v4549_v10  ;;  %6309 = vadd.xlane.f32.xlu0 %v6308_v11 }
 0x689   : > { %33634 = vmatprep.mubr.msk.f32.mxu1 %vm38223_vm0, %v38224_v1  ;;  %33637 = vmatprep.subr.mxu1 %v38224_v1 }
 0x68a   : > { %v39137_v12 = vpop.eup %37911 }
 0x68b   : > { %v7226_v15 = vsel %vm2162_vm3, %v39137_v12, 0.0 }
 0x68c   : > { %7227 = vadd.xlane.f32.xlu1 %v7226_v15 }
 0x68f   : > { %33635 = vmatmul.mubr.f32.vlgmr.msra.gmra.mrb[8].mxu1 %v4534_v62 }
 0x690   : > { %33638 = vmatpush3.msra.mxu1 %v4546_v57  ;;  %9057 = vmax.xlane.f32.xlu1 %v9056_v16 }
 0x691   : > { %33639 = vmatprep.mubr.msk.f32.mxu1 %vm38223_vm0, %v38224_v1  ;;  %33642 = vmatprep.subr.mxu1 %v38224_v1 }
 0x697   : > { %33640 = vmatmul.mubr.f32.vlgmr.msra.gmra.mrb[8].mxu1 %v4535_v63 }
 0x698   : > { %33643 = vmatpush3.msra.mxu1 %v39116_v52  ;;  %33644 = vmatprep.mubr.msk.f32.mxu1 %vm38223_vm0, %v38224_v1 }
 0x699   : > { %33647 = vmatprep.subr.mxu1 %v38224_v1 }
 0x69a   : > { %v5377_v18 = vpop.xlane.xlu1 %5376 }
 0x69b   : > { %37913 = vrcp.f32 %v5377_v18 }
 0x69e   : > { %6313 = vrot.lane.b32.xlu0 %v38838_v32, %s38232_s10  ;;  %v5381_v19 = vpop.permute.xlu1 %5380 }
 0x69f   : > { %33645 = vmatmul.mubr.f32.vlgmr.msra.gmra.mrb[8].mxu1 %v4536_v6  ;;  %v5387_v20 = vand.u32 4294901760, %v5381_v19 }
 0x6a0   : > { %33648 = vmatpush3.msra.mxu1 %v4547_v2  ;;  %33649 = vmatprep.mubr.msk.f32.mxu1 %vm38223_vm0, %v38224_v1 }
 0x6a1   : > { %33652 = vmatprep.subr.mxu1 %v38224_v1  ;;  %v5464_v17 = vsub.f32 %v5381_v19, %v5387_v20 }
 0x6a2   : > { %7231 = vrot.lane.b32.xlu0 %v38838_v32, %s38233_s20 }
 0x6a3   : > { %v5465_v25 = vand.u32 4294901760, %v5464_v17 }
 0x6a5   : > { %v37914_v21 = vpop.eup %37913  ;;  %v5466_v27 = vsub.f32 %v5464_v17, %v5465_v25 }
 0x6a6   : > { %v5379_v22 = vmul.f32 %v37914_v21, %v39070_v13  ;;  %8149 = vrot.lane.b32.xlu0 %v38838_v32, %s38234_s25 }
 0x6a7   : > { %33650 = vmatmul.mubr.f32.vlgmr.msra.gmra.mrb[8].mxu1 %v4534_v62  ;;  %v5467_v30 = vand.u32 4294901760, %v5466_v27 }
 0x6a8   : > { %33653 = vmatpush3.msra.mxu1 %v39116_v52  ;;  %33654 = vmatprep.mubr.msk.f32.mxu1 %vm38223_vm0, %v38224_v1  ;;  %v5384_v23 = vsel %vm2162_vm3, %v5379_v22, 0 }
 0x6a9   : > { %33687 = vmatprep.subr.mxu1 %v38224_v1  ;;  %v5452_v24 = vand.u32 4294901760, %v5384_v23 }
 0x6aa   : > { %9067 = vrot.lane.b32.xlu0 %v38838_v32, %s41871_s17 }
 0x6ab   : > { %v5453_v13 = vsub.f32 %v5384_v23, %v5452_v24  ;;  %v1159_v23 = vld [vmem:[#allocation7] sm:$0xff] }
 0x6ad   : > { %v5454_v26 = vand.u32 4294901760, %v5453_v13 }
 0x6af   : > { %33655 = vmatmul.mubr.f32.vlgmr.msra.gmra.mrb[8].mxu1 %v4534_v62  ;;  %v5455_v28 = vsub.f32 %v5453_v13, %v5454_v26 }
 0x6b0   : > { %33688 = vmatpush3.msra.mxu1 %v5387_v20  ;;  %33689 = vmatprep.mubr.msk.f32.mxu1 %vm38223_vm0, %v38224_v1 }
 0x6b1   : > { %33692 = vmatprep.subr.mxu1 %v38224_v1  ;;  %v5456_v29 = vand.u32 4294901760, %v5455_v28 }
 0x6b3   : > { %33690 = vmatmul.mubr.f32.vlgmr.msra.gmra.mrb[10].mxu1 %v5456_v29 }
 0x6b4   : > { %33693 = vmatpush3.msra.mxu1 %v5467_v30  ;;  %33694 = vmatprep.mubr.msk.f32.mxu1 %vm38223_vm0, %v38224_v1 }
 0x6b5   : > { %33697 = vmatprep.subr.mxu1 %v38224_v1 }
 0x6bb   : > { %33695 = vmatmul.mubr.f32.vlgmr.msra.gmra.mrb[10].mxu1 %v5452_v24 }
 0x6bc   : > { %33698 = vmatpush3.msra.mxu1 %v5464_v17  ;;  %33699 = vmatprep.mubr.msk.f32.mxu1 %vm38223_vm0, %v38224_v1 }
 0x6bd   : > { %33702 = vmatprep.subr.mxu1 %v38224_v1 }
 0x6c3   : > { %33700 = vmatmul.mubr.f32.vlgmr.msra.gmra.mrb[10].mxu1 %v5453_v13  ;;  %v9538_v13 = vand.u32 4294901760, %v1159_v23 }
 0x6c4   : > { %33703 = vmatpush3.msra.mxu1 %v5387_v20  ;;  %33704 = vmatprep.mubr.msk.f32.mxu1 %vm38223_vm0, %v38224_v1 }
 0x6c5   : > { %33707 = vmatprep.subr.mxu1 %v38224_v1  ;;  %v39254_v28 = vsub.f32 %v1159_v23, %v9538_v13 }
 0x6cb   : > { %33705 = vmatmul.mubr.f32.vlgmr.msra.gmra.mrb[10].mxu1 %v5454_v26 }
 0x6cc   : > { %33708 = vmatpush3.msra.mxu1 %v5465_v25  ;;  %33709 = vmatprep.mubr.msk.f32.mxu1 %vm38223_vm0, %v38224_v1 }
 0x6cd   : > { %33712 = vmatprep.subr.mxu1 %v38224_v1 }
 0x6cf   : > { %v8140_v32 = vpop.xlane.xlu1 %8139 }
 0x6d0   : > { %v8141_v31 = vsub.f32 %v39086_v36, %v8140_v32 }
 0x6d2   : > { %v8142_v33 = vmul.f32 1.442695, %v8141_v31  ;;  %v9619_v31 = vand.u32 4294901760, %v39254_v28 }
 0x6d3   : > { %33710 = vmatmul.mubr.f32.vlgmr.msra.gmra.mrb[10].mxu1 %v5452_v24 }
 0x6d4   : > { %37915 = vpow2.f32 %v8142_v33  ;;  %33713 = vmatpush3.msra.mxu1 %v5387_v20  ;;  %33714 = vmatprep.mubr.msk.f32.mxu1 %vm38223_vm0, %v38224_v1 }
 0x6d5   : > { %33747 = vmatprep.subr.mxu1 %v38224_v1 }
 0x6db   : > { %33715 = vmatmul.mubr.f32.vlgmr.msra.gmra.mrb[10].mxu1 %v5452_v24  ;;  %v1160_v24 = vld [vmem:[#allocation7 + $0x8] sm:$0xff] }
 0x6dc   : > { %33749 = vmatprep.mubr.msk.f32.mxu1 %vm38223_vm0, %v38224_v1  ;;  %v9541_v26 = vand.u32 4294901760, %v1160_v24 }
 0x6de   : > { %v39191_v34 = vpop.eup %37915  ;;  %v39256_v29 = vsub.f32 %v1160_v24, %v9541_v26 }
 0x6df   : > { %v8144_v35 = vsel %vm2162_vm3, %v39191_v34, 0.0 }
 0x6e0   : > { %8145 = vadd.xlane.f32.xlu1 %v8144_v35  ;;  %v9626_v33 = vand.u32 4294901760, %v39256_v29 }
 0x715   : > { %v6310_v36 = vpop.xlane.xlu0 %6309 }
 0x716   : > { %37917 = vrcp.f32 %v6310_v36 }
 0x719   : > { %v6314_v37 = vpop.permute.xlu0 %6313  ;;  %v7228_v38 = vpop.xlane.xlu1 %7227 }
 0x71a   : > { %v6320_v39 = vand.u32 4294901760, %v6314_v37 }
 0x71c   : > { %33748 = vmatpush3.msra.mxu1 %v6320_v39  ;;  %v6397_v45 = vsub.f32 %v6314_v37, %v6320_v39  ;;  %v9620_v37 = vsub.f32 %v39254_v28, %v9619_v31 }
 0x71d   : > { %v9058_v40 = vpop.xlane.xlu1 %9057  ;;  %33752 = vmatprep.subr.mxu1 %v38224_v1  ;;  %v7232_v62 = vpop.permute.xlu0 %7231 }
 0x71e   : > { %v9059_v41 = vsub.f32 %v39140_v14, %v9058_v40  ;;  %v6398_v48 = vand.u32 4294901760, %v6397_v45  ;;  %v7238_v3 = vand.u32 4294901760, %v7232_v62 }
 0x720   : > { %v37918_v42 = vpop.eup %37917  ;;  %v9060_v43 = vmul.f32 1.442695, %v9059_v41  ;;  %v6399_v51 = vsub.f32 %v6397_v45, %v6398_v48  ;;  %v7315_v6 = vsub.f32 %v7232_v62, %v7238_v3  ;;  %v9621_v41 = vand.u32 4294901760, %v9620_v37  ;;  %v10533_v37 = vld [vmem:[#allocation4 + $0x20] sm:$0xff] }
 0x721   : > { %v6312_v44 = vmul.f32 %v37918_v42, %v39130_v9  ;;  %v8150_v16 = vpop.permute.xlu0 %8149 }
 0x722   : > { %37919 = vpow2.f32 %v9060_v43  ;;  %v6400_v57 = vand.u32 4294901760, %v6399_v51  ;;  %v7316_v8 = vand.u32 4294901760, %v7315_v6  ;;  %v39242_v18 = vand.u32 4294901760, %v8150_v16 }
 0x723   : > { %v6317_v46 = vsel %vm2162_vm3, %v6312_v44, 0  ;;  %37921 = vrcp.f32 %v7228_v38  ;;  %v9627_v38 = vsub.f32 %v39256_v29, %v9626_v33  ;;  %v1161_v44 = vld [vmem:[#allocation7 + $0x10] sm:$0xff] }
 0x724   : > { %v6385_v47 = vand.u32 4294901760, %v6317_v46  ;;  %v7317_v9 = vsub.f32 %v7315_v6, %v7316_v8  ;;  %v8233_v20 = vsub.f32 %v8150_v16, %v39242_v18 }
 0x725   : > { %v9628_v42 = vand.u32 4294901760, %v9627_v38  ;;  %v10534_v38 = vld [vmem:[#allocation4 + $0x28] sm:$0xff] }
 0x726   : > { %v6386_v49 = vsub.f32 %v6317_v46, %v6385_v47  ;;  %v7318_v14 = vand.u32 4294901760, %v7317_v9  ;;  %v8234_v25 = vand.u32 4294901760, %v8233_v20  ;;  %v9544_v46 = vand.u32 4294901760, %v1161_v44 }
 0x727   : > { %v39274_v43 = vpack.c.bf16 %v9628_v42, %v9621_v41 }
 0x728   : > { %v6387_v50 = vand.u32 4294901760, %v6386_v49  ;;  %v8235_v32 = vsub.f32 %v8233_v20, %v8234_v25 }
 0x72a   : > { %v39199_v52 = vpop.f32.mrb[4].mxu1  ;;  %v6388_v53 = vsub.f32 %v6386_v49, %v6387_v50  ;;  %v8236_v40 = vand.u32 4294901760, %v8235_v32 }
 0x72b   : > { %v33536_v54 = vpop.f32.mrb[5].mxu1 }
 0x72c   : > { %v39201_v55 = vpop.eup %37919  ;;  %v6389_v56 = vand.u32 4294901760, %v6388_v53 }
 0x72d   : > { %v9062_v58 = vsel %vm2162_vm3, %v39201_v55, 0.0  ;;  %v37922_v59 = vpop.eup %37921 }
 0x72e   : > { %33750 = vmatmul.mubr.f32.vlgmr.msra.gmra.mrb[12].mxu1 %v6389_v56  ;;  %9063 = vadd.xlane.f32.xlu1 %v9062_v58  ;;  %v7230_v60 = vmul.f32 %v37922_v59, %v39137_v12  ;;  %v39296_v59 = vpack.c.bf16 %v9541_v26, %v9538_v13 }
 0x72f   : > { %33753 = vmatpush3.msra.mxu1 %v6400_v57  ;;  %33754 = vmatprep.mubr.msk.f32.mxu1 %vm38223_vm0, %v38224_v1 }
 0x730   : > { %33757 = vmatprep.subr.mxu1 %v38224_v1  ;;  %v7235_v61 = vsel %vm2162_vm3, %v7230_v60, 0  ;;  %36371 = vmatpush3.bf16.msra.mxu0 %v39296_v59 }
 0x731   : > { %v39219_v2 = vand.u32 4294901760, %v7235_v61  ;;  %36372 = vmatprep.subr.bf16.mxu0 %v38222_v0 }
 0x733   : > { %v7304_v63 = vsub.f32 %v7235_v61, %v39219_v2  ;;  %v9068_v61 = vpop.permute.xlu0 %9067 }
 0x734   : > { %v9074_v62 = vand.u32 4294901760, %v9068_v61 }
 0x735   : > { %v7305_v7 = vand.u32 4294901760, %v7304_v63 }
 0x736   : > { %33755 = vmatmul.mubr.f32.vlgmr.msra.gmra.mrb[12].mxu1 %v6385_v47 }
 0x737   : > { %33758 = vmatpush3.msra.mxu1 %v6397_v45  ;;  %33759 = vmatprep.mubr.msk.f32.mxu1 %vm38223_vm0, %v38224_v1  ;;  %v7306_v4 = vsub.f32 %v7304_v63, %v7305_v7  ;;  %v1162_v45 = vld [vmem:[#allocation7 + $0x18] sm:$0xff] }
 0x738   : > { %33762 = vmatprep.subr.mxu1 %v38224_v1 }
 0x739   : > { %v7307_v12 = vand.u32 4294901760, %v7306_v4 }
 0x73e   : > { %33760 = vmatmul.mubr.f32.vlgmr.msra.gmra.mrb[12].mxu1 %v6386_v49 }
 0x73f   : > { %33763 = vmatpush3.msra.mxu1 %v6320_v39  ;;  %33764 = vmatprep.mubr.msk.f32.mxu1 %vm38223_vm0, %v38224_v1 }
 0x740   : > { %33767 = vmatprep.subr.mxu1 %v38224_v1 }
 0x746   : > { %33765 = vmatmul.mubr.f32.vlgmr.msra.gmra.mrb[12].mxu1 %v6387_v50 }
 0x747   : > { %33768 = vmatpush3.msra.mxu1 %v6398_v48  ;;  %33769 = vmatprep.mubr.msk.f32.mxu1 %vm38223_vm0, %v38224_v1  ;;  %v39285_v48 = vsub.f32 %v1161_v44, %v9544_v46  ;;  %v10535_v44 = vld [vmem:[#allocation4 + $0x30] sm:$0xff] }
 0x748   : > { %33772 = vmatprep.subr.mxu1 %v38224_v1 }
 0x749   : > { %v9633_v50 = vand.u32 4294901760, %v39285_v48 }
 0x74b   : > { %v9634_v53 = vsub.f32 %v39285_v48, %v9633_v50 }
 0x74d   : > { %v9635_v56 = vand.u32 4294901760, %v9634_v53 }
 0x74e   : > { %33770 = vmatmul.mubr.f32.vlgmr.msra.gmra.mrb[12].mxu1 %v6385_v47 }
 0x74f   : > { %33773 = vmatpush3.msra.mxu1 %v6320_v39  ;;  %33774 = vmatprep.mubr.msk.f32.mxu1 %vm38223_vm0, %v38224_v1 }
 0x750   : > { %33807 = vmatprep.subr.mxu1 %v38224_v1 }
 0x756   : > { %v3992_v10 = vpop.f32.mrb[6].mxu1  ;;  %33775 = vmatmul.mubr.f32.vlgmr.msra.gmra.mrb[12].mxu1 %v6385_v47  ;;  %v9547_v47 = vand.u32 4294901760, %v1162_v45 }
 0x757   : > { %33808 = vmatpush3.msra.mxu1 %v7238_v3  ;;  %v33596_v11 = vpop.f32.mrb[7].mxu1  ;;  %5833 = vrot.lane.b32.xlu1 %v3992_v10, %s41869_s29  ;;  %v9151_v10 = vsub.f32 %v9068_v61, %v9074_v62 }
 0x758   : > { %33809 = vmatprep.mubr.msk.f32.mxu1 %vm38223_vm0, %v38224_v1  ;;  %33812 = vmatprep.subr.mxu1 %v38224_v1  ;;  %v39287_v49 = vsub.f32 %v1162_v45, %v9547_v47  ;;  %v39305_v60 = vpack.c.bf16 %v9547_v47, %v9544_v46  ;;  %v10536_v45 = vld [vmem:[#allocation4 + $0x38] sm:$0xff]  ;;  %v10576_v46 = vand.u32 4294901760, %v10535_v44 }
 0x759   : > { %v10579_v47 = vand.u32 4294901760, %v10536_v45 }
 0x75a   : > { %33810 = vmatmul.mubr.f32.vlgmr.msra.gmra.mrb[14].mxu1 %v7307_v12  ;;  %v9640_v51 = vand.u32 4294901760, %v39287_v49  ;;  %36374 = vmatpush3.bf16.msra.mxu0 %v39305_v60 }
 0x75b   : > { %33813 = vmatpush3.msra.mxu1 %v7318_v14  ;;  %33814 = vmatprep.mubr.msk.f32.mxu1 %vm38223_vm0, %v38224_v1  ;;  %v39403_v53 = vsub.f32 %v10536_v45, %v10579_v47 }
 0x75c   : > { %33817 = vmatprep.subr.mxu1 %v38224_v1  ;;  %v9641_v54 = vsub.f32 %v39287_v49, %v9640_v51  ;;  %36381 = vmatprep.subr.bf16.mxu0 %v38222_v0 }
 0x75e   : > { %v9642_v57 = vand.u32 4294901760, %v9641_v54 }
 0x760   : > { %v36379_v58 = vpack.c.bf16 %v9642_v57, %v9635_v56 }
 0x762   : > { %33815 = vmatmul.mubr.f32.vlgmr.msra.gmra.mrb[14].mxu1 %v39219_v2 }
 0x763   : > { %33818 = vmatpush3.msra.mxu1 %v7315_v6  ;;  %33819 = vmatprep.mubr.msk.f32.mxu1 %vm38223_vm0, %v38224_v1  ;;  %v36385_v6 = vpack.c.bf16 %v39287_v49, %v39285_v48 }
 0x764   : > { %33822 = vmatprep.subr.mxu1 %v38224_v1 }
 0x76a   : > { %33820 = vmatmul.mubr.f32.vlgmr.msra.gmra.mrb[14].mxu1 %v7304_v63 }
 0x76b   : > { %33823 = vmatpush3.msra.mxu1 %v7238_v3  ;;  %33824 = vmatprep.mubr.msk.f32.mxu1 %vm38223_vm0, %v38224_v1 }
 0x76c   : > { %33827 = vmatprep.subr.mxu1 %v38224_v1 }
 0x76d   : > { %v8146_v15 = vpop.xlane.xlu1 %8145 }
 0x76e   : > { %37923 = vrcp.f32 %v8146_v15  ;;  %v9152_v15 = vand.u32 4294901760, %v9151_v10 }
 0x772   : > { %33825 = vmatmul.mubr.f32.vlgmr.msra.gmra.mrb[14].mxu1 %v7305_v7  ;;  %v39322_v7 = vpack.c.bf16 %v9626_v33, %v9619_v31 }
 0x773   : > { %33828 = vmatpush3.msra.mxu1 %v7316_v8  ;;  %33829 = vmatprep.mubr.msk.f32.mxu1 %vm38223_vm0, %v38224_v1  ;;  %v39324_v8 = vpack.c.bf16 %v9640_v51, %v9633_v50  ;;  %v39399_v50 = vpack.c.bf16 %v10579_v47, %v10576_v46  ;;  %v39401_v51 = vsub.f32 %v10535_v44, %v10576_v46 }
 0x774   : > { %33832 = vmatprep.subr.mxu1 %v38224_v1 }
 0x778   : > { %v37924_v19 = vpop.eup %37923 }
 0x779   : > { %v8148_v21 = vmul.f32 %v37924_v19, %v39191_v34  ;;  %v9153_v19 = vsub.f32 %v9151_v10, %v9152_v15 }
 0x77a   : > { %33830 = vmatmul.mubr.f32.vlgmr.msra.gmra.mrb[14].mxu1 %v39219_v2 }
 0x77b   : > { %33833 = vmatpush3.msra.mxu1 %v7238_v3  ;;  %33834 = vmatprep.mubr.msk.f32.mxu1 %vm38223_vm0, %v38224_v1  ;;  %v8153_v22 = vsel %vm2162_vm3, %v8148_v21, 0 }
 0x77c   : > { %33867 = vmatprep.subr.mxu1 %v38224_v1  ;;  %v39251_v17 = vand.u32 4294901760, %v8153_v22 }
 0x77e   : > { %v8222_v27 = vsub.f32 %v8153_v22, %v39251_v17  ;;  %v9154_v22 = vand.u32 4294901760, %v9153_v19  ;;  %v1166_v19 = vld [vmem:[#allocation9 + $0x10] sm:$0xff] }
 0x780   : > { %v8223_v30 = vand.u32 4294901760, %v8222_v27 }
 0x782   : > { %v4910_v34 = vpop.f32.mrb[8].mxu1  ;;  %33835 = vmatmul.mubr.f32.vlgmr.msra.gmra.mrb[14].mxu1 %v39219_v2  ;;  %v8224_v35 = vsub.f32 %v8222_v27, %v8223_v30  ;;  %v36382_v2 = vpack.c.bf16 %v39256_v29, %v39254_v28 }
 0x783   : > { %33868 = vmatpush3.msra.mxu1 %v39242_v18  ;;  %v33656_v36 = vpop.f32.mrb[9].mxu1  ;;  %5837 = vrot.lane.b32.xlu0 %v4910_v34, %s41865_s22 }
 0x784   : > { %33869 = vmatprep.mubr.msk.f32.mxu1 %vm38223_vm0, %v38224_v1  ;;  %33872 = vmatprep.subr.mxu1 %v38224_v1  ;;  %v8225_v39 = vand.u32 4294901760, %v8224_v35 }
 0x786   : > { %33870 = vmatmul.mubr.f32.vlgmr.msra.gmra.mrb[16].mxu1 %v8225_v39  ;;  %v10570_v39 = vand.u32 4294901760, %v10533_v37 }
 0x787   : > { %33873 = vmatpush3.msra.mxu1 %v8236_v40  ;;  %33874 = vmatprep.mubr.msk.f32.mxu1 %vm38223_vm0, %v38224_v1  ;;  %v10573_v40 = vand.u32 4294901760, %v10534_v38 }
 0x788   : > { %33877 = vmatprep.subr.mxu1 %v38224_v1  ;;  %v39391_v42 = vsub.f32 %v10533_v37, %v10570_v39 }
 0x789   : > { %v39389_v41 = vpack.c.bf16 %v10573_v40, %v10570_v39 }
 0x78a   : > { %v10651_v48 = vand.u32 4294901760, %v39391_v42 }
 0x78c   : > { %v10652_v54 = vsub.f32 %v39391_v42, %v10651_v48 }
 0x78e   : > { %33875 = vmatmul.mubr.f32.vlgmr.msra.gmra.mrb[16].mxu1 %v39251_v17  ;;  %v10653_v57 = vand.u32 4294901760, %v10652_v54 }
 0x78f   : > { %33878 = vmatpush3.msra.mxu1 %v8233_v20  ;;  %33879 = vmatprep.mubr.msk.f32.mxu1 %vm38223_vm0, %v38224_v1 }
 0x790   : > { %33882 = vmatprep.subr.mxu1 %v38224_v1 }
 0x796   : > { %33880 = vmatmul.mubr.f32.vlgmr.msra.gmra.mrb[16].mxu1 %v8222_v27 }
 0x797   : > { %33883 = vmatpush3.msra.mxu1 %v39242_v18  ;;  %33884 = vmatprep.mubr.msk.f32.mxu1 %vm38223_vm0, %v38224_v1 }
 0x798   : > { %33887 = vmatprep.subr.mxu1 %v38224_v1 }
 0x79e   : > { %33885 = vmatmul.mubr.f32.vlgmr.msra.gmra.mrb[16].mxu1 %v8223_v30 }
 0x79f   : > { %33888 = vmatpush3.msra.mxu1 %v8234_v25  ;;  %33889 = vmatprep.mubr.msk.f32.mxu1 %vm38223_vm0, %v38224_v1 }
 0x7a0   : > { %33892 = vmatprep.subr.mxu1 %v38224_v1 }
 0x7a6   : > { %33890 = vmatmul.mubr.f32.vlgmr.msra.gmra.mrb[16].mxu1 %v39251_v17 }
 0x7a7   : > { %33893 = vmatpush3.msra.mxu1 %v39242_v18  ;;  %33894 = vmatprep.mubr.msk.f32.mxu1 %vm38223_vm0, %v38224_v1 }
 0x7a8   : > { %33927 = vmatprep.subr.mxu1 %v38224_v1 }
 0x7ae   : > { %v5828_v3 = vpop.f32.mrb[10].mxu1  ;;  %33895 = vmatmul.mubr.f32.vlgmr.msra.gmra.mrb[16].mxu1 %v39251_v17 }
 0x7af   : > { %33928 = vmatpush3.msra.mxu1 %v9074_v62  ;;  %5841 = vrot.lane.b32.xlu0 %v5828_v3, %s41863_s12  ;;  %v33716_v63 = vpop.f32.mrb[11].mxu1 }
 0x7b0   : > { %33929 = vmatprep.mubr.msk.f32.mxu1 %vm38223_vm0, %v38224_v1  ;;  %33932 = vmatprep.subr.mxu1 %v38224_v1 }
 0x7bb   : > { %v9064_v4 = vpop.xlane.xlu1 %9063 }
 0x7bc   : > { %37925 = vrcp.f32 %v9064_v4 }
 0x7c6   : > { %v37926_v9 = vpop.eup %37925 }
 0x7c7   : > { %v9066_v11 = vmul.f32 %v37926_v9, %v39201_v55 }
 0x7c9   : > { %v9071_v12 = vsel %vm2162_vm3, %v9066_v11, 0  ;;  %v5834_v55 = vpop.permute.xlu1 %5833  ;;  %v1165_v11 = vld [vmem:[#allocation9 + $0x8] sm:$0xff] }
 0x7ca   : > { %v9139_v14 = vand.u32 4294901760, %v9071_v12  ;;  %v5844_v23 = vsel %vm2162_vm3, %v39199_v52, %v5834_v55 }
 0x7cc   : > { %v9140_v16 = vsub.f32 %v9071_v12, %v9139_v14 }
 0x7ce   : > { %v9141_v18 = vand.u32 4294901760, %v9140_v16 }
 0x7d0   : > { %v9142_v20 = vsub.f32 %v9140_v16, %v9141_v18 }
 0x7d2   : > { %v9143_v21 = vand.u32 4294901760, %v9142_v20  ;;  %v1167_v20 = vld [vmem:[#allocation9 + $0x18] sm:$0xff] }
 0x7d4   : > { %33930 = vmatmul.mubr.f32.vlgmr.msra.gmra.mrb[18].mxu1 %v9143_v21  ;;  %v10040_v21 = vand.u32 4294901760, %v1166_v19 }
 0x7d5   : > { %33933 = vmatpush3.msra.mxu1 %v9154_v22  ;;  %33934 = vmatprep.mubr.msk.f32.mxu1 %vm38223_vm0, %v38224_v1  ;;  %v10043_v22 = vand.u32 4294901760, %v1167_v20 }
 0x7d6   : > { %33937 = vmatprep.subr.mxu1 %v38224_v1 }
 0x7dc   : > { %33935 = vmatmul.mubr.f32.vlgmr.msra.gmra.mrb[18].mxu1 %v9139_v14 }
 0x7dd   : > { %33938 = vmatpush3.msra.mxu1 %v9151_v10  ;;  %33939 = vmatprep.mubr.msk.f32.mxu1 %vm38223_vm0, %v38224_v1  ;;  %v1164_v10 = vld [vmem:[#allocation9] sm:$0xff] }
 0x7de   : > { %33942 = vmatprep.subr.mxu1 %v38224_v1  ;;  %v10034_v12 = vand.u32 4294901760, %v1164_v10 }
 0x7e4   : > { %33940 = vmatmul.mubr.f32.vlgmr.msra.gmra.mrb[18].mxu1 %v9140_v16  ;;  %v39427_v16 = vsub.f32 %v1164_v10, %v10034_v12 }
 0x7e5   : > { %33943 = vmatpush3.msra.mxu1 %v9074_v62  ;;  %33944 = vmatprep.mubr.msk.f32.mxu1 %vm38223_vm0, %v38224_v1 }
 0x7e6   : > { %33947 = vmatprep.subr.mxu1 %v38224_v1  ;;  %v10115_v55 = vand.u32 4294901760, %v39427_v16 }
 0x7ec   : > { %33945 = vmatmul.mubr.f32.vlgmr.msra.gmra.mrb[18].mxu1 %v9141_v18 }
 0x7ed   : > { %33948 = vmatpush3.msra.mxu1 %v9152_v15  ;;  %33949 = vmatprep.mubr.msk.f32.mxu1 %vm38223_vm0, %v38224_v1 }
 0x7ee   : > { %33952 = vmatprep.subr.mxu1 %v38224_v1 }
 0x7f4   : > { %33950 = vmatmul.mubr.f32.vlgmr.msra.gmra.mrb[18].mxu1 %v9139_v14 }
 0x7f5   : > { %33953 = vmatpush3.msra.mxu1 %v9074_v62  ;;  %33954 = vmatprep.mubr.msk.f32.mxu1 %vm38223_vm0, %v38224_v1  ;;  %v5838_v17 = vpop.permute.xlu0 %5837 }
 0x7f6   : > { %36375 = vmatprep.subr.bf16.mxu1 %v38222_v0  ;;  %v5846_v24 = vsel %vm5845_vm4, %v5844_v23, %v5838_v17  ;;  %v39435_v23 = vpack.c.bf16 %v10043_v22, %v10040_v21 }
 0x7fc   : > { %33955 = vmatmul.mubr.f32.vlgmr.msra.gmra.mrb[18].mxu1 %v9139_v14  ;;  %v10037_v14 = vand.u32 4294901760, %v1165_v11 }
 0x7fd   : > { %36377 = vmatpush3.bf16.msra.mxu1 %v39274_v43  ;;  %33976 = vmatprep.mubr.msk.f32.mxu1 %vm38223_vm0, %v38224_v1  ;;  %v39393_v43 = vsub.f32 %v10534_v38, %v10573_v40 }
 0x7fe   : > { %36378 = vmatprep.subr.bf16.mxu1 %v38222_v0  ;;  %v39425_v15 = vpack.c.bf16 %v10037_v14, %v10034_v12  ;;  %v39429_v18 = vsub.f32 %v1165_v11, %v10037_v14  ;;  %v31903_v14 = vld [vmem:[%s41848_s8] ss:$0 sm:$0xff] }
 0x7ff   : > { %v10658_v49 = vand.u32 4294901760, %v39393_v43 }
 0x800   : > { %v10122_v17 = vand.u32 4294901760, %v39429_v18  ;;  %v36418_v39 = vpack.c.bf16 %v39429_v18, %v39427_v16 }
 0x801   : > { %36380 = vmatpush3.bf16.msra.mxu1 %v36379_v58  ;;  %v10659_v56 = vsub.f32 %v39393_v43, %v10658_v49  ;;  %v10665_v58 = vand.u32 4294901760, %v39401_v51  ;;  %v39421_v4 = vpack.c.bf16 %v10658_v49, %v10651_v48 }
 0x802   : > { %36387 = vmatprep.subr.bf16.mxu1 %v38222_v0  ;;  %v39458_v44 = vpack.c.bf16 %v10122_v17, %v10115_v55 }
 0x803   : > { %v10666_v61 = vsub.f32 %v39401_v51, %v10665_v58 }
 0x805   : > { %v10667_v3 = vand.u32 4294901760, %v10666_v61 }
 0x821   : > { %v5842_v25 = vpop.permute.xlu0 %5841 }
 0x822   : > { %v5848_v13 = vsel %vm5847_vm5, %v5846_v24, %v5842_v25  ;;  %v39437_v24 = vsub.f32 %v1166_v19, %v10040_v21  ;;  %v39439_v25 = vsub.f32 %v1167_v20, %v10043_v22 }
 0x823   : > { %v9535_v26 = vsel %vm1175_vm2, %v5848_v13, 0  ;;  %v10116_v13 = vsub.f32 %v39427_v16, %v10115_v55 }
 0x824   : > { %v9606_v27 = vand.u32 4294901760, %v9535_v26  ;;  %v36421_v40 = vpack.c.bf16 %v39439_v25, %v39437_v24 }
 0x826   : > { %v9607_v30 = vsub.f32 %v9535_v26, %v9606_v27  ;;  %33977 = vmatmul.mubr.f32.vlgmr.msra.gmra.mrb[20].mxu1 %v9606_v27  ;;  %v10123_v26 = vsub.f32 %v39429_v18, %v10122_v17 }
 0x827   : > { %36389 = vmatpush3.bf16.msra.mxu1 %v39296_v59  ;;  %33998 = vmatprep.mubr.msk.f32.mxu1 %vm38223_vm0, %v38224_v1 }
 0x828   : > { %36390 = vmatprep.subr.bf16.mxu1 %v38222_v0  ;;  %v9608_v32 = vand.u32 4294901760, %v9607_v30 }
 0x829   : > { %v39357_v31 = vpop.f32.mrb[12].mxu1 }
 0x82a   : > { %v33776_v52 = vpop.f32.mrb[13].mxu1  ;;  %v9609_v33 = vsub.f32 %v9607_v30, %v9608_v32 }
 0x82b   : > { %36392 = vmatpush3.bf16.msra.mxu1 %v39305_v60  ;;  %v10124_v52 = vand.u32 4294901760, %v10123_v26 }
 0x82c   : > { %36399 = vmatprep.subr.bf16.mxu1 %v38222_v0  ;;  %v9610_v34 = vand.u32 4294901760, %v9609_v33 }
 0x82e   : > { %33999 = vmatmul.mubr.f32.vlgmr.msra.gmra.mrb[22].mxu1 %v9608_v32  ;;  %33966 = vmatmul.mubr.f32.vlgmr.msra.gmra.mrb[18].mxu0 %v9610_v34  ;;  %v10136_v32 = vand.u32 4294901760, %v39439_v25 }
 0x82f   : > { %36383 = vmatpush3.bf16.msra.mxu0 %v36382_v2  ;;  %36401 = vmatpush3.bf16.msra.mxu1 %v39296_v59  ;;  %v10672_v59 = vand.u32 4294901760, %v39403_v53 }
 0x830   : > { %36384 = vmatprep.subr.bf16.mxu0 %v38222_v0  ;;  %36402 = vmatprep.subr.bf16.mxu1 %v38222_v0 }
 0x831   : > { %33987 = vmatprep.mubr.msk.f32.mxu0 %vm38223_vm0, %v38224_v1  ;;  %34020 = vmatprep.mubr.msk.f32.mxu1 %vm38223_vm0, %v38224_v1  ;;  %v10673_v62 = vsub.f32 %v39403_v53, %v10672_v59  ;;  %v39423_v9 = vpack.c.bf16 %v10672_v59, %v10665_v58 }
 0x833   : > { %36386 = vmatpush3.bf16.msra.mxu0 %v36385_v6  ;;  %36404 = vmatpush3.bf16.msra.mxu1 %v39305_v60  ;;  %v10660_v60 = vand.u32 4294901760, %v10659_v56  ;;  %v10674_v63 = vand.u32 4294901760, %v10673_v62 }
 0x834   : > { %36393 = vmatprep.subr.bf16.mxu0 %v38222_v0  ;;  %36441 = vmatprep.subr.bf16.mxu1 %v38222_v0 }
 0x835   : > { %v39413_v2 = vpack.c.bf16 %v10660_v60, %v10653_v57  ;;  %v39415_v6 = vpack.c.bf16 %v10674_v63, %v10667_v3 }
 0x836   : > { %33988 = vmatmul.mubr.f32.vlgmr.msra.gmra.mrb[20].mxu0 %v9607_v30  ;;  %34021 = vmatmul.mubr.f32.vlgmr.msra.gmra.mrb[24].mxu1 %v9606_v27  ;;  %v10129_v30 = vand.u32 4294901760, %v39437_v24 }
 0x837   : > { %36395 = vmatpush3.bf16.msra.mxu0 %v39322_v7  ;;  %34009 = vmatprep.mubr.msk.f32.mxu0 %vm38223_vm0, %v38224_v1  ;;  %v36454_v7 = vpack.c.bf16 %v39393_v43, %v39391_v42 }
 0x838   : > { %36396 = vmatprep.subr.bf16.mxu0 %v38222_v0  ;;  %34097 = vmatprep.mubr.msk.f32.mxu1 %vm38223_vm0, %v38224_v1  ;;  %v10130_v34 = vsub.f32 %v39437_v24, %v10129_v30  ;;  %v39460_v45 = vpack.c.bf16 %v10136_v32, %v10129_v30  ;;  %v10541_v24 = vld [vmem:[#allocation6 + $0x28] sm:$0xff] }
 0x839   : > { %36443 = vmatpush3.bf16.msra.mxu1 %v39389_v41  ;;  %v11069_v30 = vand.u32 4294901760, %v10541_v24 }
 0x83a   : > { %36444 = vmatprep.subr.bf16.mxu1 %v38222_v0 }
 0x83b   : > { %36398 = vmatpush3.bf16.msra.mxu0 %v39324_v8  ;;  %v36457_v8 = vpack.c.bf16 %v39403_v53, %v39401_v51 }
 0x83c   : > { %36405 = vmatprep.subr.bf16.mxu0 %v38222_v0 }
 0x83d   : > { %36446 = vmatpush3.bf16.msra.mxu1 %v39399_v50 }
 0x83e   : > { %34010 = vmatmul.mubr.f32.vlgmr.msra.gmra.mrb[22].mxu0 %v9606_v27  ;;  %36447 = vmatprep.subr.bf16.mxu1 %v38222_v0  ;;  %v10117_v27 = vand.u32 4294901760, %v10116_v13 }
 0x83f   : > { %34031 = vmatprep.mubr.msk.f32.mxu0 %vm38223_vm0, %v38224_v1  ;;  %36407 = vmatpush3.bf16.msra.mxu0 %v39425_v15 }
 0x840   : > { %36408 = vmatprep.subr.bf16.mxu0 %v38222_v0 }
 0x843   : > { %36410 = vmatpush3.bf16.msra.mxu0 %v39435_v23 }
 0x844   : > { %36411 = vmatprep.subr.bf16.mxu0 %v38222_v0 }
 0x855   : > { %v7679_v28 = vpop.f32.mrb[14].mxu1 }
 0x856   : > { %9520 = vrot.lane.b32.xlu0 %v7679_v28, %s41869_s29  ;;  %v33836_v29 = vpop.f32.mrb[15].mxu1  ;;  %v10137_v28 = vsub.f32 %v39439_v25, %v10136_v32 }
 0x858   : > { %v10138_v37 = vand.u32 4294901760, %v10137_v28  ;;  %v10543_v28 = vld [vmem:[#allocation6 + $0x38] sm:$0xff] }
 0x881   : > { %v8597_v35 = vpop.f32.mrb[16].mxu1 }
 0x882   : > { %9524 = vrot.lane.b32.xlu0 %v8597_v35, %s41865_s22  ;;  %v33896_v36 = vpop.f32.mrb[17].mxu1  ;;  %v39450_v35 = vpack.c.bf16 %v10124_v52, %v10117_v27  ;;  %s41867_s22 = smov 32  }
 0x883   : > { %v10131_v36 = vand.u32 4294901760, %v10130_v34  ;;  %v10542_v34 = vld [vmem:[#allocation6 + $0x30] sm:$0xff] }
 0x885   : > { %v39452_v38 = vpack.c.bf16 %v10138_v37, %v10131_v36 }
 0x8c8   : > { %v9521_v42 = vpop.permute.xlu0 %9520 }
 0x8c9   : > { %v9531_v51 = vsel %vm2162_vm3, %v39357_v31, %v9521_v42 }
 0x8cf   : > { %v9515_v33 = vpop.f32.mrb[18].mxu1 }
 0x8d0   : > { %9528 = vrot.lane.b32.xlu0 %v9515_v33, %s41863_s12  ;;  %v33956_v29 = vpop.f32.mrb[19].mxu1  ;;  %s41902_s12 = smov %s41901_s18  ;;  %v11153_v33 = vsub.f32 %v10541_v24, %v11069_v30 }
 0x8d1   : > { %v11072_v29 = vand.u32 4294901760, %v10542_v34 }
 0x8d2   : > { %v11154_v37 = vand.u32 4294901760, %v11153_v33 }
 0x8f4   : > { %v9525_v43 = vpop.permute.xlu0 %9524 }
 0x8f5   : > { %v9532_v53 = vsel %vm5845_vm4, %v9531_v51, %v9525_v43  ;;  %v31910_v43 = vld [vmem:[%s41846_s6 + $0x1] ss:$0 sm:$0xff] }
 0x8f9   : > { %v9703_v46 = vpop.f32.mrb[20].mxu1 }
 0x8fa   : > { %v33978_v47 = vpop.f32.mrb[21].mxu1 }
 0x8fb   : > { %v11155_v47 = vsub.f32 %v11153_v33, %v11154_v37 }
 0x901   : > { %v9860_v48 = vpop.f32.mrb[22].mxu1  ;;  %v9612_v49 = vpop.f32.mrb[18].mxu0 }
 0x902   : > { %v9704_v54 = vadd.f32 %v9703_v46, %v9612_v49  ;;  %v34000_v56 = vpop.f32.mrb[23].mxu1  ;;  %v33967_v57 = vpop.f32.mrb[19].mxu0 }
 0x903   : > { %v11156_v57 = vand.u32 4294901760, %v11155_v47 }
 0x909   : > { %v9783_v58 = vpop.f32.mrb[20].mxu0  ;;  %v10018_v59 = vpop.f32.mrb[24].mxu1 }
 0x90a   : > { %v9784_v60 = vadd.f32 %v9783_v58, %v9704_v54  ;;  %v33989_v61 = vpop.f32.mrb[21].mxu0  ;;  %v34022_v62 = vpop.f32.mrb[25].mxu1 }
 0x90b   : > { %v31909_v61 = vld [vmem:[%s41844_s4 + $0x1] ss:$0 sm:$0xff] }
 0x90c   : > { %v9861_v3 = vadd.f32 %v9860_v48, %v9784_v60 }
 0x911   : > { %v9943_v63 = vpop.f32.mrb[22].mxu0 }
 0x912   : > { %v9944_v10 = vadd.f32 %v9943_v63, %v9861_v3  ;;  %v34011_v11 = vpop.f32.mrb[23].mxu0 }
 0x914   : > { %v10019_v12 = vadd.f32 %v10018_v59, %v9944_v10 }
 0x916   : > { %v10022_v19 = vadd.f32 %v38764_v5, %v10019_v12 }
 0x918   : > { %v39466_v20 = vadd.f32 %v31903_v14, %v10022_v19 }
 0x91a   : > { %v10567_v21 = vsel %vm1175_vm2, %v39466_v20, 0 }
 0x91b   : > { %v10638_v22 = vand.u32 4294901760, %v10567_v21 }
 0x91d   : > { %v10639_v55 = vsub.f32 %v10567_v21, %v10638_v22 }
 0x91f   : > { %v10640_v17 = vand.u32 4294901760, %v10639_v55 }
 0x921   : > { %v10641_v13 = vsub.f32 %v10639_v55, %v10640_v17 }
 0x923   : > { %v10642_v26 = vand.u32 4294901760, %v10641_v13 }
 0x925   : > { %34098 = vmatmul.mubr.f32.vlgmr.msra.gmra.mrb[26].mxu1 %v10642_v26 }
 0x926   : > { %36449 = vmatpush3.bf16.msra.mxu1 %v39413_v2  ;;  %34108 = vmatprep.mubr.msk.f32.mxu1 %vm38223_vm0, %v38224_v1 }
 0x927   : > { %36450 = vmatprep.subr.bf16.mxu1 %v38222_v0 }
 0x92a   : > { %36452 = vmatpush3.bf16.msra.mxu1 %v39415_v6 }
 0x92b   : > { %36453 = vmatprep.subr.bf16.mxu1 %v38222_v0 }
 0x92d   : > { %34109 = vmatmul.mubr.f32.vlgmr.msra.gmra.mrb[26].mxu1 %v10638_v22 }
 0x92e   : > { %36455 = vmatpush3.bf16.msra.mxu1 %v36454_v7  ;;  %34119 = vmatprep.mubr.msk.f32.mxu1 %vm38223_vm0, %v38224_v1 }
 0x92f   : > { %36456 = vmatprep.subr.bf16.mxu1 %v38222_v0 }
 0x932   : > { %36458 = vmatpush3.bf16.msra.mxu1 %v36457_v8 }
 0x933   : > { %36459 = vmatprep.subr.bf16.mxu1 %v38222_v0 }
 0x935   : > { %34120 = vmatmul.mubr.f32.vlgmr.msra.gmra.mrb[26].mxu1 %v10639_v55 }
 0x936   : > { %36461 = vmatpush3.bf16.msra.mxu1 %v39389_v41  ;;  %34130 = vmatprep.mubr.msk.f32.mxu1 %vm38223_vm0, %v38224_v1 }
 0x937   : > { %36462 = vmatprep.subr.bf16.mxu1 %v38222_v0 }
 0x93a   : > { %36464 = vmatpush3.bf16.msra.mxu1 %v39399_v50 }
 0x93b   : > { %36465 = vmatprep.subr.bf16.mxu1 %v38222_v0 }
 0x93d   : > { %34131 = vmatmul.mubr.f32.vlgmr.msra.gmra.mrb[26].mxu1 %v10640_v17 }
 0x93e   : > { %36467 = vmatpush3.bf16.msra.mxu1 %v39421_v4  ;;  %34141 = vmatprep.mubr.msk.f32.mxu1 %vm38223_vm0, %v38224_v1 }
 0x93f   : > { %36468 = vmatprep.subr.bf16.mxu1 %v38222_v0 }
 0x942   : > { %36470 = vmatpush3.bf16.msra.mxu1 %v39423_v9  ;;  %v9529_v2 = vpop.permute.xlu0 %9528 }
 0x943   : > { %v9533_v6 = vsel %vm5847_vm5, %v9532_v53, %v9529_v2  ;;  %36471 = vmatprep.subr.bf16.mxu1 %v38222_v0 }
 0x944   : > { %v10031_v7 = vsel %vm1175_vm2, %v9533_v6, 0 }
 0x945   : > { %v10102_v8 = vand.u32 4294901760, %v10031_v7  ;;  %34142 = vmatmul.mubr.f32.vlgmr.msra.gmra.mrb[26].mxu1 %v10638_v22 }
 0x946   : > { %36473 = vmatpush3.bf16.msra.mxu1 %v39389_v41  ;;  %34152 = vmatprep.mubr.msk.f32.mxu1 %vm38223_vm0, %v38224_v1  ;;  %v31904_v41 = vld [vmem:[%s41901_s18] ss:$0 sm:$0xff]  ;;  %s41915_s18 = sld [smem:[#allocation20_spill]] }
 0x947   : > { %v10103_v4 = vsub.f32 %v10031_v7, %v10102_v8  ;;  %36474 = vmatprep.subr.bf16.mxu1 %v38222_v0  ;;  %10528 = vrot.lane.b32.xlu0 %v31904_v41, %s41867_s22 }
 0x949   : > { %v10104_v31 = vand.u32 4294901760, %v10103_v4 }
 0x94a   : > { %36476 = vmatpush3.bf16.msra.mxu1 %v39399_v50 }
 0x94b   : > { %v10105_v9 = vsub.f32 %v10103_v4, %v10104_v31  ;;  %34221 = vmatprep.subr.mxu1 %v38224_v1 }
 0x94d   : > { %34153 = vmatmul.mubr.f32.vlgmr.msra.gmra.mrb[26].mxu1 %v10638_v22  ;;  %v10106_v27 = vand.u32 4294901760, %v10105_v9 }
 0x94e   : > { %34223 = vmatprep.mubr.msk.f32.mxu1 %vm38223_vm0, %v38224_v1 }
 0x94f   : > { %34032 = vmatmul.mubr.f32.vlgmr.msra.gmra.mrb[24].mxu0 %v10106_v27 }
 0x950   : > { %36413 = vmatpush3.bf16.msra.mxu0 %v39450_v35  ;;  %34042 = vmatprep.mubr.msk.f32.mxu0 %vm38223_vm0, %v38224_v1  ;;  %v11075_v35 = vand.u32 4294901760, %v10543_v28 }
 0x951   : > { %36414 = vmatprep.subr.bf16.mxu0 %v38222_v0 }
 0x954   : > { %36416 = vmatpush3.bf16.msra.mxu0 %v39452_v38  ;;  %v39556_v38 = vpack.c.bf16 %v11075_v35, %v11072_v29 }
 0x955   : > { %36417 = vmatprep.subr.bf16.mxu0 %v38222_v0 }
 0x957   : > { %34043 = vmatmul.mubr.f32.vlgmr.msra.gmra.mrb[24].mxu0 %v10102_v8 }
 0x958   : > { %36419 = vmatpush3.bf16.msra.mxu0 %v36418_v39  ;;  %34053 = vmatprep.mubr.msk.f32.mxu0 %vm38223_vm0, %v38224_v1  ;;  %v11160_v39 = vsub.f32 %v10542_v34, %v11072_v29 }
 0x959   : > { %36420 = vmatprep.subr.bf16.mxu0 %v38222_v0 }
 0x95a   : > { %v11161_v54 = vand.u32 4294901760, %v11160_v39 }
 0x95c   : > { %36422 = vmatpush3.bf16.msra.mxu0 %v36421_v40  ;;  %v11167_v40 = vsub.f32 %v10543_v28, %v11075_v35  ;;  %v11162_v59 = vsub.f32 %v11160_v39, %v11161_v54 }
 0x95d   : > { %36423 = vmatprep.subr.bf16.mxu0 %v38222_v0 }
 0x95e   : > { %v11168_v56 = vand.u32 4294901760, %v11167_v40  ;;  %v36493_v12 = vpack.c.bf16 %v11167_v40, %v11160_v39 }
 0x95f   : > { %34054 = vmatmul.mubr.f32.vlgmr.msra.gmra.mrb[24].mxu0 %v10103_v4 }
 0x960   : > { %36425 = vmatpush3.bf16.msra.mxu0 %v39425_v15  ;;  %34064 = vmatprep.mubr.msk.f32.mxu0 %vm38223_vm0, %v38224_v1  ;;  %v11169_v60 = vsub.f32 %v11167_v40, %v11168_v56  ;;  %v36505_v19 = vpack.c.bf16 %v11168_v56, %v11161_v54 }
 0x961   : > { %36426 = vmatprep.subr.bf16.mxu0 %v38222_v0 }
 0x962   : > { %v11170_v3 = vand.u32 4294901760, %v11169_v60 }
 0x964   : > { %36428 = vmatpush3.bf16.msra.mxu0 %v39435_v23 }
 0x965   : > { %36429 = vmatprep.subr.bf16.mxu0 %v38222_v0 }
 0x967   : > { %34065 = vmatmul.mubr.f32.vlgmr.msra.gmra.mrb[24].mxu0 %v10104_v31 }
 0x968   : > { %36431 = vmatpush3.bf16.msra.mxu0 %v39458_v44  ;;  %34075 = vmatprep.mubr.msk.f32.mxu0 %vm38223_vm0, %v38224_v1 }
 0x969   : > { %36432 = vmatprep.subr.bf16.mxu0 %v38222_v0 }
 0x96c   : > { %36434 = vmatpush3.bf16.msra.mxu0 %v39460_v45 }
 0x96d   : > { %36435 = vmatprep.subr.bf16.mxu0 %v38222_v0 }
 0x96f   : > { %34076 = vmatmul.mubr.f32.vlgmr.msra.gmra.mrb[24].mxu0 %v10102_v8 }
 0x970   : > { %36437 = vmatpush3.bf16.msra.mxu0 %v39425_v15  ;;  %34086 = vmatprep.mubr.msk.f32.mxu0 %vm38223_vm0, %v38224_v1 }
 0x971   : > { %36438 = vmatprep.subr.bf16.mxu0 %v38222_v0 }
 0x974   : > { %36440 = vmatpush3.bf16.msra.mxu0 %v39435_v23  ;;  %v10540_v23 = vld [vmem:[#allocation6 + $0x20] sm:$0xff] }
 0x975   : > { %36477 = vmatprep.subr.bf16.mxu0 %v38222_v0  ;;  %v11066_v25 = vand.u32 4294901760, %v10540_v23 }
 0x977   : > { %34087 = vmatmul.mubr.f32.vlgmr.msra.gmra.mrb[24].mxu0 %v10102_v8  ;;  %v39552_v32 = vpack.c.bf16 %v11069_v30, %v11066_v25  ;;  %v11146_v52 = vsub.f32 %v10540_v23, %v11066_v25 }
 0x978   : > { %34163 = vmatprep.mubr.msk.f32.mxu0 %vm38223_vm0, %v38224_v1 }
 0x979   : > { %36479 = vmatpush3.bf16.msra.mxu0 %v39552_v32  ;;  %v11147_v36 = vand.u32 4294901760, %v11146_v52  ;;  %v36490_v11 = vpack.c.bf16 %v11153_v33, %v11146_v52 }
 0x97a   : > { %36480 = vmatprep.subr.bf16.mxu0 %v38222_v0 }
 0x97b   : > { %v11148_v44 = vsub.f32 %v11146_v52, %v11147_v36  ;;  %v36502_v14 = vpack.c.bf16 %v11154_v37, %v11147_v36 }
 0x97d   : > { %36482 = vmatpush3.bf16.msra.mxu0 %v39556_v38  ;;  %v11149_v49 = vand.u32 4294901760, %v11148_v44 }
 0x97e   : > { %36483 = vmatprep.subr.bf16.mxu0 %v38222_v0 }
 0x97f   : > { %v36484_v62 = vpack.c.bf16 %v11156_v57, %v11149_v49 }
 0x9b9   : > { %v10529_v46 = vpop.permute.xlu0 %10528 }
 0xa20   : > { %v11050_v50 = vpop.f32.mrb[26].mxu1 }
 0xa21   : > { %v34154_v15 = vpop.f32.mrb[27].mxu1  ;;  %v39568_v63 = vadd.f32 %v31909_v61, %v11050_v50 }
 0xa23   : > { %v11554_v6 = vsel %vm2162_vm3, %v39568_v63, 0 }
 0xa24   : > { %v39632_v8 = vand.u32 4294901760, %v11554_v6 }
 0xa26   : > { %v11625_v9 = vsub.f32 %v11554_v6, %v39632_v8 }
 0xa28   : > { %v11626_v41 = vand.u32 4294901760, %v11625_v9 }
 0xa4a   : > { %v10514_v16 = vpop.f32.mrb[24].mxu0 }
 0xa4b   : > { %10519 = vrot.lane.b32.xlu1 %v10514_v16, %s41867_s22  ;;  %v34088_v18 = vpop.f32.mrb[25].mxu0  ;;  %s41908_s22 = sld [smem:[#allocation19_spill]] }
 0xa4c   : > { %v11627_v18 = vsub.f32 %v11625_v9, %v11626_v41 }
 0xa4e   : > { %v11628_v52 = vand.u32 4294901760, %v11627_v18 }
 0xabd   : > { %v10520_v45 = vpop.permute.xlu1 %10519 }
 0xabe   : > { %v10522_v48 = vadd.f32 %v38764_v5, %v10520_v45  ;;  %v11163_v5 = vand.u32 4294901760, %v11162_v59 }
 0xac0   : > { %v39561_v58 = vadd.f32 %v10529_v46, %v10522_v48  ;;  %v36487_v10 = vpack.c.bf16 %v11170_v3, %v11163_v5 }
 0xac2   : > { %11061 = vrot.lane.b32.xlu1 %v39561_v58, %s38225_s24 }
 0xac6   : > { %12468 = vrot.lane.b32.xlu1 %v39568_v63, %s38226_s15 }
 0xaca   : > { %13386 = vrot.lane.b32.xlu1 %v39568_v63, %s38229_s30 }
 0xace   : > { %14304 = vrot.lane.b32.xlu1 %v39568_v63, %s38231_s27 }
 0xad2   : > { %15237 = vrot.lane.b32.xlu1 %v39568_v63, %s38225_s24 }
 0xad6   : > { %16155 = vrot.lane.b32.xlu1 %v39568_v63, %s38227_s26 }
 0xada   : > { %17073 = vrot.lane.b32.xlu1 %v39568_v63, %s38228_s28 }
 0xade   : > { %17991 = vrot.lane.b32.xlu1 %v39568_v63, %s38230_s14 }
 0xb34   : > { %v11062_v21 = vpop.permute.xlu1 %11061 }
 0xb35   : > { %v11063_v22 = vsel %vm1175_vm2, %v11062_v21, 0 }
 0xb36   : > { %v11134_v55 = vand.u32 4294901760, %v11063_v22 }
 0xb38   : > { %v11135_v17 = vsub.f32 %v11063_v22, %v11134_v55  ;;  %v12469_v7 = vpop.permute.xlu1 %12468 }
 0xb39   : > { %v12472_v4 = vsel %vm2162_vm3, %v12469_v7, 0 }
 0xb3a   : > { %v11136_v13 = vand.u32 4294901760, %v11135_v17  ;;  %v39635_v31 = vand.u32 4294901760, %v12472_v4 }
 0xb3c   : > { %v11137_v26 = vsub.f32 %v11135_v17, %v11136_v13  ;;  %v12543_v27 = vsub.f32 %v12472_v4, %v39635_v31  ;;  %v13387_v40 = vpop.permute.xlu1 %13386 }
 0xb3d   : > { %v13390_v45 = vsel %vm2162_vm3, %v13387_v40, 0 }
 0xb3e   : > { %v11138_v42 = vand.u32 4294901760, %v11137_v26  ;;  %v12544_v15 = vand.u32 4294901760, %v12543_v27  ;;  %v13460_v47 = vand.u32 4294901760, %v13390_v45 }
 0xb40   : > { %34164 = vmatmul.mubr.f32.vlgmr.msra.gmra.mrb[26].mxu0 %v11138_v42  ;;  %v12545_v30 = vsub.f32 %v12543_v27, %v12544_v15  ;;  %v13461_v49 = vsub.f32 %v13390_v45, %v13460_v47  ;;  %v14305_v5 = vpop.permute.xlu1 %14304 }
 0xb41   : > { %36485 = vmatpush3.bf16.msra.mxu0 %v36484_v62  ;;  %34174 = vmatprep.mubr.msk.f32.mxu0 %vm38223_vm0, %v38224_v1 }
 0xb42   : > { %36486 = vmatprep.subr.bf16.mxu0 %v38222_v0  ;;  %v12546_v35 = vand.u32 4294901760, %v12545_v30  ;;  %v13462_v56 = vand.u32 4294901760, %v13461_v49 }
 0xb44   : > { %v13463_v59 = vsub.f32 %v13461_v49, %v13462_v56 }
 0xb45   : > { %36488 = vmatpush3.bf16.msra.mxu0 %v36487_v10  ;;  %v14308_v10 = vsel %vm2162_vm3, %v14305_v5, 0 }
 0xb46   : > { %36489 = vmatprep.subr.bf16.mxu0 %v38222_v0  ;;  %v13464_v61 = vand.u32 4294901760, %v13463_v59 }
 0xb48   : > { %34175 = vmatmul.mubr.f32.vlgmr.msra.gmra.mrb[26].mxu0 %v11134_v55 }
 0xb49   : > { %36491 = vmatpush3.bf16.msra.mxu0 %v36490_v11  ;;  %34185 = vmatprep.mubr.msk.f32.mxu0 %vm38223_vm0, %v38224_v1 }
 0xb4a   : > { %36492 = vmatprep.subr.bf16.mxu0 %v38222_v0 }
 0xb4d   : > { %36494 = vmatpush3.bf16.msra.mxu0 %v36493_v12  ;;  %v14378_v12 = vand.u32 4294901760, %v14308_v10 }
 0xb4e   : > { %36495 = vmatprep.subr.bf16.mxu0 %v38222_v0 }
 0xb50   : > { %34186 = vmatmul.mubr.f32.vlgmr.msra.gmra.mrb[26].mxu0 %v11135_v17 }
 0xb51   : > { %36497 = vmatpush3.bf16.msra.mxu0 %v39552_v32  ;;  %34196 = vmatprep.mubr.msk.f32.mxu0 %vm38223_vm0, %v38224_v1 }
 0xb52   : > { %36498 = vmatprep.subr.bf16.mxu0 %v38222_v0 }
 0xb55   : > { %36500 = vmatpush3.bf16.msra.mxu0 %v39556_v38 }
 0xb56   : > { %36501 = vmatprep.subr.bf16.mxu0 %v38222_v0 }
 0xb58   : > { %34197 = vmatmul.mubr.f32.vlgmr.msra.gmra.mrb[26].mxu0 %v11136_v13 }
 0xb59   : > { %36503 = vmatpush3.bf16.msra.mxu0 %v36502_v14  ;;  %34207 = vmatprep.mubr.msk.f32.mxu0 %vm38223_vm0, %v38224_v1 }
 0xb5a   : > { %36504 = vmatprep.subr.bf16.mxu0 %v38222_v0 }
 0xb5d   : > { %36506 = vmatpush3.bf16.msra.mxu0 %v36505_v19  ;;  %v14379_v19 = vsub.f32 %v14308_v10, %v14378_v12 }
 0xb5e   : > { %36507 = vmatprep.subr.bf16.mxu0 %v38222_v0 }
 0xb5f   : > { %v14380_v22 = vand.u32 4294901760, %v14379_v19 }
 0xb60   : > { %34208 = vmatmul.mubr.f32.vlgmr.msra.gmra.mrb[26].mxu0 %v11134_v55 }
 0xb61   : > { %36509 = vmatpush3.bf16.msra.mxu0 %v39552_v32  ;;  %34218 = vmatprep.mubr.msk.f32.mxu0 %vm38223_vm0, %v38224_v1  ;;  %v14381_v17 = vsub.f32 %v14379_v19, %v14380_v22 }
 0xb62   : > { %36510 = vmatprep.subr.bf16.mxu0 %v38222_v0 }
 0xb63   : > { %v14382_v26 = vand.u32 4294901760, %v14381_v17 }
 0xb65   : > { %36512 = vmatpush3.bf16.msra.mxu0 %v39556_v38 }
 0xb66   : > { %34281 = vmatprep.subr.mxu0 %v38224_v1 }
 0xb68   : > { %34219 = vmatmul.mubr.f32.vlgmr.msra.gmra.mrb[26].mxu0 %v11134_v55 }
 0xb69   : > { %34283 = vmatprep.mubr.msk.f32.mxu0 %vm38223_vm0, %v38224_v1 }
 0xc3b   : > { %v11546_v51 = vpop.f32.mrb[26].mxu0 }
 0xc3c   : > { %v39614_v53 = vadd.f32 %v31910_v43, %v11546_v51  ;;  %v34220_v2 = vpop.f32.mrb[27].mxu0  ;;  %v15238_v43 = vpop.permute.xlu1 %15237 }
 0xc3d   : > { %v15241_v2 = vsel %vm2162_vm3, %v15238_v43, 0 }
 0xc3e   : > { %11551 = vrot.lane.b32.xlu0 %v39614_v53, %s38225_s24  ;;  %v15239_v51 = vsel %vm2162_vm3, %v39614_v53, 0  ;;  %v15244_v7 = vand.u32 4294901760, %v15241_v2 }
 0xc3f   : > { %v15309_v6 = vand.u32 4294901760, %v15239_v51 }
 0xc40   : > { %v15321_v4 = vsub.f32 %v15241_v2, %v15244_v7  ;;  %v16156_v18 = vpop.permute.xlu1 %16155 }
 0xc42   : > { %12470 = vrot.lane.b32.xlu0 %v39614_v53, %s38227_s26 }
 0xc46   : > { %13388 = vrot.lane.b32.xlu0 %v39614_v53, %s38228_s28 }
 0xc4a   : > { %14306 = vrot.lane.b32.xlu0 %v39614_v53, %s38230_s14 }
 0xc4e   : > { %16153 = vrot.lane.b32.xlu0 %v39614_v53, %s38226_s15 }
 0xc52   : > { %17071 = vrot.lane.b32.xlu0 %v39614_v53, %s38229_s30 }
 0xc56   : > { %17989 = vrot.lane.b32.xlu0 %v39614_v53, %s38231_s27 }
 0xcb0   : > { %v11552_v50 = vpop.permute.xlu0 %11551 }
 0xcb1   : > { %v11556_v16 = vsel %vm2162_vm3, %v11552_v50, 0 }
 0xcb2   : > { %v11559_v23 = vand.u32 4294901760, %v11556_v16 }
 0xcb4   : > { %v11636_v24 = vsub.f32 %v11556_v16, %v11559_v23  ;;  %34222 = vmatpush3.xpose.msra.mxu1 %v11559_v23  ;;  %v12471_v25 = vpop.permute.xlu0 %12470 }
 0xcb5   : > { %v12474_v32 = vsel %vm2162_vm3, %v12471_v25, 0  ;;  %34226 = vmatprep.subr.mxu1 %v38224_v1 }
 0xcb6   : > { %v11637_v33 = vand.u32 4294901760, %v11636_v24  ;;  %v12477_v34 = vand.u32 4294901760, %v12474_v32 }
 0xcb7   : > { %34224 = vmatmul.mubr.f32.vlgmr.msra.gmra.mrb[28].mxu1 %v11628_v52 }
 0xcb8   : > { %v11638_v28 = vsub.f32 %v11636_v24, %v11637_v33  ;;  %v12554_v29 = vsub.f32 %v12474_v32, %v12477_v34  ;;  %34282 = vmatpush3.xpose.msra.mxu0 %v12477_v34  ;;  %34228 = vmatprep.mubr.msk.f32.mxu1 %vm38223_vm0, %v38224_v1  ;;  %v13389_v44 = vpop.permute.xlu0 %13388 }
 0xcb9   : > { %34286 = vmatprep.subr.mxu0 %v38224_v1  ;;  %v13392_v46 = vsel %vm2162_vm3, %v13389_v44, 0 }
 0xcba   : > { %v11639_v36 = vand.u32 4294901760, %v11638_v28  ;;  %v12555_v37 = vand.u32 4294901760, %v12554_v29  ;;  %v13395_v48 = vand.u32 4294901760, %v13392_v46 }
 0xcbb   : > { %34284 = vmatmul.mubr.f32.vlgmr.msra.gmra.mrb[28].mxu0 %v12546_v35 }
 0xcbc   : > { %v12556_v38 = vsub.f32 %v12554_v29, %v12555_v37  ;;  %34227 = vmatpush3.xpose.msra.mxu1 %v11639_v36  ;;  %34288 = vmatprep.mubr.msk.f32.mxu0 %vm38223_vm0, %v38224_v1  ;;  %v13472_v54 = vsub.f32 %v13392_v46, %v13395_v48  ;;  %v14307_v3 = vpop.permute.xlu0 %14306 }
 0xcbd   : > { %34231 = vmatprep.subr.mxu1 %v38224_v1  ;;  %v14310_v11 = vsel %vm2162_vm3, %v14307_v3, 0 }
 0xcbe   : > { %v12557_v39 = vand.u32 4294901760, %v12556_v38  ;;  %v13473_v57 = vand.u32 4294901760, %v13472_v54  ;;  %v14313_v14 = vand.u32 4294901760, %v14310_v11  ;;  %v17074_v38 = vpop.permute.xlu1 %17073 }
 0xcbf   : > { %34229 = vmatmul.mubr.f32.vlgmr.msra.gmra.mrb[28].mxu1 %v39632_v8  ;;  %v17077_v40 = vsel %vm2162_vm3, %v17074_v38, 0 }
 0xcc0   : > { %34232 = vmatpush3.xpose.msra.mxu1 %v11636_v24  ;;  %34287 = vmatpush3.xpose.msra.mxu0 %v12557_v39  ;;  %v13474_v60 = vsub.f32 %v13472_v54, %v13473_v57  ;;  %v14390_v21 = vsub.f32 %v14310_v11, %v14313_v14  ;;  %v16154_v16 = vpop.permute.xlu0 %16153  ;;  %v16159_v24 = vsel %vm2162_vm3, %v16156_v18, 0  ;;  %v17080_v45 = vand.u32 4294901760, %v17077_v40 }
 0xcc1   : > { %34291 = vmatprep.subr.mxu0 %v38224_v1  ;;  %34233 = vmatprep.mubr.msk.f32.mxu1 %vm38223_vm0, %v38224_v1  ;;  %v16162_v30 = vand.u32 4294901760, %v16159_v24 }
 0xcc2   : > { %34236 = vmatprep.subr.mxu1 %v38224_v1  ;;  %v13475_v62 = vand.u32 4294901760, %v13474_v60  ;;  %v14391_v55 = vand.u32 4294901760, %v14390_v21 }
 0xcc3   : > { %34289 = vmatmul.mubr.f32.vlgmr.msra.gmra.mrb[28].mxu0 %v39635_v31  ;;  %v16239_v52 = vsub.f32 %v16159_v24, %v16162_v30 }
 0xcc4   : > { %34292 = vmatpush3.xpose.msra.mxu0 %v12554_v29  ;;  %34293 = vmatprep.mubr.msk.f32.mxu0 %vm38223_vm0, %v38224_v1  ;;  %v14392_v13 = vsub.f32 %v14390_v21, %v14391_v55 }
 0xcc5   : > { %34296 = vmatprep.subr.mxu0 %v38224_v1 }
 0xcc6   : > { %v14393_v42 = vand.u32 4294901760, %v14392_v13 }
 0xcc7   : > { %34234 = vmatmul.mubr.f32.vlgmr.msra.gmra.mrb[28].mxu1 %v11625_v9  ;;  %v15322_v9 = vand.u32 4294901760, %v15321_v4 }
 0xcc8   : > { %34237 = vmatpush3.xpose.msra.mxu1 %v11559_v23  ;;  %34238 = vmatprep.mubr.msk.f32.mxu1 %vm38223_vm0, %v38224_v1 }
 0xcc9   : > { %34241 = vmatprep.subr.mxu1 %v38224_v1 }
 0xccb   : > { %34294 = vmatmul.mubr.f32.vlgmr.msra.gmra.mrb[28].mxu0 %v12543_v27 }
 0xccc   : > { %34297 = vmatpush3.xpose.msra.mxu0 %v12477_v34  ;;  %34298 = vmatprep.mubr.msk.f32.mxu0 %vm38223_vm0, %v38224_v1 }
 0xccd   : > { %34301 = vmatprep.subr.mxu0 %v38224_v1 }
 0xccf   : > { %34239 = vmatmul.mubr.f32.vlgmr.msra.gmra.mrb[28].mxu1 %v11626_v41  ;;  %v15323_v41 = vsub.f32 %v15321_v4, %v15322_v9 }
 0xcd0   : > { %34242 = vmatpush3.xpose.msra.mxu1 %v11637_v33  ;;  %34243 = vmatprep.mubr.msk.f32.mxu1 %vm38223_vm0, %v38224_v1 }
 0xcd1   : > { %34246 = vmatprep.subr.mxu1 %v38224_v1 }
 0xcd3   : > { %34299 = vmatmul.mubr.f32.vlgmr.msra.gmra.mrb[28].mxu0 %v12544_v15  ;;  %v15324_v15 = vand.u32 4294901760, %v15323_v41 }
 0xcd4   : > { %34302 = vmatpush3.xpose.msra.mxu0 %v12555_v37  ;;  %34303 = vmatprep.mubr.msk.f32.mxu0 %vm38223_vm0, %v38224_v1  ;;  %v17072_v37 = vpop.permute.xlu0 %17071 }
 0xcd5   : > { %34306 = vmatprep.subr.mxu0 %v38224_v1  ;;  %v17075_v39 = vsel %vm2162_vm3, %v17072_v37, 0 }
 0xcd6   : > { %v17145_v44 = vand.u32 4294901760, %v17075_v39 }
 0xcd7   : > { %34244 = vmatmul.mubr.f32.vlgmr.msra.gmra.mrb[28].mxu1 %v39632_v8 }
 0xcd8   : > { %34247 = vmatpush3.xpose.msra.mxu1 %v11559_v23  ;;  %34248 = vmatprep.mubr.msk.f32.mxu1 %vm38223_vm0, %v38224_v1  ;;  %v16157_v23 = vsel %vm2162_vm3, %v16154_v16, 0  ;;  %v17146_v46 = vsub.f32 %v17075_v39, %v17145_v44  ;;  %v17990_v60 = vpop.permute.xlu0 %17989 }
 0xcd9   : > { %34251 = vmatprep.subr.mxu1 %v38224_v1  ;;  %v16227_v25 = vand.u32 4294901760, %v16157_v23 }
 0xcdb   : > { %34304 = vmatmul.mubr.f32.vlgmr.msra.gmra.mrb[28].mxu0 %v39635_v31  ;;  %v16228_v32 = vsub.f32 %v16157_v23, %v16227_v25 }
 0xcdc   : > { %34307 = vmatpush3.xpose.msra.mxu0 %v12477_v34  ;;  %34308 = vmatprep.mubr.msk.f32.mxu0 %vm38223_vm0, %v38224_v1  ;;  %v16240_v34 = vand.u32 4294901760, %v16239_v52 }
 0xcdd   : > { %34341 = vmatprep.subr.mxu0 %v38224_v1  ;;  %v16229_v33 = vand.u32 4294901760, %v16228_v32 }
 0xcde   : > { %v16241_v29 = vsub.f32 %v16239_v52, %v16240_v34 }
 0xcdf   : > { %34249 = vmatmul.mubr.f32.vlgmr.msra.gmra.mrb[28].mxu1 %v39632_v8  ;;  %v15310_v8 = vsub.f32 %v15239_v51, %v15309_v6  ;;  %v16230_v28 = vsub.f32 %v16228_v32, %v16229_v33 }
 0xce0   : > { %34253 = vmatprep.mubr.msk.f32.mxu1 %vm38223_vm0, %v38224_v1  ;;  %v16242_v36 = vand.u32 4294901760, %v16241_v29 }
 0xce1   : > { %v16231_v35 = vand.u32 4294901760, %v16230_v28 }
 0xce3   : > { %34309 = vmatmul.mubr.f32.vlgmr.msra.gmra.mrb[28].mxu0 %v39635_v31  ;;  %v15311_v31 = vand.u32 4294901760, %v15310_v8 }
 0xce4   : > { %34342 = vmatpush3.xpose.msra.mxu0 %v13395_v48  ;;  %34343 = vmatprep.mubr.msk.f32.mxu0 %vm38223_vm0, %v38224_v1 }
 0xce5   : > { %34346 = vmatprep.subr.mxu0 %v38224_v1  ;;  %v15312_v27 = vsub.f32 %v15310_v8, %v15311_v31 }
 0xce7   : > { %34344 = vmatmul.mubr.f32.vlgmr.msra.gmra.mrb[30].mxu0 %v13464_v61  ;;  %v15313_v50 = vand.u32 4294901760, %v15312_v27  ;;  %v17992_v61 = vpop.permute.xlu1 %17991 }
 0xce8   : > { %34347 = vmatpush3.xpose.msra.mxu0 %v13475_v62  ;;  %34348 = vmatprep.mubr.msk.f32.mxu0 %vm38223_vm0, %v38224_v1  ;;  %v17993_v62 = vsel %vm2162_vm3, %v17990_v60, 0  ;;  %v17995_v5 = vsel %vm2162_vm3, %v17992_v61, 0 }
 0xce9   : > { %34351 = vmatprep.subr.mxu0 %v38224_v1  ;;  %v18063_v3 = vand.u32 4294901760, %v17993_v62  ;;  %v17998_v10 = vand.u32 4294901760, %v17995_v5 }
 0xcef   : > { %34349 = vmatmul.mubr.f32.vlgmr.msra.gmra.mrb[30].mxu0 %v13460_v47 }
 0xcf0   : > { %34352 = vmatpush3.xpose.msra.mxu0 %v13472_v54  ;;  %34353 = vmatprep.mubr.msk.f32.mxu0 %vm38223_vm0, %v38224_v1 }
 0xcf1   : > { %34356 = vmatprep.subr.mxu0 %v38224_v1 }
 0xcf7   : > { %34354 = vmatmul.mubr.f32.vlgmr.msra.gmra.mrb[30].mxu0 %v13461_v49 }
 0xcf8   : > { %34357 = vmatpush3.xpose.msra.mxu0 %v13395_v48  ;;  %34358 = vmatprep.mubr.msk.f32.mxu0 %vm38223_vm0, %v38224_v1 }
 0xcf9   : > { %34361 = vmatprep.subr.mxu0 %v38224_v1 }
 0xcff   : > { %34359 = vmatmul.mubr.f32.vlgmr.msra.gmra.mrb[30].mxu0 %v13462_v56 }
 0xd00   : > { %34362 = vmatpush3.xpose.msra.mxu0 %v13473_v57  ;;  %34363 = vmatprep.mubr.msk.f32.mxu0 %vm38223_vm0, %v38224_v1 }
 0xd01   : > { %34366 = vmatprep.subr.mxu0 %v38224_v1 }
 0xd07   : > { %34364 = vmatmul.mubr.f32.vlgmr.msra.gmra.mrb[30].mxu0 %v13460_v47 }
 0xd08   : > { %34367 = vmatpush3.xpose.msra.mxu0 %v13395_v48  ;;  %34368 = vmatprep.mubr.msk.f32.mxu0 %vm38223_vm0, %v38224_v1  ;;  %v17147_v48 = vand.u32 4294901760, %v17146_v46 }
 0xd09   : > { %34401 = vmatprep.subr.mxu0 %v38224_v1 }
 0xd0a   : > { %v17148_v54 = vsub.f32 %v17146_v46, %v17147_v48 }
 0xd0c   : > { %v17149_v57 = vand.u32 4294901760, %v17148_v54 }
 0xd0f   : > { %34369 = vmatmul.mubr.f32.vlgmr.msra.gmra.mrb[30].mxu0 %v13460_v47  ;;  %v17157_v47 = vsub.f32 %v17077_v40, %v17080_v45 }
 0xd10   : > { %34402 = vmatpush3.xpose.msra.mxu0 %v14313_v14  ;;  %34403 = vmatprep.mubr.msk.f32.mxu0 %vm38223_vm0, %v38224_v1 }
 0xd11   : > { %34406 = vmatprep.subr.mxu0 %v38224_v1  ;;  %v17158_v49 = vand.u32 4294901760, %v17157_v47 }
 0xd13   : > { %34404 = vmatmul.mubr.f32.vlgmr.msra.gmra.mrb[32].mxu0 %v14382_v26  ;;  %v17159_v56 = vsub.f32 %v17157_v47, %v17158_v49 }
 0xd14   : > { %34407 = vmatpush3.xpose.msra.mxu0 %v14393_v42  ;;  %34408 = vmatprep.mubr.msk.f32.mxu0 %vm38223_vm0, %v38224_v1 }
 0xd15   : > { %34411 = vmatprep.subr.mxu0 %v38224_v1  ;;  %v17160_v59 = vand.u32 4294901760, %v17159_v56 }
 0xd1b   : > { %34409 = vmatmul.mubr.f32.vlgmr.msra.gmra.mrb[32].mxu0 %v14378_v12 }
 0xd1c   : > { %34412 = vmatpush3.xpose.msra.mxu0 %v14390_v21  ;;  %34413 = vmatprep.mubr.msk.f32.mxu0 %vm38223_vm0, %v38224_v1 }
 0xd1d   : > { %34416 = vmatprep.subr.mxu0 %v38224_v1 }
 0xd23   : > { %34414 = vmatmul.mubr.f32.vlgmr.msra.gmra.mrb[32].mxu0 %v14379_v19  ;;  %v18064_v19 = vsub.f32 %v17993_v62, %v18063_v3 }
 0xd24   : > { %34417 = vmatpush3.xpose.msra.mxu0 %v14313_v14  ;;  %34418 = vmatprep.mubr.msk.f32.mxu0 %vm38223_vm0, %v38224_v1 }
 0xd25   : > { %34421 = vmatprep.subr.mxu0 %v38224_v1  ;;  %v18065_v26 = vand.u32 4294901760, %v18064_v19 }
 0xd27   : > { %v18066_v51 = vsub.f32 %v18064_v19, %v18065_v26 }
 0xd2b   : > { %34419 = vmatmul.mubr.f32.vlgmr.msra.gmra.mrb[32].mxu0 %v14380_v22  ;;  %v18075_v22 = vsub.f32 %v17995_v5, %v17998_v10 }
 0xd2c   : > { %34422 = vmatpush3.xpose.msra.mxu0 %v14391_v55  ;;  %34423 = vmatprep.mubr.msk.f32.mxu0 %vm38223_vm0, %v38224_v1 }
 0xd2d   : > { %34426 = vmatprep.subr.mxu0 %v38224_v1  ;;  %v18076_v43 = vand.u32 4294901760, %v18075_v22 }
 0xd2f   : > { %v18077_v2 = vsub.f32 %v18075_v22, %v18076_v43 }
 0xd33   : > { %34424 = vmatmul.mubr.f32.vlgmr.msra.gmra.mrb[32].mxu0 %v14378_v12 }
 0xd34   : > { %34427 = vmatpush3.xpose.msra.mxu0 %v14313_v14  ;;  %34428 = vmatprep.mubr.msk.f32.mxu0 %vm38223_vm0, %v38224_v1 }
 0xd35   : > { %34461 = vmatprep.subr.mxu0 %v38224_v1 }
 0xd3b   : > { %34429 = vmatmul.mubr.f32.vlgmr.msra.gmra.mrb[32].mxu0 %v14378_v12 }
 0xd3c   : > { %34462 = vmatpush3.xpose.msra.mxu0 %v15244_v7  ;;  %34463 = vmatprep.mubr.msk.f32.mxu0 %vm38223_vm0, %v38224_v1 }
 0xd3d   : > { %34466 = vmatprep.subr.mxu0 %v38224_v1 }
 0xd3f   : > { %34464 = vmatmul.mubr.f32.vlgmr.msra.gmra.mrb[34].mxu0 %v15313_v50 }
 0xd40   : > { %34467 = vmatpush3.xpose.msra.mxu0 %v15324_v15  ;;  %34468 = vmatprep.mubr.msk.f32.mxu0 %vm38223_vm0, %v38224_v1 }
 0xd41   : > { %34471 = vmatprep.subr.mxu0 %v38224_v1 }
 0xd47   : > { %34469 = vmatmul.mubr.f32.vlgmr.msra.gmra.mrb[34].mxu0 %v15309_v6 }
 0xd48   : > { %34472 = vmatpush3.xpose.msra.mxu0 %v15321_v4  ;;  %34473 = vmatprep.mubr.msk.f32.mxu0 %vm38223_vm0, %v38224_v1 }
 0xd49   : > { %34476 = vmatprep.subr.mxu0 %v38224_v1 }
 0xd4f   : > { %34474 = vmatmul.mubr.f32.vlgmr.msra.gmra.mrb[34].mxu0 %v15310_v8 }
 0xd50   : > { %34477 = vmatpush3.xpose.msra.mxu0 %v15244_v7  ;;  %34478 = vmatprep.mubr.msk.f32.mxu0 %vm38223_vm0, %v38224_v1 }
 0xd51   : > { %34481 = vmatprep.subr.mxu0 %v38224_v1 }
 0xd57   : > { %34479 = vmatmul.mubr.f32.vlgmr.msra.gmra.mrb[34].mxu0 %v15311_v31 }
 0xd58   : > { %34482 = vmatpush3.xpose.msra.mxu0 %v15322_v9  ;;  %34483 = vmatprep.mubr.msk.f32.mxu0 %vm38223_vm0, %v38224_v1 }
 0xd59   : > { %34486 = vmatprep.subr.mxu0 %v38224_v1 }
 0xd5f   : > { %34484 = vmatmul.mubr.f32.vlgmr.msra.gmra.mrb[34].mxu0 %v15309_v6 }
 0xd60   : > { %34487 = vmatpush3.xpose.msra.mxu0 %v15244_v7  ;;  %34488 = vmatprep.mubr.msk.f32.mxu0 %vm38223_vm0, %v38224_v1  ;;  %v18078_v7 = vand.u32 4294901760, %v18077_v2 }
 0xd61   : > { %34521 = vmatprep.subr.mxu0 %v38224_v1 }
 0xd67   : > { %34489 = vmatmul.mubr.f32.vlgmr.msra.gmra.mrb[34].mxu0 %v15309_v6  ;;  %v18067_v6 = vand.u32 4294901760, %v18066_v51 }
 0xd68   : > { %34522 = vmatpush3.xpose.msra.mxu0 %v16162_v30  ;;  %34523 = vmatprep.mubr.msk.f32.mxu0 %vm38223_vm0, %v38224_v1 }
 0xd69   : > { %34526 = vmatprep.subr.mxu0 %v38224_v1 }
 0xd6b   : > { %34524 = vmatmul.mubr.f32.vlgmr.msra.gmra.mrb[36].mxu0 %v16231_v35 }
 0xd6c   : > { %34527 = vmatpush3.xpose.msra.mxu0 %v16242_v36  ;;  %34528 = vmatprep.mubr.msk.f32.mxu0 %vm38223_vm0, %v38224_v1 }
 0xd6d   : > { %34531 = vmatprep.subr.mxu0 %v38224_v1 }
 0xd73   : > { %34529 = vmatmul.mubr.f32.vlgmr.msra.gmra.mrb[36].mxu0 %v16227_v25 }
 0xd74   : > { %34532 = vmatpush3.xpose.msra.mxu0 %v16239_v52  ;;  %34533 = vmatprep.mubr.msk.f32.mxu0 %vm38223_vm0, %v38224_v1 }
 0xd75   : > { %34536 = vmatprep.subr.mxu0 %v38224_v1 }
 0xd7b   : > { %34534 = vmatmul.mubr.f32.vlgmr.msra.gmra.mrb[36].mxu0 %v16228_v32 }
 0xd7c   : > { %34537 = vmatpush3.xpose.msra.mxu0 %v16162_v30  ;;  %34538 = vmatprep.mubr.msk.f32.mxu0 %vm38223_vm0, %v38224_v1 }
 0xd7d   : > { %34541 = vmatprep.subr.mxu0 %v38224_v1 }
 0xd83   : > { %34539 = vmatmul.mubr.f32.vlgmr.msra.gmra.mrb[36].mxu0 %v16229_v33 }
 0xd84   : > { %34542 = vmatpush3.xpose.msra.mxu0 %v16240_v34  ;;  %34543 = vmatprep.mubr.msk.f32.mxu0 %vm38223_vm0, %v38224_v1 }
 0xd85   : > { %34546 = vmatprep.subr.mxu0 %v38224_v1 }
 0xd8b   : > { %34544 = vmatmul.mubr.f32.vlgmr.msra.gmra.mrb[36].mxu0 %v16227_v25 }
 0xd8c   : > { %34547 = vmatpush3.xpose.msra.mxu0 %v16162_v30  ;;  %34548 = vmatprep.mubr.msk.f32.mxu0 %vm38223_vm0, %v38224_v1 }
 0xd8d   : > { %34581 = vmatprep.subr.mxu0 %v38224_v1 }
 0xd93   : > { %34549 = vmatmul.mubr.f32.vlgmr.msra.gmra.mrb[36].mxu0 %v16227_v25 }
 0xd94   : > { %34582 = vmatpush3.xpose.msra.mxu0 %v17080_v45  ;;  %34583 = vmatprep.mubr.msk.f32.mxu0 %vm38223_vm0, %v38224_v1 }
 0xd95   : > { %34586 = vmatprep.subr.mxu0 %v38224_v1 }
 0xd97   : > { %34584 = vmatmul.mubr.f32.vlgmr.msra.gmra.mrb[38].mxu0 %v17149_v57 }
 0xd98   : > { %34587 = vmatpush3.xpose.msra.mxu0 %v17160_v59  ;;  %34588 = vmatprep.mubr.msk.f32.mxu0 %vm38223_vm0, %v38224_v1 }
 0xd99   : > { %34591 = vmatprep.subr.mxu0 %v38224_v1 }
 0xd9f   : > { %34589 = vmatmul.mubr.f32.vlgmr.msra.gmra.mrb[38].mxu0 %v17145_v44 }
 0xda0   : > { %34592 = vmatpush3.xpose.msra.mxu0 %v17157_v47  ;;  %34593 = vmatprep.mubr.msk.f32.mxu0 %vm38223_vm0, %v38224_v1 }
 0xda1   : > { %34596 = vmatprep.subr.mxu0 %v38224_v1 }
 0xda7   : > { %34594 = vmatmul.mubr.f32.vlgmr.msra.gmra.mrb[38].mxu0 %v17146_v46 }
 0xda8   : > { %34597 = vmatpush3.xpose.msra.mxu0 %v17080_v45  ;;  %34598 = vmatprep.mubr.msk.f32.mxu0 %vm38223_vm0, %v38224_v1 }
 0xda9   : > { %34601 = vmatprep.subr.mxu0 %v38224_v1 }
 0xdaf   : > { %34599 = vmatmul.mubr.f32.vlgmr.msra.gmra.mrb[38].mxu0 %v17147_v48 }
 0xdb0   : > { %34602 = vmatpush3.xpose.msra.mxu0 %v17158_v49  ;;  %34603 = vmatprep.mubr.msk.f32.mxu0 %vm38223_vm0, %v38224_v1 }
 0xdb1   : > { %34606 = vmatprep.subr.mxu0 %v38224_v1 }
 0xdb2   : > { %v12000_v11 = vpop.f32.mrb[28].mxu1 }
 0xdb3   : > { %v12004_v12 = vmul.f32 0.35355338, %v12000_v11  ;;  %v34250_v14 = vpop.f32.mrb[29].mxu1 }
 0xdb5   : > { %v12005_v21 = vsel %vm2162_vm3, %v12004_v12, -inf }
 0xdb6   : > { %12006 = vmax.xlane.f32.xlu0 %v12005_v21  ;;  %v12918_v55 = vpop.f32.mrb[28].mxu0 }
 0xdb7   : > { %v12922_v17 = vmul.f32 0.35355338, %v12918_v55  ;;  %v34310_v13 = vpop.f32.mrb[29].mxu0  ;;  %34604 = vmatmul.mubr.f32.vlgmr.msra.gmra.mrb[38].mxu0 %v17145_v44 }
 0xdb8   : > { %34607 = vmatpush3.xpose.msra.mxu0 %v17080_v45  ;;  %34608 = vmatprep.mubr.msk.f32.mxu0 %vm38223_vm0, %v38224_v1 }
 0xdb9   : > { %v12923_v42 = vsel %vm2162_vm3, %v12922_v17, -inf  ;;  %34641 = vmatprep.subr.mxu0 %v38224_v1 }
 0xdba   : > { %12924 = vmax.xlane.f32.xlu1 %v12923_v42 }
 0xdbf   : > { %34609 = vmatmul.mubr.f32.vlgmr.msra.gmra.mrb[38].mxu0 %v17145_v44 }
 0xdc0   : > { %34642 = vmatpush3.xpose.msra.mxu0 %v17998_v10  ;;  %34643 = vmatprep.mubr.msk.f32.mxu0 %vm38223_vm0, %v38224_v1 }
 0xdc1   : > { %34646 = vmatprep.subr.mxu0 %v38224_v1 }
 0xdc3   : > { %34644 = vmatmul.mubr.f32.vlgmr.msra.gmra.mrb[40].mxu0 %v18067_v6 }
 0xdc4   : > { %34647 = vmatpush3.xpose.msra.mxu0 %v18078_v7  ;;  %34648 = vmatprep.mubr.msk.f32.mxu0 %vm38223_vm0, %v38224_v1 }
 0xdc5   : > { %34651 = vmatprep.subr.mxu0 %v38224_v1 }
 0xdcb   : > { %34649 = vmatmul.mubr.f32.vlgmr.msra.gmra.mrb[40].mxu0 %v18063_v3  ;;  %12016 = vrot.lane.b32.xlu1 %v39614_v53, %s38232_s10 }
 0xdcc   : > { %34652 = vmatpush3.xpose.msra.mxu0 %v18075_v22  ;;  %34653 = vmatprep.mubr.msk.f32.mxu0 %vm38223_vm0, %v38224_v1 }
 0xdcd   : > { %34656 = vmatprep.subr.mxu0 %v38224_v1 }
 0xdd3   : > { %34654 = vmatmul.mubr.f32.vlgmr.msra.gmra.mrb[40].mxu0 %v18064_v19 }
 0xdd4   : > { %34657 = vmatpush3.xpose.msra.mxu0 %v17998_v10  ;;  %34658 = vmatprep.mubr.msk.f32.mxu0 %vm38223_vm0, %v38224_v1 }
 0xdd5   : > { %34661 = vmatprep.subr.mxu0 %v38224_v1 }
 0xddb   : > { %34659 = vmatmul.mubr.f32.vlgmr.msra.gmra.mrb[40].mxu0 %v18065_v26 }
 0xddc   : > { %34662 = vmatpush3.xpose.msra.mxu0 %v18076_v43  ;;  %34663 = vmatprep.mubr.msk.f32.mxu0 %vm38223_vm0, %v38224_v1 }
 0xddd   : > { %34666 = vmatprep.subr.mxu0 %v38224_v1 }
 0xde2   : > { %v13836_v8 = vpop.f32.mrb[30].mxu0 }
 0xde3   : > { %v34370_v4 = vpop.f32.mrb[31].mxu0  ;;  %34664 = vmatmul.mubr.f32.vlgmr.msra.gmra.mrb[40].mxu0 %v18063_v3  ;;  %v13840_v52 = vmul.f32 0.35355338, %v13836_v8 }
 0xde4   : > { %34667 = vmatpush3.xpose.msra.mxu0 %v17998_v10  ;;  %34668 = vmatprep.mubr.msk.f32.mxu0 %vm38223_vm0, %v38224_v1 }
 0xde5   : > { %36513 = vmatprep.subr.bf16.mxu0 %v38222_v0  ;;  %v13841_v28 = vsel %vm2162_vm3, %v13840_v52, -inf }
 0xdeb   : > { %34669 = vmatmul.mubr.f32.vlgmr.msra.gmra.mrb[40].mxu0 %v18063_v3 }
 0xdec   : > { %34709 = vmatprep.mubr.msk.f32.mxu0 %vm38223_vm0, %v38224_v1 }
 0xe0e   : > { %v14754_v31 = vpop.f32.mrb[32].mxu0 }
 0xe0f   : > { %v34430_v9 = vpop.f32.mrb[33].mxu0  ;;  %v14758_v34 = vmul.f32 0.35355338, %v14754_v31 }
 0xe11   : > { %v14759_v29 = vsel %vm2162_vm3, %v14758_v34, -inf }
 0xe3a   : > { %v15685_v27 = vpop.f32.mrb[34].mxu0 }
 0xe3b   : > { %v34490_v41 = vpop.f32.mrb[35].mxu0  ;;  %v39818_v39 = vmul.f32 0.35355338, %v15685_v27 }
 0xe3d   : > { %v15690_v45 = vsel %vm2162_vm3, %v39818_v39, -inf }
 0xe43   : > { %v12007_v50 = vpop.xlane.xlu0 %12006 }
 0xe44   : > { %v12008_v15 = vsub.f32 %v12004_v12, %v12007_v50 }
 0xe46   : > { %v12009_v16 = vmul.f32 1.442695, %v12008_v15 }
 0xe47   : > { %v12925_v18 = vpop.xlane.xlu1 %12924 }
 0xe48   : > { %37927 = vpow2.f32 %v12009_v16  ;;  %v12926_v23 = vsub.f32 %v12922_v17, %v12925_v18 }
 0xe4a   : > { %v12927_v30 = vmul.f32 1.442695, %v12926_v23 }
 0xe4b   : > { %v12017_v24 = vpop.permute.xlu1 %12016 }
 0xe4c   : > { %v39808_v25 = vand.u32 4294901760, %v12017_v24  ;;  %37929 = vpow2.f32 %v12927_v30 }
 0xe4e   : > { %34252 = vmatpush3.msra.mxu1 %v39808_v25  ;;  %v12100_v62 = vsub.f32 %v12017_v24, %v39808_v25 }
 0xe4f   : > { %34256 = vmatprep.subr.mxu1 %v38224_v1 }
 0xe50   : > { %v12101_v11 = vand.u32 4294901760, %v12100_v62 }
 0xe52   : > { %v37928_v32 = vpop.eup %37927  ;;  %v12102_v21 = vsub.f32 %v12100_v62, %v12101_v11 }
 0xe53   : > { %v12011_v33 = vsel %vm2162_vm3, %v37928_v32, 0.0 }
 0xe54   : > { %12012 = vadd.xlane.f32.xlu0 %v12011_v33  ;;  %v12103_v26 = vand.u32 4294901760, %v12102_v21 }
 0xe56   : > { %v37930_v35 = vpop.eup %37929 }
 0xe57   : > { %v12929_v36 = vsel %vm2162_vm3, %v37930_v35, 0.0 }
 0xe58   : > { %13842 = vmax.xlane.f32.xlu0 %v13841_v28 }
 0xe5c   : > { %14760 = vmax.xlane.f32.xlu0 %v14759_v29 }
 0xe60   : > { %12930 = vadd.xlane.f32.xlu0 %v12929_v36 }
 0xe66   : > { %v16603_v37 = vpop.f32.mrb[36].mxu0 }
 0xe67   : > { %v34550_v38 = vpop.f32.mrb[37].mxu0  ;;  %v39834_v42 = vmul.f32 0.35355338, %v16603_v37 }
 0xe69   : > { %v16608_v2 = vsel %vm2162_vm3, %v39834_v42, -inf }
 0xe76   : > { %12934 = vrot.lane.b32.xlu0 %v39614_v53, %s38233_s20 }
 0xe92   : > { %v39820_v40 = vpop.f32.mrb[38].mxu0 }
 0xe93   : > { %v34610_v44 = vpop.f32.mrb[39].mxu0 }
 0xe95   : > { %15691 = vmax.xlane.f32.xlu0 %v15690_v45 }
 0xebe   : > { %v39824_v46 = vpop.f32.mrb[40].mxu0 }
 0xebf   : > { %v34670_v47 = vpop.f32.mrb[41].mxu0 }
 0xee1   : > { %v12013_v48 = vpop.xlane.xlu0 %12012 }
 0xee2   : > { %37931 = vrcp.f32 %v12013_v48 }
 0xee5   : > { %v13843_v49 = vpop.xlane.xlu0 %13842 }
 0xee6   : > { %v13844_v54 = vsub.f32 %v13840_v52, %v13843_v49  ;;  %v39873_v52 = vmul.f32 0.35355338, %v39824_v46 }
 0xee8   : > { %v13845_v56 = vmul.f32 1.442695, %v13844_v54  ;;  %v18444_v29 = vsel %vm2162_vm3, %v39873_v52, -inf }
 0xee9   : > { %v14761_v57 = vpop.xlane.xlu0 %14760 }
 0xeea   : > { %37933 = vpow2.f32 %v13845_v56  ;;  %v14762_v59 = vsub.f32 %v14758_v34, %v14761_v57 }
 0xeec   : > { %v37932_v60 = vpop.eup %37931  ;;  %v14763_v61 = vmul.f32 1.442695, %v14762_v59 }
 0xeed   : > { %v12015_v5 = vmul.f32 %v37932_v60, %v37928_v32  ;;  %v12931_v51 = vpop.xlane.xlu0 %12930  ;;  %v39870_v32 = vmul.f32 0.35355338, %v39820_v40 }
 0xeee   : > { %37935 = vpow2.f32 %v14763_v61 }
 0xeef   : > { %v12020_v3 = vsel %vm2162_vm3, %v12015_v5, 0  ;;  %37937 = vrcp.f32 %v12931_v51  ;;  %v17526_v33 = vsel %vm2162_vm3, %v39870_v32, -inf }
 0xef0   : > { %v12088_v10 = vand.u32 4294901760, %v12020_v3 }
 0xef1   : > { %v12935_v4 = vpop.permute.xlu0 %12934 }
 0xef2   : > { %v12089_v12 = vsub.f32 %v12020_v3, %v12088_v10  ;;  %v12941_v9 = vand.u32 4294901760, %v12935_v4 }
 0xef4   : > { %v39828_v14 = vpop.eup %37933  ;;  %v12090_v19 = vand.u32 4294901760, %v12089_v12 }
 0xef5   : > { %v13847_v22 = vsel %vm2162_vm3, %v39828_v14, 0.0 }
 0xef6   : > { %13848 = vadd.xlane.f32.xlu1 %v13847_v22  ;;  %v12091_v55 = vsub.f32 %v12089_v12, %v12090_v19 }
 0xef8   : > { %v39832_v17 = vpop.eup %37935  ;;  %v12092_v13 = vand.u32 4294901760, %v12091_v55 }
 0xef9   : > { %v14765_v43 = vsel %vm2162_vm3, %v39832_v17, 0.0  ;;  %v37938_v6 = vpop.eup %37937 }
 0xefa   : > { %34254 = vmatmul.mubr.f32.vlgmr.msra.gmra.mrb[30].mxu1 %v12092_v13  ;;  %14766 = vadd.xlane.f32.xlu0 %v14765_v43  ;;  %v12933_v7 = vmul.f32 %v37938_v6, %v37930_v35 }
 0xefb   : > { %34257 = vmatpush3.msra.mxu1 %v12103_v26  ;;  %34258 = vmatprep.mubr.msk.f32.mxu1 %vm38223_vm0, %v38224_v1 }
 0xefc   : > { %34261 = vmatprep.subr.mxu1 %v38224_v1  ;;  %v12938_v8 = vsel %vm2162_vm3, %v12933_v7, 0 }
 0xefd   : > { %v13006_v31 = vand.u32 4294901760, %v12938_v8 }
 0xefe   : > { %16609 = vmax.xlane.f32.xlu0 %v16608_v2 }
 0xeff   : > { %v13007_v27 = vsub.f32 %v12938_v8, %v13006_v31 }
 0xf01   : > { %v13008_v41 = vand.u32 4294901760, %v13007_v27 }
 0xf02   : > { %34259 = vmatmul.mubr.f32.vlgmr.msra.gmra.mrb[30].mxu1 %v12088_v10 }
 0xf03   : > { %34262 = vmatpush3.msra.mxu1 %v12100_v62  ;;  %34263 = vmatprep.mubr.msk.f32.mxu1 %vm38223_vm0, %v38224_v1  ;;  %v13009_v15 = vsub.f32 %v13007_v27, %v13008_v41 }
 0xf04   : > { %34266 = vmatprep.subr.mxu1 %v38224_v1 }
 0xf05   : > { %v13010_v24 = vand.u32 4294901760, %v13009_v15 }
 0xf07   : > { %13852 = vrot.lane.b32.xlu1 %v39614_v53, %s38234_s25 }
 0xf0a   : > { %34264 = vmatmul.mubr.f32.vlgmr.msra.gmra.mrb[30].mxu1 %v12089_v12 }
 0xf0b   : > { %34267 = vmatpush3.msra.mxu1 %v39808_v25  ;;  %14770 = vrot.lane.b32.xlu1 %v39614_v53, %s41871_s17  ;;  %v13018_v53 = vsub.f32 %v12935_v4, %v12941_v9 }
 0xf0c   : > { %34268 = vmatprep.mubr.msk.f32.mxu1 %vm38223_vm0, %v38224_v1  ;;  %34271 = vmatprep.subr.mxu1 %v38224_v1 }
 0xf0d   : > { %v13019_v50 = vand.u32 4294901760, %v13018_v53 }
 0xf0f   : > { %v13020_v16 = vsub.f32 %v13018_v53, %v13019_v50 }
 0xf12   : > { %34269 = vmatmul.mubr.f32.vlgmr.msra.gmra.mrb[30].mxu1 %v12090_v19 }
 0xf13   : > { %34272 = vmatpush3.msra.mxu1 %v12101_v11  ;;  %34273 = vmatprep.mubr.msk.f32.mxu1 %vm38223_vm0, %v38224_v1 }
 0xf14   : > { %34276 = vmatprep.subr.mxu1 %v38224_v1 }
 0xf1a   : > { %34274 = vmatmul.mubr.f32.vlgmr.msra.gmra.mrb[30].mxu1 %v12088_v10 }
 0xf1b   : > { %34277 = vmatpush3.msra.mxu1 %v39808_v25  ;;  %34278 = vmatprep.mubr.msk.f32.mxu1 %vm38223_vm0, %v38224_v1  ;;  %v13021_v25 = vand.u32 4294901760, %v13020_v16 }
 0xf1c   : > { %34311 = vmatprep.subr.mxu1 %v38224_v1 }
 0xf22   : > { %34279 = vmatmul.mubr.f32.vlgmr.msra.gmra.mrb[30].mxu1 %v12088_v10  ;;  %v15692_v18 = vpop.xlane.xlu0 %15691 }
 0xf23   : > { %34312 = vmatpush3.msra.mxu1 %v12941_v9  ;;  %v15693_v23 = vsub.f32 %v39818_v39, %v15692_v18  ;;  %34313 = vmatprep.mubr.msk.f32.mxu1 %vm38223_vm0, %v38224_v1 }
 0xf24   : > { %34316 = vmatprep.subr.mxu1 %v38224_v1 }
 0xf25   : > { %v15694_v30 = vmul.f32 1.442695, %v15693_v23 }
 0xf26   : > { %34314 = vmatmul.mubr.f32.vlgmr.msra.gmra.mrb[32].mxu1 %v13010_v24 }
 0xf27   : > { %37939 = vpow2.f32 %v15694_v30  ;;  %34317 = vmatpush3.msra.mxu1 %v13021_v25  ;;  %34318 = vmatprep.mubr.msk.f32.mxu1 %vm38223_vm0, %v38224_v1 }
 0xf28   : > { %34321 = vmatprep.subr.mxu1 %v38224_v1 }
 0xf2e   : > { %34319 = vmatmul.mubr.f32.vlgmr.msra.gmra.mrb[32].mxu1 %v13006_v31 }
 0xf2f   : > { %34322 = vmatpush3.msra.mxu1 %v13018_v53  ;;  %17527 = vmax.xlane.f32.xlu1 %v17526_v33 }
 0xf30   : > { %34323 = vmatprep.mubr.msk.f32.mxu1 %vm38223_vm0, %v38224_v1  ;;  %34326 = vmatprep.subr.mxu1 %v38224_v1 }
 0xf31   : > { %v39880_v34 = vpop.eup %37939 }
 0xf32   : > { %v15696_v28 = vsel %vm2162_vm3, %v39880_v34, 0.0 }
 0xf33   : > { %15697 = vadd.xlane.f32.xlu0 %v15696_v28  ;;  %18445 = vmax.xlane.f32.xlu1 %v18444_v29 }
 0xf36   : > { %34324 = vmatmul.mubr.f32.vlgmr.msra.gmra.mrb[32].mxu1 %v13007_v27 }
 0xf37   : > { %34327 = vmatpush3.msra.mxu1 %v12941_v9  ;;  %34328 = vmatprep.mubr.msk.f32.mxu1 %vm38223_vm0, %v38224_v1 }
 0xf38   : > { %34331 = vmatprep.subr.mxu1 %v38224_v1 }
 0xf3e   : > { %34329 = vmatmul.mubr.f32.vlgmr.msra.gmra.mrb[32].mxu1 %v13008_v41 }
 0xf3f   : > { %34332 = vmatpush3.msra.mxu1 %v13019_v50  ;;  %34333 = vmatprep.mubr.msk.f32.mxu1 %vm38223_vm0, %v38224_v1 }
 0xf40   : > { %34336 = vmatprep.subr.mxu1 %v38224_v1 }
 0xf44   : > { %16619 = vrot.lane.b32.xlu1 %v39568_v63, %s38233_s20 }
 0xf46   : > { %34334 = vmatmul.mubr.f32.vlgmr.msra.gmra.mrb[32].mxu1 %v13006_v31 }
 0xf47   : > { %34337 = vmatpush3.msra.mxu1 %v12941_v9  ;;  %34338 = vmatprep.mubr.msk.f32.mxu1 %vm38223_vm0, %v38224_v1 }
 0xf48   : > { %17537 = vrot.lane.b32.xlu1 %v39568_v63, %s38234_s25  ;;  %34371 = vmatprep.subr.mxu1 %v38224_v1 }
 0xf49   : > { %15701 = vrot.lane.b32.xlu0 %v39568_v63, %s38232_s10 }
 0xf4c   : > { %18455 = vrot.lane.b32.xlu1 %v39568_v63, %s41871_s17 }
 0xf4e   : > { %34339 = vmatmul.mubr.f32.vlgmr.msra.gmra.mrb[32].mxu1 %v13006_v31 }
 0xf4f   : > { %34373 = vmatprep.mubr.msk.f32.mxu1 %vm38223_vm0, %v38224_v1 }
 0xf83   : > { %v13849_v35 = vpop.xlane.xlu1 %13848 }
 0xf84   : > { %37941 = vrcp.f32 %v13849_v35 }
 0xf87   : > { %v13853_v36 = vpop.permute.xlu1 %13852  ;;  %v14767_v37 = vpop.xlane.xlu0 %14766 }
 0xf88   : > { %v13859_v38 = vand.u32 4294901760, %v13853_v36 }
 0xf8a   : > { %34372 = vmatpush3.msra.mxu1 %v13859_v38  ;;  %v13936_v63 = vsub.f32 %v13853_v36, %v13859_v38 }
 0xf8b   : > { %v16610_v39 = vpop.xlane.xlu0 %16609  ;;  %34376 = vmatprep.subr.mxu1 %v38224_v1  ;;  %v14771_v12 = vpop.permute.xlu1 %14770 }
 0xf8c   : > { %v16611_v40 = vsub.f32 %v39834_v42, %v16610_v39  ;;  %v13937_v49 = vand.u32 4294901760, %v13936_v63  ;;  %v14777_v19 = vand.u32 4294901760, %v14771_v12 }
 0xf8e   : > { %v37942_v44 = vpop.eup %37941  ;;  %v16612_v45 = vmul.f32 1.442695, %v16611_v40  ;;  %v13938_v57 = vsub.f32 %v13936_v63, %v13937_v49  ;;  %v14854_v22 = vsub.f32 %v14771_v12, %v14777_v19 }
 0xf8f   : > { %v13851_v46 = vmul.f32 %v37942_v44, %v39828_v14 }
 0xf90   : > { %37943 = vpow2.f32 %v16612_v45  ;;  %v13939_v62 = vand.u32 4294901760, %v13938_v57  ;;  %v14855_v26 = vand.u32 4294901760, %v14854_v22 }
 0xf91   : > { %v13856_v47 = vsel %vm2162_vm3, %v13851_v46, 0  ;;  %37945 = vrcp.f32 %v14767_v37 }
 0xf92   : > { %v13924_v48 = vand.u32 4294901760, %v13856_v47  ;;  %v14856_v6 = vsub.f32 %v14854_v22, %v14855_v26 }
 0xf94   : > { %v13925_v54 = vsub.f32 %v13856_v47, %v13924_v48  ;;  %v14857_v4 = vand.u32 4294901760, %v14856_v6 }
 0xf96   : > { %v13926_v56 = vand.u32 4294901760, %v13925_v54 }
 0xf98   : > { %v13927_v59 = vsub.f32 %v13925_v54, %v13926_v56 }
 0xf9a   : > { %v39909_v60 = vpop.eup %37943  ;;  %v13928_v61 = vand.u32 4294901760, %v13927_v59 }
 0xf9b   : > { %v16614_v5 = vsel %vm2162_vm3, %v39909_v60, 0.0  ;;  %v37946_v3 = vpop.eup %37945 }
 0xf9c   : > { %34374 = vmatmul.mubr.f32.vlgmr.msra.gmra.mrb[34].mxu1 %v13928_v61  ;;  %16615 = vadd.xlane.f32.xlu0 %v16614_v5  ;;  %v14769_v10 = vmul.f32 %v37946_v3, %v39832_v17 }
 0xf9d   : > { %34377 = vmatpush3.msra.mxu1 %v13939_v62  ;;  %34378 = vmatprep.mubr.msk.f32.mxu1 %vm38223_vm0, %v38224_v1 }
 0xf9e   : > { %34381 = vmatprep.subr.mxu1 %v38224_v1  ;;  %v14774_v11 = vsel %vm2162_vm3, %v14769_v10, 0 }
 0xf9f   : > { %v39927_v14 = vand.u32 4294901760, %v14774_v11 }
 0xfa1   : > { %v14843_v21 = vsub.f32 %v14774_v11, %v39927_v14 }
 0xfa3   : > { %v14844_v13 = vand.u32 4294901760, %v14843_v21 }
 0xfa4   : > { %34379 = vmatmul.mubr.f32.vlgmr.msra.gmra.mrb[34].mxu1 %v13924_v48 }
 0xfa5   : > { %34382 = vmatpush3.msra.mxu1 %v13936_v63  ;;  %34383 = vmatprep.mubr.msk.f32.mxu1 %vm38223_vm0, %v38224_v1  ;;  %v14845_v2 = vsub.f32 %v14843_v21, %v14844_v13 }
 0xfa6   : > { %34386 = vmatprep.subr.mxu1 %v38224_v1 }
 0xfa7   : > { %v14846_v8 = vand.u32 4294901760, %v14845_v2 }
 0xfac   : > { %34384 = vmatmul.mubr.f32.vlgmr.msra.gmra.mrb[34].mxu1 %v13925_v54 }
 0xfad   : > { %34387 = vmatpush3.msra.mxu1 %v13859_v38  ;;  %34388 = vmatprep.mubr.msk.f32.mxu1 %vm38223_vm0, %v38224_v1 }
 0xfae   : > { %34391 = vmatprep.subr.mxu1 %v38224_v1 }
 0xfb4   : > { %34389 = vmatmul.mubr.f32.vlgmr.msra.gmra.mrb[34].mxu1 %v13926_v56 }
 0xfb5   : > { %34392 = vmatpush3.msra.mxu1 %v13937_v49  ;;  %34393 = vmatprep.mubr.msk.f32.mxu1 %vm38223_vm0, %v38224_v1 }
 0xfb6   : > { %34396 = vmatprep.subr.mxu1 %v38224_v1 }
 0xfbc   : > { %34394 = vmatmul.mubr.f32.vlgmr.msra.gmra.mrb[34].mxu1 %v13924_v48  ;;  %v17528_v55 = vpop.xlane.xlu1 %17527 }
 0xfbd   : > { %34397 = vmatpush3.msra.mxu1 %v13859_v38  ;;  %v17529_v17 = vsub.f32 %v39870_v32, %v17528_v55  ;;  %34398 = vmatprep.mubr.msk.f32.mxu1 %vm38223_vm0, %v38224_v1 }
 0xfbe   : > { %34431 = vmatprep.subr.mxu1 %v38224_v1 }
 0xfbf   : > { %v17530_v42 = vmul.f32 1.442695, %v17529_v17 }
 0xfc0   : > { %v18446_v43 = vpop.xlane.xlu1 %18445  ;;  %v15698_v9 = vpop.xlane.xlu0 %15697 }
 0xfc1   : > { %37947 = vpow2.f32 %v17530_v42  ;;  %v18447_v51 = vsub.f32 %v39873_v52, %v18446_v43 }
 0xfc3   : > { %v18448_v7 = vmul.f32 1.442695, %v18447_v51 }
 0xfc4   : > { %34399 = vmatmul.mubr.f32.vlgmr.msra.gmra.mrb[34].mxu1 %v13924_v48  ;;  %v15702_v18 = vpop.permute.xlu0 %15701  ;;  %v16620_v37 = vpop.permute.xlu1 %16619 }
 0xfc5   : > { %37949 = vpow2.f32 %v18448_v7  ;;  %34432 = vmatpush3.msra.mxu1 %v14777_v19  ;;  %34433 = vmatprep.mubr.msk.f32.mxu1 %vm38223_vm0, %v38224_v1  ;;  %v15708_v24 = vand.u32 4294901760, %v15702_v18  ;;  %v16626_v38 = vand.u32 4294901760, %v16620_v37 }
 0xfc6   : > { %34436 = vmatprep.subr.mxu1 %v38224_v1  ;;  %37951 = vrcp.f32 %v15698_v9 }
 0xfc7   : > { %v15785_v30 = vsub.f32 %v15702_v18, %v15708_v24  ;;  %v16703_v46 = vsub.f32 %v16620_v37, %v16626_v38  ;;  %v10555_v37 = vld [vmem:[#allocation9 + $0x28] sm:$0xff] }
 0xfc8   : > { %34434 = vmatmul.mubr.f32.vlgmr.msra.gmra.mrb[36].mxu1 %v14846_v8  ;;  %v17538_v5 = vpop.permute.xlu1 %17537 }
 0xfc9   : > { %34437 = vmatpush3.msra.mxu1 %v14857_v4  ;;  %34438 = vmatprep.mubr.msk.f32.mxu1 %vm38223_vm0, %v38224_v1  ;;  %v15786_v52 = vand.u32 4294901760, %v15785_v30  ;;  %v16704_v49 = vand.u32 4294901760, %v16703_v46  ;;  %v17544_v3 = vand.u32 4294901760, %v17538_v5 }
 0xfca   : > { %34441 = vmatprep.subr.mxu1 %v38224_v1 }
 0xfcb   : > { %v39941_v31 = vpop.eup %37947  ;;  %v16705_v57 = vsub.f32 %v16703_v46, %v16704_v49  ;;  %v17621_v11 = vsub.f32 %v17538_v5, %v17544_v3 }
 0xfcc   : > { %v17532_v27 = vsel %vm2162_vm3, %v39941_v31, 0.0  ;;  %v18456_v7 = vpop.permute.xlu1 %18455 }
 0xfcd   : > { %17533 = vadd.xlane.f32.xlu0 %v17532_v27  ;;  %v16706_v62 = vand.u32 4294901760, %v16705_v57  ;;  %v18462_v4 = vand.u32 4294901760, %v18456_v7 }
 0xfcf   : > { %v39945_v53 = vpop.eup %37949  ;;  %v18539_v9 = vsub.f32 %v18456_v7, %v18462_v4 }
 0xfd0   : > { %34439 = vmatmul.mubr.f32.vlgmr.msra.gmra.mrb[36].mxu1 %v39927_v14  ;;  %v18450_v41 = vsel %vm2162_vm3, %v39945_v53, 0.0  ;;  %v37952_v50 = vpop.eup %37951 }
 0xfd1   : > { %34442 = vmatpush3.msra.mxu1 %v14854_v22  ;;  %18451 = vadd.xlane.f32.xlu0 %v18450_v41  ;;  %v15700_v15 = vmul.f32 %v37952_v50, %v39880_v34  ;;  %v15787_v34 = vsub.f32 %v15785_v30, %v15786_v52 }
 0xfd2   : > { %34443 = vmatprep.mubr.msk.f32.mxu1 %vm38223_vm0, %v38224_v1  ;;  %34446 = vmatprep.subr.mxu1 %v38224_v1 }
 0xfd3   : > { %v15705_v16 = vsel %vm2162_vm3, %v15700_v15, 0  ;;  %v15788_v29 = vand.u32 4294901760, %v15787_v34  ;;  %v40058_v34 = vld [vmem:[%s38554_s16] sm:$0xff] }
 0xfd4   : > { %v15773_v23 = vand.u32 4294901760, %v15705_v16 }
 0xfd6   : > { %v15774_v25 = vsub.f32 %v15705_v16, %v15773_v23 }
 0xfd8   : > { %34444 = vmatmul.mubr.f32.vlgmr.msra.gmra.mrb[36].mxu1 %v14843_v21  ;;  %v15775_v32 = vand.u32 4294901760, %v15774_v25  ;;  %v17622_v21 = vand.u32 4294901760, %v17621_v11 }
 0xfd9   : > { %34447 = vmatpush3.msra.mxu1 %v14777_v19  ;;  %34448 = vmatprep.mubr.msk.f32.mxu1 %vm38223_vm0, %v38224_v1 }
 0xfda   : > { %34451 = vmatprep.subr.mxu1 %v38224_v1  ;;  %v15776_v33 = vsub.f32 %v15774_v25, %v15775_v32  ;;  %v17623_v17 = vsub.f32 %v17621_v11, %v17622_v21 }
 0xfdc   : > { %v15777_v28 = vand.u32 4294901760, %v15776_v33  ;;  %v17624_v42 = vand.u32 4294901760, %v17623_v17 }
 0xfe0   : > { %34449 = vmatmul.mubr.f32.vlgmr.msra.gmra.mrb[36].mxu1 %v14844_v13 }
 0xfe1   : > { %34452 = vmatpush3.msra.mxu1 %v14855_v26  ;;  %34453 = vmatprep.mubr.msk.f32.mxu1 %vm38223_vm0, %v38224_v1 }
 0xfe2   : > { %34456 = vmatprep.subr.mxu1 %v38224_v1 }
 0xfe8   : > { %34454 = vmatmul.mubr.f32.vlgmr.msra.gmra.mrb[36].mxu1 %v39927_v14 }
 0xfe9   : > { %34457 = vmatpush3.msra.mxu1 %v14777_v19  ;;  %34458 = vmatprep.mubr.msk.f32.mxu1 %vm38223_vm0, %v38224_v1 }
 0xfea   : > { %34491 = vmatprep.subr.mxu1 %v38224_v1 }
 0xff0   : > { %34459 = vmatmul.mubr.f32.vlgmr.msra.gmra.mrb[36].mxu1 %v39927_v14 }
 0xff1   : > { %34492 = vmatpush3.msra.mxu1 %v15708_v24  ;;  %34493 = vmatprep.mubr.msk.f32.mxu1 %vm38223_vm0, %v38224_v1 }
 0xff2   : > { %34496 = vmatprep.subr.mxu1 %v38224_v1 }
 0xff4   : > { %34494 = vmatmul.mubr.f32.vlgmr.msra.gmra.mrb[38].mxu1 %v15777_v28 }
 0xff5   : > { %34497 = vmatpush3.msra.mxu1 %v15788_v29  ;;  %v39969_v35 = vpop.f32.mrb[30].mxu1  ;;  %34498 = vmatprep.mubr.msk.f32.mxu1 %vm38223_vm0, %v38224_v1 }
 0xff6   : > { %v34280_v36 = vpop.f32.mrb[31].mxu1  ;;  %34501 = vmatprep.subr.mxu1 %v38224_v1 }
 0xff7   : > { %v10554_v36 = vld [vmem:[#allocation9 + $0x20] sm:$0xff] }
 0xffc   : > { %34499 = vmatmul.mubr.f32.vlgmr.msra.gmra.mrb[38].mxu1 %v15773_v23 }
 0xffd   : > { %34502 = vmatpush3.msra.mxu1 %v15785_v30  ;;  %34503 = vmatprep.mubr.msk.f32.mxu1 %vm38223_vm0, %v38224_v1 }
 0xffe   : > { %34506 = vmatprep.subr.mxu1 %v38224_v1 }
0x1004   : > { %34504 = vmatmul.mubr.f32.vlgmr.msra.gmra.mrb[38].mxu1 %v15774_v25 }
0x1005   : > { %34507 = vmatpush3.msra.mxu1 %v15708_v24  ;;  %34508 = vmatprep.mubr.msk.f32.mxu1 %vm38223_vm0, %v38224_v1 }
0x1006   : > { %34511 = vmatprep.subr.mxu1 %v38224_v1 }
0x100c   : > { %34509 = vmatmul.mubr.f32.vlgmr.msra.gmra.mrb[38].mxu1 %v15775_v32 }
0x100d   : > { %34512 = vmatpush3.msra.mxu1 %v15786_v52  ;;  %34513 = vmatprep.mubr.msk.f32.mxu1 %vm38223_vm0, %v38224_v1 }
0x100e   : > { %34516 = vmatprep.subr.mxu1 %v38224_v1 }
0x1014   : > { %34514 = vmatmul.mubr.f32.vlgmr.msra.gmra.mrb[38].mxu1 %v15773_v23 }
0x1015   : > { %34517 = vmatpush3.msra.mxu1 %v15708_v24  ;;  %34518 = vmatprep.mubr.msk.f32.mxu1 %vm38223_vm0, %v38224_v1 }
0x1016   : > { %34551 = vmatprep.subr.mxu1 %v38224_v1 }
0x101c   : > { %34519 = vmatmul.mubr.f32.vlgmr.msra.gmra.mrb[38].mxu1 %v15773_v23 }
0x101d   : > { %34552 = vmatpush3.msra.mxu1 %v16626_v38  ;;  %34553 = vmatprep.mubr.msk.f32.mxu1 %vm38223_vm0, %v38224_v1 }
0x101e   : > { %34556 = vmatprep.subr.mxu1 %v38224_v1 }
0x1021   : > { %v39989_v39 = vpop.f32.mrb[32].mxu1 }
0x1022   : > { %v34340_v40 = vpop.f32.mrb[33].mxu1 }
0x1023   : > { %v19425_v40 = vand.u32 4294901760, %v10555_v37 }
0x1029   : > { %v16616_v44 = vpop.xlane.xlu0 %16615 }
0x102a   : > { %37953 = vrcp.f32 %v16616_v44 }
0x1034   : > { %v37954_v45 = vpop.eup %37953 }
0x1035   : > { %v16618_v63 = vmul.f32 %v37954_v45, %v39909_v60 }
0x1037   : > { %v16623_v47 = vsel %vm2162_vm3, %v16618_v63, 0  ;;  %v10556_v63 = vld [vmem:[#allocation9 + $0x30] sm:$0xff] }
0x1038   : > { %v16691_v48 = vand.u32 4294901760, %v16623_v47 }
0x103a   : > { %v16692_v54 = vsub.f32 %v16623_v47, %v16691_v48  ;;  %v10557_v47 = vld [vmem:[#allocation9 + $0x38] sm:$0xff] }
0x103c   : > { %v16693_v56 = vand.u32 4294901760, %v16692_v54 }
0x103e   : > { %v16694_v59 = vsub.f32 %v16692_v54, %v16693_v56 }
0x1040   : > { %v16695_v61 = vand.u32 4294901760, %v16694_v59 }
0x1042   : > { %34554 = vmatmul.mubr.f32.vlgmr.msra.gmra.mrb[40].mxu1 %v16695_v61 }
0x1043   : > { %34557 = vmatpush3.msra.mxu1 %v16706_v62  ;;  %34558 = vmatprep.mubr.msk.f32.mxu1 %vm38223_vm0, %v38224_v1 }
0x1044   : > { %34561 = vmatprep.subr.mxu1 %v38224_v1 }
0x104a   : > { %34559 = vmatmul.mubr.f32.vlgmr.msra.gmra.mrb[40].mxu1 %v16691_v48 }
0x104b   : > { %34562 = vmatpush3.msra.mxu1 %v16703_v46  ;;  %34563 = vmatprep.mubr.msk.f32.mxu1 %vm38223_vm0, %v38224_v1  ;;  %v40067_v46 = vsub.f32 %v10555_v37, %v19425_v40 }
0x104c   : > { %34566 = vmatprep.subr.mxu1 %v38224_v1 }
0x1052   : > { %34564 = vmatmul.mubr.f32.vlgmr.msra.gmra.mrb[40].mxu1 %v16692_v54 }
0x1053   : > { %34567 = vmatpush3.msra.mxu1 %v16626_v38  ;;  %34568 = vmatprep.mubr.msk.f32.mxu1 %vm38223_vm0, %v38224_v1 }
0x1054   : > { %34571 = vmatprep.subr.mxu1 %v38224_v1 }
0x105a   : > { %v17534_v60 = vpop.xlane.xlu0 %17533  ;;  %34569 = vmatmul.mubr.f32.vlgmr.msra.gmra.mrb[40].mxu1 %v16693_v56  ;;  %v19510_v56 = vand.u32 4294901760, %v40067_v46 }
0x105b   : > { %37955 = vrcp.f32 %v17534_v60  ;;  %34572 = vmatpush3.msra.mxu1 %v16704_v49  ;;  %34573 = vmatprep.mubr.msk.f32.mxu1 %vm38223_vm0, %v38224_v1  ;;  %v19431_v49 = vand.u32 4294901760, %v10557_v47 }
0x105c   : > { %34576 = vmatprep.subr.mxu1 %v38224_v1  ;;  %v19511_v60 = vsub.f32 %v40067_v46, %v19510_v56 }
0x105d   : > { %v40077_v61 = vsub.f32 %v10557_v47, %v19431_v49 }
0x105e   : > { %v18452_v43 = vpop.xlane.xlu0 %18451 }
0x105f   : > { %37957 = vrcp.f32 %v18452_v43 }
0x1062   : > { %34574 = vmatmul.mubr.f32.vlgmr.msra.gmra.mrb[40].mxu1 %v16691_v48 }
0x1063   : > { %34577 = vmatpush3.msra.mxu1 %v16626_v38  ;;  %34578 = vmatprep.mubr.msk.f32.mxu1 %vm38223_vm0, %v38224_v1  ;;  %v19422_v38 = vand.u32 4294901760, %v10554_v36 }
0x1064   : > { %34611 = vmatprep.subr.mxu1 %v38224_v1 }
0x1065   : > { %v37956_v10 = vpop.eup %37955  ;;  %v40063_v44 = vpack.c.bf16 %v19425_v40, %v19422_v38  ;;  %v40065_v45 = vsub.f32 %v10554_v36, %v19422_v38 }
0x1066   : > { %v17536_v12 = vmul.f32 %v37956_v10, %v39941_v31  ;;  %v19524_v10 = vand.u32 4294901760, %v40077_v61 }
0x1067   : > { %v19503_v54 = vand.u32 4294901760, %v40065_v45 }
0x1068   : > { %v17541_v14 = vsel %vm2162_vm3, %v17536_v12, 0 }
0x1069   : > { %v17609_v19 = vand.u32 4294901760, %v17541_v14  ;;  %v37958_v51 = vpop.eup %37957  ;;  %v19504_v62 = vsub.f32 %v40065_v45, %v19503_v54 }
0x106a   : > { %34579 = vmatmul.mubr.f32.vlgmr.msra.gmra.mrb[40].mxu1 %v16691_v48  ;;  %v18454_v2 = vmul.f32 %v37958_v51, %v39945_v53  ;;  %v18540_v53 = vand.u32 4294901760, %v18539_v9  ;;  %v19428_v48 = vand.u32 4294901760, %v10556_v63 }
0x106b   : > { %34612 = vmatpush3.msra.mxu1 %v17544_v3  ;;  %34613 = vmatprep.mubr.msk.f32.mxu1 %vm38223_vm0, %v38224_v1  ;;  %v17610_v22 = vsub.f32 %v17541_v14, %v17609_v19  ;;  %v19505_v5 = vand.u32 4294901760, %v19504_v62  ;;  %v19525_v14 = vsub.f32 %v40077_v61, %v19524_v10 }
0x106c   : > { %34616 = vmatprep.subr.mxu1 %v38224_v1  ;;  %v18459_v6 = vsel %vm2162_vm3, %v18454_v2, 0  ;;  %v18541_v16 = vsub.f32 %v18539_v9, %v18540_v53  ;;  %v40073_v57 = vpack.c.bf16 %v19431_v49, %v19428_v48  ;;  %v40075_v59 = vsub.f32 %v10556_v63, %v19428_v48 }
0x106d   : > { %v17611_v55 = vand.u32 4294901760, %v17610_v22  ;;  %v18527_v8 = vand.u32 4294901760, %v18459_v6  ;;  %v19526_v43 = vand.u32 4294901760, %v19525_v14  ;;  %v36574_v63 = vpack.c.bf16 %v19510_v56, %v19503_v54 }
0x106e   : > { %v18542_v23 = vand.u32 4294901760, %v18541_v16 }
0x106f   : > { %v17612_v13 = vsub.f32 %v17610_v22, %v17611_v55  ;;  %v18528_v31 = vsub.f32 %v18459_v6, %v18527_v8 }
0x1071   : > { %v17613_v26 = vand.u32 4294901760, %v17612_v13  ;;  %v18529_v27 = vand.u32 4294901760, %v18528_v31 }
0x1073   : > { %34614 = vmatmul.mubr.f32.vlgmr.msra.gmra.mrb[42].mxu1 %v17613_v26  ;;  %v18530_v15 = vsub.f32 %v18528_v31, %v18529_v27 }
0x1074   : > { %34617 = vmatpush3.msra.mxu1 %v17624_v42  ;;  %34618 = vmatprep.mubr.msk.f32.mxu1 %vm38223_vm0, %v38224_v1 }
0x1075   : > { %34621 = vmatprep.subr.mxu1 %v38224_v1  ;;  %v18531_v18 = vand.u32 4294901760, %v18530_v15 }
0x107b   : > { %34619 = vmatmul.mubr.f32.vlgmr.msra.gmra.mrb[42].mxu1 %v17609_v19 }
0x107c   : > { %34622 = vmatpush3.msra.mxu1 %v17621_v11  ;;  %34623 = vmatprep.mubr.msk.f32.mxu1 %vm38223_vm0, %v38224_v1  ;;  %v19512_v11 = vand.u32 4294901760, %v19511_v60 }
0x107d   : > { %34626 = vmatprep.subr.mxu1 %v38224_v1 }
0x1083   : > { %34624 = vmatmul.mubr.f32.vlgmr.msra.gmra.mrb[42].mxu1 %v17610_v22  ;;  %v10547_v22 = vld [vmem:[#allocation7 + $0x20] sm:$0xff] }
0x1084   : > { %34627 = vmatpush3.msra.mxu1 %v17544_v3  ;;  %34628 = vmatprep.mubr.msk.f32.mxu1 %vm38223_vm0, %v38224_v1  ;;  %v18926_v13 = vand.u32 4294901760, %v10547_v22 }
0x1085   : > { %34631 = vmatprep.subr.mxu1 %v38224_v1 }
0x1086   : > { %v40092_v2 = vsub.f32 %v10547_v22, %v18926_v13 }
0x108b   : > { %34629 = vmatmul.mubr.f32.vlgmr.msra.gmra.mrb[42].mxu1 %v17611_v55  ;;  %v10548_v55 = vld [vmem:[#allocation7 + $0x28] sm:$0xff] }
0x108c   : > { %34632 = vmatpush3.msra.mxu1 %v17622_v21  ;;  %34633 = vmatprep.mubr.msk.f32.mxu1 %vm38223_vm0, %v38224_v1  ;;  %v40087_v21 = vpack.c.bf16 %v19512_v11, %v19505_v5  ;;  %v18929_v26 = vand.u32 4294901760, %v10548_v55 }
0x108d   : > { %34636 = vmatprep.subr.mxu1 %v38224_v1 }
0x108e   : > { %v40090_v51 = vpack.c.bf16 %v18929_v26, %v18926_v13  ;;  %v40094_v6 = vsub.f32 %v10548_v55, %v18929_v26 }
0x1090   : > { %36515 = vmatpush3.bf16.msra.mxu0 %v40090_v51 }
0x1091   : > { %36516 = vmatprep.subr.bf16.mxu0 %v38222_v0 }
0x1093   : > { %34634 = vmatmul.mubr.f32.vlgmr.msra.gmra.mrb[42].mxu1 %v17609_v19 }
0x1094   : > { %34637 = vmatpush3.msra.mxu1 %v17544_v3  ;;  %34638 = vmatprep.mubr.msk.f32.mxu1 %vm38223_vm0, %v38224_v1  ;;  %v19517_v3 = vand.u32 4294901760, %v40075_v59 }
0x1095   : > { %34671 = vmatprep.subr.mxu1 %v38224_v1 }
0x1096   : > { %v19518_v12 = vsub.f32 %v40075_v59, %v19517_v3  ;;  %v40128_v47 = vpack.c.bf16 %v19524_v10, %v19517_v3 }
0x1097   : > { %v40030_v41 = vpop.f32.mrb[34].mxu1 }
0x1098   : > { %v34400_v50 = vpop.f32.mrb[35].mxu1  ;;  %v19519_v42 = vand.u32 4294901760, %v19518_v12 }
0x109a   : > { %v36559_v7 = vpack.c.bf16 %v19526_v43, %v19519_v42 }
0x109b   : > { %34639 = vmatmul.mubr.f32.vlgmr.msra.gmra.mrb[42].mxu1 %v17609_v19 }
0x109c   : > { %34672 = vmatpush3.msra.mxu1 %v18462_v4  ;;  %34673 = vmatprep.mubr.msk.f32.mxu1 %vm38223_vm0, %v38224_v1 }
0x109d   : > { %34676 = vmatprep.subr.mxu1 %v38224_v1 }
0x109f   : > { %34674 = vmatmul.mubr.f32.vlgmr.msra.gmra.mrb[44].mxu1 %v18531_v18  ;;  %v36562_v18 = vpack.c.bf16 %v40067_v46, %v40065_v45  ;;  %v36526_v45 = vpack.c.bf16 %v40094_v6, %v40092_v2 }
0x10a0   : > { %34677 = vmatpush3.msra.mxu1 %v18542_v23  ;;  %34678 = vmatprep.mubr.msk.f32.mxu1 %vm38223_vm0, %v38224_v1 }
0x10a1   : > { %34681 = vmatprep.subr.mxu1 %v38224_v1 }
0x10a7   : > { %34679 = vmatmul.mubr.f32.vlgmr.msra.gmra.mrb[44].mxu1 %v18527_v8 }
0x10a8   : > { %34682 = vmatpush3.msra.mxu1 %v18539_v9  ;;  %34683 = vmatprep.mubr.msk.f32.mxu1 %vm38223_vm0, %v38224_v1 }
0x10a9   : > { %34686 = vmatprep.subr.mxu1 %v38224_v1 }
0x10af   : > { %34684 = vmatmul.mubr.f32.vlgmr.msra.gmra.mrb[44].mxu1 %v18528_v31 }
0x10b0   : > { %34687 = vmatpush3.msra.mxu1 %v18462_v4  ;;  %34688 = vmatprep.mubr.msk.f32.mxu1 %vm38223_vm0, %v38224_v1 }
0x10b1   : > { %34691 = vmatprep.subr.mxu1 %v38224_v1 }
0x10b7   : > { %34689 = vmatmul.mubr.f32.vlgmr.msra.gmra.mrb[44].mxu1 %v18529_v27  ;;  %v19007_v27 = vand.u32 4294901760, %v40092_v2 }
0x10b8   : > { %34692 = vmatpush3.msra.mxu1 %v18540_v53  ;;  %34693 = vmatprep.mubr.msk.f32.mxu1 %vm38223_vm0, %v38224_v1  ;;  %v19014_v53 = vand.u32 4294901760, %v40094_v6 }
0x10b9   : > { %34696 = vmatprep.subr.mxu1 %v38224_v1 }
0x10ba   : > { %v19015_v23 = vsub.f32 %v40094_v6, %v19014_v53  ;;  %v40130_v48 = vpack.c.bf16 %v19014_v53, %v19007_v27  ;;  %v19929_v6 = vld [vmem:[#allocation6 + $0x48] sm:$0xff] }
0x10bf   : > { %34694 = vmatmul.mubr.f32.vlgmr.msra.gmra.mrb[44].mxu1 %v18527_v8 }
0x10c0   : > { %34697 = vmatpush3.msra.mxu1 %v18462_v4  ;;  %34698 = vmatprep.mubr.msk.f32.mxu1 %vm38223_vm0, %v38224_v1  ;;  %v10550_v4 = vld [vmem:[#allocation7 + $0x38] sm:$0xff] }
0x10c1   : > { %36549 = vmatprep.subr.bf16.mxu1 %v38222_v0  ;;  %v18935_v9 = vand.u32 4294901760, %v10550_v4 }
0x10c3   : > { %v40050_v24 = vpop.f32.mrb[36].mxu1  ;;  %v40106_v16 = vsub.f32 %v10550_v4, %v18935_v9  ;;  %v20455_v4 = vand.u32 4294901760, %v19929_v6 }
0x10c4   : > { %v34460_v25 = vpop.f32.mrb[37].mxu1 }
0x10c7   : > { %34699 = vmatmul.mubr.f32.vlgmr.msra.gmra.mrb[44].mxu1 %v18527_v8  ;;  %v10549_v8 = vld [vmem:[#allocation7 + $0x30] sm:$0xff] }
0x10c8   : > { %34775 = vmatprep.mubr.msk.f32.mxu1 %vm38223_vm0, %v38224_v1  ;;  %36551 = vmatpush3.bf16.msra.mxu1 %v40063_v44  ;;  %v18932_v31 = vand.u32 4294901760, %v10549_v8 }
0x10c9   : > { %36552 = vmatprep.subr.bf16.mxu1 %v38222_v0 }
0x10ca   : > { %v40102_v50 = vpack.c.bf16 %v18935_v9, %v18932_v31  ;;  %v40104_v15 = vsub.f32 %v10549_v8, %v18932_v31  ;;  %v19930_v31 = vld [vmem:[#allocation6 + $0x50] sm:$0xff]  ;;  %v19931_v9 = vld [vmem:[#allocation6 + $0x58] sm:$0xff] }
0x10cc   : > { %36554 = vmatpush3.bf16.msra.mxu1 %v40073_v57  ;;  %36518 = vmatpush3.bf16.msra.mxu0 %v40102_v50  ;;  %v19021_v25 = vand.u32 4294901760, %v40104_v15  ;;  %v36529_v46 = vpack.c.bf16 %v40106_v16, %v40104_v15 }
0x10cd   : > { %36555 = vmatprep.subr.bf16.mxu1 %v38222_v0  ;;  %36519 = vmatprep.subr.bf16.mxu0 %v38222_v0 }
0x10ef   : > { %v40054_v30 = vpop.f32.mrb[38].mxu1 }
0x10f0   : > { %v34520_v32 = vpop.f32.mrb[39].mxu1 }
0x10f1   : > { %v19028_v32 = vand.u32 4294901760, %v40106_v16 }
0x10f3   : > { %v19029_v36 = vsub.f32 %v40106_v16, %v19028_v32  ;;  %v40132_v49 = vpack.c.bf16 %v19028_v32, %v19021_v25  ;;  %v20458_v16 = vand.u32 4294901760, %v19930_v31 }
0x10f5   : > { %v19030_v38 = vand.u32 4294901760, %v19029_v36 }
0x113d   : > { %v17067_v52 = vpop.f32.mrb[40].mxu1 }
0x113e   : > { %18908 = vrot.lane.b32.xlu0 %v17067_v52, %s41869_s29  ;;  %v34580_v33 = vpop.f32.mrb[41].mxu1 }
0x113f   : > { %v19016_v33 = vand.u32 4294901760, %v19015_v23 }
0x1142   : > { %20447 = vrot.lane.b32.xlu0 %v40058_v34, %s38225_s24 }
0x116e   : > { %v17985_v28 = vpop.f32.mrb[42].mxu1 }
0x116f   : > { %18912 = vrot.lane.b32.xlu1 %v17985_v28, %s41903_s21  ;;  %v34640_v29 = vpop.f32.mrb[43].mxu1  ;;  %v36565_v28 = vpack.c.bf16 %v40077_v61, %v40075_v59 }
0x1170   : > { %v19022_v29 = vsub.f32 %v40104_v15, %v19021_v25  ;;  %v40188_v15 = vsub.f32 %v19929_v6, %v20455_v4  ;;  %v40200_v25 = vsub.f32 %v19930_v31, %v20458_v16 }
0x119a   : > { %v18903_v19 = vpop.f32.mrb[44].mxu1 }
0x119b   : > { %18916 = vrot.lane.b32.xlu1 %v18903_v19, %s41904_s23  ;;  %v34700_v17 = vpop.f32.mrb[45].mxu1 }
0x119f   : > { %15223 = vrot.lane.b32.xlu1 %v39989_v39, %s41869_s29  ;;  %v19008_v39 = vsub.f32 %v40092_v2, %v19007_v27  ;;  %v19928_v2 = vld [vmem:[#allocation6 + $0x40] sm:$0xff] }
0x11a1   : > { %v19009_v52 = vand.u32 4294901760, %v19008_v39 }
0x11a3   : > { %15227 = vrot.lane.b32.xlu1 %v40030_v41, %s41903_s21  ;;  %v36520_v37 = vpack.c.bf16 %v19016_v33, %v19009_v52  ;;  %v19023_v41 = vand.u32 4294901760, %v19022_v29  ;;  %v20540_v52 = vand.u32 4294901760, %v40188_v15  ;;  %v19922_v29 = vld [vmem:[#allocation4 + $0x48] sm:$0xff] }
0x11a5   : > { %v36523_v40 = vpack.c.bf16 %v19030_v38, %v19023_v41 }
0x11a7   : > { %15231 = vrot.lane.b32.xlu1 %v40050_v24, %s41904_s23 }
0x11b0   : > { %v18909_v59 = vpop.permute.xlu0 %18908 }
0x11b1   : > { %v18919_v24 = vsel %vm2162_vm3, %v40054_v30, %v18909_v59  ;;  %v19924_v59 = vld [vmem:[#allocation4 + $0x58] sm:$0xff] }
0x11b4   : > { %v20448_v8 = vpop.permute.xlu0 %20447 }
0x11b5   : > { %v20449_v27 = vsel %vm1175_vm2, %v20448_v8, 0 }
0x11b6   : > { %v40192_v39 = vand.u32 4294901760, %v20449_v27 }
0x11b8   : > { %v40208_v33 = vsub.f32 %v20449_v27, %v40192_v39 }
0x11e1   : > { %v18913_v61 = vpop.permute.xlu1 %18912 }
0x11e2   : > { %v18920_v62 = vsel %vm5845_vm4, %v18919_v24, %v18913_v61 }
0x120d   : > { %v18917_v60 = vpop.permute.xlu1 %18916 }
0x120e   : > { %v18921_v5 = vsel %vm5847_vm5, %v18920_v62, %v18917_v60 }
0x120f   : > { %v19419_v11 = vsel %vm1175_vm2, %v18921_v5, 0 }
0x1210   : > { %v40139_v12 = vand.u32 4294901760, %v19419_v11 }
0x1211   : > { %v15224_v54 = vpop.permute.xlu1 %15223 }
0x1212   : > { %v19491_v56 = vsub.f32 %v19419_v11, %v40139_v12  ;;  %v15234_v19 = vsel %vm2162_vm3, %v39969_v35, %v15224_v54 }
0x1214   : > { %v19492_v3 = vand.u32 4294901760, %v19491_v56 }
0x1215   : > { %v15228_v10 = vpop.permute.xlu1 %15227 }
0x1216   : > { %v19493_v14 = vsub.f32 %v19491_v56, %v19492_v3  ;;  %v15235_v30 = vsel %vm5845_vm4, %v15234_v19, %v15228_v10 }
0x1218   : > { %v19494_v22 = vand.u32 4294901760, %v19493_v14 }
0x1219   : > { %v15232_v55 = vpop.permute.xlu1 %15231 }
0x121a   : > { %v15236_v17 = vsel %vm5847_vm5, %v15235_v30, %v15232_v55  ;;  %34776 = vmatmul.mubr.f32.vlgmr.msra.gmra.mrb[46].mxu1 %v19494_v22 }
0x121b   : > { %v18923_v13 = vsel %vm1175_vm2, %v15236_v17, 0  ;;  %36557 = vmatpush3.bf16.msra.mxu1 %v40087_v21  ;;  %34786 = vmatprep.mubr.msk.f32.mxu1 %vm38223_vm0, %v38224_v1 }
0x121c   : > { %v40150_v26 = vand.u32 4294901760, %v18923_v13  ;;  %36558 = vmatprep.subr.bf16.mxu1 %v38222_v0 }
0x121e   : > { %v40154_v35 = vsub.f32 %v18923_v13, %v40150_v26 }
0x121f   : > { %36560 = vmatpush3.bf16.msra.mxu1 %v36559_v7  ;;  %v20452_v7 = vand.u32 4294901760, %v19928_v2 }
0x1220   : > { %v18996_v42 = vand.u32 4294901760, %v40154_v35  ;;  %36561 = vmatprep.subr.bf16.mxu1 %v38222_v0 }
0x1221   : > { %v40185_v53 = vsub.f32 %v19928_v2, %v20452_v7  ;;  %v40226_v38 = vpack.c.bf16 %v20455_v4, %v20452_v7 }
0x1222   : > { %34787 = vmatmul.mubr.f32.vlgmr.msra.gmra.mrb[46].mxu1 %v40139_v12  ;;  %v18997_v21 = vsub.f32 %v40154_v35, %v18996_v42 }
0x1223   : > { %36563 = vmatpush3.bf16.msra.mxu1 %v36562_v18  ;;  %34797 = vmatprep.mubr.msk.f32.mxu1 %vm38223_vm0, %v38224_v1  ;;  %v20461_v18 = vand.u32 4294901760, %v19931_v9  ;;  %v20533_v23 = vand.u32 4294901760, %v40185_v53  ;;  %v36634_v2 = vpack.c.bf16 %v40188_v15, %v40185_v53 }
0x1224   : > { %36564 = vmatprep.subr.bf16.mxu1 %v38222_v0  ;;  %v18998_v43 = vand.u32 4294901760, %v18997_v21 }
0x1225   : > { %v40202_v32 = vsub.f32 %v19931_v9, %v20461_v18  ;;  %v20534_v36 = vsub.f32 %v40185_v53, %v20533_v23 }
0x1226   : > { %34710 = vmatmul.mubr.f32.vlgmr.msra.gmra.mrb[42].mxu0 %v18998_v43 }
0x1227   : > { %36521 = vmatpush3.bf16.msra.mxu0 %v36520_v37  ;;  %36566 = vmatpush3.bf16.msra.mxu1 %v36565_v28  ;;  %v19921_v28 = vld [vmem:[#allocation4 + $0x40] sm:$0xff]  ;;  %v20547_v37 = vand.u32 4294901760, %v40200_v25  ;;  %v20554_v41 = vand.u32 4294901760, %v40202_v32  ;;  %v36637_v27 = vpack.c.bf16 %v40202_v32, %v40200_v25 }
0x1228   : > { %36522 = vmatprep.subr.bf16.mxu0 %v38222_v0  ;;  %36567 = vmatprep.subr.bf16.mxu1 %v38222_v0 }
0x1229   : > { %34720 = vmatprep.mubr.msk.f32.mxu0 %vm38223_vm0, %v38224_v1  ;;  %v20555_v24 = vsub.f32 %v40202_v32, %v20554_v41  ;;  %v36649_v53 = vpack.c.bf16 %v20554_v41, %v20547_v37  ;;  %v31918_v32 = vld [vmem:[%s41846_s6 + $0x2] ss:$0 sm:$0xff] }
0x122a   : > { %34798 = vmatmul.mubr.f32.vlgmr.msra.gmra.mrb[46].mxu1 %v19491_v56  ;;  %v31917_v41 = vld [vmem:[%s41844_s4 + $0x2] ss:$0 sm:$0xff] }
0x122b   : > { %36524 = vmatpush3.bf16.msra.mxu0 %v36523_v40  ;;  %36569 = vmatpush3.bf16.msra.mxu1 %v40063_v44  ;;  %v19957_v40 = vand.u32 4294901760, %v19921_v28 }
0x122c   : > { %36525 = vmatprep.subr.bf16.mxu0 %v38222_v0  ;;  %36570 = vmatprep.subr.bf16.mxu1 %v38222_v0 }
0x122d   : > { %34808 = vmatprep.mubr.msk.f32.mxu1 %vm38223_vm0, %v38224_v1  ;;  %v40248_v60 = vsub.f32 %v19921_v28, %v19957_v40 }
0x122e   : > { %34721 = vmatmul.mubr.f32.vlgmr.msra.gmra.mrb[42].mxu0 %v40150_v26 }
0x122f   : > { %36527 = vmatpush3.bf16.msra.mxu0 %v36526_v45  ;;  %36572 = vmatpush3.bf16.msra.mxu1 %v40073_v57  ;;  %v19960_v45 = vand.u32 4294901760, %v19922_v29  ;;  %v20038_v22 = vand.u32 4294901760, %v40248_v60 }
0x1230   : > { %36528 = vmatprep.subr.bf16.mxu0 %v38222_v0  ;;  %36573 = vmatprep.subr.bf16.mxu1 %v38222_v0 }
0x1231   : > { %34731 = vmatprep.mubr.msk.f32.mxu0 %vm38223_vm0, %v38224_v1  ;;  %v40250_v5 = vsub.f32 %v19922_v29, %v19960_v45 }
0x1232   : > { %34809 = vmatmul.mubr.f32.vlgmr.msra.gmra.mrb[46].mxu1 %v19492_v3  ;;  %v20556_v3 = vand.u32 4294901760, %v20555_v24 }
0x1233   : > { %36530 = vmatpush3.bf16.msra.mxu0 %v36529_v46  ;;  %36575 = vmatpush3.bf16.msra.mxu1 %v36574_v63  ;;  %v19954_v46 = vsel %vm1175_vm2, %v40058_v34, 0  ;;  %v20522_v63 = vand.u32 4294901760, %v40208_v33  ;;  %v20548_v34 = vsub.f32 %v40200_v25, %v20547_v37  ;;  %v20045_v30 = vand.u32 4294901760, %v40250_v5 }
0x1234   : > { %36531 = vmatprep.subr.bf16.mxu0 %v38222_v0  ;;  %36576 = vmatprep.subr.bf16.mxu1 %v38222_v0  ;;  %v40244_v62 = vand.u32 4294901760, %v19954_v46  ;;  %v36598_v29 = vpack.c.bf16 %v40250_v5, %v40248_v60 }
0x1235   : > { %34819 = vmatprep.mubr.msk.f32.mxu1 %vm38223_vm0, %v38224_v1  ;;  %v20523_v54 = vsub.f32 %v40208_v33, %v20522_v63  ;;  %v20549_v56 = vand.u32 4294901760, %v20548_v34 }
0x1236   : > { %34732 = vmatmul.mubr.f32.vlgmr.msra.gmra.mrb[42].mxu0 %v40154_v35  ;;  %v40261_v10 = vsub.f32 %v19954_v46, %v40244_v62  ;;  %v20039_v35 = vsub.f32 %v40248_v60, %v20038_v22 }
0x1237   : > { %36533 = vmatpush3.bf16.msra.mxu0 %v40090_v51  ;;  %36578 = vmatpush3.bf16.msra.mxu1 %v40128_v47  ;;  %v19923_v47 = vld [vmem:[#allocation4 + $0x50] sm:$0xff]  ;;  %v20524_v55 = vand.u32 4294901760, %v20523_v54  ;;  %v36631_v17 = vpack.c.bf16 %v20556_v3, %v20549_v56 }
0x1238   : > { %36534 = vmatprep.subr.bf16.mxu0 %v38222_v0  ;;  %36579 = vmatprep.subr.bf16.mxu1 %v38222_v0  ;;  %v19963_v11 = vand.u32 4294901760, %v19923_v47  ;;  %v20027_v13 = vand.u32 4294901760, %v40261_v10  ;;  %v20040_v7 = vand.u32 4294901760, %v20039_v35 }
0x1239   : > { %34742 = vmatprep.mubr.msk.f32.mxu0 %vm38223_vm0, %v38224_v1 }
0x123a   : > { %34820 = vmatmul.mubr.f32.vlgmr.msra.gmra.mrb[46].mxu1 %v40139_v12  ;;  %v40265_v14 = vsub.f32 %v19923_v47, %v19963_v11  ;;  %v20028_v6 = vsub.f32 %v40261_v10, %v20027_v13 }
0x123b   : > { %36536 = vmatpush3.bf16.msra.mxu0 %v40102_v50  ;;  %36581 = vmatpush3.bf16.msra.mxu1 %v40063_v44  ;;  %v20541_v44 = vsub.f32 %v40188_v15, %v20540_v52  ;;  %v36610_v15 = vpack.c.bf16 %v20045_v30, %v20038_v22 }
0x123c   : > { %36537 = vmatprep.subr.bf16.mxu0 %v38222_v0  ;;  %36582 = vmatprep.subr.bf16.mxu1 %v38222_v0  ;;  %v20052_v21 = vand.u32 4294901760, %v40265_v14  ;;  %v20029_v31 = vand.u32 4294901760, %v20028_v6 }
0x123d   : > { %34830 = vmatprep.mubr.msk.f32.mxu1 %vm38223_vm0, %v38224_v1  ;;  %v20542_v61 = vand.u32 4294901760, %v20541_v44  ;;  %v36646_v44 = vpack.c.bf16 %v20540_v52, %v20533_v23 }
0x123e   : > { %34743 = vmatmul.mubr.f32.vlgmr.msra.gmra.mrb[42].mxu0 %v18996_v42  ;;  %v20046_v42 = vsub.f32 %v40250_v5, %v20045_v30  ;;  %v20053_v4 = vsub.f32 %v40265_v14, %v20052_v21 }
0x123f   : > { %36539 = vmatpush3.bf16.msra.mxu0 %v40130_v48  ;;  %36584 = vmatpush3.bf16.msra.mxu1 %v40073_v57  ;;  %v40235_v48 = vpack.c.bf16 %v20461_v18, %v20458_v16  ;;  %v20535_v57 = vand.u32 4294901760, %v20534_v36 }
0x1240   : > { %36540 = vmatprep.subr.bf16.mxu0 %v38222_v0  ;;  %36621 = vmatprep.subr.bf16.mxu1 %v38222_v0  ;;  %v20047_v8 = vand.u32 4294901760, %v20046_v42  ;;  %v20054_v16 = vand.u32 4294901760, %v20053_v4 }
0x1241   : > { %34753 = vmatprep.mubr.msk.f32.mxu0 %vm38223_vm0, %v38224_v1 }
0x1242   : > { %34831 = vmatmul.mubr.f32.vlgmr.msra.gmra.mrb[46].mxu1 %v40139_v12  ;;  %v19966_v12 = vand.u32 4294901760, %v19924_v59  ;;  %v36592_v9 = vpack.c.bf16 %v20047_v8, %v20040_v7 }
0x1243   : > { %36542 = vmatpush3.bf16.msra.mxu0 %v40132_v49  ;;  %36623 = vmatpush3.bf16.msra.mxu1 %v40226_v38  ;;  %v36628_v49 = vpack.c.bf16 %v20542_v61, %v20535_v57 }
0x1244   : > { %36543 = vmatprep.subr.bf16.mxu0 %v38222_v0  ;;  %36624 = vmatprep.subr.bf16.mxu1 %v38222_v0  ;;  %v40267_v19 = vsub.f32 %v19924_v59, %v19966_v12 }
0x1245   : > { %34907 = vmatprep.mubr.msk.f32.mxu1 %vm38223_vm0, %v38224_v1 }
0x1246   : > { %34754 = vmatmul.mubr.f32.vlgmr.msra.gmra.mrb[42].mxu0 %v40150_v26  ;;  %v20059_v43 = vand.u32 4294901760, %v40267_v19  ;;  %v36601_v36 = vpack.c.bf16 %v40267_v19, %v40265_v14 }
0x1247   : > { %36545 = vmatpush3.bf16.msra.mxu0 %v40090_v51  ;;  %36626 = vmatpush3.bf16.msra.mxu1 %v40235_v48  ;;  %v40275_v51 = vpack.c.bf16 %v19960_v45, %v19957_v40 }
0x1248   : > { %36546 = vmatprep.subr.bf16.mxu0 %v38222_v0  ;;  %36627 = vmatprep.subr.bf16.mxu1 %v38222_v0  ;;  %v36613_v23 = vpack.c.bf16 %v20059_v43, %v20052_v21 }
0x1249   : > { %34764 = vmatprep.mubr.msk.f32.mxu0 %vm38223_vm0, %v38224_v1 }
0x124a   : > { %34908 = vmatmul.mubr.f32.vlgmr.msra.gmra.mrb[48].mxu1 %v20524_v55 }
0x124b   : > { %36548 = vmatpush3.bf16.msra.mxu0 %v40102_v50  ;;  %36629 = vmatpush3.bf16.msra.mxu1 %v36628_v49  ;;  %v40292_v50 = vpack.c.bf16 %v19966_v12, %v19963_v11 }
0x124c   : > { %36585 = vmatprep.subr.bf16.mxu0 %v38222_v0  ;;  %36630 = vmatprep.subr.bf16.mxu1 %v38222_v0 }
0x124d   : > { %34918 = vmatprep.mubr.msk.f32.mxu1 %vm38223_vm0, %v38224_v1 }
0x124e   : > { %34765 = vmatmul.mubr.f32.vlgmr.msra.gmra.mrb[42].mxu0 %v40150_v26  ;;  %v20060_v26 = vsub.f32 %v40267_v19, %v20059_v43 }
0x124f   : > { %36587 = vmatpush3.bf16.msra.mxu0 %v40275_v51  ;;  %36632 = vmatpush3.bf16.msra.mxu1 %v36631_v17 }
0x1250   : > { %36588 = vmatprep.subr.bf16.mxu0 %v38222_v0  ;;  %36633 = vmatprep.subr.bf16.mxu1 %v38222_v0  ;;  %v20061_v18 = vand.u32 4294901760, %v20060_v26 }
0x1251   : > { %34841 = vmatprep.mubr.msk.f32.mxu0 %vm38223_vm0, %v38224_v1 }
0x1252   : > { %34919 = vmatmul.mubr.f32.vlgmr.msra.gmra.mrb[48].mxu1 %v40192_v39  ;;  %v36595_v28 = vpack.c.bf16 %v20061_v18, %v20054_v16 }
0x1253   : > { %36590 = vmatpush3.bf16.msra.mxu0 %v40292_v50  ;;  %36635 = vmatpush3.bf16.msra.mxu1 %v36634_v2 }
0x1254   : > { %36591 = vmatprep.subr.bf16.mxu0 %v38222_v0  ;;  %36636 = vmatprep.subr.bf16.mxu1 %v38222_v0 }
0x1255   : > { %34929 = vmatprep.mubr.msk.f32.mxu1 %vm38223_vm0, %v38224_v1 }
0x1256   : > { %34842 = vmatmul.mubr.f32.vlgmr.msra.gmra.mrb[44].mxu0 %v20029_v31 }
0x1257   : > { %36593 = vmatpush3.bf16.msra.mxu0 %v36592_v9  ;;  %36638 = vmatpush3.bf16.msra.mxu1 %v36637_v27 }
0x1258   : > { %36594 = vmatprep.subr.bf16.mxu0 %v38222_v0  ;;  %36639 = vmatprep.subr.bf16.mxu1 %v38222_v0 }
0x1259   : > { %34852 = vmatprep.mubr.msk.f32.mxu0 %vm38223_vm0, %v38224_v1 }
0x125a   : > { %34930 = vmatmul.mubr.f32.vlgmr.msra.gmra.mrb[48].mxu1 %v40208_v33 }
0x125b   : > { %36596 = vmatpush3.bf16.msra.mxu0 %v36595_v28  ;;  %36641 = vmatpush3.bf16.msra.mxu1 %v40226_v38 }
0x125c   : > { %36597 = vmatprep.subr.bf16.mxu0 %v38222_v0  ;;  %36642 = vmatprep.subr.bf16.mxu1 %v38222_v0 }
0x125d   : > { %34940 = vmatprep.mubr.msk.f32.mxu1 %vm38223_vm0, %v38224_v1 }
0x125e   : > { %34853 = vmatmul.mubr.f32.vlgmr.msra.gmra.mrb[44].mxu0 %v40244_v62 }
0x125f   : > { %36599 = vmatpush3.bf16.msra.mxu0 %v36598_v29  ;;  %36644 = vmatpush3.bf16.msra.mxu1 %v40235_v48 }
0x1260   : > { %36600 = vmatprep.subr.bf16.mxu0 %v38222_v0  ;;  %36645 = vmatprep.subr.bf16.mxu1 %v38222_v0 }
0x1261   : > { %34863 = vmatprep.mubr.msk.f32.mxu0 %vm38223_vm0, %v38224_v1 }
0x1262   : > { %34941 = vmatmul.mubr.f32.vlgmr.msra.gmra.mrb[48].mxu1 %v20522_v63 }
0x1263   : > { %36602 = vmatpush3.bf16.msra.mxu0 %v36601_v36  ;;  %36647 = vmatpush3.bf16.msra.mxu1 %v36646_v44 }
0x1264   : > { %36603 = vmatprep.subr.bf16.mxu0 %v38222_v0  ;;  %36648 = vmatprep.subr.bf16.mxu1 %v38222_v0 }
0x1265   : > { %34951 = vmatprep.mubr.msk.f32.mxu1 %vm38223_vm0, %v38224_v1 }
0x1266   : > { %34864 = vmatmul.mubr.f32.vlgmr.msra.gmra.mrb[44].mxu0 %v40261_v10 }
0x1267   : > { %36605 = vmatpush3.bf16.msra.mxu0 %v40275_v51  ;;  %36650 = vmatpush3.bf16.msra.mxu1 %v36649_v53 }
0x1268   : > { %36606 = vmatprep.subr.bf16.mxu0 %v38222_v0  ;;  %36651 = vmatprep.subr.bf16.mxu1 %v38222_v0 }
0x1269   : > { %34874 = vmatprep.mubr.msk.f32.mxu0 %vm38223_vm0, %v38224_v1 }
0x126a   : > { %34952 = vmatmul.mubr.f32.vlgmr.msra.gmra.mrb[48].mxu1 %v40192_v39 }
0x126b   : > { %36608 = vmatpush3.bf16.msra.mxu0 %v40292_v50  ;;  %36653 = vmatpush3.bf16.msra.mxu1 %v40226_v38 }
0x126c   : > { %36609 = vmatprep.subr.bf16.mxu0 %v38222_v0  ;;  %36654 = vmatprep.subr.bf16.mxu1 %v38222_v0 }
0x126d   : > { %34962 = vmatprep.mubr.msk.f32.mxu1 %vm38223_vm0, %v38224_v1 }
0x126e   : > { %34875 = vmatmul.mubr.f32.vlgmr.msra.gmra.mrb[44].mxu0 %v20027_v13 }
0x126f   : > { %36611 = vmatpush3.bf16.msra.mxu0 %v36610_v15  ;;  %36656 = vmatpush3.bf16.msra.mxu1 %v40235_v48 }
0x1270   : > { %36612 = vmatprep.subr.bf16.mxu0 %v38222_v0  ;;  %34885 = vmatprep.mubr.msk.f32.mxu0 %vm38223_vm0, %v38224_v1 }
0x1271   : > { %34995 = vmatprep.subr.mxu1 %v38224_v1 }
0x1272   : > { %34963 = vmatmul.mubr.f32.vlgmr.msra.gmra.mrb[48].mxu1 %v40192_v39 }
0x1273   : > { %36614 = vmatpush3.bf16.msra.mxu0 %v36613_v23  ;;  %34997 = vmatprep.mubr.msk.f32.mxu1 %vm38223_vm0, %v38224_v1 }
0x1274   : > { %36615 = vmatprep.subr.bf16.mxu0 %v38222_v0 }
0x1276   : > { %34886 = vmatmul.mubr.f32.vlgmr.msra.gmra.mrb[44].mxu0 %v40244_v62 }
0x1277   : > { %36617 = vmatpush3.bf16.msra.mxu0 %v40275_v51  ;;  %34896 = vmatprep.mubr.msk.f32.mxu0 %vm38223_vm0, %v38224_v1 }
0x1278   : > { %36618 = vmatprep.subr.bf16.mxu0 %v38222_v0 }
0x127b   : > { %36620 = vmatpush3.bf16.msra.mxu0 %v40292_v50 }
0x127c   : > { %34965 = vmatprep.subr.mxu0 %v38224_v1 }
0x127e   : > { %34897 = vmatmul.mubr.f32.vlgmr.msra.gmra.mrb[44].mxu0 %v40244_v62 }
0x127f   : > { %34967 = vmatprep.mubr.msk.f32.mxu0 %vm38223_vm0, %v38224_v1 }
0x1315   : > { %v40394_v39 = vpop.f32.mrb[46].mxu1 }
0x1316   : > { %v34832_v25 = vpop.f32.mrb[47].mxu1 }
0x1345   : > { %v20932_v52 = vpop.f32.mrb[48].mxu1 }
0x1346   : > { %v40399_v33 = vadd.f32 %v31918_v32, %v20932_v52  ;;  %v34964_v37 = vpop.f32.mrb[49].mxu1 }
0x1348   : > { %20937 = vrot.lane.b32.xlu1 %v40399_v33, %s38225_s24 }
0x134c   : > { %21856 = vrot.lane.b32.xlu1 %v40399_v33, %s38227_s26 }
0x1350   : > { %22774 = vrot.lane.b32.xlu1 %v40399_v33, %s38228_s28 }
0x1351   : > { %v20437_v38 = vpop.f32.mrb[44].mxu0 }
0x1352   : > { %v40410_v40 = vadd.f32 %v31917_v41, %v20437_v38  ;;  %v34898_v45 = vpop.f32.mrb[45].mxu0 }
0x1353   : > { %v24625_v45 = vsel %vm2162_vm3, %v40399_v33, 0 }
0x1354   : > { %23692 = vrot.lane.b32.xlu1 %v40399_v33, %s38230_s14  ;;  %21854 = vrot.lane.b32.xlu0 %v40410_v40, %s38226_s15  ;;  %v20940_v46 = vsel %vm2162_vm3, %v40410_v40, 0 }
0x1355   : > { %v21010_v63 = vand.u32 4294901760, %v20940_v46 }
0x1357   : > { %v21011_v47 = vsub.f32 %v20940_v46, %v21010_v63 }
0x1358   : > { %25539 = vrot.lane.b32.xlu1 %v40399_v33, %s38226_s15  ;;  %22772 = vrot.lane.b32.xlu0 %v40410_v40, %s38229_s30  ;;  %s41906_s15 = smov 8  }
0x1359   : > { %v21012_v59 = vand.u32 4294901760, %v21011_v47 }
0x135b   : > { %v21013_v61 = vsub.f32 %v21011_v47, %v21012_v59 }
0x135c   : > { %26457 = vrot.lane.b32.xlu1 %v40399_v33, %s38229_s30  ;;  %23690 = vrot.lane.b32.xlu0 %v40410_v40, %s38231_s27 }
0x135d   : > { %v21014_v62 = vand.u32 4294901760, %v21013_v61 }
0x1360   : > { %27375 = vrot.lane.b32.xlu1 %v40399_v33, %s38231_s27  ;;  %24623 = vrot.lane.b32.xlu0 %v40410_v40, %s38225_s24  ;;  %s41905_s24 = smov 40  }
0x1364   : > { %25541 = vrot.lane.b32.xlu0 %v40410_v40, %s38227_s26  ;;  %s41907_s26 = smov 32  }
0x1368   : > { %26459 = vrot.lane.b32.xlu0 %v40410_v40, %s38228_s28 }
0x136c   : > { %27377 = vrot.lane.b32.xlu0 %v40410_v40, %s38230_s14  ;;  %s41922_s14 = sshll.u32 %s41926_s19, 3 }
0x13ba   : > { %v20938_v48 = vpop.permute.xlu1 %20937 }
0x13bb   : > { %v20942_v57 = vsel %vm2162_vm3, %v20938_v48, 0 }
0x13bc   : > { %v20945_v34 = vand.u32 4294901760, %v20942_v57 }
0x13be   : > { %v21022_v24 = vsub.f32 %v20942_v57, %v20945_v34  ;;  %34966 = vmatpush3.xpose.msra.mxu0 %v20945_v34  ;;  %v21857_v54 = vpop.permute.xlu1 %21856 }
0x13bf   : > { %34970 = vmatprep.subr.mxu0 %v38224_v1  ;;  %v21860_v56 = vsel %vm2162_vm3, %v21857_v54, 0 }
0x13c0   : > { %v21023_v60 = vand.u32 4294901760, %v21022_v24  ;;  %v21863_v10 = vand.u32 4294901760, %v21860_v56 }
0x13c1   : > { %34968 = vmatmul.mubr.f32.vlgmr.msra.gmra.mrb[46].mxu0 %v21014_v62 }
0x13c2   : > { %v21024_v5 = vsub.f32 %v21022_v24, %v21023_v60  ;;  %34972 = vmatprep.mubr.msk.f32.mxu0 %vm38223_vm0, %v38224_v1  ;;  %v21940_v19 = vsub.f32 %v21860_v56, %v21863_v10  ;;  %v22775_v42 = vpop.permute.xlu1 %22774 }
0x13c3   : > { %v22778_v43 = vsel %vm2162_vm3, %v22775_v42, 0 }
0x13c4   : > { %v21025_v11 = vand.u32 4294901760, %v21024_v5  ;;  %v21941_v30 = vand.u32 4294901760, %v21940_v19  ;;  %v22781_v2 = vand.u32 4294901760, %v22778_v43 }
0x13c6   : > { %34971 = vmatpush3.xpose.msra.mxu0 %v21025_v11  ;;  %v21855_v12 = vpop.permute.xlu0 %21854  ;;  %v21942_v51 = vsub.f32 %v21940_v19, %v21941_v30  ;;  %v22858_v7 = vsub.f32 %v22778_v43, %v22781_v2  ;;  %v23693_v18 = vpop.permute.xlu1 %23692 }
0x13c7   : > { %34975 = vmatprep.subr.mxu0 %v38224_v1  ;;  %v21858_v49 = vsel %vm2162_vm3, %v21855_v12, 0  ;;  %v23696_v29 = vsel %vm2162_vm3, %v23693_v18, 0 }
0x13c8   : > { %v21928_v3 = vand.u32 4294901760, %v21858_v49  ;;  %v21943_v13 = vand.u32 4294901760, %v21942_v51  ;;  %v22859_v4 = vand.u32 4294901760, %v22858_v7  ;;  %v23699_v44 = vand.u32 4294901760, %v23696_v29 }
0x13c9   : > { %34973 = vmatmul.mubr.f32.vlgmr.msra.gmra.mrb[46].mxu0 %v21010_v63 }
0x13ca   : > { %34976 = vmatpush3.xpose.msra.mxu0 %v21022_v24  ;;  %34977 = vmatprep.mubr.msk.f32.mxu0 %vm38223_vm0, %v38224_v1  ;;  %v21929_v14 = vsub.f32 %v21858_v49, %v21928_v3  ;;  %v22773_v35 = vpop.permute.xlu0 %22772  ;;  %v22860_v31 = vsub.f32 %v22858_v7, %v22859_v4  ;;  %v23776_v15 = vsub.f32 %v23696_v29, %v23699_v44  ;;  %v25540_v5 = vpop.permute.xlu1 %25539 }
0x13cb   : > { %34980 = vmatprep.subr.mxu0 %v38224_v1  ;;  %v22776_v21 = vsel %vm2162_vm3, %v22773_v35, 0  ;;  %v25543_v12 = vsel %vm2162_vm3, %v25540_v5, 0 }
0x13cc   : > { %v21930_v22 = vand.u32 4294901760, %v21929_v14  ;;  %v22846_v50 = vand.u32 4294901760, %v22776_v21  ;;  %v22861_v27 = vand.u32 4294901760, %v22860_v31  ;;  %v23777_v25 = vand.u32 4294901760, %v23776_v15 }
0x13cd   : > { %v25613_v49 = vand.u32 4294901760, %v25543_v12 }
0x13ce   : > { %v21931_v55 = vsub.f32 %v21929_v14, %v21930_v22  ;;  %v22847_v6 = vsub.f32 %v22776_v21, %v22846_v50  ;;  %v23691_v16 = vpop.permute.xlu0 %23690  ;;  %v23778_v52 = vsub.f32 %v23776_v15, %v23777_v25 }
0x13cf   : > { %v23694_v28 = vsel %vm2162_vm3, %v23691_v16, 0 }
0x13d0   : > { %v21932_v17 = vand.u32 4294901760, %v21931_v55  ;;  %v22848_v8 = vand.u32 4294901760, %v22847_v6  ;;  %v23764_v36 = vand.u32 4294901760, %v23694_v28  ;;  %v23779_v41 = vand.u32 4294901760, %v23778_v52 }
0x13d1   : > { %34978 = vmatmul.mubr.f32.vlgmr.msra.gmra.mrb[46].mxu0 %v21011_v47 }
0x13d2   : > { %34981 = vmatpush3.xpose.msra.mxu0 %v20945_v34  ;;  %34982 = vmatprep.mubr.msk.f32.mxu0 %vm38223_vm0, %v38224_v1  ;;  %v22849_v26 = vsub.f32 %v22847_v6, %v22848_v8  ;;  %v23765_v53 = vsub.f32 %v23694_v28, %v23764_v36  ;;  %v24624_v38 = vpop.permute.xlu0 %24623 }
0x13d3   : > { %34985 = vmatprep.subr.mxu0 %v38224_v1  ;;  %v24627_v46 = vsel %vm2162_vm3, %v24624_v38, 0 }
0x13d4   : > { %v22850_v9 = vand.u32 4294901760, %v22849_v26  ;;  %v23766_v23 = vand.u32 4294901760, %v23765_v53  ;;  %v24630_v47 = vand.u32 4294901760, %v24627_v46 }
0x13d6   : > { %v23767_v32 = vsub.f32 %v23765_v53, %v23766_v23  ;;  %v24707_v48 = vsub.f32 %v24627_v46, %v24630_v47  ;;  %v25542_v11 = vpop.permute.xlu0 %25541 }
0x13d7   : > { %v25545_v54 = vsel %vm2162_vm3, %v25542_v11, 0 }
0x13d8   : > { %v23768_v37 = vand.u32 4294901760, %v23767_v32  ;;  %v24708_v61 = vand.u32 4294901760, %v24707_v48  ;;  %v25548_v56 = vand.u32 4294901760, %v25545_v54 }
0x13d9   : > { %34983 = vmatmul.mubr.f32.vlgmr.msra.gmra.mrb[46].mxu0 %v21012_v59 }
0x13da   : > { %34986 = vmatpush3.xpose.msra.mxu0 %v21023_v60  ;;  %34987 = vmatprep.mubr.msk.f32.mxu0 %vm38223_vm0, %v38224_v1  ;;  %v24709_v24 = vsub.f32 %v24707_v48, %v24708_v61 }
0x13db   : > { %34990 = vmatprep.subr.mxu0 %v38224_v1 }
0x13dc   : > { %v24710_v60 = vand.u32 4294901760, %v24709_v24 }
0x13e1   : > { %34988 = vmatmul.mubr.f32.vlgmr.msra.gmra.mrb[46].mxu0 %v21010_v63 }
0x13e2   : > { %34991 = vmatpush3.xpose.msra.mxu0 %v20945_v34  ;;  %34992 = vmatprep.mubr.msk.f32.mxu0 %vm38223_vm0, %v38224_v1 }
0x13e3   : > { %35025 = vmatprep.subr.mxu0 %v38224_v1 }
0x13e9   : > { %34993 = vmatmul.mubr.f32.vlgmr.msra.gmra.mrb[46].mxu0 %v21010_v63  ;;  %v24695_v63 = vand.u32 4294901760, %v24625_v45 }
0x13ea   : > { %35026 = vmatpush3.xpose.msra.mxu0 %v21863_v10  ;;  %35027 = vmatprep.mubr.msk.f32.mxu0 %vm38223_vm0, %v38224_v1 }
0x13eb   : > { %35030 = vmatprep.subr.mxu0 %v38224_v1  ;;  %v24696_v59 = vsub.f32 %v24625_v45, %v24695_v63 }
0x13ed   : > { %35028 = vmatmul.mubr.f32.vlgmr.msra.gmra.mrb[48].mxu0 %v21932_v17  ;;  %v24697_v57 = vand.u32 4294901760, %v24696_v59  ;;  %v26458_v17 = vpop.permute.xlu1 %26457 }
0x13ee   : > { %35031 = vmatpush3.xpose.msra.mxu0 %v21943_v13  ;;  %35032 = vmatprep.mubr.msk.f32.mxu0 %vm38223_vm0, %v38224_v1  ;;  %v26460_v13 = vpop.permute.xlu0 %26459  ;;  %v26461_v35 = vsel %vm2162_vm3, %v26458_v17, 0 }
0x13ef   : > { %35035 = vmatprep.subr.mxu0 %v38224_v1  ;;  %v24698_v34 = vsub.f32 %v24696_v59, %v24697_v57  ;;  %v26463_v42 = vsel %vm2162_vm3, %v26460_v13, 0  ;;  %v26531_v21 = vand.u32 4294901760, %v26461_v35 }
0x13f0   : > { %v26466_v43 = vand.u32 4294901760, %v26463_v42 }
0x13f1   : > { %v24699_v62 = vand.u32 4294901760, %v24698_v34  ;;  %v27376_v28 = vpop.permute.xlu1 %27375 }
0x13f2   : > { %v27378_v29 = vpop.permute.xlu0 %27377 }
0x13f5   : > { %35033 = vmatmul.mubr.f32.vlgmr.msra.gmra.mrb[48].mxu0 %v21928_v3 }
0x13f6   : > { %35036 = vmatpush3.xpose.msra.mxu0 %v21940_v19  ;;  %35037 = vmatprep.mubr.msk.f32.mxu0 %vm38223_vm0, %v38224_v1 }
0x13f7   : > { %35040 = vmatprep.subr.mxu0 %v38224_v1 }
0x13fd   : > { %35038 = vmatmul.mubr.f32.vlgmr.msra.gmra.mrb[48].mxu0 %v21929_v14 }
0x13fe   : > { %35041 = vmatpush3.xpose.msra.mxu0 %v21863_v10  ;;  %35042 = vmatprep.mubr.msk.f32.mxu0 %vm38223_vm0, %v38224_v1 }
0x13ff   : > { %35045 = vmatprep.subr.mxu0 %v38224_v1 }
0x1405   : > { %35043 = vmatmul.mubr.f32.vlgmr.msra.gmra.mrb[48].mxu0 %v21930_v22 }
0x1406   : > { %35046 = vmatpush3.xpose.msra.mxu0 %v21941_v30  ;;  %35047 = vmatprep.mubr.msk.f32.mxu0 %vm38223_vm0, %v38224_v1 }
0x1407   : > { %35050 = vmatprep.subr.mxu0 %v38224_v1 }
0x140d   : > { %35048 = vmatmul.mubr.f32.vlgmr.msra.gmra.mrb[48].mxu0 %v21928_v3 }
0x140e   : > { %35051 = vmatpush3.xpose.msra.mxu0 %v21863_v10  ;;  %35052 = vmatprep.mubr.msk.f32.mxu0 %vm38223_vm0, %v38224_v1  ;;  %v25625_v10 = vsub.f32 %v25545_v54, %v25548_v56 }
0x140f   : > { %35085 = vmatprep.subr.mxu0 %v38224_v1 }
0x1410   : > { %v25626_v19 = vand.u32 4294901760, %v25625_v10 }
0x1412   : > { %v25627_v30 = vsub.f32 %v25625_v10, %v25626_v19 }
0x1414   : > { %v25628_v51 = vand.u32 4294901760, %v25627_v30 }
0x1415   : > { %35053 = vmatmul.mubr.f32.vlgmr.msra.gmra.mrb[48].mxu0 %v21928_v3  ;;  %v25614_v3 = vsub.f32 %v25543_v12, %v25613_v49 }
0x1416   : > { %35086 = vmatpush3.xpose.msra.mxu0 %v22781_v2  ;;  %35087 = vmatprep.mubr.msk.f32.mxu0 %vm38223_vm0, %v38224_v1 }
0x1417   : > { %35090 = vmatprep.subr.mxu0 %v38224_v1  ;;  %v25615_v14 = vand.u32 4294901760, %v25614_v3 }
0x1419   : > { %35088 = vmatmul.mubr.f32.vlgmr.msra.gmra.mrb[50].mxu0 %v22850_v9  ;;  %v25616_v22 = vsub.f32 %v25614_v3, %v25615_v14 }
0x141a   : > { %35091 = vmatpush3.xpose.msra.mxu0 %v22861_v27  ;;  %35092 = vmatprep.mubr.msk.f32.mxu0 %vm38223_vm0, %v38224_v1 }
0x141b   : > { %35095 = vmatprep.subr.mxu0 %v38224_v1  ;;  %v25617_v55 = vand.u32 4294901760, %v25616_v22 }
0x1421   : > { %35093 = vmatmul.mubr.f32.vlgmr.msra.gmra.mrb[50].mxu0 %v22846_v50 }
0x1422   : > { %35096 = vmatpush3.xpose.msra.mxu0 %v22858_v7  ;;  %35097 = vmatprep.mubr.msk.f32.mxu0 %vm38223_vm0, %v38224_v1 }
0x1423   : > { %35100 = vmatprep.subr.mxu0 %v38224_v1 }
0x1429   : > { %35098 = vmatmul.mubr.f32.vlgmr.msra.gmra.mrb[50].mxu0 %v22847_v6 }
0x142a   : > { %35101 = vmatpush3.xpose.msra.mxu0 %v22781_v2  ;;  %35102 = vmatprep.mubr.msk.f32.mxu0 %vm38223_vm0, %v38224_v1 }
0x142b   : > { %35105 = vmatprep.subr.mxu0 %v38224_v1 }
0x1431   : > { %35103 = vmatmul.mubr.f32.vlgmr.msra.gmra.mrb[50].mxu0 %v22848_v8 }
0x1432   : > { %35106 = vmatpush3.xpose.msra.mxu0 %v22859_v4  ;;  %35107 = vmatprep.mubr.msk.f32.mxu0 %vm38223_vm0, %v38224_v1 }
0x1433   : > { %35110 = vmatprep.subr.mxu0 %v38224_v1 }
0x1439   : > { %35108 = vmatmul.mubr.f32.vlgmr.msra.gmra.mrb[50].mxu0 %v22846_v50 }
0x143a   : > { %35111 = vmatpush3.xpose.msra.mxu0 %v22781_v2  ;;  %35112 = vmatprep.mubr.msk.f32.mxu0 %vm38223_vm0, %v38224_v1  ;;  %v26543_v2 = vsub.f32 %v26463_v42, %v26466_v43 }
0x143b   : > { %35145 = vmatprep.subr.mxu0 %v38224_v1 }
0x143c   : > { %v26544_v31 = vand.u32 4294901760, %v26543_v2 }
0x143e   : > { %v26545_v27 = vsub.f32 %v26543_v2, %v26544_v31 }
0x1440   : > { %v26546_v18 = vand.u32 4294901760, %v26545_v27 }
0x1441   : > { %35113 = vmatmul.mubr.f32.vlgmr.msra.gmra.mrb[50].mxu0 %v22846_v50  ;;  %v26532_v50 = vsub.f32 %v26461_v35, %v26531_v21 }
0x1442   : > { %35146 = vmatpush3.xpose.msra.mxu0 %v23699_v44  ;;  %35147 = vmatprep.mubr.msk.f32.mxu0 %vm38223_vm0, %v38224_v1 }
0x1443   : > { %35150 = vmatprep.subr.mxu0 %v38224_v1  ;;  %v26533_v4 = vand.u32 4294901760, %v26532_v50 }
0x1445   : > { %35148 = vmatmul.mubr.f32.vlgmr.msra.gmra.mrb[52].mxu0 %v23768_v37  ;;  %v26534_v9 = vsub.f32 %v26532_v50, %v26533_v4 }
0x1446   : > { %35151 = vmatpush3.xpose.msra.mxu0 %v23779_v41  ;;  %35152 = vmatprep.mubr.msk.f32.mxu0 %vm38223_vm0, %v38224_v1 }
0x1447   : > { %35155 = vmatprep.subr.mxu0 %v38224_v1  ;;  %v26535_v16 = vand.u32 4294901760, %v26534_v9 }
0x144d   : > { %35153 = vmatmul.mubr.f32.vlgmr.msra.gmra.mrb[52].mxu0 %v23764_v36 }
0x144e   : > { %35156 = vmatpush3.xpose.msra.mxu0 %v23776_v15  ;;  %35157 = vmatprep.mubr.msk.f32.mxu0 %vm38223_vm0, %v38224_v1 }
0x144f   : > { %35160 = vmatprep.subr.mxu0 %v38224_v1 }
0x1455   : > { %35158 = vmatmul.mubr.f32.vlgmr.msra.gmra.mrb[52].mxu0 %v23765_v53 }
0x1456   : > { %35161 = vmatpush3.xpose.msra.mxu0 %v23699_v44  ;;  %35162 = vmatprep.mubr.msk.f32.mxu0 %vm38223_vm0, %v38224_v1 }
0x1457   : > { %35165 = vmatprep.subr.mxu0 %v38224_v1 }
0x145d   : > { %35163 = vmatmul.mubr.f32.vlgmr.msra.gmra.mrb[52].mxu0 %v23766_v23 }
0x145e   : > { %35166 = vmatpush3.xpose.msra.mxu0 %v23777_v25  ;;  %35167 = vmatprep.mubr.msk.f32.mxu0 %vm38223_vm0, %v38224_v1 }
0x145f   : > { %35170 = vmatprep.subr.mxu0 %v38224_v1 }
0x1465   : > { %35168 = vmatmul.mubr.f32.vlgmr.msra.gmra.mrb[52].mxu0 %v23764_v36 }
0x1466   : > { %35171 = vmatpush3.xpose.msra.mxu0 %v23699_v44  ;;  %35172 = vmatprep.mubr.msk.f32.mxu0 %vm38223_vm0, %v38224_v1  ;;  %v27381_v44 = vsel %vm2162_vm3, %v27378_v29, 0 }
0x1467   : > { %35205 = vmatprep.subr.mxu0 %v38224_v1  ;;  %v27384_v15 = vand.u32 4294901760, %v27381_v44 }
0x1469   : > { %v27461_v25 = vsub.f32 %v27381_v44, %v27384_v15 }
0x146b   : > { %v27462_v45 = vand.u32 4294901760, %v27461_v25 }
0x146d   : > { %35173 = vmatmul.mubr.f32.vlgmr.msra.gmra.mrb[52].mxu0 %v23764_v36  ;;  %v27379_v36 = vsel %vm2162_vm3, %v27376_v28, 0 }
0x146e   : > { %35206 = vmatpush3.xpose.msra.mxu0 %v24630_v47  ;;  %35207 = vmatprep.mubr.msk.f32.mxu0 %vm38223_vm0, %v38224_v1  ;;  %v27449_v53 = vand.u32 4294901760, %v27379_v36 }
0x146f   : > { %35210 = vmatprep.subr.mxu0 %v38224_v1 }
0x1470   : > { %v27450_v23 = vsub.f32 %v27379_v36, %v27449_v53 }
0x1471   : > { %35208 = vmatmul.mubr.f32.vlgmr.msra.gmra.mrb[54].mxu0 %v24699_v62 }
0x1472   : > { %35211 = vmatpush3.xpose.msra.mxu0 %v24710_v60  ;;  %35212 = vmatprep.mubr.msk.f32.mxu0 %vm38223_vm0, %v38224_v1  ;;  %v27451_v41 = vand.u32 4294901760, %v27450_v23 }
0x1473   : > { %35215 = vmatprep.subr.mxu0 %v38224_v1 }
0x1474   : > { %v27452_v46 = vsub.f32 %v27450_v23, %v27451_v41 }
0x1479   : > { %35213 = vmatmul.mubr.f32.vlgmr.msra.gmra.mrb[54].mxu0 %v24695_v63 }
0x147a   : > { %35216 = vmatpush3.xpose.msra.mxu0 %v24707_v48  ;;  %35217 = vmatprep.mubr.msk.f32.mxu0 %vm38223_vm0, %v38224_v1 }
0x147b   : > { %35220 = vmatprep.subr.mxu0 %v38224_v1 }
0x1481   : > { %35218 = vmatmul.mubr.f32.vlgmr.msra.gmra.mrb[54].mxu0 %v24696_v59 }
0x1482   : > { %35221 = vmatpush3.xpose.msra.mxu0 %v24630_v47  ;;  %35222 = vmatprep.mubr.msk.f32.mxu0 %vm38223_vm0, %v38224_v1 }
0x1483   : > { %35225 = vmatprep.subr.mxu0 %v38224_v1 }
0x1489   : > { %35223 = vmatmul.mubr.f32.vlgmr.msra.gmra.mrb[54].mxu0 %v24697_v57 }
0x148a   : > { %35226 = vmatpush3.xpose.msra.mxu0 %v24708_v61  ;;  %35227 = vmatprep.mubr.msk.f32.mxu0 %vm38223_vm0, %v38224_v1 }
0x148b   : > { %35230 = vmatprep.subr.mxu0 %v38224_v1 }
0x1491   : > { %35228 = vmatmul.mubr.f32.vlgmr.msra.gmra.mrb[54].mxu0 %v24695_v63 }
0x1492   : > { %35231 = vmatpush3.xpose.msra.mxu0 %v24630_v47  ;;  %35232 = vmatprep.mubr.msk.f32.mxu0 %vm38223_vm0, %v38224_v1  ;;  %v27453_v47 = vand.u32 4294901760, %v27452_v46 }
0x1493   : > { %35265 = vmatprep.subr.mxu0 %v38224_v1 }
0x1499   : > { %35233 = vmatmul.mubr.f32.vlgmr.msra.gmra.mrb[54].mxu0 %v24695_v63  ;;  %v27463_v63 = vsub.f32 %v27461_v25, %v27462_v45 }
0x149a   : > { %35266 = vmatpush3.xpose.msra.mxu0 %v25548_v56  ;;  %35267 = vmatprep.mubr.msk.f32.mxu0 %vm38223_vm0, %v38224_v1 }
0x149b   : > { %35270 = vmatprep.subr.mxu0 %v38224_v1  ;;  %v27464_v59 = vand.u32 4294901760, %v27463_v63 }
0x149d   : > { %35268 = vmatmul.mubr.f32.vlgmr.msra.gmra.mrb[56].mxu0 %v25617_v55 }
0x149e   : > { %35271 = vmatpush3.xpose.msra.mxu0 %v25628_v51  ;;  %35272 = vmatprep.mubr.msk.f32.mxu0 %vm38223_vm0, %v38224_v1 }
0x149f   : > { %35275 = vmatprep.subr.mxu0 %v38224_v1 }
0x14a5   : > { %35273 = vmatmul.mubr.f32.vlgmr.msra.gmra.mrb[56].mxu0 %v25613_v49 }
0x14a6   : > { %35276 = vmatpush3.xpose.msra.mxu0 %v25625_v10  ;;  %35277 = vmatprep.mubr.msk.f32.mxu0 %vm38223_vm0, %v38224_v1 }
0x14a7   : > { %35280 = vmatprep.subr.mxu0 %v38224_v1 }
0x14ad   : > { %35278 = vmatmul.mubr.f32.vlgmr.msra.gmra.mrb[56].mxu0 %v25614_v3 }
0x14ae   : > { %35281 = vmatpush3.xpose.msra.mxu0 %v25548_v56  ;;  %35282 = vmatprep.mubr.msk.f32.mxu0 %vm38223_vm0, %v38224_v1 }
0x14af   : > { %35285 = vmatprep.subr.mxu0 %v38224_v1 }
0x14b5   : > { %35283 = vmatmul.mubr.f32.vlgmr.msra.gmra.mrb[56].mxu0 %v25615_v14 }
0x14b6   : > { %35286 = vmatpush3.xpose.msra.mxu0 %v25626_v19  ;;  %35287 = vmatprep.mubr.msk.f32.mxu0 %vm38223_vm0, %v38224_v1 }
0x14b7   : > { %35290 = vmatprep.subr.mxu0 %v38224_v1 }
0x14bc   : > { %v21386_v6 = vpop.f32.mrb[46].mxu0 }
0x14bd   : > { %v40553_v7 = vmul.f32 0.35355338, %v21386_v6  ;;  %v34994_v8 = vpop.f32.mrb[47].mxu0  ;;  %35288 = vmatmul.mubr.f32.vlgmr.msra.gmra.mrb[56].mxu0 %v25613_v49 }
0x14be   : > { %35291 = vmatpush3.xpose.msra.mxu0 %v25548_v56  ;;  %35292 = vmatprep.mubr.msk.f32.mxu0 %vm38223_vm0, %v38224_v1 }
0x14bf   : > { %v21391_v26 = vsel %vm2162_vm3, %v40553_v7, -inf  ;;  %35325 = vmatprep.subr.mxu0 %v38224_v1 }
0x14c0   : > { %21392 = vmax.xlane.f32.xlu1 %v21391_v26 }
0x14c5   : > { %35293 = vmatmul.mubr.f32.vlgmr.msra.gmra.mrb[56].mxu0 %v25613_v49 }
0x14c6   : > { %35326 = vmatpush3.xpose.msra.mxu0 %v26466_v43  ;;  %35327 = vmatprep.mubr.msk.f32.mxu0 %vm38223_vm0, %v38224_v1 }
0x14c7   : > { %35330 = vmatprep.subr.mxu0 %v38224_v1 }
0x14c9   : > { %35328 = vmatmul.mubr.f32.vlgmr.msra.gmra.mrb[58].mxu0 %v26535_v16 }
0x14ca   : > { %35331 = vmatpush3.xpose.msra.mxu0 %v26546_v18  ;;  %35332 = vmatprep.mubr.msk.f32.mxu0 %vm38223_vm0, %v38224_v1 }
0x14cb   : > { %35335 = vmatprep.subr.mxu0 %v38224_v1 }
0x14d1   : > { %35333 = vmatmul.mubr.f32.vlgmr.msra.gmra.mrb[58].mxu0 %v26531_v21 }
0x14d2   : > { %35336 = vmatpush3.xpose.msra.mxu0 %v26543_v2  ;;  %35337 = vmatprep.mubr.msk.f32.mxu0 %vm38223_vm0, %v38224_v1 }
0x14d3   : > { %35340 = vmatprep.subr.mxu0 %v38224_v1 }
0x14d9   : > { %35338 = vmatmul.mubr.f32.vlgmr.msra.gmra.mrb[58].mxu0 %v26532_v50 }
0x14da   : > { %35341 = vmatpush3.xpose.msra.mxu0 %v26466_v43  ;;  %35342 = vmatprep.mubr.msk.f32.mxu0 %vm38223_vm0, %v38224_v1 }
0x14db   : > { %35345 = vmatprep.subr.mxu0 %v38224_v1 }
0x14e1   : > { %35343 = vmatmul.mubr.f32.vlgmr.msra.gmra.mrb[58].mxu0 %v26533_v4 }
0x14e2   : > { %35346 = vmatpush3.xpose.msra.mxu0 %v26544_v31  ;;  %35347 = vmatprep.mubr.msk.f32.mxu0 %vm38223_vm0, %v38224_v1 }
0x14e3   : > { %35350 = vmatprep.subr.mxu0 %v38224_v1 }
0x14e8   : > { %v22304_v32 = vpop.f32.mrb[48].mxu0 }
0x14e9   : > { %v22308_v52 = vmul.f32 0.35355338, %v22304_v32  ;;  %v35054_v37 = vpop.f32.mrb[49].mxu0  ;;  %35348 = vmatmul.mubr.f32.vlgmr.msra.gmra.mrb[58].mxu0 %v26531_v21 }
0x14ea   : > { %35351 = vmatpush3.xpose.msra.mxu0 %v26466_v43  ;;  %35352 = vmatprep.mubr.msk.f32.mxu0 %vm38223_vm0, %v38224_v1 }
0x14eb   : > { %v22309_v38 = vsel %vm2162_vm3, %v22308_v52, -inf  ;;  %35385 = vmatprep.subr.mxu0 %v38224_v1 }
0x14ec   : > { %22310 = vmax.xlane.f32.xlu0 %v22309_v38 }
0x14f1   : > { %35353 = vmatmul.mubr.f32.vlgmr.msra.gmra.mrb[58].mxu0 %v26531_v21 }
0x14f2   : > { %35386 = vmatpush3.xpose.msra.mxu0 %v27384_v15  ;;  %35387 = vmatprep.mubr.msk.f32.mxu0 %vm38223_vm0, %v38224_v1 }
0x14f3   : > { %35390 = vmatprep.subr.mxu0 %v38224_v1 }
0x14f5   : > { %35388 = vmatmul.mubr.f32.vlgmr.msra.gmra.mrb[60].mxu0 %v27453_v47 }
0x14f6   : > { %35391 = vmatpush3.xpose.msra.mxu0 %v27464_v59  ;;  %35392 = vmatprep.mubr.msk.f32.mxu0 %vm38223_vm0, %v38224_v1 }
0x14f7   : > { %35395 = vmatprep.subr.mxu0 %v38224_v1 }
0x14fd   : > { %35393 = vmatmul.mubr.f32.vlgmr.msra.gmra.mrb[60].mxu0 %v27449_v53 }
0x14fe   : > { %35396 = vmatpush3.xpose.msra.mxu0 %v27461_v25  ;;  %35397 = vmatprep.mubr.msk.f32.mxu0 %vm38223_vm0, %v38224_v1 }
0x14ff   : > { %35400 = vmatprep.subr.mxu0 %v38224_v1 }
0x1505   : > { %35398 = vmatmul.mubr.f32.vlgmr.msra.gmra.mrb[60].mxu0 %v27450_v23 }
0x1506   : > { %35401 = vmatpush3.xpose.msra.mxu0 %v27384_v15  ;;  %35402 = vmatprep.mubr.msk.f32.mxu0 %vm38223_vm0, %v38224_v1 }
0x1507   : > { %35405 = vmatprep.subr.mxu0 %v38224_v1 }
0x150d   : > { %35403 = vmatmul.mubr.f32.vlgmr.msra.gmra.mrb[60].mxu0 %v27451_v41 }
0x150e   : > { %35406 = vmatpush3.xpose.msra.mxu0 %v27462_v45  ;;  %35407 = vmatprep.mubr.msk.f32.mxu0 %vm38223_vm0, %v38224_v1 }
0x150f   : > { %35410 = vmatprep.subr.mxu0 %v38224_v1 }
0x1514   : > { %v23222_v48 = vpop.f32.mrb[50].mxu0 }
0x1515   : > { %v23226_v57 = vmul.f32 0.35355338, %v23222_v48  ;;  %v35114_v61 = vpop.f32.mrb[51].mxu0  ;;  %35408 = vmatmul.mubr.f32.vlgmr.msra.gmra.mrb[60].mxu0 %v27449_v53 }
0x1516   : > { %35411 = vmatpush3.xpose.msra.mxu0 %v27384_v15  ;;  %35412 = vmatprep.mubr.msk.f32.mxu0 %vm38223_vm0, %v38224_v1 }
0x1517   : > { %v23227_v34 = vsel %vm2162_vm3, %v23226_v57, -inf  ;;  %36657 = vmatprep.subr.bf16.mxu0 %v38222_v0 }
0x1518   : > { %23228 = vmax.xlane.f32.xlu1 %v23227_v34 }
0x151d   : > { %35413 = vmatmul.mubr.f32.vlgmr.msra.gmra.mrb[60].mxu0 %v27449_v53 }
0x151e   : > { %35453 = vmatprep.mubr.msk.f32.mxu0 %vm38223_vm0, %v38224_v1 }
0x1540   : > { %v24140_v24 = vpop.f32.mrb[52].mxu0 }
0x1541   : > { %v24144_v62 = vmul.f32 0.35355338, %v24140_v24  ;;  %v35174_v60 = vpop.f32.mrb[53].mxu0 }
0x1543   : > { %v24145_v5 = vsel %vm2162_vm3, %v24144_v62, -inf }
0x1544   : > { %24146 = vmax.xlane.f32.xlu1 %v24145_v5 }
0x154d   : > { %v21393_v11 = vpop.xlane.xlu1 %21392 }
0x154e   : > { %v21394_v12 = vsub.f32 %v40553_v7, %v21393_v11 }
0x1550   : > { %v21395_v54 = vmul.f32 1.442695, %v21394_v12 }
0x1552   : > { %37959 = vpow2.f32 %v21395_v54 }
0x155c   : > { %v37960_v49 = vpop.eup %37959 }
0x155d   : > { %v21397_v56 = vsel %vm2162_vm3, %v37960_v49, 0.0 }
0x155e   : > { %21398 = vadd.xlane.f32.xlu0 %v21397_v56 }
0x156c   : > { %v25071_v3 = vpop.f32.mrb[54].mxu0 }
0x156d   : > { %v35234_v10 = vpop.f32.mrb[55].mxu0  ;;  %v40617_v50 = vmul.f32 0.35355338, %v25071_v3 }
0x156f   : > { %v25076_v6 = vsel %vm2162_vm3, %v40617_v50, -inf }
0x1574   : > { %21402 = vrot.lane.b32.xlu0 %v40399_v33, %s38232_s10 }
0x1579   : > { %v22311_v14 = vpop.xlane.xlu0 %22310 }
0x157a   : > { %v22312_v19 = vsub.f32 %v22308_v52, %v22311_v14 }
0x157c   : > { %v22313_v22 = vmul.f32 1.442695, %v22312_v19 }
0x157e   : > { %37961 = vpow2.f32 %v22313_v22 }
0x1588   : > { %v40607_v30 = vpop.eup %37961 }
0x1589   : > { %v22315_v55 = vsel %vm2162_vm3, %v40607_v30, 0.0 }
0x158a   : > { %22316 = vadd.xlane.f32.xlu1 %v22315_v55 }
0x1598   : > { %v25989_v51 = vpop.f32.mrb[56].mxu0 }
0x1599   : > { %v35294_v17 = vpop.f32.mrb[57].mxu0  ;;  %v40619_v2 = vmul.f32 0.35355338, %v25989_v51 }
0x159b   : > { %22320 = vrot.lane.b32.xlu1 %v40399_v33, %s38233_s20  ;;  %v25994_v7 = vsel %vm2162_vm3, %v40619_v2, -inf }
0x15a5   : > { %v23229_v13 = vpop.xlane.xlu1 %23228 }
0x15a6   : > { %v23230_v35 = vsub.f32 %v23226_v57, %v23229_v13 }
0x15a8   : > { %v23231_v42 = vmul.f32 1.442695, %v23230_v35 }
0x15aa   : > { %37963 = vpow2.f32 %v23231_v42 }
0x15b4   : > { %v40613_v21 = vpop.eup %37963 }
0x15b5   : > { %v23233_v43 = vsel %vm2162_vm3, %v40613_v21, 0.0 }
0x15b6   : > { %23234 = vadd.xlane.f32.xlu0 %v23233_v43 }
0x15bf   : > { %25077 = vmax.xlane.f32.xlu1 %v25076_v6 }
0x15c3   : > { %25995 = vmax.xlane.f32.xlu1 %v25994_v7 }
0x15c4   : > { %v26907_v8 = vpop.f32.mrb[58].mxu0 }
0x15c5   : > { %v35354_v4 = vpop.f32.mrb[59].mxu0 }
0x15cc   : > { %23238 = vrot.lane.b32.xlu0 %v40399_v33, %s38234_s25 }
0x15d1   : > { %v24147_v26 = vpop.xlane.xlu1 %24146 }
0x15d2   : > { %v24148_v31 = vsub.f32 %v24144_v62, %v24147_v26 }
0x15d4   : > { %v24149_v9 = vmul.f32 1.442695, %v24148_v31 }
0x15d6   : > { %37965 = vpow2.f32 %v24149_v9 }
0x15e0   : > { %v40627_v27 = vpop.eup %37965 }
0x15e1   : > { %v24151_v16 = vsel %vm2162_vm3, %v40627_v27, 0.0 }
0x15e2   : > { %24152 = vadd.xlane.f32.xlu1 %v24151_v16 }
0x15eb   : > { %v21399_v18 = vpop.xlane.xlu0 %21398 }
0x15ec   : > { %37967 = vrcp.f32 %v21399_v18 }
0x15ef   : > { %v21403_v28 = vpop.permute.xlu0 %21402 }
0x15f0   : > { %v21409_v29 = vand.u32 4294901760, %v21403_v28  ;;  %v40631_v36 = vpop.f32.mrb[60].mxu0 }
0x15f1   : > { %v35414_v44 = vpop.f32.mrb[61].mxu0 }
0x15f2   : > { %34996 = vmatpush3.msra.mxu1 %v21409_v29  ;;  %v21486_v23 = vsub.f32 %v21403_v28, %v21409_v29  ;;  %v40697_v28 = vmul.f32 0.35355338, %v40631_v36 }
0x15f3   : > { %24156 = vrot.lane.b32.xlu1 %v40399_v33, %s41905_s24  ;;  %35000 = vmatprep.subr.mxu1 %v38224_v1  ;;  %v40643_v33 = vmul.f32 0.35355338, %v26907_v8 }
0x15f4   : > { %v21487_v52 = vand.u32 4294901760, %v21486_v23  ;;  %v27830_v44 = vsel %vm2162_vm3, %v40697_v28, -inf }
0x15f5   : > { %v26912_v47 = vsel %vm2162_vm3, %v40643_v33, -inf }
0x15f6   : > { %v37968_v53 = vpop.eup %37967  ;;  %v21488_v38 = vsub.f32 %v21486_v23, %v21487_v52 }
0x15f7   : > { %v21401_v15 = vmul.f32 %v37968_v53, %v37960_v49 }
0x15f8   : > { %v21489_v63 = vand.u32 4294901760, %v21488_v38 }
0x15f9   : > { %v21406_v25 = vsel %vm2162_vm3, %v21401_v15, 0 }
0x15fa   : > { %v21474_v32 = vand.u32 4294901760, %v21406_v25 }
0x15fc   : > { %v21475_v37 = vsub.f32 %v21406_v25, %v21474_v32 }
0x15fe   : > { %v21476_v41 = vand.u32 4294901760, %v21475_v37 }
0x1600   : > { %v21477_v45 = vsub.f32 %v21475_v37, %v21476_v41 }
0x1602   : > { %v21478_v46 = vand.u32 4294901760, %v21477_v45 }
0x1604   : > { %34998 = vmatmul.mubr.f32.vlgmr.msra.gmra.mrb[50].mxu1 %v21478_v46 }
0x1605   : > { %35001 = vmatpush3.msra.mxu1 %v21489_v63  ;;  %35002 = vmatprep.mubr.msk.f32.mxu1 %vm38223_vm0, %v38224_v1 }
0x1606   : > { %35005 = vmatprep.subr.mxu1 %v38224_v1 }
0x160c   : > { %35003 = vmatmul.mubr.f32.vlgmr.msra.gmra.mrb[50].mxu1 %v21474_v32 }
0x160d   : > { %35006 = vmatpush3.msra.mxu1 %v21486_v23  ;;  %35007 = vmatprep.mubr.msk.f32.mxu1 %vm38223_vm0, %v38224_v1 }
0x160e   : > { %35010 = vmatprep.subr.mxu1 %v38224_v1 }
0x1614   : > { %35008 = vmatmul.mubr.f32.vlgmr.msra.gmra.mrb[50].mxu1 %v21475_v37 }
0x1615   : > { %35011 = vmatpush3.msra.mxu1 %v21409_v29  ;;  %35012 = vmatprep.mubr.msk.f32.mxu1 %vm38223_vm0, %v38224_v1 }
0x1616   : > { %35015 = vmatprep.subr.mxu1 %v38224_v1 }
0x1617   : > { %v22317_v59 = vpop.xlane.xlu1 %22316  ;;  %26913 = vmax.xlane.f32.xlu1 %v26912_v47 }
0x1618   : > { %37969 = vrcp.f32 %v22317_v59 }
0x161b   : > { %v22321_v48 = vpop.permute.xlu1 %22320 }
0x161c   : > { %35013 = vmatmul.mubr.f32.vlgmr.msra.gmra.mrb[50].mxu1 %v21476_v41  ;;  %v22327_v57 = vand.u32 4294901760, %v22321_v48 }
0x161d   : > { %35016 = vmatpush3.msra.mxu1 %v21487_v52  ;;  %35017 = vmatprep.mubr.msk.f32.mxu1 %vm38223_vm0, %v38224_v1 }
0x161e   : > { %35020 = vmatprep.subr.mxu1 %v38224_v1  ;;  %v22404_v24 = vsub.f32 %v22321_v48, %v22327_v57 }
0x1620   : > { %v22405_v5 = vand.u32 4294901760, %v22404_v24 }
0x1622   : > { %v37970_v61 = vpop.eup %37969  ;;  %v22406_v54 = vsub.f32 %v22404_v24, %v22405_v5 }
0x1623   : > { %v22319_v34 = vmul.f32 %v37970_v61, %v40607_v30 }
0x1624   : > { %35018 = vmatmul.mubr.f32.vlgmr.msra.gmra.mrb[50].mxu1 %v21474_v32  ;;  %v22407_v3 = vand.u32 4294901760, %v22406_v54 }
0x1625   : > { %35021 = vmatpush3.msra.mxu1 %v21409_v29  ;;  %35022 = vmatprep.mubr.msk.f32.mxu1 %vm38223_vm0, %v38224_v1  ;;  %v22324_v62 = vsel %vm2162_vm3, %v22319_v34, 0 }
0x1626   : > { %35055 = vmatprep.subr.mxu1 %v38224_v1  ;;  %v22392_v60 = vand.u32 4294901760, %v22324_v62 }
0x1628   : > { %v22393_v11 = vsub.f32 %v22324_v62, %v22392_v60 }
0x162a   : > { %v22394_v12 = vand.u32 4294901760, %v22393_v11 }
0x162c   : > { %35023 = vmatmul.mubr.f32.vlgmr.msra.gmra.mrb[50].mxu1 %v21474_v32  ;;  %v22395_v49 = vsub.f32 %v22393_v11, %v22394_v12 }
0x162d   : > { %35056 = vmatpush3.msra.mxu1 %v22327_v57  ;;  %35057 = vmatprep.mubr.msk.f32.mxu1 %vm38223_vm0, %v38224_v1 }
0x162e   : > { %35060 = vmatprep.subr.mxu1 %v38224_v1  ;;  %v22396_v56 = vand.u32 4294901760, %v22395_v49 }
0x1630   : > { %35058 = vmatmul.mubr.f32.vlgmr.msra.gmra.mrb[52].mxu1 %v22396_v56 }
0x1631   : > { %35061 = vmatpush3.msra.mxu1 %v22407_v3  ;;  %35062 = vmatprep.mubr.msk.f32.mxu1 %vm38223_vm0, %v38224_v1 }
0x1632   : > { %35065 = vmatprep.subr.mxu1 %v38224_v1 }
0x1638   : > { %35063 = vmatmul.mubr.f32.vlgmr.msra.gmra.mrb[52].mxu1 %v22392_v60 }
0x1639   : > { %35066 = vmatpush3.msra.mxu1 %v22404_v24  ;;  %35067 = vmatprep.mubr.msk.f32.mxu1 %vm38223_vm0, %v38224_v1 }
0x163a   : > { %35070 = vmatprep.subr.mxu1 %v38224_v1 }
0x1640   : > { %35068 = vmatmul.mubr.f32.vlgmr.msra.gmra.mrb[52].mxu1 %v22393_v11 }
0x1641   : > { %35071 = vmatpush3.msra.mxu1 %v22327_v57  ;;  %35072 = vmatprep.mubr.msk.f32.mxu1 %vm38223_vm0, %v38224_v1 }
0x1642   : > { %35075 = vmatprep.subr.mxu1 %v38224_v1 }
0x1643   : > { %v23235_v10 = vpop.xlane.xlu0 %23234 }
0x1644   : > { %37971 = vrcp.f32 %v23235_v10 }
0x1647   : > { %v23239_v14 = vpop.permute.xlu0 %23238 }
0x1648   : > { %35073 = vmatmul.mubr.f32.vlgmr.msra.gmra.mrb[52].mxu1 %v22394_v12  ;;  %v40673_v19 = vand.u32 4294901760, %v23239_v14 }
0x1649   : > { %35076 = vmatpush3.msra.mxu1 %v22405_v5  ;;  %35077 = vmatprep.mubr.msk.f32.mxu1 %vm38223_vm0, %v38224_v1 }
0x164a   : > { %35080 = vmatprep.subr.mxu1 %v38224_v1  ;;  %v23322_v17 = vsub.f32 %v23239_v14, %v40673_v19 }
0x164c   : > { %v25078_v22 = vpop.xlane.xlu1 %25077  ;;  %v23323_v6 = vand.u32 4294901760, %v23322_v17 }
0x164d   : > { %v25079_v30 = vsub.f32 %v40617_v50, %v25078_v22 }
0x164e   : > { %v37972_v55 = vpop.eup %37971  ;;  %v23324_v4 = vsub.f32 %v23322_v17, %v23323_v6 }
0x164f   : > { %v23237_v51 = vmul.f32 %v37972_v55, %v40613_v21  ;;  %v25080_v13 = vmul.f32 1.442695, %v25079_v30 }
0x1650   : > { %35078 = vmatmul.mubr.f32.vlgmr.msra.gmra.mrb[52].mxu1 %v22392_v60  ;;  %v25996_v35 = vpop.xlane.xlu1 %25995  ;;  %v23325_v9 = vand.u32 4294901760, %v23324_v4 }
0x1651   : > { %37973 = vpow2.f32 %v25080_v13  ;;  %35081 = vmatpush3.msra.mxu1 %v22327_v57  ;;  %v25997_v42 = vsub.f32 %v40619_v2, %v25996_v35  ;;  %35082 = vmatprep.mubr.msk.f32.mxu1 %vm38223_vm0, %v38224_v1  ;;  %v23242_v43 = vsel %vm2162_vm3, %v23237_v51, 0 }
0x1652   : > { %35115 = vmatprep.subr.mxu1 %v38224_v1  ;;  %v23310_v50 = vand.u32 4294901760, %v23242_v43 }
0x1653   : > { %v25998_v7 = vmul.f32 1.442695, %v25997_v42 }
0x1654   : > { %v23311_v21 = vsub.f32 %v23242_v43, %v23310_v50 }
0x1655   : > { %37975 = vpow2.f32 %v25998_v7 }
0x1656   : > { %v23312_v8 = vand.u32 4294901760, %v23311_v21 }
0x1658   : > { %35083 = vmatmul.mubr.f32.vlgmr.msra.gmra.mrb[52].mxu1 %v22392_v60  ;;  %v23313_v26 = vsub.f32 %v23311_v21, %v23312_v8 }
0x1659   : > { %35116 = vmatpush3.msra.mxu1 %v40673_v19  ;;  %35117 = vmatprep.mubr.msk.f32.mxu1 %vm38223_vm0, %v38224_v1 }
0x165a   : > { %35120 = vmatprep.subr.mxu1 %v38224_v1  ;;  %v23314_v2 = vand.u32 4294901760, %v23313_v26 }
0x165b   : > { %v40687_v31 = vpop.eup %37973 }
0x165c   : > { %35118 = vmatmul.mubr.f32.vlgmr.msra.gmra.mrb[54].mxu1 %v23314_v2  ;;  %v25082_v16 = vsel %vm2162_vm3, %v40687_v31, 0.0 }
0x165d   : > { %35121 = vmatpush3.msra.mxu1 %v23325_v9  ;;  %25083 = vadd.xlane.f32.xlu0 %v25082_v16 }
0x165e   : > { %35122 = vmatprep.mubr.msk.f32.mxu1 %vm38223_vm0, %v38224_v1  ;;  %35125 = vmatprep.subr.mxu1 %v38224_v1 }
0x165f   : > { %v40694_v18 = vpop.eup %37975 }
0x1660   : > { %v26000_v29 = vsel %vm2162_vm3, %v40694_v18, 0.0 }
0x1661   : > { %26001 = vadd.xlane.f32.xlu1 %v26000_v29 }
0x1664   : > { %35123 = vmatmul.mubr.f32.vlgmr.msra.gmra.mrb[54].mxu1 %v23310_v50 }
0x1665   : > { %35126 = vmatpush3.msra.mxu1 %v23322_v17  ;;  %27831 = vmax.xlane.f32.xlu1 %v27830_v44 }
0x1666   : > { %35127 = vmatprep.mubr.msk.f32.mxu1 %vm38223_vm0, %v38224_v1  ;;  %35130 = vmatprep.subr.mxu1 %v38224_v1 }
0x166c   : > { %35128 = vmatmul.mubr.f32.vlgmr.msra.gmra.mrb[54].mxu1 %v23311_v21 }
0x166d   : > { %35131 = vmatpush3.msra.mxu1 %v40673_v19  ;;  %35132 = vmatprep.mubr.msk.f32.mxu1 %vm38223_vm0, %v38224_v1 }
0x166e   : > { %35135 = vmatprep.subr.mxu1 %v38224_v1 }
0x166f   : > { %v24153_v36 = vpop.xlane.xlu1 %24152 }
0x1670   : > { %37977 = vrcp.f32 %v24153_v36 }
0x1673   : > { %25087 = vrot.lane.b32.xlu0 %v40410_v40, %s38232_s10  ;;  %v24157_v53 = vpop.permute.xlu1 %24156 }
0x1674   : > { %35133 = vmatmul.mubr.f32.vlgmr.msra.gmra.mrb[54].mxu1 %v23312_v8  ;;  %v24163_v15 = vand.u32 4294901760, %v24157_v53 }
0x1675   : > { %35136 = vmatpush3.msra.mxu1 %v23323_v6  ;;  %35137 = vmatprep.mubr.msk.f32.mxu1 %vm38223_vm0, %v38224_v1 }
0x1676   : > { %35140 = vmatprep.subr.mxu1 %v38224_v1  ;;  %v24240_v32 = vsub.f32 %v24157_v53, %v24163_v15 }
0x1677   : > { %26005 = vrot.lane.b32.xlu0 %v40410_v40, %s38233_s20  ;;  %s41923_s20 = sld [smem:[#allocation21_spill]] }
0x1678   : > { %v24241_v41 = vand.u32 4294901760, %v24240_v32 }
0x167a   : > { %v37978_v23 = vpop.eup %37977  ;;  %v24242_v45 = vsub.f32 %v24240_v32, %v24241_v41 }
0x167b   : > { %v24155_v25 = vmul.f32 %v37978_v23, %v40627_v27  ;;  %26923 = vrot.lane.b32.xlu0 %v40410_v40, %s38234_s25 }
0x167c   : > { %35138 = vmatmul.mubr.f32.vlgmr.msra.gmra.mrb[54].mxu1 %v23310_v50  ;;  %v24243_v47 = vand.u32 4294901760, %v24242_v45 }
0x167d   : > { %35141 = vmatpush3.msra.mxu1 %v40673_v19  ;;  %35142 = vmatprep.mubr.msk.f32.mxu1 %vm38223_vm0, %v38224_v1  ;;  %v24160_v52 = vsel %vm2162_vm3, %v24155_v25, 0 }
0x167e   : > { %35175 = vmatprep.subr.mxu1 %v38224_v1  ;;  %v24228_v37 = vand.u32 4294901760, %v24160_v52 }
0x167f   : > { %27841 = vrot.lane.b32.xlu0 %v40410_v40, %s41905_s24  ;;  %s41916_s24 = smov %s41915_s18 }
0x1680   : > { %v24229_v27 = vsub.f32 %v24160_v52, %v24228_v37 }
0x1682   : > { %v24230_v38 = vand.u32 4294901760, %v24229_v27 }
0x1684   : > { %35143 = vmatmul.mubr.f32.vlgmr.msra.gmra.mrb[54].mxu1 %v23310_v50  ;;  %v24231_v46 = vsub.f32 %v24229_v27, %v24230_v38 }
0x1685   : > { %35176 = vmatpush3.msra.mxu1 %v24163_v15  ;;  %35177 = vmatprep.mubr.msk.f32.mxu1 %vm38223_vm0, %v38224_v1 }
0x1686   : > { %35180 = vmatprep.subr.mxu1 %v38224_v1  ;;  %v24232_v63 = vand.u32 4294901760, %v24231_v46 }
0x1688   : > { %35178 = vmatmul.mubr.f32.vlgmr.msra.gmra.mrb[56].mxu1 %v24232_v63 }
0x1689   : > { %35181 = vmatpush3.msra.mxu1 %v24243_v47  ;;  %35182 = vmatprep.mubr.msk.f32.mxu1 %vm38223_vm0, %v38224_v1 }
0x168a   : > { %35185 = vmatprep.subr.mxu1 %v38224_v1 }
0x1690   : > { %35183 = vmatmul.mubr.f32.vlgmr.msra.gmra.mrb[56].mxu1 %v24228_v37 }
0x1691   : > { %35186 = vmatpush3.msra.mxu1 %v24240_v32  ;;  %35187 = vmatprep.mubr.msk.f32.mxu1 %vm38223_vm0, %v38224_v1 }
0x1692   : > { %35190 = vmatprep.subr.mxu1 %v38224_v1 }
0x1698   : > { %35188 = vmatmul.mubr.f32.vlgmr.msra.gmra.mrb[56].mxu1 %v24229_v27 }
0x1699   : > { %35191 = vmatpush3.msra.mxu1 %v24163_v15  ;;  %35192 = vmatprep.mubr.msk.f32.mxu1 %vm38223_vm0, %v38224_v1 }
0x169a   : > { %35195 = vmatprep.subr.mxu1 %v38224_v1 }
0x16a0   : > { %35193 = vmatmul.mubr.f32.vlgmr.msra.gmra.mrb[56].mxu1 %v24230_v38 }
0x16a1   : > { %35196 = vmatpush3.msra.mxu1 %v24241_v41  ;;  %35197 = vmatprep.mubr.msk.f32.mxu1 %vm38223_vm0, %v38224_v1 }
0x16a2   : > { %35200 = vmatprep.subr.mxu1 %v38224_v1 }
0x16a4   : > { %v26914_v40 = vpop.xlane.xlu1 %26913 }
0x16a5   : > { %v26915_v59 = vsub.f32 %v40643_v33, %v26914_v40 }
0x16a7   : > { %v26916_v48 = vmul.f32 1.442695, %v26915_v59 }
0x16a8   : > { %35198 = vmatmul.mubr.f32.vlgmr.msra.gmra.mrb[56].mxu1 %v24228_v37 }
0x16a9   : > { %37979 = vpow2.f32 %v26916_v48  ;;  %35201 = vmatpush3.msra.mxu1 %v24163_v15  ;;  %35202 = vmatprep.mubr.msk.f32.mxu1 %vm38223_vm0, %v38224_v1 }
0x16aa   : > { %35235 = vmatprep.subr.mxu1 %v38224_v1 }
0x16b0   : > { %35203 = vmatmul.mubr.f32.vlgmr.msra.gmra.mrb[56].mxu1 %v24228_v37 }
0x16b1   : > { %35237 = vmatprep.mubr.msk.f32.mxu1 %vm38223_vm0, %v38224_v1 }
0x16b3   : > { %v40748_v57 = vpop.eup %37979 }
0x16b4   : > { %v26918_v61 = vsel %vm2162_vm3, %v40748_v57, 0.0 }
0x16b5   : > { %26919 = vadd.xlane.f32.xlu1 %v26918_v61 }
0x16ea   : > { %v25084_v33 = vpop.xlane.xlu0 %25083 }
0x16eb   : > { %37981 = vrcp.f32 %v25084_v33 }
0x16ee   : > { %v25088_v34 = vpop.permute.xlu0 %25087  ;;  %v26002_v24 = vpop.xlane.xlu1 %26001 }
0x16ef   : > { %v25094_v62 = vand.u32 4294901760, %v25088_v34 }
0x16f1   : > { %35236 = vmatpush3.msra.mxu1 %v25094_v62  ;;  %v25171_v49 = vsub.f32 %v25088_v34, %v25094_v62 }
0x16f2   : > { %v27832_v60 = vpop.xlane.xlu1 %27831  ;;  %35240 = vmatprep.subr.mxu1 %v38224_v1  ;;  %v26006_v7 = vpop.permute.xlu0 %26005 }
0x16f3   : > { %v27833_v5 = vsub.f32 %v40697_v28, %v27832_v60  ;;  %v25172_v10 = vand.u32 4294901760, %v25171_v49  ;;  %v26012_v8 = vand.u32 4294901760, %v26006_v7 }
0x16f5   : > { %v37982_v11 = vpop.eup %37981  ;;  %v27834_v12 = vmul.f32 1.442695, %v27833_v5  ;;  %v25173_v22 = vsub.f32 %v25171_v49, %v25172_v10  ;;  %v26089_v26 = vsub.f32 %v26006_v7, %v26012_v8 }
0x16f6   : > { %v25086_v54 = vmul.f32 %v37982_v11, %v40687_v31  ;;  %v26924_v53 = vpop.permute.xlu0 %26923 }
0x16f7   : > { %37983 = vpow2.f32 %v27834_v12  ;;  %v25174_v35 = vand.u32 4294901760, %v25173_v22  ;;  %v26090_v31 = vand.u32 4294901760, %v26089_v26  ;;  %v26930_v15 = vand.u32 4294901760, %v26924_v53 }
0x16f8   : > { %v25091_v56 = vsel %vm2162_vm3, %v25086_v54, 0  ;;  %37985 = vrcp.f32 %v26002_v24 }
0x16f9   : > { %v25159_v3 = vand.u32 4294901760, %v25091_v56  ;;  %v26091_v16 = vsub.f32 %v26089_v26, %v26090_v31  ;;  %v27007_v25 = vsub.f32 %v26924_v53, %v26930_v15 }
0x16fa   : > { %v27842_v48 = vpop.permute.xlu0 %27841 }
0x16fb   : > { %v25160_v14 = vsub.f32 %v25091_v56, %v25159_v3  ;;  %v26092_v44 = vand.u32 4294901760, %v26091_v16  ;;  %v27008_v41 = vand.u32 4294901760, %v27007_v25 }
0x16fd   : > { %v25161_v19 = vand.u32 4294901760, %v25160_v14  ;;  %v27009_v45 = vsub.f32 %v27007_v25, %v27008_v41 }
0x16ff   : > { %v40756_v30 = vpop.f32.mrb[50].mxu1  ;;  %v25162_v55 = vsub.f32 %v25160_v14, %v25161_v19  ;;  %v27010_v59 = vand.u32 4294901760, %v27009_v45  ;;  %v19936_v45 = vld [vmem:[#allocation7 + $0x48] sm:$0xff] }
0x1700   : > { %v35024_v51 = vpop.f32.mrb[51].mxu1 }
0x1701   : > { %v40758_v17 = vpop.eup %37983  ;;  %v25163_v13 = vand.u32 4294901760, %v25162_v55 }
0x1702   : > { %v27836_v42 = vsel %vm2162_vm3, %v40758_v17, 0.0  ;;  %v37986_v43 = vpop.eup %37985 }
0x1703   : > { %35238 = vmatmul.mubr.f32.vlgmr.msra.gmra.mrb[58].mxu1 %v25163_v13  ;;  %27837 = vadd.xlane.f32.xlu1 %v27836_v42  ;;  %v26004_v50 = vmul.f32 %v37986_v43, %v40694_v18  ;;  %v19942_v42 = vld [vmem:[#allocation9 + $0x40] sm:$0xff]  ;;  %v19943_v43 = vld [vmem:[#allocation9 + $0x48] sm:$0xff] }
0x1704   : > { %35241 = vmatpush3.msra.mxu1 %v25174_v35  ;;  %35242 = vmatprep.mubr.msk.f32.mxu1 %vm38223_vm0, %v38224_v1 }
0x1705   : > { %35245 = vmatprep.subr.mxu1 %v38224_v1  ;;  %v26009_v6 = vsel %vm2162_vm3, %v26004_v50, 0  ;;  %v28808_v50 = vand.u32 4294901760, %v19942_v42 }
0x1706   : > { %v26077_v21 = vand.u32 4294901760, %v26009_v6 }
0x1708   : > { %v26078_v4 = vsub.f32 %v26009_v6, %v26077_v21  ;;  %v28811_v6 = vand.u32 4294901760, %v19943_v43 }
0x170a   : > { %v26079_v2 = vand.u32 4294901760, %v26078_v4  ;;  %v40855_v7 = vpack.c.bf16 %v28811_v6, %v28808_v50 }
0x170b   : > { %35243 = vmatmul.mubr.f32.vlgmr.msra.gmra.mrb[58].mxu1 %v25159_v3 }
0x170c   : > { %35246 = vmatpush3.msra.mxu1 %v25171_v49  ;;  %35247 = vmatprep.mubr.msk.f32.mxu1 %vm38223_vm0, %v38224_v1  ;;  %v26080_v9 = vsub.f32 %v26078_v4, %v26079_v2 }
0x170d   : > { %35250 = vmatprep.subr.mxu1 %v38224_v1 }
0x170e   : > { %v26081_v29 = vand.u32 4294901760, %v26080_v9 }
0x1713   : > { %35248 = vmatmul.mubr.f32.vlgmr.msra.gmra.mrb[58].mxu1 %v25160_v14 }
0x1714   : > { %35251 = vmatpush3.msra.mxu1 %v25094_v62  ;;  %35252 = vmatprep.mubr.msk.f32.mxu1 %vm38223_vm0, %v38224_v1 }
0x1715   : > { %35255 = vmatprep.subr.mxu1 %v38224_v1 }
0x171b   : > { %35253 = vmatmul.mubr.f32.vlgmr.msra.gmra.mrb[58].mxu1 %v25161_v19 }
0x171c   : > { %35256 = vmatpush3.msra.mxu1 %v25172_v10  ;;  %35257 = vmatprep.mubr.msk.f32.mxu1 %vm38223_vm0, %v38224_v1 }
0x171d   : > { %35260 = vmatprep.subr.mxu1 %v38224_v1 }
0x1723   : > { %35258 = vmatmul.mubr.f32.vlgmr.msra.gmra.mrb[58].mxu1 %v25159_v3 }
0x1724   : > { %35261 = vmatpush3.msra.mxu1 %v25094_v62  ;;  %35262 = vmatprep.mubr.msk.f32.mxu1 %vm38223_vm0, %v38224_v1 }
0x1725   : > { %35295 = vmatprep.subr.mxu1 %v38224_v1 }
0x172b   : > { %v40779_v18 = vpop.f32.mrb[52].mxu1  ;;  %35263 = vmatmul.mubr.f32.vlgmr.msra.gmra.mrb[58].mxu1 %v25159_v3 }
0x172c   : > { %35296 = vmatpush3.msra.mxu1 %v26012_v8  ;;  %v35084_v28 = vpop.f32.mrb[53].mxu1  ;;  %35297 = vmatprep.mubr.msk.f32.mxu1 %vm38223_vm0, %v38224_v1 }
0x172d   : > { %35300 = vmatprep.subr.mxu1 %v38224_v1 }
0x172f   : > { %35298 = vmatmul.mubr.f32.vlgmr.msra.gmra.mrb[60].mxu1 %v26081_v29 }
0x1730   : > { %35301 = vmatpush3.msra.mxu1 %v26092_v44  ;;  %35302 = vmatprep.mubr.msk.f32.mxu1 %vm38223_vm0, %v38224_v1 }
0x1731   : > { %35305 = vmatprep.subr.mxu1 %v38224_v1 }
0x1737   : > { %35303 = vmatmul.mubr.f32.vlgmr.msra.gmra.mrb[60].mxu1 %v26077_v21 }
0x1738   : > { %35306 = vmatpush3.msra.mxu1 %v26089_v26  ;;  %35307 = vmatprep.mubr.msk.f32.mxu1 %vm38223_vm0, %v38224_v1 }
0x1739   : > { %35310 = vmatprep.subr.mxu1 %v38224_v1 }
0x173f   : > { %35308 = vmatmul.mubr.f32.vlgmr.msra.gmra.mrb[60].mxu1 %v26078_v4  ;;  %v19945_v4 = vld [vmem:[#allocation9 + $0x58] sm:$0xff] }
0x1740   : > { %35311 = vmatpush3.msra.mxu1 %v26012_v8  ;;  %35312 = vmatprep.mubr.msk.f32.mxu1 %vm38223_vm0, %v38224_v1 }
0x1741   : > { %35315 = vmatprep.subr.mxu1 %v38224_v1 }
0x1742   : > { %v26920_v36 = vpop.xlane.xlu1 %26919 }
0x1743   : > { %37987 = vrcp.f32 %v26920_v36 }
0x1747   : > { %35313 = vmatmul.mubr.f32.vlgmr.msra.gmra.mrb[60].mxu1 %v26079_v2  ;;  %v28817_v2 = vand.u32 4294901760, %v19945_v4 }
0x1748   : > { %35316 = vmatpush3.msra.mxu1 %v26090_v31  ;;  %35317 = vmatprep.mubr.msk.f32.mxu1 %vm38223_vm0, %v38224_v1 }
0x1749   : > { %35320 = vmatprep.subr.mxu1 %v38224_v1  ;;  %v40869_v29 = vsub.f32 %v19945_v4, %v28817_v2 }
0x174d   : > { %v37988_v23 = vpop.eup %37987 }
0x174e   : > { %v26922_v32 = vmul.f32 %v37988_v23, %v40748_v57  ;;  %v27848_v57 = vand.u32 4294901760, %v27842_v48  ;;  %v28910_v23 = vand.u32 4294901760, %v40869_v29 }
0x174f   : > { %35318 = vmatmul.mubr.f32.vlgmr.msra.gmra.mrb[60].mxu1 %v26077_v21 }
0x1750   : > { %35321 = vmatpush3.msra.mxu1 %v26012_v8  ;;  %35322 = vmatprep.mubr.msk.f32.mxu1 %vm38223_vm0, %v38224_v1  ;;  %v26927_v52 = vsel %vm2162_vm3, %v26922_v32, 0  ;;  %v27925_v62 = vsub.f32 %v27842_v48, %v27848_v57  ;;  %v40859_v8 = vsub.f32 %v19943_v43, %v28811_v6 }
0x1751   : > { %35355 = vmatprep.subr.mxu1 %v38224_v1  ;;  %v26995_v37 = vand.u32 4294901760, %v26927_v52 }
0x1752   : > { %v27926_v12 = vand.u32 4294901760, %v27925_v62  ;;  %v28896_v9 = vand.u32 4294901760, %v40859_v8 }
0x1753   : > { %v26996_v27 = vsub.f32 %v26927_v52, %v26995_v37 }
0x1754   : > { %v27927_v56 = vsub.f32 %v27925_v62, %v27926_v12  ;;  %v28897_v36 = vsub.f32 %v40859_v8, %v28896_v9 }
0x1755   : > { %v26997_v38 = vand.u32 4294901760, %v26996_v27 }
0x1756   : > { %v27928_v14 = vand.u32 4294901760, %v27927_v56 }
0x1757   : > { %v40801_v46 = vpop.f32.mrb[54].mxu1  ;;  %35323 = vmatmul.mubr.f32.vlgmr.msra.gmra.mrb[60].mxu1 %v26077_v21  ;;  %v26998_v63 = vsub.f32 %v26996_v27, %v26997_v38  ;;  %v40857_v21 = vsub.f32 %v19942_v42, %v28808_v50 }
0x1758   : > { %35356 = vmatpush3.msra.mxu1 %v26930_v15  ;;  %v35144_v47 = vpop.f32.mrb[55].mxu1  ;;  %35357 = vmatprep.mubr.msk.f32.mxu1 %vm38223_vm0, %v38224_v1 }
0x1759   : > { %35360 = vmatprep.subr.mxu1 %v38224_v1  ;;  %v26999_v40 = vand.u32 4294901760, %v26998_v63  ;;  %v28889_v31 = vand.u32 4294901760, %v40857_v21  ;;  %v28315_v47 = vand.u32 4294901760, %v19936_v45 }
0x175b   : > { %35358 = vmatmul.mubr.f32.vlgmr.msra.gmra.mrb[62].mxu1 %v26999_v40  ;;  %v28890_v44 = vsub.f32 %v40857_v21, %v28889_v31 }
0x175c   : > { %35361 = vmatpush3.msra.mxu1 %v27010_v59  ;;  %35362 = vmatprep.mubr.msk.f32.mxu1 %vm38223_vm0, %v38224_v1 }
0x175d   : > { %35365 = vmatprep.subr.mxu1 %v38224_v1  ;;  %v28891_v53 = vand.u32 4294901760, %v28890_v44 }
0x1763   : > { %35363 = vmatmul.mubr.f32.vlgmr.msra.gmra.mrb[62].mxu1 %v26995_v37 }
0x1764   : > { %35366 = vmatpush3.msra.mxu1 %v27007_v25  ;;  %35367 = vmatprep.mubr.msk.f32.mxu1 %vm38223_vm0, %v38224_v1  ;;  %v28898_v25 = vand.u32 4294901760, %v28897_v36 }
0x1765   : > { %35370 = vmatprep.subr.mxu1 %v38224_v1 }
0x176b   : > { %35368 = vmatmul.mubr.f32.vlgmr.msra.gmra.mrb[62].mxu1 %v26996_v27  ;;  %v40880_v27 = vpack.c.bf16 %v28898_v25, %v28891_v53 }
0x176c   : > { %35371 = vmatpush3.msra.mxu1 %v26930_v15  ;;  %35372 = vmatprep.mubr.msk.f32.mxu1 %vm38223_vm0, %v38224_v1 }
0x176d   : > { %35375 = vmatprep.subr.mxu1 %v38224_v1 }
0x1773   : > { %35373 = vmatmul.mubr.f32.vlgmr.msra.gmra.mrb[62].mxu1 %v26997_v38  ;;  %v19935_v38 = vld [vmem:[#allocation7 + $0x40] sm:$0xff] }
0x1774   : > { %35376 = vmatpush3.msra.mxu1 %v27008_v41  ;;  %35377 = vmatprep.mubr.msk.f32.mxu1 %vm38223_vm0, %v38224_v1  ;;  %v28312_v63 = vand.u32 4294901760, %v19935_v38 }
0x1775   : > { %35380 = vmatprep.subr.mxu1 %v38224_v1 }
0x1776   : > { %v40882_v48 = vpack.c.bf16 %v28315_v47, %v28312_v63 }
0x1778   : > { %36659 = vmatpush3.bf16.msra.mxu0 %v40882_v48 }
0x1779   : > { %36660 = vmatprep.subr.bf16.mxu0 %v38222_v0 }
0x177b   : > { %35378 = vmatmul.mubr.f32.vlgmr.msra.gmra.mrb[62].mxu1 %v26995_v37 }
0x177c   : > { %35381 = vmatpush3.msra.mxu1 %v26930_v15  ;;  %35382 = vmatprep.mubr.msk.f32.mxu1 %vm38223_vm0, %v38224_v1 }
0x177d   : > { %35415 = vmatprep.subr.mxu1 %v38224_v1 }
0x1783   : > { %v40821_v61 = vpop.f32.mrb[56].mxu1  ;;  %35383 = vmatmul.mubr.f32.vlgmr.msra.gmra.mrb[62].mxu1 %v26995_v37  ;;  %v28911_v37 = vsub.f32 %v40869_v29, %v28910_v23 }
0x1784   : > { %35416 = vmatpush3.msra.mxu1 %v27848_v57  ;;  %v35204_v33 = vpop.f32.mrb[57].mxu1  ;;  %35417 = vmatprep.mubr.msk.f32.mxu1 %vm38223_vm0, %v38224_v1 }
0x1785   : > { %35420 = vmatprep.subr.mxu1 %v38224_v1  ;;  %v28912_v59 = vand.u32 4294901760, %v28911_v37  ;;  %v40886_v33 = vsub.f32 %v19936_v45, %v28315_v47 }
0x1790   : > { %v27838_v34 = vpop.xlane.xlu1 %27837 }
0x1791   : > { %37989 = vrcp.f32 %v27838_v34 }
0x179b   : > { %v37990_v24 = vpop.eup %37989 }
0x179c   : > { %v27840_v60 = vmul.f32 %v37990_v24, %v40758_v17  ;;  %v31912_v17 = vld [vmem:[%s41902_s12 + $0x1] ss:$0 sm:$0xff]  ;;  %v19937_v24 = vld [vmem:[#allocation7 + $0x50] sm:$0xff] }
0x179e   : > { %v27845_v5 = vsel %vm2162_vm3, %v27840_v60, 0  ;;  %v28318_v60 = vand.u32 4294901760, %v19937_v24 }
0x179f   : > { %v27913_v11 = vand.u32 4294901760, %v27845_v5 }
0x17a1   : > { %v27914_v54 = vsub.f32 %v27845_v5, %v27913_v11 }
0x17a3   : > { %v27915_v49 = vand.u32 4294901760, %v27914_v54 }
0x17a5   : > { %v27916_v3 = vsub.f32 %v27914_v54, %v27915_v49 }
0x17a7   : > { %v27917_v10 = vand.u32 4294901760, %v27916_v3 }
0x17a9   : > { %35418 = vmatmul.mubr.f32.vlgmr.msra.gmra.mrb[64].mxu1 %v27917_v10 }
0x17aa   : > { %35421 = vmatpush3.msra.mxu1 %v27928_v14  ;;  %35422 = vmatprep.mubr.msk.f32.mxu1 %vm38223_vm0, %v38224_v1 }
0x17ab   : > { %35425 = vmatprep.subr.mxu1 %v38224_v1 }
0x17b1   : > { %35423 = vmatmul.mubr.f32.vlgmr.msra.gmra.mrb[64].mxu1 %v27913_v11 }
0x17b2   : > { %35426 = vmatpush3.msra.mxu1 %v27925_v62  ;;  %35427 = vmatprep.mubr.msk.f32.mxu1 %vm38223_vm0, %v38224_v1  ;;  %v19938_v62 = vld [vmem:[#allocation7 + $0x58] sm:$0xff] }
0x17b3   : > { %35430 = vmatprep.subr.mxu1 %v38224_v1  ;;  %v28321_v5 = vand.u32 4294901760, %v19938_v62 }
0x17b5   : > { %v40898_v56 = vsub.f32 %v19938_v62, %v28321_v5 }
0x17b9   : > { %35428 = vmatmul.mubr.f32.vlgmr.msra.gmra.mrb[64].mxu1 %v27914_v54  ;;  %v40894_v54 = vpack.c.bf16 %v28321_v5, %v28318_v60  ;;  %v29313_v5 = vld [vmem:[#allocation10 + $0x20] sm:$0xff] }
0x17ba   : > { %35431 = vmatpush3.msra.mxu1 %v27848_v57  ;;  %35432 = vmatprep.mubr.msk.f32.mxu1 %vm38223_vm0, %v38224_v1 }
0x17bb   : > { %35435 = vmatprep.subr.mxu1 %v38224_v1  ;;  %36662 = vmatpush3.bf16.msra.mxu0 %v40894_v54 }
0x17bc   : > { %36663 = vmatprep.subr.bf16.mxu0 %v38222_v0 }
0x17c1   : > { %35433 = vmatmul.mubr.f32.vlgmr.msra.gmra.mrb[64].mxu1 %v27915_v49  ;;  %v40896_v49 = vsub.f32 %v19937_v24, %v28318_v60 }
0x17c2   : > { %35436 = vmatpush3.msra.mxu1 %v27926_v12  ;;  %35437 = vmatprep.mubr.msk.f32.mxu1 %vm38223_vm0, %v38224_v1  ;;  %v28400_v12 = vand.u32 4294901760, %v40886_v33 }
0x17c3   : > { %35440 = vmatprep.subr.mxu1 %v38224_v1  ;;  %v28407_v14 = vand.u32 4294901760, %v40896_v49 }
0x17c4   : > { %v28401_v10 = vsub.f32 %v40886_v33, %v28400_v12 }
0x17c9   : > { %35438 = vmatmul.mubr.f32.vlgmr.msra.gmra.mrb[64].mxu1 %v27913_v11 }
0x17ca   : > { %35441 = vmatpush3.msra.mxu1 %v27848_v57  ;;  %35442 = vmatprep.mubr.msk.f32.mxu1 %vm38223_vm0, %v38224_v1  ;;  %v40884_v57 = vsub.f32 %v19935_v38, %v28312_v63 }
0x17cb   : > { %36693 = vmatprep.subr.bf16.mxu1 %v38222_v0 }
0x17cc   : > { %v36670_v6 = vpack.c.bf16 %v40886_v33, %v40884_v57 }
0x17d1   : > { %35443 = vmatmul.mubr.f32.vlgmr.msra.gmra.mrb[64].mxu1 %v27913_v11  ;;  %v28393_v11 = vand.u32 4294901760, %v40884_v57 }
0x17d2   : > { %35519 = vmatprep.mubr.msk.f32.mxu1 %vm38223_vm0, %v38224_v1  ;;  %36695 = vmatpush3.bf16.msra.mxu1 %v40855_v7 }
0x17d3   : > { %36696 = vmatprep.subr.bf16.mxu1 %v38222_v0  ;;  %v28394_v3 = vsub.f32 %v40884_v57, %v28393_v11  ;;  %v40920_v4 = vpack.c.bf16 %v28400_v12, %v28393_v11  ;;  %v29314_v11 = vld [vmem:[#allocation10 + $0x28] sm:$0xff]  ;;  %v29357_v12 = vand.u32 4294901760, %v29313_v5 }
0x17fe   : > { %v40845_v19 = vpop.f32.mrb[58].mxu1 }
0x17ff   : > { %v35264_v22 = vpop.f32.mrb[59].mxu1 }
0x1800   : > { %v28414_v22 = vand.u32 4294901760, %v40898_v56 }
0x182a   : > { %v26453_v55 = vpop.f32.mrb[60].mxu1 }
0x182b   : > { %v35324_v51 = vpop.f32.mrb[61].mxu1  ;;  %28294 = vrot.lane.b32.xlu1 %v26453_v55, %s41906_s15  ;;  %v28395_v55 = vand.u32 4294901760, %v28394_v3 }
0x182c   : > { %v28402_v51 = vand.u32 4294901760, %v28401_v10 }
0x182f   : > { %19907 = vrot.lane.b32.xlu1 %v40394_v39, %s41907_s26  ;;  %v19944_v39 = vld [vmem:[#allocation9 + $0x50] sm:$0xff] }
0x1830   : > { %v28814_v26 = vand.u32 4294901760, %v19944_v39 }
0x1832   : > { %v40865_v16 = vpack.c.bf16 %v28817_v2, %v28814_v26  ;;  %v40867_v28 = vsub.f32 %v19944_v39, %v28814_v26  ;;  %v40922_v26 = vpack.c.bf16 %v28414_v22, %v28407_v14 }
0x1833   : > { %19916 = vrot.lane.b32.xlu1 %v31912_v17, %s41907_s26 }
0x1834   : > { %36698 = vmatpush3.bf16.msra.mxu1 %v40865_v16  ;;  %v28903_v15 = vand.u32 4294901760, %v40867_v28  ;;  %v36709_v17 = vpack.c.bf16 %v40869_v29, %v40867_v28 }
0x1835   : > { %36699 = vmatprep.subr.bf16.mxu1 %v38222_v0 }
0x1836   : > { %v28904_v52 = vsub.f32 %v40867_v28, %v28903_v15  ;;  %v36721_v39 = vpack.c.bf16 %v28910_v23, %v28903_v15 }
0x1838   : > { %v28905_v40 = vand.u32 4294901760, %v28904_v52 }
0x183a   : > { %v36703_v34 = vpack.c.bf16 %v28912_v59, %v28905_v40 }
0x1856   : > { %v27371_v13 = vpop.f32.mrb[62].mxu1 }
0x1857   : > { %28298 = vrot.lane.b32.xlu0 %v27371_v13, %s41903_s21  ;;  %v35384_v35 = vpop.f32.mrb[63].mxu1  ;;  %v28408_v13 = vsub.f32 %v40896_v49, %v28407_v14 }
0x1858   : > { %v36664_v35 = vpack.c.bf16 %v28402_v51, %v28395_v55  ;;  %v29315_v51 = vld [vmem:[#allocation10 + $0x30] sm:$0xff] }
0x1859   : > { %v28409_v42 = vand.u32 4294901760, %v28408_v13 }
0x189d   : > { %v28295_v2 = vpop.permute.xlu1 %28294 }
0x18a4   : > { %v28289_v32 = vpop.f32.mrb[64].mxu1 }
0x18a5   : > { %28302 = vrot.lane.b32.xlu0 %v28289_v32, %s41904_s23  ;;  %v35444_v41 = vpop.f32.mrb[65].mxu1 }
0x18a9   : > { %24609 = vrot.lane.b32.xlu0 %v40779_v18, %s41906_s15  ;;  %v36706_v18 = vpack.c.bf16 %v40859_v8, %v40857_v21  ;;  %v36673_v21 = vpack.c.bf16 %v40898_v56, %v40896_v49  ;;  %v36718_v8 = vpack.c.bf16 %v28896_v9, %v28889_v31 }
0x18ad   : > { %24613 = vrot.lane.b32.xlu0 %v40801_v46, %s41903_s21  ;;  %v28415_v46 = vsub.f32 %v40898_v56, %v28414_v22  ;;  %v41019_v22 = vsub.f32 %v29313_v5, %v29357_v12 }
0x18af   : > { %v28416_v43 = vand.u32 4294901760, %v28415_v46  ;;  %v29363_v46 = vand.u32 4294901760, %v29315_v51 }
0x18b1   : > { %24617 = vrot.lane.b32.xlu0 %v40821_v61, %s41904_s23  ;;  %v36667_v50 = vpack.c.bf16 %v28416_v43, %v28409_v42  ;;  %v28305_v61 = vsel %vm2162_vm3, %v40845_v19, %v28295_v2  ;;  %v31911_v2 = vld [vmem:[%s41848_s8 + $0x1] ss:$0 sm:$0xff] }
0x18c9   : > { %v28299_v28 = vpop.permute.xlu0 %28298 }
0x18ca   : > { %v28306_v29 = vsel %vm5845_vm4, %v28305_v61, %v28299_v28 }
0x1917   : > { %v28303_v44 = vpop.permute.xlu0 %28302 }
0x1918   : > { %v28307_v36 = vsel %vm5847_vm5, %v28306_v29, %v28303_v44 }
0x1919   : > { %v28805_v53 = vsel %vm1175_vm2, %v28307_v36, 0 }
0x191a   : > { %v40929_v25 = vand.u32 4294901760, %v28805_v53 }
0x191b   : > { %v24610_v31 = vpop.permute.xlu0 %24609 }
0x191c   : > { %v28877_v9 = vsub.f32 %v28805_v53, %v40929_v25  ;;  %v24620_v52 = vsel %vm2162_vm3, %v40756_v30, %v24610_v31  ;;  %v31919_v31 = vld [vmem:[%s41848_s8 + $0x2] ss:$0 sm:$0xff] }
0x191e   : > { %v28878_v15 = vand.u32 4294901760, %v28877_v9 }
0x191f   : > { %v24614_v23 = vpop.permute.xlu0 %24613 }
0x1920   : > { %v28879_v32 = vsub.f32 %v28877_v9, %v28878_v15  ;;  %v24621_v19 = vsel %vm5845_vm4, %v24620_v52, %v24614_v23 }
0x1922   : > { %v28880_v37 = vand.u32 4294901760, %v28879_v32  ;;  %v29458_v32 = vand.u32 4294901760, %v41019_v22 }
0x1923   : > { %v24618_v41 = vpop.permute.xlu0 %24617 }
0x1924   : > { %v24622_v38 = vsel %vm5847_vm5, %v24621_v19, %v24618_v41  ;;  %35520 = vmatmul.mubr.f32.vlgmr.msra.gmra.mrb[66].mxu1 %v28880_v37  ;;  %v29459_v41 = vsub.f32 %v41019_v22, %v29458_v32 }
0x1925   : > { %v28309_v45 = vsel %vm1175_vm2, %v24622_v38, 0  ;;  %36701 = vmatpush3.bf16.msra.mxu1 %v40880_v27  ;;  %35530 = vmatprep.mubr.msk.f32.mxu1 %vm38223_vm0, %v38224_v1 }
0x1926   : > { %v40940_v63 = vand.u32 4294901760, %v28309_v45  ;;  %36702 = vmatprep.subr.bf16.mxu1 %v38222_v0 }
0x1928   : > { %v28381_v30 = vsub.f32 %v28309_v45, %v40940_v63 }
0x1929   : > { %36704 = vmatpush3.bf16.msra.mxu1 %v36703_v34  ;;  %v29312_v34 = vld [vmem:[#allocation10 + $0x18] sm:$0xff] }
0x192a   : > { %v28382_v47 = vand.u32 4294901760, %v28381_v30  ;;  %36705 = vmatprep.subr.bf16.mxu1 %v38222_v0  ;;  %v29354_v62 = vand.u32 4294901760, %v29312_v34 }
0x192c   : > { %35531 = vmatmul.mubr.f32.vlgmr.msra.gmra.mrb[66].mxu1 %v40929_v25  ;;  %v28383_v40 = vsub.f32 %v28381_v30, %v28382_v47  ;;  %v41017_v14 = vsub.f32 %v29312_v34, %v29354_v62 }
0x192d   : > { %36707 = vmatpush3.bf16.msra.mxu1 %v36706_v18  ;;  %35541 = vmatprep.mubr.msk.f32.mxu1 %vm38223_vm0, %v38224_v1 }
0x192e   : > { %v28384_v27 = vand.u32 4294901760, %v28383_v40  ;;  %36708 = vmatprep.subr.bf16.mxu1 %v38222_v0  ;;  %v29451_v29 = vand.u32 4294901760, %v41017_v14 }
0x1930   : > { %35454 = vmatmul.mubr.f32.vlgmr.msra.gmra.mrb[42].mxu0 %v28384_v27 }
0x1931   : > { %36665 = vmatpush3.bf16.msra.mxu0 %v36664_v35  ;;  %36710 = vmatpush3.bf16.msra.mxu1 %v36709_v17  ;;  %v29316_v17 = vld [vmem:[#allocation10 + $0x38] sm:$0xff] }
0x1932   : > { %36666 = vmatprep.subr.bf16.mxu0 %v38222_v0  ;;  %36711 = vmatprep.subr.bf16.mxu1 %v38222_v0  ;;  %v29366_v35 = vand.u32 4294901760, %v29316_v17 }
0x1933   : > { %35464 = vmatprep.mubr.msk.f32.mxu0 %vm38223_vm0, %v38224_v1 }
0x1934   : > { %35542 = vmatmul.mubr.f32.vlgmr.msra.gmra.mrb[66].mxu1 %v28877_v9 }
0x1935   : > { %36668 = vmatpush3.bf16.msra.mxu0 %v36667_v50  ;;  %36713 = vmatpush3.bf16.msra.mxu1 %v40855_v7  ;;  %v31920_v50 = vld [vmem:[%s41902_s12 + $0x2] ss:$0 sm:$0xff] }
0x1936   : > { %36669 = vmatprep.subr.bf16.mxu0 %v38222_v0  ;;  %36714 = vmatprep.subr.bf16.mxu1 %v38222_v0 }
0x1937   : > { %35552 = vmatprep.mubr.msk.f32.mxu1 %vm38223_vm0, %v38224_v1 }
0x1938   : > { %35465 = vmatmul.mubr.f32.vlgmr.msra.gmra.mrb[42].mxu0 %v40940_v63 }
0x1939   : > { %36671 = vmatpush3.bf16.msra.mxu0 %v36670_v6  ;;  %36716 = vmatpush3.bf16.msra.mxu1 %v40865_v16  ;;  %v41031_v6 = vld [vmem:[%s38554_s16] sm:$0xff]  ;;  %s591_s16 = scalar_lea.vmem %s41923_s20, %s41922_s14 }
0x193a   : > { %36672 = vmatprep.subr.bf16.mxu0 %v38222_v0  ;;  %36717 = vmatprep.subr.bf16.mxu1 %v38222_v0 }
0x193b   : > { %35475 = vmatprep.mubr.msk.f32.mxu0 %vm38223_vm0, %v38224_v1 }
0x193c   : > { %35553 = vmatmul.mubr.f32.vlgmr.msra.gmra.mrb[66].mxu1 %v28878_v15 }
0x193d   : > { %36674 = vmatpush3.bf16.msra.mxu0 %v36673_v21  ;;  %36719 = vmatpush3.bf16.msra.mxu1 %v36718_v8  ;;  %v37166_v21 = vadd.f32 %v41031_v6, %v39466_v20  ;;  %v41036_v8 = vpack.c.bf16 %v29366_v35, %v29363_v46 }
0x193e   : > { %36675 = vmatprep.subr.bf16.mxu0 %v38222_v0  ;;  %36720 = vmatprep.subr.bf16.mxu1 %v38222_v0 }
0x193f   : > { %35563 = vmatprep.mubr.msk.f32.mxu1 %vm38223_vm0, %v38224_v1  ;;  %v37167_v36 = vadd.f32 %v37166_v21, %v31911_v2  ;;  %v29320_v21 = vld [vmem:[#allocation12 + $0x10] sm:$0xff] }
0x1940   : > { %35476 = vmatmul.mubr.f32.vlgmr.msra.gmra.mrb[42].mxu0 %v28381_v30 }
0x1941   : > { %36677 = vmatpush3.bf16.msra.mxu0 %v40882_v48  ;;  %36722 = vmatpush3.bf16.msra.mxu1 %v36721_v39  ;;  %v41038_v39 = vsub.f32 %v29315_v51, %v29363_v46  ;;  %v37168_v37 = vadd.f32 %v37167_v36, %v31919_v31  ;;  %v29319_v46 = vld [vmem:[#allocation12 + $0x8] sm:$0xff] }
0x1942   : > { %36678 = vmatprep.subr.bf16.mxu0 %v38222_v0  ;;  %36723 = vmatprep.subr.bf16.mxu1 %v38222_v0  ;;  %v29323_v36 = vld [vmem:[#allocation12 + $0x28] sm:$0xff] }
0x1943   : > { %35486 = vmatprep.mubr.msk.f32.mxu0 %vm38223_vm0, %v38224_v1  ;;  %v29472_v27 = vand.u32 4294901760, %v41038_v39  ;;  %v29904_v31 = vand.u32 4294901760, %v29323_v36 }
0x1944   : > { %35564 = vmatmul.mubr.f32.vlgmr.msra.gmra.mrb[66].mxu1 %v40929_v25 }
0x1945   : > { %36680 = vmatpush3.bf16.msra.mxu0 %v40894_v54  ;;  %36725 = vmatpush3.bf16.msra.mxu1 %v40855_v7  ;;  %v29309_v7 = vld [vmem:[#allocation10] sm:$0xff] }
0x1946   : > { %36681 = vmatprep.subr.bf16.mxu0 %v38222_v0  ;;  %36726 = vmatprep.subr.bf16.mxu1 %v38222_v0  ;;  %v29345_v59 = vand.u32 4294901760, %v29309_v7 }
0x1947   : > { %35574 = vmatprep.mubr.msk.f32.mxu1 %vm38223_vm0, %v38224_v1 }
0x1948   : > { %35487 = vmatmul.mubr.f32.vlgmr.msra.gmra.mrb[42].mxu0 %v28382_v47  ;;  %v41009_v49 = vsub.f32 %v29309_v7, %v29345_v59  ;;  %v29460_v47 = vand.u32 4294901760, %v29459_v41 }
0x1949   : > { %36683 = vmatpush3.bf16.msra.mxu0 %v40920_v4  ;;  %36728 = vmatpush3.bf16.msra.mxu1 %v40865_v16  ;;  %v29310_v16 = vld [vmem:[#allocation10 + $0x8] sm:$0xff]  ;;  %v41040_v4 = vsub.f32 %v29316_v17, %v29366_v35 }
0x194a   : > { %36684 = vmatprep.subr.bf16.mxu0 %v38222_v0  ;;  %35497 = vmatprep.mubr.msk.f32.mxu0 %vm38223_vm0, %v38224_v1  ;;  %v29348_v57 = vand.u32 4294901760, %v29310_v16  ;;  %v29430_v42 = vand.u32 4294901760, %v41009_v49 }
0x194b   : > { %36801 = vmatprep.subr.bf16.mxu1 %v38222_v0  ;;  %v29479_v7 = vand.u32 4294901760, %v41040_v4 }
0x194c   : > { %35575 = vmatmul.mubr.f32.vlgmr.msra.gmra.mrb[66].mxu1 %v40929_v25  ;;  %v41001_v33 = vpack.c.bf16 %v29348_v57, %v29345_v59  ;;  %v41011_v56 = vsub.f32 %v29310_v16, %v29348_v57  ;;  %v29452_v25 = vsub.f32 %v41017_v14, %v29451_v29  ;;  %v29473_v59 = vsub.f32 %v41038_v39, %v29472_v27 }
0x194d   : > { %36686 = vmatpush3.bf16.msra.mxu0 %v40922_v26  ;;  %35723 = vmatprep.mubr.msk.f32.mxu1 %vm38223_vm0, %v38224_v1  ;;  %v29431_v26 = vsub.f32 %v41009_v49, %v29430_v42  ;;  %v29480_v57 = vsub.f32 %v41040_v4, %v29479_v7  ;;  %v41089_v17 = vpack.c.bf16 %v29479_v7, %v29472_v27 }
0x194e   : > { %36687 = vmatprep.subr.bf16.mxu0 %v38222_v0  ;;  %v29437_v43 = vand.u32 4294901760, %v41011_v56  ;;  %v29453_v23 = vand.u32 4294901760, %v29452_v25 }
0x194f   : > { %v29432_v20 = vand.u32 4294901760, %v29431_v26  ;;  %v29481_v34 = vand.u32 4294901760, %v29480_v57  ;;  %v29321_v26 = vld [vmem:[#allocation12 + $0x18] sm:$0xff] }
0x1950   : > { %35498 = vmatmul.mubr.f32.vlgmr.msra.gmra.mrb[42].mxu0 %v40940_v63  ;;  %v29438_v28 = vsub.f32 %v41011_v56, %v29437_v43 }
0x1951   : > { %36689 = vmatpush3.bf16.msra.mxu0 %v40882_v48  ;;  %35508 = vmatprep.mubr.msk.f32.mxu0 %vm38223_vm0, %v38224_v1  ;;  %v29311_v48 = vld [vmem:[#allocation10 + $0x10] sm:$0xff] }
0x1952   : > { %36690 = vmatprep.subr.bf16.mxu0 %v38222_v0  ;;  %v29351_v24 = vand.u32 4294901760, %v29311_v48  ;;  %v29439_v44 = vand.u32 4294901760, %v29438_v28 }
0x1954   : > { %v41005_v60 = vpack.c.bf16 %v29354_v62, %v29351_v24  ;;  %v41015_v10 = vsub.f32 %v29311_v48, %v29351_v24  ;;  %v41057_v9 = vpack.c.bf16 %v29439_v44, %v29432_v20  ;;  %v29474_v48 = vand.u32 4294901760, %v29473_v59  ;;  %v29322_v44 = vld [vmem:[#allocation12 + $0x20] sm:$0xff] }
0x1955   : > { %36692 = vmatpush3.bf16.msra.mxu0 %v40894_v54  ;;  %v29360_v54 = vand.u32 4294901760, %v29314_v11  ;;  %v36754_v62 = vpack.c.bf16 %v41011_v56, %v41009_v49  ;;  %v29901_v25 = vand.u32 4294901760, %v29322_v44 }
0x1956   : > { %36729 = vmatprep.subr.bf16.mxu0 %v38222_v0  ;;  %v29444_v61 = vand.u32 4294901760, %v41015_v10  ;;  %v41073_v24 = vpack.c.bf16 %v29481_v34, %v29474_v48  ;;  %v36757_v5 = vpack.c.bf16 %v41017_v14, %v41015_v10  ;;  %v29328_v34 = vld [vmem:[#allocation12 + $0x50] sm:$0xff] }
0x1957   : > { %v41013_v18 = vpack.c.bf16 %v29360_v54, %v29357_v12  ;;  %v41021_v55 = vsub.f32 %v29314_v11, %v29360_v54  ;;  %v36763_v12 = vpack.c.bf16 %v41040_v4, %v41038_v39  ;;  %v41083_v54 = vpack.c.bf16 %v29437_v43, %v29430_v42 }
0x1958   : > { %35509 = vmatmul.mubr.f32.vlgmr.msra.gmra.mrb[42].mxu0 %v40940_v63  ;;  %v29445_v53 = vsub.f32 %v41015_v10, %v29444_v61  ;;  %v29895_v42 = vand.u32 4294901760, %v29320_v21  ;;  %v29898_v43 = vand.u32 4294901760, %v29321_v26  ;;  %v29333_v10 = vld [vmem:[#allocation12 + $0x78] sm:$0xff] }
0x1959   : > { %35593 = vmatprep.mubr.msk.f32.mxu0 %vm38223_vm0, %v38224_v1  ;;  %36731 = vmatpush3.bf16.msra.mxu0 %v41001_v33  ;;  %v29465_v52 = vand.u32 4294901760, %v41021_v55  ;;  %v36760_v11 = vpack.c.bf16 %v41021_v55, %v41019_v22  ;;  %v29934_v22 = vand.u32 4294901760, %v29333_v10 }
0x195a   : > { %36732 = vmatprep.subr.bf16.mxu0 %v38222_v0  ;;  %v29446_v15 = vand.u32 4294901760, %v29445_v53  ;;  %v41103_v53 = vpack.c.bf16 %v29898_v43, %v29895_v42 }
0x195b   : > { %v29466_v38 = vsub.f32 %v41021_v55, %v29465_v52  ;;  %v41087_v51 = vpack.c.bf16 %v29465_v52, %v29458_v32  ;;  %v29324_v32 = vld [vmem:[#allocation12 + $0x30] sm:$0xff]  ;;  %v29325_v52 = vld [vmem:[#allocation12 + $0x38] sm:$0xff] }
0x195c   : > { %v41061_v19 = vpack.c.bf16 %v29453_v23, %v29446_v15  ;;  %v41106_v15 = vsub.f32 %v29322_v44, %v29901_v25  ;;  %v41108_v23 = vsub.f32 %v29323_v36, %v29904_v31  ;;  %v29907_v41 = vand.u32 4294901760, %v29324_v32 }
0x195d   : > { %36734 = vmatpush3.bf16.msra.mxu0 %v41005_v60  ;;  %v29467_v40 = vand.u32 4294901760, %v29466_v38  ;;  %v29910_v38 = vand.u32 4294901760, %v29325_v52 }
0x195e   : > { %36735 = vmatprep.subr.bf16.mxu0 %v38222_v0 }
0x195f   : > { %v41069_v16 = vpack.c.bf16 %v29467_v40, %v29460_v47  ;;  %v29326_v47 = vld [vmem:[#allocation12 + $0x40] sm:$0xff]  ;;  %v29327_v40 = vld [vmem:[#allocation12 + $0x48] sm:$0xff]  ;;  %v41119_v27 = vpack.c.bf16 %v29910_v38, %v29907_v41 }
0x1960   : > { %v29913_v7 = vand.u32 4294901760, %v29326_v47  ;;  %v29916_v59 = vand.u32 4294901760, %v29327_v40 }
0x1961   : > { %36737 = vmatpush3.bf16.msra.mxu0 %v41013_v18 }
0x1962   : > { %36738 = vmatprep.subr.bf16.mxu0 %v38222_v0  ;;  %v41122_v57 = vsub.f32 %v29326_v47, %v29913_v7  ;;  %v41124_v48 = vsub.f32 %v29327_v40, %v29916_v59 }
0x1965   : > { %36740 = vmatpush3.bf16.msra.mxu0 %v41036_v8 }
0x1966   : > { %36741 = vmatprep.subr.bf16.mxu0 %v38222_v0 }
0x1a1f   : > { %v29288_v3 = vpop.f32.mrb[66].mxu1 }
0x1a20   : > { %29293 = vrot.lane.b32.xlu0 %v29288_v3, %s41907_s26  ;;  %v35576_v13 = vpop.f32.mrb[67].mxu1  ;;  %v41085_v3 = vpack.c.bf16 %v29451_v29, %v29444_v61  ;;  %v41098_v61 = vsub.f32 %v29320_v21, %v29895_v42  ;;  %v41100_v29 = vsub.f32 %v29321_v26, %v29898_v43  ;;  %v19908_v42 = vpop.permute.xlu1 %19907 }
0x1a21   : > { %v29318_v13 = vld [vmem:[#allocation12] sm:$0xff] }
0x1a22   : > { %v29889_v35 = vand.u32 4294901760, %v29318_v13 }
0x1a24   : > { %29302 = vrot.lane.b32.xlu0 %v31920_v50, %s41907_s26  ;;  %v29892_v50 = vand.u32 4294901760, %v29319_v46  ;;  %v41093_v28 = vsub.f32 %v29318_v13, %v29889_v35  ;;  %v29329_v13 = vld [vmem:[#allocation12 + $0x58] sm:$0xff]  ;;  %v19917_v36 = vpop.permute.xlu1 %19916 }
0x1a26   : > { %v41091_v2 = vpack.c.bf16 %v29892_v50, %v29889_v35  ;;  %v41095_v20 = vsub.f32 %v29319_v46, %v29892_v50  ;;  %v41127_v46 = vpack.c.bf16 %v29916_v59, %v29913_v7  ;;  %v29919_v35 = vand.u32 4294901760, %v29328_v34 }
0x1a27   : > { %v29922_v50 = vand.u32 4294901760, %v29329_v13 }
0x1a28   : > { %36803 = vmatpush3.bf16.msra.mxu1 %v41091_v2  ;;  %v41130_v21 = vsub.f32 %v29328_v34, %v29919_v35  ;;  %v29989_v39 = vand.u32 4294901760, %v41095_v20 }
0x1a29   : > { %36804 = vmatprep.subr.bf16.mxu1 %v38222_v0  ;;  %v41132_v26 = vsub.f32 %v29329_v13, %v29922_v50  ;;  %v41135_v43 = vpack.c.bf16 %v29922_v50, %v29919_v35 }
0x1a2b   : > { %v28792_v45 = vpop.f32.mrb[42].mxu0 }
0x1a2c   : > { %v41065_v63 = vadd.f32 %v37168_v37, %v28792_v45  ;;  %v35510_v30 = vpop.f32.mrb[43].mxu0  ;;  %36806 = vmatpush3.bf16.msra.mxu1 %v41103_v53  ;;  %v41111_v37 = vpack.c.bf16 %v29904_v31, %v29901_v25  ;;  %v41114_v45 = vsub.f32 %v29324_v32, %v29907_v41  ;;  %v19910_v25 = vadd.f32 %v19908_v42, %v39561_v58  ;;  %v29330_v58 = vld [vmem:[#allocation12 + $0x60] sm:$0xff] }
0x1a2d   : > { %36807 = vmatprep.subr.bf16.mxu1 %v38222_v0  ;;  %v41116_v30 = vsub.f32 %v29325_v52, %v29910_v38  ;;  %v30010_v42 = vand.u32 4294901760, %v41106_v15 }
0x1a2e   : > { %v19919_v52 = vadd.f32 %v19917_v36, %v19910_v25 }
0x1a2f   : > { %v30011_v25 = vsub.f32 %v41106_v15, %v30010_v42 }
0x1a30   : > { %36809 = vmatpush3.bf16.msra.mxu1 %v41111_v37 }
0x1a31   : > { %36810 = vmatprep.subr.bf16.mxu1 %v38222_v0 }
0x1a34   : > { %36812 = vmatpush3.bf16.msra.mxu1 %v41119_v27 }
0x1a35   : > { %36813 = vmatprep.subr.bf16.mxu1 %v38222_v0 }
0x1a38   : > { %36815 = vmatpush3.bf16.msra.mxu1 %v41127_v46 }
0x1a39   : > { %36816 = vmatprep.subr.bf16.mxu1 %v38222_v0 }
0x1a3c   : > { %36818 = vmatpush3.bf16.msra.mxu1 %v41135_v43 }
0x1a3d   : > { %36819 = vmatprep.subr.bf16.mxu1 %v38222_v0 }
0x1a92   : > { %v29294_v44 = vpop.permute.xlu0 %29293 }
0x1a93   : > { %v29296_v31 = vadd.f32 %v41031_v6, %v29294_v44  ;;  %v30017_v44 = vand.u32 4294901760, %v41108_v23 }
0x1a96   : > { %v29303_v32 = vpop.permute.xlu0 %29302 }
0x1a97   : > { %v29305_v41 = vadd.f32 %v29303_v32, %v29296_v31  ;;  %v30018_v31 = vsub.f32 %v41108_v23, %v30017_v44  ;;  %v30012_v32 = vand.u32 4294901760, %v30011_v25 }
0x1a99   : > { %v29307_v38 = vadd.f32 %v29305_v41, %v19919_v52  ;;  %v30019_v52 = vand.u32 4294901760, %v30018_v31  ;;  %v30024_v41 = vand.u32 4294901760, %v41114_v45 }
0x1a9b   : > { %v41143_v47 = vsel %vm1175_vm2, %v41065_v63, %v29307_v38  ;;  %v30031_v38 = vand.u32 4294901760, %v41116_v30 }
0x1a9c   : > { %v29342_v40 = vsel %vm608_vm1, %v41143_v47, 0 }
0x1a9d   : > { %v29417_v7 = vand.u32 4294901760, %v29342_v40 }
0x1a9f   : > { %v29418_v59 = vsub.f32 %v29342_v40, %v29417_v7  ;;  %v41269_v40 = vpack.c.bf16 %v30019_v52, %v30012_v32 }
0x1aa1   : > { %v29419_v34 = vand.u32 4294901760, %v29418_v59 }
0x1aa3   : > { %v29420_v13 = vsub.f32 %v29418_v59, %v29419_v34 }
0x1aa5   : > { %v29421_v35 = vand.u32 4294901760, %v29420_v13 }
0x1aa7   : > { %35594 = vmatmul.mubr.f32.vlgmr.msra.gmra.mrb[62].mxu0 %v29421_v35  ;;  %v30038_v35 = vand.u32 4294901760, %v41122_v57 }
0x1aa8   : > { %36743 = vmatpush3.bf16.msra.mxu0 %v41057_v9  ;;  %35612 = vmatprep.mubr.msk.f32.mxu0 %vm38223_vm0, %v38224_v1  ;;  %v29990_v9 = vsub.f32 %v41095_v20, %v29989_v39 }
0x1aa9   : > { %36744 = vmatprep.subr.bf16.mxu0 %v38222_v0 }
0x1aac   : > { %36746 = vmatpush3.bf16.msra.mxu0 %v41061_v19 }
0x1aad   : > { %36747 = vmatprep.subr.bf16.mxu0 %v38222_v0 }
0x1ab0   : > { %36749 = vmatpush3.bf16.msra.mxu0 %v41069_v16 }
0x1ab1   : > { %36750 = vmatprep.subr.bf16.mxu0 %v38222_v0 }
0x1ab4   : > { %36752 = vmatpush3.bf16.msra.mxu0 %v41073_v24  ;;  %v41245_v24 = vsub.f32 %v29333_v10, %v29934_v22 }
0x1ab5   : > { %36753 = vmatprep.subr.bf16.mxu0 %v38222_v0 }
0x1ab7   : > { %35613 = vmatmul.mubr.f32.vlgmr.msra.gmra.mrb[62].mxu0 %v29417_v7 }
0x1ab8   : > { %36755 = vmatpush3.bf16.msra.mxu0 %v36754_v62  ;;  %35631 = vmatprep.mubr.msk.f32.mxu0 %vm38223_vm0, %v38224_v1 }
0x1ab9   : > { %36756 = vmatprep.subr.bf16.mxu0 %v38222_v0 }
0x1abc   : > { %36758 = vmatpush3.bf16.msra.mxu0 %v36757_v5  ;;  %v29991_v5 = vand.u32 4294901760, %v29990_v9 }
0x1abd   : > { %36759 = vmatprep.subr.bf16.mxu0 %v38222_v0 }
0x1ac0   : > { %36761 = vmatpush3.bf16.msra.mxu0 %v36760_v11  ;;  %v29996_v11 = vand.u32 4294901760, %v41098_v61 }
0x1ac1   : > { %36762 = vmatprep.subr.bf16.mxu0 %v38222_v0 }
0x1ac4   : > { %36764 = vmatpush3.bf16.msra.mxu0 %v36763_v12  ;;  %v30003_v12 = vand.u32 4294901760, %v41100_v29 }
0x1ac5   : > { %36765 = vmatprep.subr.bf16.mxu0 %v38222_v0 }
0x1ac7   : > { %35632 = vmatmul.mubr.f32.vlgmr.msra.gmra.mrb[62].mxu0 %v29418_v59  ;;  %v30032_v59 = vsub.f32 %v41116_v30, %v30031_v38 }
0x1ac8   : > { %36767 = vmatpush3.bf16.msra.mxu0 %v41001_v33  ;;  %35650 = vmatprep.mubr.msk.f32.mxu0 %vm38223_vm0, %v38224_v1 }
0x1ac9   : > { %36768 = vmatprep.subr.bf16.mxu0 %v38222_v0  ;;  %v30033_v13 = vand.u32 4294901760, %v30032_v59  ;;  %v41873_v59 = vand.u32 4294901760, %v41245_v24 }
0x1acc   : > { %36770 = vmatpush3.bf16.msra.mxu0 %v41005_v60 }
0x1acd   : > { %36771 = vmatprep.subr.bf16.mxu0 %v38222_v0 }
0x1ad0   : > { %36773 = vmatpush3.bf16.msra.mxu0 %v41013_v18 }
0x1ad1   : > { %36774 = vmatprep.subr.bf16.mxu0 %v38222_v0 }
0x1ad4   : > { %36776 = vmatpush3.bf16.msra.mxu0 %v41036_v8 }
0x1ad5   : > { %36777 = vmatprep.subr.bf16.mxu0 %v38222_v0 }
0x1ad7   : > { %35651 = vmatmul.mubr.f32.vlgmr.msra.gmra.mrb[62].mxu0 %v29419_v34 }
0x1ad8   : > { %36779 = vmatpush3.bf16.msra.mxu0 %v41083_v54  ;;  %35669 = vmatprep.mubr.msk.f32.mxu0 %vm38223_vm0, %v38224_v1 }
0x1ad9   : > { %36780 = vmatprep.subr.bf16.mxu0 %v38222_v0 }
0x1adc   : > { %36782 = vmatpush3.bf16.msra.mxu0 %v41085_v3  ;;  %v29997_v3 = vsub.f32 %v41098_v61, %v29996_v11 }
0x1add   : > { %36783 = vmatprep.subr.bf16.mxu0 %v38222_v0 }
0x1ae0   : > { %36785 = vmatpush3.bf16.msra.mxu0 %v41087_v51  ;;  %v30004_v51 = vsub.f32 %v41100_v29, %v30003_v12 }
0x1ae1   : > { %36786 = vmatprep.subr.bf16.mxu0 %v38222_v0 }
0x1ae2   : > { %v30005_v50 = vand.u32 4294901760, %v30004_v51 }
0x1ae4   : > { %36788 = vmatpush3.bf16.msra.mxu0 %v41089_v17  ;;  %v29998_v17 = vand.u32 4294901760, %v29997_v3 }
0x1ae5   : > { %36789 = vmatprep.subr.bf16.mxu0 %v38222_v0 }
0x1ae6   : > { %v41259_v36 = vpack.c.bf16 %v30005_v50, %v29998_v17 }
0x1ae7   : > { %35670 = vmatmul.mubr.f32.vlgmr.msra.gmra.mrb[62].mxu0 %v29417_v7 }
0x1ae8   : > { %36791 = vmatpush3.bf16.msra.mxu0 %v41001_v33  ;;  %35688 = vmatprep.mubr.msk.f32.mxu0 %vm38223_vm0, %v38224_v1  ;;  %v29331_v33 = vld [vmem:[#allocation12 + $0x68] sm:$0xff] }
0x1ae9   : > { %36792 = vmatprep.subr.bf16.mxu0 %v38222_v0  ;;  %v29928_v49 = vand.u32 4294901760, %v29331_v33 }
0x1aeb   : > { %v41241_v63 = vsub.f32 %v29331_v33, %v29928_v49 }
0x1aec   : > { %36794 = vmatpush3.bf16.msra.mxu0 %v41005_v60  ;;  %v29925_v60 = vand.u32 4294901760, %v29330_v58 }
0x1aed   : > { %36795 = vmatprep.subr.bf16.mxu0 %v38222_v0  ;;  %v41875_v17 = vand.u32 4294901760, %v41241_v63 }
0x1aee   : > { %v41219_v56 = vpack.c.bf16 %v29928_v49, %v29925_v60  ;;  %v41239_v19 = vsub.f32 %v29330_v58, %v29925_v60  ;;  %v30045_v58 = vand.u32 4294901760, %v41124_v48  ;;  %v30039_v60 = vsub.f32 %v41122_v57, %v30038_v35 }
0x1aef   : > { %v30074_v31 = vsub.f32 %v41241_v63, %v41875_v17 }
0x1af0   : > { %36797 = vmatpush3.bf16.msra.mxu0 %v41013_v18  ;;  %v29332_v18 = vld [vmem:[#allocation12 + $0x70] sm:$0xff]  ;;  %36821 = vmatpush3.bf16.msra.mxu1 %v41219_v56  ;;  %v30046_v49 = vsub.f32 %v41124_v48, %v30045_v58  ;;  %v41876_v51 = vand.u32 4294901760, %v41239_v19 }
0x1af1   : > { %36798 = vmatprep.subr.bf16.mxu0 %v38222_v0  ;;  %v29931_v14 = vand.u32 4294901760, %v29332_v18  ;;  %36822 = vmatprep.subr.bf16.mxu1 %v38222_v0  ;;  %v30075_v52 = vand.u32 4294901760, %v30074_v31  ;;  %v36865_v31 = vpack.c.bf16 %v41132_v26, %v41130_v21 }
0x1af2   : > { %v30047_v10 = vand.u32 4294901760, %v30046_v49  ;;  %v30067_v25 = vsub.f32 %v41239_v19, %v41876_v51 }
0x1af3   : > { %v41225_v55 = vpack.c.bf16 %v29934_v22, %v29931_v14  ;;  %v41243_v16 = vsub.f32 %v29332_v18, %v29931_v14  ;;  %v30040_v18 = vand.u32 4294901760, %v30039_v60  ;;  %v41878_v14 = vand.u32 4294901760, %v41130_v21 }
0x1af4   : > { %36800 = vmatpush3.bf16.msra.mxu0 %v41036_v8  ;;  %v29982_v8 = vand.u32 4294901760, %v41093_v28  ;;  %v41877_v22 = vand.u32 4294901760, %v41132_v26  ;;  %v30068_v32 = vand.u32 4294901760, %v30067_v25  ;;  %v30088_v60 = vsub.f32 %v41245_v24, %v41873_v59 }
0x1af5   : > { %36873 = vmatprep.subr.bf16.mxu0 %v38222_v0  ;;  %36824 = vmatpush3.bf16.msra.mxu1 %v41225_v55  ;;  %v30053_v9 = vsub.f32 %v41130_v21, %v41878_v14  ;;  %v36862_v25 = vpack.c.bf16 %v41124_v48, %v41122_v57  ;;  %v41914_v57 = vand.u32 4294901760, %v41245_v24 }
0x1af6   : > { %36825 = vmatprep.subr.bf16.mxu1 %v38222_v0  ;;  %v29983_v4 = vsub.f32 %v41093_v28, %v29982_v8 }
0x1af7   : > { %35689 = vmatmul.mubr.f32.vlgmr.msra.gmra.mrb[62].mxu0 %v29417_v7  ;;  %v30025_v7 = vsub.f32 %v41114_v45, %v30024_v41 }
0x1af8   : > { %36875 = vmatpush3.bf16.msra.mxu0 %v41091_v2  ;;  %35828 = vmatprep.mubr.msk.f32.mxu0 %vm38223_vm0, %v38224_v1  ;;  %v29984_v62 = vand.u32 4294901760, %v29983_v4  ;;  %v36838_v4 = vpack.c.bf16 %v30047_v10, %v30040_v18  ;;  %v30089_v18 = vand.u32 4294901760, %v30088_v60 }
0x1af9   : > { %36876 = vmatprep.subr.bf16.mxu0 %v38222_v0  ;;  %v30026_v34 = vand.u32 4294901760, %v30025_v7  ;;  %v41874_v7 = vand.u32 4294901760, %v41243_v16 }
0x1afa   : > { %v41249_v54 = vpack.c.bf16 %v29991_v5, %v29984_v62  ;;  %v30060_v62 = vsub.f32 %v41132_v26, %v41877_v22  ;;  %v30054_v5 = vand.u32 4294901760, %v30053_v9  ;;  %v36850_v9 = vpack.c.bf16 %v41095_v20, %v41093_v28 }
0x1afb   : > { %v36835_v33 = vpack.c.bf16 %v30033_v13, %v30026_v34  ;;  %v36844_v34 = vpack.c.bf16 %v30075_v52, %v30068_v32  ;;  %v30081_v13 = vsub.f32 %v41243_v16, %v41874_v7  ;;  %v36868_v32 = vpack.c.bf16 %v41241_v63, %v41239_v19 }
0x1afc   : > { %36878 = vmatpush3.bf16.msra.mxu0 %v41103_v53  ;;  %v30061_v3 = vand.u32 4294901760, %v30060_v62  ;;  %v36853_v62 = vpack.c.bf16 %v41100_v29, %v41098_v61  ;;  %v36871_v52 = vpack.c.bf16 %v41245_v24, %v41243_v16  ;;  %v36904_v28 = vpack.c.bf16 %v30017_v44, %v30010_v42  ;;  %v30537_v24 = vld [vmem:[#allocation10 + $0x68] sm:$0xff] }
0x1afd   : > { %36879 = vmatprep.subr.bf16.mxu0 %v38222_v0  ;;  %v30082_v49 = vand.u32 4294901760, %v30081_v13  ;;  %v31921_v13 = vld [vmem:[%s41908_s22] ss:$0 sm:$0xff]  ;;  %v36907_v20 = vpack.c.bf16 %v30031_v38, %v30024_v41  ;;  %v36910_v61 = vpack.c.bf16 %v30045_v58, %v30038_v35  ;;  %v41909_v29 = vand.u32 4294901760, %v41130_v21  ;;  %v30533_v21 = vld [vmem:[#allocation10 + $0x48] sm:$0xff]  ;;  %v30539_v41 = vld [vmem:[#allocation10 + $0x78] sm:$0xff] }
0x1afe   : > { %v36841_v50 = vpack.c.bf16 %v30061_v3, %v30054_v5  ;;  %v36856_v5 = vpack.c.bf16 %v41108_v23, %v41106_v15  ;;  %v36859_v3 = vpack.c.bf16 %v41116_v30, %v41114_v45  ;;  %v41910_v15 = vand.u32 4294901760, %v41132_v26 }
0x1aff   : > { %v36847_v10 = vpack.c.bf16 %v30089_v18, %v30082_v49  ;;  %v41912_v45 = vand.u32 4294901760, %v41241_v63 }
0x1b00   : > { %36881 = vmatpush3.bf16.msra.mxu0 %v41111_v37  ;;  %v36913_v23 = vpack.c.bf16 %v41910_v15, %v41909_v29 }
0x1b01   : > { %36882 = vmatprep.subr.bf16.mxu0 %v38222_v0 }
0x1b04   : > { %36884 = vmatpush3.bf16.msra.mxu0 %v41119_v27 }
0x1b05   : > { %36885 = vmatprep.subr.bf16.mxu0 %v38222_v0 }
0x1b08   : > { %36887 = vmatpush3.bf16.msra.mxu0 %v41127_v46 }
0x1b09   : > { %36888 = vmatprep.subr.bf16.mxu0 %v38222_v0 }
0x1b0c   : > { %36890 = vmatpush3.bf16.msra.mxu0 %v41135_v43 }
0x1b0d   : > { %36891 = vmatprep.subr.bf16.mxu0 %v38222_v0 }
0x1b10   : > { %36893 = vmatpush3.bf16.msra.mxu0 %v41219_v56 }
0x1b11   : > { %36894 = vmatprep.subr.bf16.mxu0 %v38222_v0 }
0x1b14   : > { %36896 = vmatpush3.bf16.msra.mxu0 %v41225_v55 }
0x1b15   : > { %36921 = vmatprep.subr.bf16.mxu0 %v38222_v0 }
0x1bca   : > { %v29877_v60 = vpop.f32.mrb[62].mxu0 }
0x1bcb   : > { %v37172_v49 = vadd.f32 %v31921_v13, %v29877_v60  ;;  %v35690_v18 = vpop.f32.mrb[63].mxu0 }
0x1bcd   : > { %v29881_v59 = vmax.f32 %v37172_v49, 0.0 }
0x1bcf   : > { %v41328_v7 = vand.u32 4294901760, %v29881_v59 }
0x1bd1   : > { %v29970_v17 = vsub.f32 %v29881_v59, %v41328_v7 }
0x1bd3   : > { %v29971_v51 = vand.u32 4294901760, %v29970_v17 }
0x1bd5   : > { %v29972_v22 = vsub.f32 %v29970_v17, %v29971_v51  ;;  %35829 = vmatmul.mubr.f32.vlgmr.msra.gmra.mrb[64].mxu0 %v29971_v51 }
0x1bd6   : > { %36923 = vmatpush3.bf16.msra.mxu0 %v41091_v2  ;;  %35898 = vmatprep.mubr.msk.f32.mxu0 %vm38223_vm0, %v38224_v1  ;;  %v36898_v2 = vpack.c.bf16 %v29989_v39, %v29982_v8  ;;  %v30535_v8 = vld [vmem:[#allocation10 + $0x58] sm:$0xff] }
0x1bd7   : > { %36924 = vmatprep.subr.bf16.mxu0 %v38222_v0  ;;  %v29973_v14 = vand.u32 4294901760, %v29972_v22 }
0x1bd9   : > { %35724 = vmatmul.mubr.f32.vlgmr.msra.gmra.mrb[68].mxu1 %v29973_v14  ;;  %v30592_v14 = vand.u32 4294901760, %v30539_v41 }
0x1bda   : > { %36827 = vmatpush3.bf16.msra.mxu1 %v41249_v54  ;;  %36926 = vmatpush3.bf16.msra.mxu0 %v41103_v53  ;;  %v36901_v53 = vpack.c.bf16 %v30003_v12, %v29996_v11  ;;  %v30586_v12 = vand.u32 4294901760, %v30537_v24 }
0x1bdb   : > { %36828 = vmatprep.subr.bf16.mxu1 %v38222_v0  ;;  %36927 = vmatprep.subr.bf16.mxu0 %v38222_v0 }
0x1bdc   : > { %35758 = vmatprep.mubr.msk.f32.mxu1 %vm38223_vm0, %v38224_v1  ;;  %v41448_v58 = vsub.f32 %v30537_v24, %v30586_v12 }
0x1bde   : > { %36830 = vmatpush3.bf16.msra.mxu1 %v41259_v36  ;;  %36929 = vmatpush3.bf16.msra.mxu0 %v41111_v37  ;;  %v41911_v37 = vand.u32 4294901760, %v41239_v19  ;;  %v30580_v19 = vand.u32 4294901760, %v30535_v8  ;;  %v30538_v36 = vld [vmem:[#allocation10 + $0x70] sm:$0xff]  ;;  %v30691_v13 = vand.u32 4294901760, %v41448_v58 }
0x1bdf   : > { %36831 = vmatprep.subr.bf16.mxu1 %v38222_v0  ;;  %36930 = vmatprep.subr.bf16.mxu0 %v38222_v0 }
0x1be0   : > { %v36916_v30 = vpack.c.bf16 %v41912_v45, %v41911_v37  ;;  %v30692_v18 = vsub.f32 %v41448_v58, %v30691_v13 }
0x1be2   : > { %36833 = vmatpush3.bf16.msra.mxu1 %v41269_v40  ;;  %36932 = vmatpush3.bf16.msra.mxu0 %v41119_v27  ;;  %v41913_v27 = vand.u32 4294901760, %v41243_v16  ;;  %v30536_v16 = vld [vmem:[#allocation10 + $0x60] sm:$0xff]  ;;  %v41443_v40 = vsub.f32 %v30535_v8, %v30580_v19 }
0x1be3   : > { %36834 = vmatprep.subr.bf16.mxu1 %v38222_v0  ;;  %36933 = vmatprep.subr.bf16.mxu0 %v38222_v0  ;;  %v30583_v11 = vand.u32 4294901760, %v30536_v16 }
0x1be4   : > { %v36919_v48 = vpack.c.bf16 %v41914_v57, %v41913_v27 }
0x1be5   : > { %v41439_v44 = vpack.c.bf16 %v30586_v12, %v30583_v11  ;;  %v41446_v35 = vsub.f32 %v30536_v16, %v30583_v11 }
0x1be6   : > { %36836 = vmatpush3.bf16.msra.mxu1 %v36835_v33  ;;  %36935 = vmatpush3.bf16.msra.mxu0 %v41127_v46  ;;  %v30532_v46 = vld [vmem:[#allocation10 + $0x40] sm:$0xff]  ;;  %v30589_v33 = vand.u32 4294901760, %v30538_v36 }
0x1be7   : > { %36837 = vmatprep.subr.bf16.mxu1 %v38222_v0  ;;  %36936 = vmatprep.subr.bf16.mxu0 %v38222_v0  ;;  %v30571_v26 = vand.u32 4294901760, %v30532_v46 }
0x1be8   : > { %v41453_v51 = vpack.c.bf16 %v30592_v14, %v30589_v33 }
0x1be9   : > { %v41435_v54 = vsub.f32 %v30532_v46, %v30571_v26 }
0x1bea   : > { %36839 = vmatpush3.bf16.msra.mxu1 %v36838_v4  ;;  %36938 = vmatpush3.bf16.msra.mxu0 %v41135_v43  ;;  %v30574_v43 = vand.u32 4294901760, %v30533_v21 }
0x1beb   : > { %36840 = vmatprep.subr.bf16.mxu1 %v38222_v0  ;;  %36939 = vmatprep.subr.bf16.mxu0 %v38222_v0  ;;  %v30656_v22 = vand.u32 4294901760, %v41435_v54 }
0x1bec   : > { %v41437_v42 = vsub.f32 %v30533_v21, %v30574_v43 }
0x1bee   : > { %36842 = vmatpush3.bf16.msra.mxu1 %v36841_v50  ;;  %36941 = vmatpush3.bf16.msra.mxu0 %v41219_v56  ;;  %v41427_v56 = vpack.c.bf16 %v30574_v43, %v30571_v26  ;;  %v30663_v4 = vand.u32 4294901760, %v41437_v42  ;;  %v41457_v50 = vsub.f32 %v30539_v41, %v30592_v14  ;;  %v36970_v46 = vpack.c.bf16 %v41437_v42, %v41435_v54 }
0x1bef   : > { %36843 = vmatprep.subr.bf16.mxu1 %v38222_v0  ;;  %36942 = vmatprep.subr.bf16.mxu0 %v38222_v0  ;;  %v36976_v26 = vpack.c.bf16 %v41448_v58, %v41446_v35 }
0x1bf0   : > { %v30664_v59 = vsub.f32 %v41437_v42, %v30663_v4  ;;  %v41496_v12 = vpack.c.bf16 %v30663_v4, %v30656_v22  ;;  %v30557_v42 = vld [vmem:[#allocation12 + $0xf0] sm:$0xff] }
0x1bf2   : > { %36845 = vmatpush3.bf16.msra.mxu1 %v36844_v34  ;;  %36944 = vmatpush3.bf16.msra.mxu0 %v41225_v55  ;;  %v30534_v55 = vld [vmem:[#allocation10 + $0x50] sm:$0xff] }
0x1bf3   : > { %36846 = vmatprep.subr.bf16.mxu1 %v38222_v0  ;;  %37017 = vmatprep.subr.bf16.mxu0 %v38222_v0  ;;  %v30577_v39 = vand.u32 4294901760, %v30534_v55 }
0x1bf5   : > { %35899 = vmatmul.mubr.f32.vlgmr.msra.gmra.mrb[66].mxu0 %v41328_v7  ;;  %v41431_v63 = vpack.c.bf16 %v30580_v19, %v30577_v39  ;;  %v41441_v38 = vsub.f32 %v30534_v55, %v30577_v39  ;;  %v31922_v55 = vld [vmem:[%s41915_s18] ss:$0 sm:$0xff] }
0x1bf6   : > { %36848 = vmatpush3.bf16.msra.mxu1 %v36847_v10  ;;  %36047 = vmatprep.mubr.msk.f32.mxu0 %vm38223_vm0, %v38224_v1 }
0x1bf7   : > { %36849 = vmatprep.subr.bf16.mxu1 %v38222_v0  ;;  %v30670_v10 = vand.u32 4294901760, %v41441_v38  ;;  %v36973_v21 = vpack.c.bf16 %v41443_v40, %v41441_v38 }
0x1bf9   : > { %35759 = vmatmul.mubr.f32.vlgmr.msra.gmra.mrb[70].mxu1 %v41328_v7 }
0x1bfa   : > { %36851 = vmatpush3.bf16.msra.mxu1 %v36850_v9  ;;  %35793 = vmatprep.mubr.msk.f32.mxu1 %vm38223_vm0, %v38224_v1  ;;  %v30677_v9 = vand.u32 4294901760, %v41443_v40 }
0x1bfb   : > { %36852 = vmatprep.subr.bf16.mxu1 %v38222_v0 }
0x1bfe   : > { %36854 = vmatpush3.bf16.msra.mxu1 %v36853_v62  ;;  %v30665_v62 = vand.u32 4294901760, %v30664_v59 }
0x1bff   : > { %36855 = vmatprep.subr.bf16.mxu1 %v38222_v0 }
0x1c02   : > { %36857 = vmatpush3.bf16.msra.mxu1 %v36856_v5  ;;  %v30671_v5 = vsub.f32 %v41441_v38, %v30670_v10  ;;  %v31157_v38 = vand.u32 4294901760, %v30557_v42 }
0x1c03   : > { %36858 = vmatprep.subr.bf16.mxu1 %v38222_v0 }
0x1c06   : > { %36860 = vmatpush3.bf16.msra.mxu1 %v36859_v3  ;;  %v30678_v3 = vsub.f32 %v41443_v40, %v30677_v9 }
0x1c07   : > { %36861 = vmatprep.subr.bf16.mxu1 %v38222_v0 }
0x1c0a   : > { %36863 = vmatpush3.bf16.msra.mxu1 %v36862_v25 }
0x1c0b   : > { %36864 = vmatprep.subr.bf16.mxu1 %v38222_v0 }
0x1c0e   : > { %36866 = vmatpush3.bf16.msra.mxu1 %v36865_v31  ;;  %v30672_v31 = vand.u32 4294901760, %v30671_v5  ;;  %v30544_v5 = vld [vmem:[#allocation12 + $0x88] sm:$0xff] }
0x1c0f   : > { %36867 = vmatprep.subr.bf16.mxu1 %v38222_v0 }
0x1c12   : > { %36869 = vmatpush3.bf16.msra.mxu1 %v36868_v32  ;;  %v30679_v32 = vand.u32 4294901760, %v30678_v3 }
0x1c13   : > { %36870 = vmatprep.subr.bf16.mxu1 %v38222_v0 }
0x1c14   : > { %v41471_v60 = vpack.c.bf16 %v30679_v32, %v30672_v31  ;;  %v31118_v31 = vand.u32 4294901760, %v30544_v5  ;;  %v30545_v32 = vld [vmem:[#allocation12 + $0x90] sm:$0xff] }
0x1c16   : > { %36872 = vmatpush3.bf16.msra.mxu1 %v36871_v52  ;;  %v30684_v52 = vand.u32 4294901760, %v41446_v35  ;;  %v41508_v4 = vsub.f32 %v30544_v5, %v31118_v31  ;;  %v30554_v5 = vld [vmem:[#allocation12 + $0xd8] sm:$0xff] }
0x1c17   : > { %36897 = vmatprep.subr.bf16.mxu1 %v38222_v0 }
0x1c18   : > { %v30685_v49 = vsub.f32 %v41446_v35, %v30684_v52  ;;  %v41500_v41 = vpack.c.bf16 %v30691_v13, %v30684_v52 }
0x1c19   : > { %35794 = vmatmul.mubr.f32.vlgmr.msra.gmra.mrb[72].mxu1 %v29970_v17  ;;  %v41455_v17 = vsub.f32 %v30538_v36, %v30589_v33  ;;  %v41498_v36 = vpack.c.bf16 %v30677_v9, %v30670_v10  ;;  %v31121_v10 = vand.u32 4294901760, %v30545_v32 }
0x1c1a   : > { %36899 = vmatpush3.bf16.msra.mxu1 %v36898_v2  ;;  %35863 = vmatprep.mubr.msk.f32.mxu1 %vm38223_vm0, %v38224_v1  ;;  %v30686_v2 = vand.u32 4294901760, %v30685_v49  ;;  %v30546_v49 = vld [vmem:[#allocation12 + $0x98] sm:$0xff] }
0x1c1b   : > { %36900 = vmatprep.subr.bf16.mxu1 %v38222_v0  ;;  %v36979_v43 = vpack.c.bf16 %v41457_v50, %v41455_v17  ;;  %v31124_v9 = vand.u32 4294901760, %v30546_v49  ;;  %v41511_v52 = vsub.f32 %v30545_v32, %v31121_v10  ;;  %v31148_v32 = vand.u32 4294901760, %v30554_v5 }
0x1c1d   : > { %v41513_v13 = vsub.f32 %v30546_v49, %v31124_v9 }
0x1c1e   : > { %36902 = vmatpush3.bf16.msra.mxu1 %v36901_v53  ;;  %v30693_v53 = vand.u32 4294901760, %v30692_v18 }
0x1c1f   : > { %36903 = vmatprep.subr.bf16.mxu1 %v38222_v0 }
0x1c22   : > { %36905 = vmatpush3.bf16.msra.mxu1 %v36904_v28  ;;  %v30698_v28 = vand.u32 4294901760, %v41455_v17 }
0x1c23   : > { %36906 = vmatprep.subr.bf16.mxu1 %v38222_v0 }
0x1c24   : > { %v30699_v29 = vsub.f32 %v41455_v17, %v30698_v28 }
0x1c26   : > { %36908 = vmatpush3.bf16.msra.mxu1 %v36907_v20  ;;  %v30705_v20 = vand.u32 4294901760, %v41457_v50  ;;  %v30700_v45 = vand.u32 4294901760, %v30699_v29 }
0x1c27   : > { %36909 = vmatprep.subr.bf16.mxu1 %v38222_v0 }
0x1c28   : > { %v30706_v15 = vsub.f32 %v41457_v50, %v30705_v20  ;;  %v41502_v33 = vpack.c.bf16 %v30705_v20, %v30698_v28  ;;  %v41516_v28 = vpack.c.bf16 %v31124_v9, %v31121_v10  ;;  %v41545_v10 = vsub.f32 %v30554_v5, %v31148_v32 }
0x1c2a   : > { %36911 = vmatpush3.bf16.msra.mxu1 %v36910_v61  ;;  %v41477_v61 = vpack.c.bf16 %v30693_v53, %v30686_v2  ;;  %v30547_v2 = vld [vmem:[#allocation12 + $0xa0] sm:$0xff]  ;;  %v30548_v53 = vld [vmem:[#allocation12 + $0xa8] sm:$0xff] }
0x1c2b   : > { %36912 = vmatprep.subr.bf16.mxu1 %v38222_v0  ;;  %v31127_v20 = vand.u32 4294901760, %v30547_v2  ;;  %v31130_v29 = vand.u32 4294901760, %v30548_v53 }
0x1c2e   : > { %36914 = vmatpush3.bf16.msra.mxu1 %v36913_v23 }
0x1c2f   : > { %36915 = vmatprep.subr.bf16.mxu1 %v38222_v0 }
0x1c32   : > { %36917 = vmatpush3.bf16.msra.mxu1 %v36916_v30  ;;  %v30707_v30 = vand.u32 4294901760, %v30706_v15  ;;  %v41519_v15 = vsub.f32 %v30547_v2, %v31127_v20 }
0x1c33   : > { %36918 = vmatprep.subr.bf16.mxu1 %v38222_v0 }
0x1c34   : > { %v41481_v27 = vpack.c.bf16 %v30707_v30, %v30700_v45  ;;  %v30550_v45 = vld [vmem:[#allocation12 + $0xb8] sm:$0xff]  ;;  %v41524_v30 = vpack.c.bf16 %v31130_v29, %v31127_v20 }
0x1c36   : > { %36920 = vmatpush3.bf16.msra.mxu1 %v36919_v48 }
0x1c37   : > { %36945 = vmatprep.subr.bf16.mxu1 %v38222_v0 }
0x1c39   : > { %35864 = vmatmul.mubr.f32.vlgmr.msra.gmra.mrb[74].mxu1 %v41328_v7  ;;  %v30657_v7 = vsub.f32 %v41435_v54, %v30656_v22 }
0x1c3a   : > { %35917 = vmatprep.mubr.msk.f32.mxu1 %vm38223_vm0, %v38224_v1  ;;  %36947 = vmatpush3.bf16.msra.mxu1 %v41427_v56 }
0x1c3b   : > { %36948 = vmatprep.subr.bf16.mxu1 %v38222_v0  ;;  %v30658_v34 = vand.u32 4294901760, %v30657_v7 }
0x1c3d   : > { %v41467_v25 = vpack.c.bf16 %v30665_v62, %v30658_v34  ;;  %v30543_v62 = vld [vmem:[#allocation12 + $0x80] sm:$0xff] }
0x1c3e   : > { %36950 = vmatpush3.bf16.msra.mxu1 %v41431_v63  ;;  %v31115_v3 = vand.u32 4294901760, %v30543_v62 }
0x1c3f   : > { %36951 = vmatprep.subr.bf16.mxu1 %v38222_v0 }
0x1c40   : > { %v41504_v18 = vpack.c.bf16 %v31118_v31, %v31115_v3  ;;  %v41506_v22 = vsub.f32 %v30543_v62, %v31115_v3  ;;  %v30553_v62 = vld [vmem:[#allocation12 + $0xd0] sm:$0xff] }
0x1c41   : > { %v31145_v31 = vand.u32 4294901760, %v30553_v62 }
0x1c42   : > { %36953 = vmatpush3.bf16.msra.mxu1 %v41439_v44  ;;  %37019 = vmatpush3.bf16.msra.mxu0 %v41504_v18  ;;  %v31208_v58 = vand.u32 4294901760, %v41506_v22 }
0x1c43   : > { %36954 = vmatprep.subr.bf16.mxu1 %v38222_v0  ;;  %37020 = vmatprep.subr.bf16.mxu0 %v38222_v0  ;;  %v41543_v49 = vsub.f32 %v30553_v62, %v31145_v31  ;;  %v41548_v9 = vpack.c.bf16 %v31148_v32, %v31145_v31 }
0x1c44   : > { %v31209_v17 = vsub.f32 %v41506_v22, %v31208_v58 }
0x1c46   : > { %36956 = vmatpush3.bf16.msra.mxu1 %v41453_v51  ;;  %37022 = vmatpush3.bf16.msra.mxu0 %v41516_v28 }
0x1c47   : > { %36957 = vmatprep.subr.bf16.mxu1 %v38222_v0  ;;  %37023 = vmatprep.subr.bf16.mxu0 %v38222_v0 }
0x1c4a   : > { %37025 = vmatpush3.bf16.msra.mxu0 %v41524_v30 }
0x1c4b   : > { %37026 = vmatprep.subr.bf16.mxu0 %v38222_v0 }
0x1ca8   : > { %v30319_v23 = vpop.f32.mrb[64].mxu0 }
0x1ca9   : > { %v35830_v37 = vpop.f32.mrb[65].mxu0 }
0x1caa   : > { %v30549_v37 = vld [vmem:[#allocation12 + $0xb0] sm:$0xff] }
0x1cac   : > { %v29975_v57 = vpop.f32.mrb[68].mxu1 }
0x1cad   : > { %v35725_v48 = vpop.f32.mrb[69].mxu1  ;;  %v29976_v19 = vadd.f32 %v31922_v55, %v29975_v57  ;;  %v31133_v57 = vand.u32 4294901760, %v30549_v37 }
0x1cae   : > { %v31136_v48 = vand.u32 4294901760, %v30550_v45 }
0x1caf   : > { %v41527_v55 = vsub.f32 %v30549_v37, %v31133_v57 }
0x1cc8   : > { %v41494_v8 = vpop.f32.mrb[66].mxu0 }
0x1cc9   : > { %v35900_v39 = vpop.f32.mrb[67].mxu0 }
0x1cca   : > { %v41529_v39 = vsub.f32 %v30550_v45, %v31136_v48 }
0x1ccc   : > { %v30126_v16 = vpop.f32.mrb[70].mxu1 }
0x1ccd   : > { %v30127_v24 = vadd.f32 %v30126_v16, %v29976_v19  ;;  %v35760_v11 = vpop.f32.mrb[71].mxu1  ;;  %v30551_v19 = vld [vmem:[#allocation12 + $0xc0] sm:$0xff]  ;;  %v30552_v16 = vld [vmem:[#allocation12 + $0xc8] sm:$0xff] }
0x1cce   : > { %v31139_v11 = vand.u32 4294901760, %v30551_v19 }
0x1cec   : > { %v30230_v14 = vpop.f32.mrb[72].mxu1 }
0x1ced   : > { %v30231_v7 = vadd.f32 %v30230_v14, %v30127_v24  ;;  %v35795_v59 = vpop.f32.mrb[73].mxu1  ;;  %v41532_v24 = vpack.c.bf16 %v31136_v48, %v31133_v57  ;;  %v31142_v14 = vand.u32 4294901760, %v30552_v16 }
0x1cef   : > { %v30320_v34 = vadd.f32 %v30319_v23, %v30231_v7  ;;  %v41521_v23 = vsub.f32 %v30548_v53, %v31130_v29  ;;  %37028 = vmatpush3.bf16.msra.mxu0 %v41532_v24  ;;  %v41535_v7 = vsub.f32 %v30551_v19, %v31139_v11  ;;  %v41537_v59 = vsub.f32 %v30552_v16, %v31142_v14 }
0x1cf0   : > { %37029 = vmatprep.subr.bf16.mxu0 %v38222_v0  ;;  %v41540_v3 = vpack.c.bf16 %v31142_v14, %v31139_v11 }
0x1cf1   : > { %v31243_v62 = vand.u32 4294901760, %v41521_v23 }
0x1cf3   : > { %37031 = vmatpush3.bf16.msra.mxu0 %v41540_v3  ;;  %v31244_v32 = vsub.f32 %v41521_v23, %v31243_v62 }
0x1cf4   : > { %37032 = vmatprep.subr.bf16.mxu0 %v38222_v0 }
0x1cf7   : > { %37034 = vmatpush3.bf16.msra.mxu0 %v41548_v9 }
0x1cf8   : > { %37035 = vmatprep.subr.bf16.mxu0 %v38222_v0 }
0x1d0c   : > { %v30438_v2 = vpop.f32.mrb[74].mxu1 }
0x1d0d   : > { %v30439_v53 = vadd.f32 %v30438_v2, %v30320_v34  ;;  %v35865_v20 = vpop.f32.mrb[75].mxu1  ;;  %v31236_v34 = vand.u32 4294901760, %v41519_v15 }
0x1d0e   : > { %v31250_v20 = vand.u32 4294901760, %v41527_v55 }
0x1d0f   : > { %v30526_v29 = vadd.f32 %v41494_v8, %v30439_v53  ;;  %v31237_v31 = vsub.f32 %v41519_v15, %v31236_v34  ;;  %v31245_v53 = vand.u32 4294901760, %v31244_v32 }
0x1d11   : > { %v30529_v37 = vadd.f32 %v30526_v29, %v41143_v47  ;;  %v30556_v47 = vld [vmem:[#allocation12 + $0xe8] sm:$0xff]  ;;  %v31238_v2 = vand.u32 4294901760, %v31237_v31  ;;  %v31257_v29 = vand.u32 4294901760, %v41529_v39 }
0x1d13   : > { %v41555_v45 = vadd.f32 %v41031_v6, %v30529_v37  ;;  %v30555_v6 = vld [vmem:[#allocation12 + $0xe0] sm:$0xff]  ;;  %v41681_v37 = vpack.c.bf16 %v31245_v53, %v31238_v2 }
0x1d15   : > { %v30568_v57 = vsel %vm608_vm1, %v41555_v45, 0 }
0x1d16   : > { %v30643_v48 = vand.u32 4294901760, %v30568_v57 }
0x1d18   : > { %v30644_v19 = vsub.f32 %v30568_v57, %v30643_v48  ;;  %v31251_v57 = vsub.f32 %v41527_v55, %v31250_v20 }
0x1d1a   : > { %v30645_v16 = vand.u32 4294901760, %v30644_v19 }
0x1d1c   : > { %v30646_v11 = vsub.f32 %v30644_v19, %v30645_v16 }
0x1d1e   : > { %v30647_v14 = vand.u32 4294901760, %v30646_v11  ;;  %v31264_v11 = vand.u32 4294901760, %v41535_v7 }
0x1d20   : > { %35918 = vmatmul.mubr.f32.vlgmr.msra.gmra.mrb[76].mxu1 %v30647_v14  ;;  %v31271_v14 = vand.u32 4294901760, %v41537_v59 }
0x1d21   : > { %36959 = vmatpush3.bf16.msra.mxu1 %v41467_v25  ;;  %35936 = vmatprep.mubr.msk.f32.mxu1 %vm38223_vm0, %v38224_v1 }
0x1d22   : > { %36960 = vmatprep.subr.bf16.mxu1 %v38222_v0 }
0x1d25   : > { %36962 = vmatpush3.bf16.msra.mxu1 %v41471_v60 }
0x1d26   : > { %36963 = vmatprep.subr.bf16.mxu1 %v38222_v0 }
0x1d29   : > { %36965 = vmatpush3.bf16.msra.mxu1 %v41477_v61  ;;  %v41655_v61 = vsub.f32 %v30557_v42, %v31157_v38 }
0x1d2a   : > { %36966 = vmatprep.subr.bf16.mxu1 %v38222_v0 }
0x1d2b   : > { %v41880_v53 = vand.u32 4294901760, %v41655_v61 }
0x1d2d   : > { %36968 = vmatpush3.bf16.msra.mxu1 %v41481_v27 }
0x1d2e   : > { %36969 = vmatprep.subr.bf16.mxu1 %v38222_v0 }
0x1d30   : > { %35937 = vmatmul.mubr.f32.vlgmr.msra.gmra.mrb[76].mxu1 %v30643_v48 }
0x1d31   : > { %36971 = vmatpush3.bf16.msra.mxu1 %v36970_v46  ;;  %35955 = vmatprep.mubr.msk.f32.mxu1 %vm38223_vm0, %v38224_v1  ;;  %v31210_v46 = vand.u32 4294901760, %v31209_v17 }
0x1d32   : > { %36972 = vmatprep.subr.bf16.mxu1 %v38222_v0 }
0x1d35   : > { %36974 = vmatpush3.bf16.msra.mxu1 %v36973_v21 }
0x1d36   : > { %36975 = vmatprep.subr.bf16.mxu1 %v38222_v0 }
0x1d39   : > { %36977 = vmatpush3.bf16.msra.mxu1 %v36976_v26  ;;  %v31222_v26 = vand.u32 4294901760, %v41511_v52 }
0x1d3a   : > { %36978 = vmatprep.subr.bf16.mxu1 %v38222_v0 }
0x1d3d   : > { %36980 = vmatpush3.bf16.msra.mxu1 %v36979_v43  ;;  %v31229_v43 = vand.u32 4294901760, %v41513_v13 }
0x1d3e   : > { %36981 = vmatprep.subr.bf16.mxu1 %v38222_v0 }
0x1d40   : > { %35956 = vmatmul.mubr.f32.vlgmr.msra.gmra.mrb[76].mxu1 %v30644_v19  ;;  %v31252_v19 = vand.u32 4294901760, %v31251_v57 }
0x1d41   : > { %36983 = vmatpush3.bf16.msra.mxu1 %v41427_v56  ;;  %35974 = vmatprep.mubr.msk.f32.mxu1 %vm38223_vm0, %v38224_v1 }
0x1d42   : > { %36984 = vmatprep.subr.bf16.mxu1 %v38222_v0 }
0x1d45   : > { %36986 = vmatpush3.bf16.msra.mxu1 %v41431_v63 }
0x1d46   : > { %36987 = vmatprep.subr.bf16.mxu1 %v38222_v0 }
0x1d49   : > { %36989 = vmatpush3.bf16.msra.mxu1 %v41439_v44 }
0x1d4a   : > { %36990 = vmatprep.subr.bf16.mxu1 %v38222_v0 }
0x1d4d   : > { %36992 = vmatpush3.bf16.msra.mxu1 %v41453_v51 }
0x1d4e   : > { %36993 = vmatprep.subr.bf16.mxu1 %v38222_v0 }
0x1d50   : > { %35975 = vmatmul.mubr.f32.vlgmr.msra.gmra.mrb[76].mxu1 %v30645_v16 }
0x1d51   : > { %36995 = vmatpush3.bf16.msra.mxu1 %v41496_v12  ;;  %35993 = vmatprep.mubr.msk.f32.mxu1 %vm38223_vm0, %v38224_v1  ;;  %v31223_v12 = vsub.f32 %v41511_v52, %v31222_v26 }
0x1d52   : > { %36996 = vmatprep.subr.bf16.mxu1 %v38222_v0 }
0x1d55   : > { %36998 = vmatpush3.bf16.msra.mxu1 %v41498_v36  ;;  %v31230_v36 = vsub.f32 %v41513_v13, %v31229_v43 }
0x1d56   : > { %36999 = vmatprep.subr.bf16.mxu1 %v38222_v0 }
0x1d59   : > { %37001 = vmatpush3.bf16.msra.mxu1 %v41500_v41  ;;  %v31224_v41 = vand.u32 4294901760, %v31223_v12 }
0x1d5a   : > { %37002 = vmatprep.subr.bf16.mxu1 %v38222_v0 }
0x1d5d   : > { %37004 = vmatpush3.bf16.msra.mxu1 %v41502_v33  ;;  %v31231_v33 = vand.u32 4294901760, %v31230_v36 }
0x1d5e   : > { %37005 = vmatprep.subr.bf16.mxu1 %v38222_v0 }
0x1d5f   : > { %v41671_v5 = vpack.c.bf16 %v31231_v33, %v31224_v41 }
0x1d60   : > { %35994 = vmatmul.mubr.f32.vlgmr.msra.gmra.mrb[76].mxu1 %v30643_v48 }
0x1d61   : > { %37007 = vmatpush3.bf16.msra.mxu1 %v41427_v56  ;;  %36012 = vmatprep.mubr.msk.f32.mxu1 %vm38223_vm0, %v38224_v1  ;;  %v31151_v56 = vand.u32 4294901760, %v30555_v6 }
0x1d62   : > { %37008 = vmatprep.subr.bf16.mxu1 %v38222_v0 }
0x1d63   : > { %v41651_v25 = vsub.f32 %v30555_v6, %v31151_v56 }
0x1d65   : > { %37010 = vmatpush3.bf16.msra.mxu1 %v41431_v63  ;;  %v31154_v63 = vand.u32 4294901760, %v30556_v47  ;;  %v41882_v12 = vand.u32 4294901760, %v41651_v25 }
0x1d66   : > { %37011 = vmatprep.subr.bf16.mxu1 %v38222_v0 }
0x1d67   : > { %v41631_v54 = vpack.c.bf16 %v31154_v63, %v31151_v56  ;;  %v41653_v60 = vsub.f32 %v30556_v47, %v31154_v63  ;;  %v31265_v47 = vsub.f32 %v41535_v7, %v31264_v11  ;;  %v31272_v56 = vsub.f32 %v41537_v59, %v31271_v14 }
0x1d68   : > { %v31293_v33 = vsub.f32 %v41651_v25, %v41882_v12 }
0x1d69   : > { %37013 = vmatpush3.bf16.msra.mxu1 %v41439_v44  ;;  %v30558_v44 = vld [vmem:[#allocation12 + $0xf8] sm:$0xff]  ;;  %37037 = vmatpush3.bf16.msra.mxu0 %v41631_v54  ;;  %v31266_v63 = vand.u32 4294901760, %v31265_v47  ;;  %v31273_v42 = vand.u32 4294901760, %v31272_v56  ;;  %v41881_v36 = vand.u32 4294901760, %v41653_v60 }
0x1d6a   : > { %37014 = vmatprep.subr.bf16.mxu1 %v38222_v0  ;;  %v31160_v40 = vand.u32 4294901760, %v30558_v44  ;;  %37038 = vmatprep.subr.bf16.mxu0 %v38222_v0  ;;  %v31294_v32 = vand.u32 4294901760, %v31293_v33  ;;  %v37081_v33 = vpack.c.bf16 %v41545_v10, %v41543_v49 }
0x1d6b   : > { %v31300_v31 = vsub.f32 %v41653_v60, %v41881_v36 }
0x1d6c   : > { %v41637_v35 = vpack.c.bf16 %v31160_v40, %v31157_v38  ;;  %v41657_v27 = vsub.f32 %v30558_v44, %v31160_v40  ;;  %v31278_v44 = vand.u32 4294901760, %v41543_v49  ;;  %v41883_v38 = vand.u32 4294901760, %v41545_v10 }
0x1d6d   : > { %37016 = vmatpush3.bf16.msra.mxu1 %v41453_v51  ;;  %v31215_v51 = vand.u32 4294901760, %v41508_v4  ;;  %v37054_v40 = vpack.c.bf16 %v31273_v42, %v31266_v63  ;;  %v31301_v2 = vand.u32 4294901760, %v31300_v31  ;;  %v37066_v42 = vpack.c.bf16 %v41508_v4, %v41506_v22 }
0x1d6e   : > { %37089 = vmatprep.subr.bf16.mxu1 %v38222_v0  ;;  %37040 = vmatpush3.bf16.msra.mxu0 %v41637_v35  ;;  %v31279_v17 = vsub.f32 %v41543_v49, %v31278_v44  ;;  %v41879_v57 = vand.u32 4294901760, %v41657_v27  ;;  %v37084_v31 = vpack.c.bf16 %v41653_v60, %v41651_v25  ;;  %v37120_v22 = vpack.c.bf16 %v31243_v62, %v31236_v34 }
0x1d6f   : > { %37041 = vmatprep.subr.bf16.mxu0 %v38222_v0  ;;  %v31216_v50 = vsub.f32 %v41508_v4, %v31215_v51  ;;  %v37123_v4 = vpack.c.bf16 %v31257_v29, %v31250_v20 }
0x1d70   : > { %36013 = vmatmul.mubr.f32.vlgmr.msra.gmra.mrb[76].mxu1 %v30643_v48  ;;  %v31258_v48 = vsub.f32 %v41529_v39, %v31257_v29 }
0x1d71   : > { %37091 = vmatpush3.bf16.msra.mxu1 %v41504_v18  ;;  %36152 = vmatprep.mubr.msk.f32.mxu1 %vm38223_vm0, %v38224_v1  ;;  %v31217_v21 = vand.u32 4294901760, %v31216_v50  ;;  %v31286_v50 = vsub.f32 %v41545_v10, %v41883_v38 }
0x1d72   : > { %37092 = vmatprep.subr.bf16.mxu1 %v38222_v0  ;;  %v31259_v16 = vand.u32 4294901760, %v31258_v48  ;;  %v37060_v48 = vpack.c.bf16 %v31301_v2, %v31294_v32  ;;  %v37087_v32 = vpack.c.bf16 %v41657_v27, %v41655_v61  ;;  %v31925_v2 = vld [vmem:[%s41908_s22 + $0x1] ss:$0 sm:$0xff] }
0x1d73   : > { %v41661_v8 = vpack.c.bf16 %v31217_v21, %v31210_v46  ;;  %v31280_v46 = vand.u32 4294901760, %v31279_v17  ;;  %v31287_v21 = vand.u32 4294901760, %v31286_v50  ;;  %v37069_v17 = vpack.c.bf16 %v41513_v13, %v41511_v52 }
0x1d74   : > { %v37051_v6 = vpack.c.bf16 %v31259_v16, %v31252_v19  ;;  %v31307_v19 = vsub.f32 %v41655_v61, %v41880_v53  ;;  %v31314_v16 = vsub.f32 %v41657_v27, %v41879_v57  ;;  %v37072_v50 = vpack.c.bf16 %v41521_v23, %v41519_v15 }
0x1d75   : > { %37094 = vmatpush3.bf16.msra.mxu1 %v41516_v28  ;;  %v37057_v41 = vpack.c.bf16 %v31287_v21, %v31280_v46  ;;  %v37075_v46 = vpack.c.bf16 %v41529_v39, %v41527_v55  ;;  %v37078_v21 = vpack.c.bf16 %v41537_v59, %v41535_v7  ;;  %v41917_v52 = vand.u32 4294901760, %v41545_v10  ;;  %v31926_v10 = vld [vmem:[%s41916_s24 + $0x1] ss:$0 sm:$0xff] }
0x1d76   : > { %37095 = vmatprep.subr.bf16.mxu1 %v38222_v0  ;;  %v31308_v47 = vand.u32 4294901760, %v31307_v19  ;;  %v31315_v56 = vand.u32 4294901760, %v31314_v16  ;;  %v41918_v15 = vand.u32 4294901760, %v41651_v25  ;;  %v41919_v23 = vand.u32 4294901760, %v41653_v60 }
0x1d77   : > { %v37129_v13 = vpack.c.bf16 %v41917_v52, %v31278_v44  ;;  %v41920_v55 = vand.u32 4294901760, %v41655_v61  ;;  %v41921_v39 = vand.u32 4294901760, %v41657_v27 }
0x1d78   : > { %v37063_v63 = vpack.c.bf16 %v31315_v56, %v31308_v47 }
0x1d79   : > { %37097 = vmatpush3.bf16.msra.mxu1 %v41524_v30 }
0x1d7a   : > { %37098 = vmatprep.subr.bf16.mxu1 %v38222_v0 }
0x1d7d   : > { %37100 = vmatpush3.bf16.msra.mxu1 %v41532_v24 }
0x1d7e   : > { %37101 = vmatprep.subr.bf16.mxu1 %v38222_v0 }
0x1d81   : > { %37103 = vmatpush3.bf16.msra.mxu1 %v41540_v3 }
0x1d82   : > { %37104 = vmatprep.subr.bf16.mxu1 %v38222_v0 }
0x1d85   : > { %37106 = vmatpush3.bf16.msra.mxu1 %v41548_v9 }
0x1d86   : > { %37107 = vmatprep.subr.bf16.mxu1 %v38222_v0 }
0x1d89   : > { %37109 = vmatpush3.bf16.msra.mxu1 %v41631_v54 }
0x1d8a   : > { %37110 = vmatprep.subr.bf16.mxu1 %v38222_v0 }
0x1d8d   : > { %37112 = vmatpush3.bf16.msra.mxu1 %v41637_v35 }
0x1d8e   : > { %37137 = vmatprep.subr.bf16.mxu1 %v38222_v0 }
0x1e43   : > { %v31103_v19 = vpop.f32.mrb[76].mxu1 }
0x1e44   : > { %v37173_v16 = vadd.f32 %v31925_v2, %v31103_v19  ;;  %v36014_v47 = vpop.f32.mrb[77].mxu1 }
0x1e46   : > { %v31107_v56 = vmax.f32 %v37173_v16, 0.0 }
0x1e48   : > { %v41740_v57 = vand.u32 4294901760, %v31107_v56 }
0x1e4a   : > { %v31196_v53 = vsub.f32 %v31107_v56, %v41740_v57 }
0x1e4c   : > { %v31197_v36 = vand.u32 4294901760, %v31196_v53 }
0x1e4e   : > { %v31198_v12 = vsub.f32 %v31196_v53, %v31197_v36  ;;  %36153 = vmatmul.mubr.f32.vlgmr.msra.gmra.mrb[78].mxu1 %v31197_v36 }
0x1e4f   : > { %37139 = vmatpush3.bf16.msra.mxu1 %v41504_v18  ;;  %36222 = vmatprep.mubr.msk.f32.mxu1 %vm38223_vm0, %v38224_v1  ;;  %v37114_v18 = vpack.c.bf16 %v31215_v51, %v31208_v58 }
0x1e50   : > { %37140 = vmatprep.subr.bf16.mxu1 %v38222_v0  ;;  %v31199_v38 = vand.u32 4294901760, %v31198_v12 }
0x1e52   : > { %36048 = vmatmul.mubr.f32.vlgmr.msra.gmra.mrb[68].mxu0 %v31199_v38 }
0x1e53   : > { %37043 = vmatpush3.bf16.msra.mxu0 %v41661_v8  ;;  %37142 = vmatpush3.bf16.msra.mxu1 %v41516_v28  ;;  %v37117_v28 = vpack.c.bf16 %v31229_v43, %v31222_v26 }
0x1e54   : > { %37044 = vmatprep.subr.bf16.mxu0 %v38222_v0  ;;  %37143 = vmatprep.subr.bf16.mxu1 %v38222_v0 }
0x1e55   : > { %36082 = vmatprep.mubr.msk.f32.mxu0 %vm38223_vm0, %v38224_v1 }
0x1e57   : > { %37046 = vmatpush3.bf16.msra.mxu0 %v41671_v5  ;;  %37145 = vmatpush3.bf16.msra.mxu1 %v41524_v30  ;;  %v37132_v30 = vpack.c.bf16 %v41919_v23, %v41918_v15 }
0x1e58   : > { %37047 = vmatprep.subr.bf16.mxu0 %v38222_v0  ;;  %37146 = vmatprep.subr.bf16.mxu1 %v38222_v0 }
0x1e5b   : > { %37049 = vmatpush3.bf16.msra.mxu0 %v41681_v37  ;;  %37148 = vmatpush3.bf16.msra.mxu1 %v41532_v24  ;;  %v37135_v24 = vpack.c.bf16 %v41921_v39, %v41920_v55 }
0x1e5c   : > { %37050 = vmatprep.subr.bf16.mxu0 %v38222_v0  ;;  %37149 = vmatprep.subr.bf16.mxu1 %v38222_v0 }
0x1e5f   : > { %37052 = vmatpush3.bf16.msra.mxu0 %v37051_v6  ;;  %37151 = vmatpush3.bf16.msra.mxu1 %v41540_v3 }
0x1e60   : > { %37053 = vmatprep.subr.bf16.mxu0 %v38222_v0  ;;  %37152 = vmatprep.subr.bf16.mxu1 %v38222_v0 }
0x1e63   : > { %37055 = vmatpush3.bf16.msra.mxu0 %v37054_v40  ;;  %37154 = vmatpush3.bf16.msra.mxu1 %v41548_v9 }
0x1e64   : > { %37056 = vmatprep.subr.bf16.mxu0 %v38222_v0  ;;  %37155 = vmatprep.subr.bf16.mxu1 %v38222_v0 }
0x1e67   : > { %37058 = vmatpush3.bf16.msra.mxu0 %v37057_v41  ;;  %37157 = vmatpush3.bf16.msra.mxu1 %v41631_v54 }
0x1e68   : > { %37059 = vmatprep.subr.bf16.mxu0 %v38222_v0  ;;  %37158 = vmatprep.subr.bf16.mxu1 %v38222_v0 }
0x1e6b   : > { %37061 = vmatpush3.bf16.msra.mxu0 %v37060_v48  ;;  %37160 = vmatpush3.bf16.msra.mxu1 %v41637_v35 }
0x1e6c   : > { %37062 = vmatprep.subr.bf16.mxu0 %v38222_v0 }
0x1e6e   : > { %36223 = vmatmul.mubr.f32.vlgmr.msra.gmra.mrb[80].mxu1 %v41740_v57 }
0x1e6f   : > { %37064 = vmatpush3.bf16.msra.mxu0 %v37063_v63 }
0x1e70   : > { %37065 = vmatprep.subr.bf16.mxu0 %v38222_v0 }
0x1e72   : > { %36083 = vmatmul.mubr.f32.vlgmr.msra.gmra.mrb[70].mxu0 %v41740_v57 }
0x1e73   : > { %37067 = vmatpush3.bf16.msra.mxu0 %v37066_v42  ;;  %36117 = vmatprep.mubr.msk.f32.mxu0 %vm38223_vm0, %v38224_v1 }
0x1e74   : > { %37068 = vmatprep.subr.bf16.mxu0 %v38222_v0 }
0x1e77   : > { %37070 = vmatpush3.bf16.msra.mxu0 %v37069_v17 }
0x1e78   : > { %37071 = vmatprep.subr.bf16.mxu0 %v38222_v0 }
0x1e7b   : > { %37073 = vmatpush3.bf16.msra.mxu0 %v37072_v50 }
0x1e7c   : > { %37074 = vmatprep.subr.bf16.mxu0 %v38222_v0 }
0x1e7f   : > { %37076 = vmatpush3.bf16.msra.mxu0 %v37075_v46 }
0x1e80   : > { %37077 = vmatprep.subr.bf16.mxu0 %v38222_v0 }
0x1e83   : > { %37079 = vmatpush3.bf16.msra.mxu0 %v37078_v21 }
0x1e84   : > { %37080 = vmatprep.subr.bf16.mxu0 %v38222_v0 }
0x1e87   : > { %37082 = vmatpush3.bf16.msra.mxu0 %v37081_v33 }
0x1e88   : > { %37083 = vmatprep.subr.bf16.mxu0 %v38222_v0 }
0x1e8b   : > { %37085 = vmatpush3.bf16.msra.mxu0 %v37084_v31 }
0x1e8c   : > { %37086 = vmatprep.subr.bf16.mxu0 %v38222_v0 }
0x1e8f   : > { %37088 = vmatpush3.bf16.msra.mxu0 %v37087_v32 }
0x1e90   : > { %37113 = vmatprep.subr.bf16.mxu0 %v38222_v0 }
0x1e92   : > { %36118 = vmatmul.mubr.f32.vlgmr.msra.gmra.mrb[72].mxu0 %v31196_v53 }
0x1e93   : > { %37115 = vmatpush3.bf16.msra.mxu0 %v37114_v18  ;;  %36187 = vmatprep.mubr.msk.f32.mxu0 %vm38223_vm0, %v38224_v1  ;;  %v37126_v1 = vpack.c.bf16 %v31271_v14, %v31264_v11 }
0x1e94   : > { %37116 = vmatprep.subr.bf16.mxu0 %v38222_v0 }
0x1e97   : > { %37118 = vmatpush3.bf16.msra.mxu0 %v37117_v28 }
0x1e98   : > { %37119 = vmatprep.subr.bf16.mxu0 %v38222_v0 }
0x1e9b   : > { %37121 = vmatpush3.bf16.msra.mxu0 %v37120_v22 }
0x1e9c   : > { %37122 = vmatprep.subr.bf16.mxu0 %v38222_v0 }
0x1e9f   : > { %37124 = vmatpush3.bf16.msra.mxu0 %v37123_v4 }
0x1ea0   : > { %37125 = vmatprep.subr.bf16.mxu0 %v38222_v0 }
0x1ea3   : > { %37127 = vmatpush3.bf16.msra.mxu0 %v37126_v1 }
0x1ea4   : > { %37128 = vmatprep.subr.bf16.mxu0 %v38222_v0 }
0x1ea7   : > { %37130 = vmatpush3.bf16.msra.mxu0 %v37129_v13 }
0x1ea8   : > { %37131 = vmatprep.subr.bf16.mxu0 %v38222_v0 }
0x1eab   : > { %37133 = vmatpush3.bf16.msra.mxu0 %v37132_v30 }
0x1eac   : > { %37134 = vmatprep.subr.bf16.mxu0 %v38222_v0 }
0x1eaf   : > { %37136 = vmatpush3.bf16.msra.mxu0 %v37135_v24 }
0x1eb2   : > { %36188 = vmatmul.mubr.f32.vlgmr.msra.gmra.mrb[74].mxu0 %v41740_v57 }
0x1f21   : > { %v31545_v7 = vpop.f32.mrb[78].mxu1 }
0x1f22   : > { %v36154_v59 = vpop.f32.mrb[79].mxu1 }
0x1f25   : > { %v31201_v3 = vpop.f32.mrb[68].mxu0 }
0x1f26   : > { %v36049_v49 = vpop.f32.mrb[69].mxu0  ;;  %v31202_v35 = vadd.f32 %v31926_v10, %v31201_v3 }
0x1f41   : > { %v31751_v9 = vpop.f32.mrb[80].mxu1 }
0x1f42   : > { %v36224_v54 = vpop.f32.mrb[81].mxu1 }
0x1f45   : > { %v31352_v58 = vpop.f32.mrb[70].mxu0 }
0x1f46   : > { %v31353_v51 = vadd.f32 %v31352_v58, %v31202_v35  ;;  %v36084_v25 = vpop.f32.mrb[71].mxu0 }
0x1f65   : > { %v31456_v60 = vpop.f32.mrb[72].mxu0 }
0x1f66   : > { %v31457_v0 = vadd.f32 %v31456_v60, %v31353_v51  ;;  %v36119_v61 = vpop.f32.mrb[73].mxu0 }
0x1f68   : > { %v31546_v27 = vadd.f32 %v31545_v7, %v31457_v0 }
0x1f85   : > { %v31664_v26 = vpop.f32.mrb[74].mxu0 }
0x1f86   : > { %v31665_v43 = vadd.f32 %v31664_v26, %v31546_v27  ;;  %v36189_v8 = vpop.f32.mrb[75].mxu0 }
0x1f88   : > { %v31752_v34 = vadd.f32 %v31751_v9, %v31665_v43 }
0x1f8a   : > { %v31755_v62 = vadd.f32 %v31752_v34, %v41555_v45 }
0x1f8c   : > { %31756 = vst.msk [vmem:[%s591_s16] sm:$0xff] %vm608_vm1, %v31755_v62 }
0x1f8d PF: > { %s41924_s25 = sld [smem:[#allocation17_spill]] }
0x1f93   : > { %s29_s18 = sadd.s32 1, %s41924_s25  }
0x1f94   : > { %p26_p9 = scmp.ge.s32.totalorder %s29_s18, 4  }
0x1f96   :  { %28 = sbr.rel (!%p26_p9) target bundleno = 9 (0x9), region = 159 }
0x1f9d   :  { %31776 = vsyncpa [#allocation3], 1 }
0x1f9e   :  { %31778 = vsyncpa [#allocation3 + $0x1], 1 }
0x1f9f   :  { %31779 = vsyncpa [#allocation5], 1 }
0x1fa0   :  { %31780 = vsyncpa [#allocation8], 1 }
0x1fa1   :  { %31781 = vsyncpa [#allocation11], 1 }

</bundles_post_ra>
